<compile_context>
chip_gen: v6e
topology: v6e:2x2x1
jax: 0.10.0
libtpu: 0.0.40
codegen_flags: <defaults>
</compile_context>

<pallas_src>
import jax
import jax.numpy as jnp
from jax.experimental import pallas as pl
from jax.experimental.pallas import tpu as pltpu


def _round_up(x, m):
    return (x + m - 1) // m * m


# ----------------------------- Pallas kernel ------------------------------- #

def two_tower_kernel(
    hist_e_ref,   # (bB, Lh, E)  bf16  book_emb(hist_ids) block
    wish_e_ref,   # (bB, Lw, E)  bf16  book_emb(wish_ids) block
    tag_e_ref,    # (bB, Lt, E)  bf16  tag_emb(tags) block
    b_e_ref,      # (bB, E)      bf16  book_emb(bid)
    a_e_ref,      # (bB, E)      bf16  auth_emb(auth)
    l_e_ref,      # (bB, E)      bf16  lang_emb(lang)
    dense_ref,    # (bB, 3)      f32   dense features
    dW1_ref,      # (3, DH)      f32   dense_mlp layer 0 weight (transposed), resident
    db1_ref,      # (1, DH)      f32
    dW2_ref,      # (DH, E)      f32
    db2_ref,      # (1, E)       f32
    uW1_ref,      # (E, H)       f32   user_mlp layer 0 weight (transposed), resident
    ub1_ref,      # (1, H)       f32
    uW2_ref,      # (H, E)       f32
    ub2_ref,      # (1, E)       f32
    out_ref,      # (1, bB)      f32   lane-dense scores for this batch block
):
    f32 = jnp.float32
    inv_lh = 1.0 / hist_e_ref.shape[1]
    inv_lw = 1.0 / wish_e_ref.shape[1]
    inv_lt = 1.0 / tag_e_ref.shape[1]

    # ---- user tower: means folded into sums * scale, accumulate in f32 ----
    u0 = (jnp.sum(hist_e_ref[...].astype(f32), axis=1) * inv_lh
          + jnp.sum(wish_e_ref[...].astype(f32), axis=1) * inv_lw)      # (bB, E)

    h1 = jnp.dot(u0, uW1_ref[...], preferred_element_type=f32) + ub1_ref[...]
    h1 = jnp.maximum(h1, 0.0)                                           # ReLU
    u_emb = jnp.dot(h1, uW2_ref[...], preferred_element_type=f32) + ub2_ref[...]

    # ---- item tower ----
    t_e = jnp.sum(tag_e_ref[...].astype(f32), axis=1) * inv_lt          # (bB, E)

    # dense_mlp layer 0: K=3 matmul replaced by three rank-1 VPU FMAs
    d = dense_ref[...]                                                  # (bB, 3)
    dW1 = dW1_ref[...]                                                  # (3, DH)
    d1 = (d[:, 0:1] * dW1[0:1, :]
          + d[:, 1:2] * dW1[1:2, :]
          + d[:, 2:3] * dW1[2:3, :]
          + db1_ref[...])                                               # (bB, DH)
    d1 = jnp.maximum(d1, 0.0)                                           # ReLU
    d_e = jnp.dot(d1, dW2_ref[...], preferred_element_type=f32) + db2_ref[...]

    i_emb = (b_e_ref[...].astype(f32) + a_e_ref[...].astype(f32)
             + l_e_ref[...].astype(f32) + t_e + d_e)                    # (bB, E)

    # ---- scoring: (u_emb * i_emb).sum(-1), stored lane-dense on the B axis ----
    out_ref[0, :] = jnp.sum(u_emb * i_emb, axis=1)


# ------------------------------ JAX wrapper -------------------------------- #

def two_tower_forward(params, hist_ids, wish_ids, bid, auth, lang, tags, dense,
                      *, block_b=1024):
    """Embedding gathers in plain JAX glue (bf16 tables), the rest in Pallas."""
    # TODO(synk): the gathers could be moved in-kernel via scalar prefetch +
    # manual DMA, but at E=32 bf16 a row is only 64B (descriptor-bound); keep
    # jnp.take glue for now.
    B = hist_ids.shape[0]
    bB = min(block_b, _round_up(B, 128))      # multiple of 128 -> lane-dense out
    B_pad = _round_up(B, bB)
    num_blocks = B_pad // bB

    def pad_b(x):
        p = B_pad - x.shape[0]
        if p == 0:
            return x
        return jnp.pad(x, ((0, p),) + ((0, 0),) * (x.ndim - 1))

    hist_ids = pad_b(hist_ids)
    wish_ids = pad_b(wish_ids)
    bid = pad_b(bid)
    auth = pad_b(auth)
    lang = pad_b(lang)
    tags = pad_b(tags)
    dense = pad_b(dense)

    book_tbl = params["book_emb"]
    hist_e = jnp.take(book_tbl, hist_ids, axis=0)          # (B_pad, Lh, E) bf16
    wish_e = jnp.take(book_tbl, wish_ids, axis=0)          # (B_pad, Lw, E) bf16
    tag_e = jnp.take(params["tag_emb"], tags, axis=0)      # (B_pad, Lt, E) bf16
    b_e = jnp.take(book_tbl, bid, axis=0)                  # (B_pad, E)     bf16
    a_e = jnp.take(params["auth_emb"], auth, axis=0)       # (B_pad, E)     bf16
    l_e = jnp.take(params["lang_emb"], lang, axis=0)       # (B_pad, E)     bf16

    Lh, Lw, Lt = hist_e.shape[1], wish_e.shape[1], tag_e.shape[1]
    E = b_e.shape[1]
    DH = params["dW1"].shape[1]
    H = params["uW1"].shape[1]

    def batched3(L):
        return pl.BlockSpec((bB, L, E), lambda i: (i, 0, 0))

    def batched2(n):
        return pl.BlockSpec((bB, n), lambda i: (i, 0))

    def resident(shape):
        return pl.BlockSpec(shape, lambda i: (0, 0))

    in_specs = [
        batched3(Lh), batched3(Lw), batched3(Lt),
        batched2(E), batched2(E), batched2(E),
        batched2(3),
        resident((3, DH)), resident((1, DH)),
        resident((DH, E)), resident((1, E)),
        resident((E, H)), resident((1, H)),
        resident((H, E)), resident((1, E)),
    ]

    out = pl.pallas_call(
        two_tower_kernel,
        out_shape=jax.ShapeDtypeStruct((1, B_pad), jnp.float32),
        grid=(num_blocks,),
        in_specs=in_specs,
        out_specs=pl.BlockSpec((1, bB), lambda i: (0, i)),
        compiler_params=pltpu.CompilerParams(
            dimension_semantics=("parallel",),        # megacore on v7x
            vmem_limit_bytes=32 * 1024 * 1024,        # explicit, headroom on v7x
        ),
    )(hist_e, wish_e, tag_e, b_e, a_e, l_e, dense,
      params["dW1"], params["db1"], params["dW2"], params["db2"],
      params["uW1"], params["ub1"], params["uW2"], params["ub2"])

    return out[0, :B].reshape(B, 1)


# --------------------------- deterministic params --------------------------- #

def init_params(key, num_books, num_authors, num_langs, num_tags,
                embed_dim, user_hids, dense_hids=(64,)):
    keys = jax.random.split(key, 16)
    ki = iter(keys)

    def emb(k, n):
        t = jax.random.normal(k, (n + 1, embed_dim), jnp.float32) * 0.02
        t = t.at[0].set(0.0)                  # padding_idx=0 -> zero row
        return t.astype(jnp.bfloat16)         # halve HBM bytes on gathers

    def linear(k, fan_in, fan_out):
        k1, k2 = jax.random.split(k)
        bound = 1.0 / jnp.sqrt(float(fan_in))
        w = jax.random.uniform(k1, (fan_in, fan_out), jnp.float32, -bound, bound)
        b = jax.random.uniform(k2, (1, fan_out), jnp.float32, -bound, bound)
        return w, b

    params = {
        "book_emb": emb(next(ki), num_books),
        "auth_emb": emb(next(ki), num_authors),
        "lang_emb": emb(next(ki), num_langs),
        "tag_emb": emb(next(ki), num_tags),
    }

    # dense_mlp: Linear(3, 64) -> ReLU -> Linear(64, E)
    (dh,) = dense_hids
    params["dW1"], params["db1"] = linear(next(ki), 3, dh)
    params["dW2"], params["db2"] = linear(next(ki), dh, embed_dim)

    # user_mlp: Linear(E, H) -> ReLU -> Linear(H, E)   (user_hids = [H])
    (uh,) = user_hids
    params["uW1"], params["ub1"] = linear(next(ki), embed_dim, uh)
    params["uW2"], params["ub2"] = linear(next(ki), uh, embed_dim)
    return params


# --------------------------- pure-JAX reference ----------------------------- #

def reference_forward(params, hist_ids, wish_ids, bid, auth, lang, tags, dense):
    f32 = jnp.float32
    book, autht, langt, tagt = (params["book_emb"], params["auth_emb"],
                                params["lang_emb"], params["tag_emb"])
    u_h = jnp.take(book, hist_ids, axis=0).astype(f32).mean(axis=1)
    u_w = jnp.take(book, wish_ids, axis=0).astype(f32).mean(axis=1)
    u0 = u_h + u_w
    h = jnp.maximum(u0 @ params["uW1"] + params["ub1"], 0.0)
    u_emb = h @ params["uW2"] + params["ub2"]
    b_e = jnp.take(book, bid, axis=0).astype(f32)
    a_e = jnp.take(autht, auth, axis=0).astype(f32)
    l_e = jnp.take(langt, lang, axis=0).astype(f32)
    t_e = jnp.take(tagt, tags, axis=0).astype(f32).mean(axis=1)
    d = jnp.maximum(dense @ params["dW1"] + params["db1"], 0.0)
    d_e = d @ params["dW2"] + params["db2"]
    i_emb = b_e + a_e + l_e + t_e + d_e
    return jnp.sum(u_emb * i_emb, axis=1, keepdims=True)


# ---------------------------------- main ------------------------------------ #

if __name__ == "__main__":
    # Small synthetic config
    B = 2
    EMBED_DIM = 32
    USER_HIDS = [32]
    MAX_HIST_LEN = 8
    MAX_WISH_LEN = 8
    NUM_TAGS_PER_ITEM = 4
    NUM_BOOKS, NUM_AUTHORS, NUM_LANGS, NUM_TAGS = 100, 20, 5, 30

    root = jax.random.PRNGKey(0)
    kp, k1, k2, k3, k4, k5, k6, k7 = jax.random.split(root, 8)

    params = init_params(kp, NUM_BOOKS, NUM_AUTHORS, NUM_LANGS, NUM_TAGS,
                         EMBED_DIM, USER_HIDS)

    hist_ids = jax.random.randint(k1, (B, MAX_HIST_LEN), 0, NUM_BOOKS + 1)
    wish_ids = jax.random.randint(k2, (B, MAX_WISH_LEN), 0, NUM_BOOKS + 1)
    bid = jax.random.randint(k3, (B,), 1, NUM_BOOKS + 1)
    auth = jax.random.randint(k4, (B,), 1, NUM_AUTHORS + 1)
    lang = jax.random.randint(k5, (B,), 1, NUM_LANGS + 1)
    tags = jax.random.randint(k6, (B, NUM_TAGS_PER_ITEM), 0, NUM_TAGS + 1)
    dense = jax.random.normal(k7, (B, 3), jnp.float32)

    out = two_tower_forward(params, hist_ids, wish_ids, bid, auth, lang, tags, dense)
    out = jax.block_until_ready(out)

    ref = reference_forward(params, hist_ids, wish_ids, bid, auth, lang, tags, dense)
    assert out.shape == (B, 1)
    assert jnp.allclose(out, ref, atol=1e-3, rtol=1e-3), (out, ref)

    print("KERNEL_OK")
</pallas_src>

<mosaic_0001>
module attributes {stable_mosaic.version = 11 : i64} {
  func.func @two_tower_kernel(%arg0: i32, %arg1: memref<128x8x32xbf16, #tpu.memory_space<vmem>>, %arg2: memref<128x8x32xbf16, #tpu.memory_space<vmem>>, %arg3: memref<128x4x32xbf16, #tpu.memory_space<vmem>>, %arg4: memref<128x32xbf16, #tpu.memory_space<vmem>>, %arg5: memref<128x32xbf16, #tpu.memory_space<vmem>>, %arg6: memref<128x32xbf16, #tpu.memory_space<vmem>>, %arg7: memref<128x3xf32, #tpu.memory_space<vmem>>, %arg8: memref<3x64xf32, #tpu.memory_space<vmem>>, %arg9: memref<1x64xf32, #tpu.memory_space<vmem>>, %arg10: memref<64x32xf32, #tpu.memory_space<vmem>>, %arg11: memref<1x32xf32, #tpu.memory_space<vmem>>, %arg12: memref<32x32xf32, #tpu.memory_space<vmem>>, %arg13: memref<1x32xf32, #tpu.memory_space<vmem>>, %arg14: memref<32x32xf32, #tpu.memory_space<vmem>>, %arg15: memref<1x32xf32, #tpu.memory_space<vmem>>, %arg16: memref<1x128xf32, #tpu.memory_space<vmem>>) attributes {dimension_semantics = [#tpu.dimension_semantics<parallel>], iteration_bounds = array<i64: 1>, scalar_prefetch = 0 : i64, scratch_operands = 0 : i64, tpu.core_type = #tpu.core_type<tc>, window_params = [{transform_indices = @transform_0, window_bounds = array<i64: 128, 8, 32>}, {transform_indices = @transform_1, window_bounds = array<i64: 128, 8, 32>}, {transform_indices = @transform_2, window_bounds = array<i64: 128, 4, 32>}, {transform_indices = @transform_3, window_bounds = array<i64: 128, 32>}, {transform_indices = @transform_4, window_bounds = array<i64: 128, 32>}, {transform_indices = @transform_5, window_bounds = array<i64: 128, 32>}, {transform_indices = @transform_6, window_bounds = array<i64: 128, 3>}, {pipeline_mode = #tpu.pipeline_mode<synchronous>, transform_indices = @transform_7, window_bounds = array<i64: 3, 64>}, {pipeline_mode = #tpu.pipeline_mode<synchronous>, transform_indices = @transform_8, window_bounds = array<i64: 1, 64>}, {pipeline_mode = #tpu.pipeline_mode<synchronous>, transform_indices = @transform_9, window_bounds = array<i64: 64, 32>}, {pipeline_mode = #tpu.pipeline_mode<synchronous>, transform_indices = @transform_10, window_bounds = array<i64: 1, 32>}, {pipeline_mode = #tpu.pipeline_mode<synchronous>, transform_indices = @transform_11, window_bounds = array<i64: 32, 32>}, {pipeline_mode = #tpu.pipeline_mode<synchronous>, transform_indices = @transform_12, window_bounds = array<i64: 1, 32>}, {pipeline_mode = #tpu.pipeline_mode<synchronous>, transform_indices = @transform_13, window_bounds = array<i64: 32, 32>}, {pipeline_mode = #tpu.pipeline_mode<synchronous>, transform_indices = @transform_14, window_bounds = array<i64: 1, 32>}, {transform_indices = @transform_15, window_bounds = array<i64: 1, 128>}]} {
    %c0 = arith.constant 0 : index
    %c0_0 = arith.constant 0 : index
    %c0_1 = arith.constant 0 : index
    %0 = vector.load %arg1[%c0, %c0_0, %c0_1] : memref<128x8x32xbf16, #tpu.memory_space<vmem>>, vector<128x8x32xbf16>
    %1 = arith.extf %0 : vector<128x8x32xbf16> to vector<128x8x32xf32>
    %cst = arith.constant dense<0.000000e+00> : vector<128x32xf32>
    %2 = vector.multi_reduction <add>, %1, %cst [1] : vector<128x8x32xf32> to vector<128x32xf32>
    %cst_2 = arith.constant 1.250000e-01 : f32
    %3 = vector.broadcast %cst_2 : f32 to vector<128x32xf32>
    %4 = arith.mulf %2, %3 : vector<128x32xf32>
    %c0_3 = arith.constant 0 : index
    %c0_4 = arith.constant 0 : index
    %c0_5 = arith.constant 0 : index
    %5 = vector.load %arg2[%c0_3, %c0_4, %c0_5] : memref<128x8x32xbf16, #tpu.memory_space<vmem>>, vector<128x8x32xbf16>
    %6 = arith.extf %5 : vector<128x8x32xbf16> to vector<128x8x32xf32>
    %cst_6 = arith.constant dense<0.000000e+00> : vector<128x32xf32>
    %7 = vector.multi_reduction <add>, %6, %cst_6 [1] : vector<128x8x32xf32> to vector<128x32xf32>
    %cst_7 = arith.constant 1.250000e-01 : f32
    %8 = vector.broadcast %cst_7 : f32 to vector<128x32xf32>
    %9 = arith.mulf %7, %8 : vector<128x32xf32>
    %10 = arith.addf %4, %9 : vector<128x32xf32>
    %c0_8 = arith.constant 0 : index
    %c0_9 = arith.constant 0 : index
    %11 = vector.load %arg12[%c0_8, %c0_9] : memref<32x32xf32, #tpu.memory_space<vmem>>, vector<32x32xf32>
    %cst_10 = arith.constant dense<0.000000e+00> : vector<128x32xf32>
    %12 = tpu.matmul %10, %11, %cst_10 {dimension_numbers = #tpu.dot_dimension_numbers<[1], [0], [0], [1], [0, 0, 1, 1], [], []>} : vector<128x32xf32>, vector<32x32xf32>, vector<128x32xf32> -> vector<128x32xf32>
    %c0_11 = arith.constant 0 : index
    %c0_12 = arith.constant 0 : index
    %13 = vector.load %arg13[%c0_11, %c0_12] : memref<1x32xf32, #tpu.memory_space<vmem>>, vector<1x32xf32>
    %14 = vector.broadcast %13 : vector<1x32xf32> to vector<128x32xf32>
    %15 = arith.addf %12, %14 : vector<128x32xf32>
    %cst_13 = arith.constant 0.000000e+00 : f32
    %16 = vector.broadcast %cst_13 : f32 to vector<128x32xf32>
    %17 = arith.maximumf %15, %16 : vector<128x32xf32>
    %c0_14 = arith.constant 0 : index
    %c0_15 = arith.constant 0 : index
    %18 = vector.load %arg14[%c0_14, %c0_15] : memref<32x32xf32, #tpu.memory_space<vmem>>, vector<32x32xf32>
    %cst_16 = arith.constant dense<0.000000e+00> : vector<128x32xf32>
    %19 = tpu.matmul %17, %18, %cst_16 {dimension_numbers = #tpu.dot_dimension_numbers<[1], [0], [0], [1], [0, 0, 1, 1], [], []>} : vector<128x32xf32>, vector<32x32xf32>, vector<128x32xf32> -> vector<128x32xf32>
    %c0_17 = arith.constant 0 : index
    %c0_18 = arith.constant 0 : index
    %20 = vector.load %arg15[%c0_17, %c0_18] : memref<1x32xf32, #tpu.memory_space<vmem>>, vector<1x32xf32>
    %21 = vector.broadcast %20 : vector<1x32xf32> to vector<128x32xf32>
    %22 = arith.addf %19, %21 : vector<128x32xf32>
    %c0_19 = arith.constant 0 : index
    %c0_20 = arith.constant 0 : index
    %c0_21 = arith.constant 0 : index
    %23 = vector.load %arg3[%c0_19, %c0_20, %c0_21] : memref<128x4x32xbf16, #tpu.memory_space<vmem>>, vector<128x4x32xbf16>
    %24 = arith.extf %23 : vector<128x4x32xbf16> to vector<128x4x32xf32>
    %cst_22 = arith.constant dense<0.000000e+00> : vector<128x32xf32>
    %25 = vector.multi_reduction <add>, %24, %cst_22 [1] : vector<128x4x32xf32> to vector<128x32xf32>
    %cst_23 = arith.constant 2.500000e-01 : f32
    %26 = vector.broadcast %cst_23 : f32 to vector<128x32xf32>
    %27 = arith.mulf %25, %26 : vector<128x32xf32>
    %c0_24 = arith.constant 0 : index
    %c0_25 = arith.constant 0 : index
    %28 = vector.load %arg7[%c0_24, %c0_25] : memref<128x3xf32, #tpu.memory_space<vmem>>, vector<128x3xf32>
    %c0_26 = arith.constant 0 : index
    %c0_27 = arith.constant 0 : index
    %29 = vector.load %arg8[%c0_26, %c0_27] : memref<3x64xf32, #tpu.memory_space<vmem>>, vector<3x64xf32>
    %30 = vector.extract_strided_slice %28 {offsets = [0, 0], sizes = [128, 1], strides = [1, 1]} : vector<128x3xf32> to vector<128x1xf32>
    %31 = vector.extract_strided_slice %29 {offsets = [0, 0], sizes = [1, 64], strides = [1, 1]} : vector<3x64xf32> to vector<1x64xf32>
    %32 = vector.broadcast %30 : vector<128x1xf32> to vector<128x64xf32>
    %33 = vector.broadcast %31 : vector<1x64xf32> to vector<128x64xf32>
    %34 = arith.mulf %32, %33 : vector<128x64xf32>
    %35 = vector.extract_strided_slice %28 {offsets = [0, 1], sizes = [128, 1], strides = [1, 1]} : vector<128x3xf32> to vector<128x1xf32>
    %36 = vector.extract_strided_slice %29 {offsets = [1, 0], sizes = [1, 64], strides = [1, 1]} : vector<3x64xf32> to vector<1x64xf32>
    %37 = vector.broadcast %35 : vector<128x1xf32> to vector<128x64xf32>
    %38 = vector.broadcast %36 : vector<1x64xf32> to vector<128x64xf32>
    %39 = arith.mulf %37, %38 : vector<128x64xf32>
    %40 = arith.addf %34, %39 : vector<128x64xf32>
    %41 = vector.extract_strided_slice %28 {offsets = [0, 2], sizes = [128, 1], strides = [1, 1]} : vector<128x3xf32> to vector<128x1xf32>
    %42 = vector.extract_strided_slice %29 {offsets = [2, 0], sizes = [1, 64], strides = [1, 1]} : vector<3x64xf32> to vector<1x64xf32>
    %43 = vector.broadcast %41 : vector<128x1xf32> to vector<128x64xf32>
    %44 = vector.broadcast %42 : vector<1x64xf32> to vector<128x64xf32>
    %45 = arith.mulf %43, %44 : vector<128x64xf32>
    %46 = arith.addf %40, %45 : vector<128x64xf32>
    %c0_28 = arith.constant 0 : index
    %c0_29 = arith.constant 0 : index
    %47 = vector.load %arg9[%c0_28, %c0_29] : memref<1x64xf32, #tpu.memory_space<vmem>>, vector<1x64xf32>
    %48 = vector.broadcast %47 : vector<1x64xf32> to vector<128x64xf32>
    %49 = arith.addf %46, %48 : vector<128x64xf32>
    %cst_30 = arith.constant 0.000000e+00 : f32
    %50 = vector.broadcast %cst_30 : f32 to vector<128x64xf32>
    %51 = arith.maximumf %49, %50 : vector<128x64xf32>
    %c0_31 = arith.constant 0 : index
    %c0_32 = arith.constant 0 : index
    %52 = vector.load %arg10[%c0_31, %c0_32] : memref<64x32xf32, #tpu.memory_space<vmem>>, vector<64x32xf32>
    %cst_33 = arith.constant dense<0.000000e+00> : vector<128x32xf32>
    %53 = tpu.matmul %51, %52, %cst_33 {dimension_numbers = #tpu.dot_dimension_numbers<[1], [0], [0], [1], [0, 0, 1, 1], [], []>} : vector<128x64xf32>, vector<64x32xf32>, vector<128x32xf32> -> vector<128x32xf32>
    %c0_34 = arith.constant 0 : index
    %c0_35 = arith.constant 0 : index
    %54 = vector.load %arg11[%c0_34, %c0_35] : memref<1x32xf32, #tpu.memory_space<vmem>>, vector<1x32xf32>
    %55 = vector.broadcast %54 : vector<1x32xf32> to vector<128x32xf32>
    %56 = arith.addf %53, %55 : vector<128x32xf32>
    %c0_36 = arith.constant 0 : index
    %c0_37 = arith.constant 0 : index
    %57 = vector.load %arg4[%c0_36, %c0_37] : memref<128x32xbf16, #tpu.memory_space<vmem>>, vector<128x32xbf16>
    %58 = arith.extf %57 : vector<128x32xbf16> to vector<128x32xf32>
    %c0_38 = arith.constant 0 : index
    %c0_39 = arith.constant 0 : index
    %59 = vector.load %arg5[%c0_38, %c0_39] : memref<128x32xbf16, #tpu.memory_space<vmem>>, vector<128x32xbf16>
    %60 = arith.extf %59 : vector<128x32xbf16> to vector<128x32xf32>
    %61 = arith.addf %58, %60 : vector<128x32xf32>
    %c0_40 = arith.constant 0 : index
    %c0_41 = arith.constant 0 : index
    %62 = vector.load %arg6[%c0_40, %c0_41] : memref<128x32xbf16, #tpu.memory_space<vmem>>, vector<128x32xbf16>
    %63 = arith.extf %62 : vector<128x32xbf16> to vector<128x32xf32>
    %64 = arith.addf %61, %63 : vector<128x32xf32>
    %65 = arith.addf %64, %27 : vector<128x32xf32>
    %66 = arith.addf %65, %56 : vector<128x32xf32>
    %67 = arith.mulf %22, %66 : vector<128x32xf32>
    %cst_42 = arith.constant dense<0.000000e+00> : vector<128xf32>
    %68 = vector.multi_reduction <add>, %67, %cst_42 [1] : vector<128x32xf32> to vector<128xf32>
    %c0_43 = arith.constant 0 : index
    %c0_44 = arith.constant 0 : index
    %69 = vector.load %arg16[%c0_43, %c0_44] : memref<1x128xf32, #tpu.memory_space<vmem>>, vector<1x128xf32>
    %70 = vector.shape_cast %69 : vector<1x128xf32> to vector<128xf32>
    %71 = vector.shape_cast %68 : vector<128xf32> to vector<1x128xf32>
    tpu.vector_store %arg16[%c0_43, %c0_44], %71 {strides = array<i32>} : memref<1x128xf32, #tpu.memory_space<vmem>>, vector<1x128xf32>,
    return
  }
  func.func @transform_0(%arg0: i32) -> (i32, i32, i32) {
    %c0_i32 = arith.constant 0 : i32
    %c0_i32_0 = arith.constant 0 : i32
    %c0_i32_1 = arith.constant 0 : i32
    return %arg0, %c0_i32, %c0_i32_0 : i32, i32, i32
  }
  func.func @transform_1(%arg0: i32) -> (i32, i32, i32) {
    %c0_i32 = arith.constant 0 : i32
    %c0_i32_0 = arith.constant 0 : i32
    %c0_i32_1 = arith.constant 0 : i32
    return %arg0, %c0_i32, %c0_i32_0 : i32, i32, i32
  }
  func.func @transform_2(%arg0: i32) -> (i32, i32, i32) {
    %c0_i32 = arith.constant 0 : i32
    %c0_i32_0 = arith.constant 0 : i32
    %c0_i32_1 = arith.constant 0 : i32
    return %arg0, %c0_i32, %c0_i32_0 : i32, i32, i32
  }
  func.func @transform_3(%arg0: i32) -> (i32, i32) {
    %c0_i32 = arith.constant 0 : i32
    %c0_i32_0 = arith.constant 0 : i32
    return %arg0, %c0_i32 : i32, i32
  }
  func.func @transform_4(%arg0: i32) -> (i32, i32) {
    %c0_i32 = arith.constant 0 : i32
    %c0_i32_0 = arith.constant 0 : i32
    return %arg0, %c0_i32 : i32, i32
  }
  func.func @transform_5(%arg0: i32) -> (i32, i32) {
    %c0_i32 = arith.constant 0 : i32
    %c0_i32_0 = arith.constant 0 : i32
    return %arg0, %c0_i32 : i32, i32
  }
  func.func @transform_6(%arg0: i32) -> (i32, i32) {
    %c0_i32 = arith.constant 0 : i32
    %c0_i32_0 = arith.constant 0 : i32
    return %arg0, %c0_i32 : i32, i32
  }
  func.func @transform_7(%arg0: i32) -> (i32, i32) {
    %c0_i32 = arith.constant 0 : i32
    %c0_i32_0 = arith.constant 0 : i32
    %c0_i32_1 = arith.constant 0 : i32
    return %c0_i32, %c0_i32_0 : i32, i32
  }
  func.func @transform_8(%arg0: i32) -> (i32, i32) {
    %c0_i32 = arith.constant 0 : i32
    %c0_i32_0 = arith.constant 0 : i32
    %c0_i32_1 = arith.constant 0 : i32
    return %c0_i32, %c0_i32_0 : i32, i32
  }
  func.func @transform_9(%arg0: i32) -> (i32, i32) {
    %c0_i32 = arith.constant 0 : i32
    %c0_i32_0 = arith.constant 0 : i32
    %c0_i32_1 = arith.constant 0 : i32
    return %c0_i32, %c0_i32_0 : i32, i32
  }
  func.func @transform_10(%arg0: i32) -> (i32, i32) {
    %c0_i32 = arith.constant 0 : i32
    %c0_i32_0 = arith.constant 0 : i32
    %c0_i32_1 = arith.constant 0 : i32
    return %c0_i32, %c0_i32_0 : i32, i32
  }
  func.func @transform_11(%arg0: i32) -> (i32, i32) {
    %c0_i32 = arith.constant 0 : i32
    %c0_i32_0 = arith.constant 0 : i32
    %c0_i32_1 = arith.constant 0 : i32
    return %c0_i32, %c0_i32_0 : i32, i32
  }
  func.func @transform_12(%arg0: i32) -> (i32, i32) {
    %c0_i32 = arith.constant 0 : i32
    %c0_i32_0 = arith.constant 0 : i32
    %c0_i32_1 = arith.constant 0 : i32
    return %c0_i32, %c0_i32_0 : i32, i32
  }
  func.func @transform_13(%arg0: i32) -> (i32, i32) {
    %c0_i32 = arith.constant 0 : i32
    %c0_i32_0 = arith.constant 0 : i32
    %c0_i32_1 = arith.constant 0 : i32
    return %c0_i32, %c0_i32_0 : i32, i32
  }
  func.func @transform_14(%arg0: i32) -> (i32, i32) {
    %c0_i32 = arith.constant 0 : i32
    %c0_i32_0 = arith.constant 0 : i32
    %c0_i32_1 = arith.constant 0 : i32
    return %c0_i32, %c0_i32_0 : i32, i32
  }
  func.func @transform_15(%arg0: i32) -> (i32, i32) {
    %c0_i32 = arith.constant 0 : i32
    %c0_i32_0 = arith.constant 0 : i32
    return %c0_i32, %arg0 : i32, i32
  }
}

</mosaic_0001>

<bundles_post_ra>
// kernel: tpu_custom_call.1
= control target key start
LH: loop header
LB: loop body
LE: loop exit
PB: predicated region body
PF: predicated region fallthrough
CT: control target
= control target key end

     0   :  { %v6908_v2 = vmov 1   ;;  %v6909_v3 = vmov 0   ;;  %vm307_vm0 = vcmask 261120   ;;  %v6910_v37 = vmov 2   ;;  %s9579_s0 = inlined_call_operand.vmem [shape: bf16[128,8,32], index: 0, kind: input, shape index: {}]   ;;  %s9580_s1 = inlined_call_operand.vmem [shape: bf16[128,8,32], index: 1, kind: input, shape index: {}]   ;;  %s9581_s2 = inlined_call_operand.vmem [shape: bf16[128,4,32], index: 2, kind: input, shape index: {}]   ;;  %s9582_s3 = inlined_call_operand.vmem [shape: bf16[128,32], index: 3, kind: input, shape index: {}]   ;;  %s9583_s4 = inlined_call_operand.vmem [shape: bf16[128,32], index: 4, kind: input, shape index: {}]   ;;  %s9584_s5 = inlined_call_operand.vmem [shape: bf16[128,32], index: 5, kind: input, shape index: {}]   ;;  %s9585_s6 = inlined_call_operand.vmem [shape: f32[128,3], index: 6, kind: input, shape index: {}]   ;;  %s9586_s7 = inlined_call_operand.vmem [shape: f32[3,64], index: 7, kind: input, shape index: {}]   ;;  %s9587_s8 = inlined_call_operand.vmem [shape: f32[1,64], index: 8, kind: input, shape index: {}]   ;;  %s9588_s9 = inlined_call_operand.vmem [shape: f32[64,32], index: 9, kind: input, shape index: {}]   ;;  %s9589_s10 = inlined_call_operand.vmem [shape: f32[1,32], index: 10, kind: input, shape index: {}]   ;;  %s9590_s11 = inlined_call_operand.vmem [shape: f32[32,32], index: 11, kind: input, shape index: {}]   ;;  %s9591_s12 = inlined_call_operand.vmem [shape: f32[1,32], index: 12, kind: input, shape index: {}]   ;;  %s9592_s13 = inlined_call_operand.vmem [shape: f32[32,32], index: 13, kind: input, shape index: {}]   ;;  %s9593_s14 = inlined_call_operand.vmem [shape: f32[1,32], index: 14, kind: input, shape index: {}]   ;;  %s9594_s15 = inlined_call_operand.hbm [shape: f32[1,128], index: 15, kind: output, shape index: {}]  }
   0x1   :  { %v6995_v0 = vld [vmem:[%s9585_s6 + $0x8] sm:$0xff]  ;;  %v4676_v1 = vld [vmem:[%s9585_s6] sm:$0xff]  ;;  %6851 = vset.pattern.permute.xlu0 %v6908_v2  ;;  %6853 = vset.pattern.permute.xlu1 %v6909_v3  ;;  %v2743_v4 = vld [vmem:[%s9590_s11 + $0x18] sm:$0xff] }
   0x2   :  { %4700 = vperm.xlu1 %6853, %v6995_v0   ;;  %4794 = vperm.xlu0 %6851, %v4676_v1   ;;  %v2742_v5 = vld [vmem:[%s9590_s11 + $0x10] sm:$0xff]  ;;  %v5917_v6 = vld [vmem:[%s9579_s0] sm:$0xff]   ;;  %v6524_v7 = vld [vmem:[%s9579_s0 + $0x8] sm:$0xff]  }
   0x3   :  { %6735 = vmatprep.subr.mxu0 %v2743_v4  ;;  %6839 = vmatprep.subr.mxu1 %v2743_v4  ;;  %v6525_v8 = vld [vmem:[%s9579_s0 + $0x10] sm:$0xff]   ;;  %v5918_v9 = vunpack.c.l.bf16 %v5917_v6  ;;  %v5919_v10 = vunpack.c.h.bf16 %v5917_v6  ;;  %v5922_v11 = vunpack.c.l.bf16 %v6524_v7  ;;  %v5923_v12 = vunpack.c.h.bf16 %v6524_v7  ;;  %v6526_v13 = vld [vmem:[%s9579_s0 + $0x18] sm:$0xff]   ;;  %v2741_v14 = vld [vmem:[%s9590_s11 + $0x8] sm:$0xff] }
   0x4   :  { %6736 = vmatpush3.msra.mxu0 %v2743_v4  ;;  %6843 = vmatpush3.msra.mxu1 %v2743_v4  ;;  %v5926_v15 = vunpack.c.l.bf16 %v6525_v8  ;;  %v5927_v16 = vunpack.c.h.bf16 %v6525_v8  ;;  %v5930_v17 = vunpack.c.l.bf16 %v6526_v13  ;;  %v5931_v18 = vunpack.c.h.bf16 %v6526_v13  ;;  %v7034_v23 = vld [vmem:[%s9585_s6 + $0x18] sm:$0xff]  ;;  %v2740_v28 = vld [vmem:[%s9590_s11] sm:$0xff]  ;;  %v7048_v42 = vld [vmem:[%s9585_s6 + $0x28] sm:$0xff] }
   0x5   :  { %6737 = vmatprep.subr.mxu0 %v2742_v5  ;;  %6840 = vmatprep.subr.mxu1 %v2742_v5  ;;  %v308_v19 = vsel %vm307_vm0, %v5918_v9, 0.0  ;;  %v315_v20 = vsel %vm307_vm0, %v5919_v10, 0.0  ;;  %v322_v21 = vsel %vm307_vm0, %v5922_v11, 0.0  ;;  %v329_v22 = vsel %vm307_vm0, %v5923_v12, 0.0  ;;  %v7053_v51 = vld [vmem:[%s9585_s6 + $0x10] sm:$0xff]  ;;  %v7060_v60 = vld [vmem:[%s9585_s6 + $0x38] sm:$0xff] }
   0x6   :  { %6854 = vset.pattern.permute.xlu1 %v6908_v2  ;;  %6852 = vset.pattern.permute.xlu0 %v6909_v3  ;;  %v309_v24 = vrot.slane %v308_v19, 4  ;;  %v316_v25 = vrot.slane %v315_v20, 4  ;;  %v323_v26 = vrot.slane %v322_v21, 4  ;;  %v330_v27 = vrot.slane %v329_v22, 4 }
   0x7   :  { %4798 = vperm.xlu1 %6854, %v6995_v0   ;;  %4695 = vperm.xlu0 %6852, %v4676_v1   ;;  %v336_v29 = vsel %vm307_vm0, %v5926_v15, 0.0  ;;  %v343_v30 = vsel %vm307_vm0, %v5927_v16, 0.0  ;;  %v350_v31 = vsel %vm307_vm0, %v5930_v17, 0.0  ;;  %v357_v32 = vsel %vm307_vm0, %v5931_v18, 0.0 }
   0x8   :  { %6738 = vmatpush3.msra.mxu0 %v2742_v5  ;;  %6844 = vmatpush3.msra.mxu1 %v2742_v5  ;;  %v310_v33 = vadd.f32 %v309_v24, %v308_v19  ;;  %v317_v34 = vadd.f32 %v316_v25, %v315_v20  ;;  %v324_v35 = vadd.f32 %v323_v26, %v322_v21  ;;  %v337_v38 = vrot.slane %v336_v29, 4 }
   0x9   :  { %6739 = vmatprep.subr.mxu0 %v2741_v14  ;;  %6841 = vmatprep.subr.mxu1 %v2741_v14  ;;  %v331_v36 = vadd.f32 %v330_v27, %v329_v22  ;;  %v344_v39 = vrot.slane %v343_v30, 4  ;;  %v351_v40 = vrot.slane %v350_v31, 4  ;;  %v358_v41 = vrot.slane %v357_v32, 4 }
   0xa   :  { %6740 = vmatpush3.msra.mxu0 %v2741_v14  ;;  %v311_v43 = vrot.slane %v310_v33, 2  ;;  %v318_v44 = vrot.slane %v317_v34, 2  ;;  %v325_v45 = vrot.slane %v324_v35, 2  ;;  %v338_v47 = vadd.f32 %v337_v38, %v336_v29  ;;  %6845 = vmatpush3.msra.mxu1 %v2741_v14 }
   0xb   :  { %6855 = vset.pattern.permute.xlu1 %v6910_v37  ;;  %4710 = vperm.xlu0 %6852, %v7034_v23   ;;  %v332_v46 = vrot.slane %v331_v36, 2  ;;  %v345_v48 = vadd.f32 %v344_v39, %v343_v30  ;;  %v352_v49 = vadd.f32 %v351_v40, %v350_v31  ;;  %v359_v50 = vadd.f32 %v358_v41, %v357_v32 }
   0xc   :  { %4894 = vperm.xlu1 %6855, %v4676_v1   ;;  %6741 = vmatprep.subr.mxu0 %v2740_v28  ;;  %v312_v52 = vadd.f32 %v311_v43, %v310_v33  ;;  %v319_v53 = vadd.f32 %v318_v44, %v317_v34  ;;  %v326_v54 = vadd.f32 %v325_v45, %v324_v35  ;;  %v339_v56 = vrot.slane %v338_v47, 2 }
   0xd   :  { %6742 = vmatpush3.msra.mxu0 %v2740_v28  ;;  %v333_v55 = vadd.f32 %v332_v46, %v331_v36  ;;  %v346_v57 = vrot.slane %v345_v48, 2  ;;  %v353_v58 = vrot.slane %v352_v49, 2  ;;  %v360_v59 = vrot.slane %v359_v50, 2  ;;  %6842 = vmatprep.subr.mxu1 %v2740_v28 }
   0xe   :  { %v313_v61 = vrot.slane %v312_v52, 1  ;;  %v320_v62 = vrot.slane %v319_v53, 1  ;;  %v327_v63 = vrot.slane %v326_v54, 1  ;;  %6846 = vmatpush3.msra.mxu1 %v2740_v28  ;;  %v340_v4 = vadd.f32 %v339_v56, %v338_v47 }
   0xf   :  { %4720 = vperm.xlu0 %6852, %v7048_v42   ;;  %v334_v1 = vrot.slane %v333_v55, 1  ;;  %v347_v5 = vadd.f32 %v346_v57, %v345_v48  ;;  %v354_v6 = vadd.f32 %v353_v58, %v352_v49  ;;  %v361_v7 = vadd.f32 %v360_v59, %v359_v50 }
  0x10   :  { %6856 = vset.pattern.permute.xlu1 %v6909_v3 }
  0x11   :  { %4705 = vperm.xlu1 %6856, %v7053_v51  }
  0x12   :  { %20 = vsyncpa [#allocation3], 0  ;;  %v314_v8 = vadd.f32 %v313_v61, %v312_v52  ;;  %v321_v9 = vadd.f32 %v320_v62, %v319_v53  ;;  %v328_v10 = vadd.f32 %v327_v63, %v326_v54  ;;  %v335_v11 = vadd.f32 %v334_v1, %v333_v55  ;;  %v6173_v16 = vld [vmem:[%s9580_s1] sm:$0xff]   ;;  %v6587_v17 = vld [vmem:[%s9580_s1 + $0x8] sm:$0xff]  }
  0x13   :  { %4730 = vperm.xlu0 %6852, %v7060_v60   ;;  %v341_v12 = vrot.slane %v340_v4, 1  ;;  %v348_v13 = vrot.slane %v347_v5, 1  ;;  %v355_v14 = vrot.slane %v354_v6, 1  ;;  %v362_v15 = vrot.slane %v361_v7, 1  ;;  %v7073_v18 = vld [vmem:[%s9585_s6 + $0x48] sm:$0xff]  ;;  %v6588_v28 = vld [vmem:[%s9580_s1 + $0x10] sm:$0xff]  }
  0x14   :  { %v7075_v19 = vmul.f32 0.125, %v314_v8  ;;  %v7077_v20 = vmul.f32 0.125, %v321_v9  ;;  %v7079_v21 = vmul.f32 0.125, %v328_v10  ;;  %v7081_v22 = vmul.f32 0.125, %v335_v11  ;;  %v6589_v29 = vld [vmem:[%s9580_s1 + $0x18] sm:$0xff]  }
  0x15   :  { %6857 = vset.pattern.permute.xlu1 %v6908_v2  ;;  %v342_v24 = vadd.f32 %v341_v12, %v340_v4  ;;  %v349_v25 = vadd.f32 %v348_v13, %v347_v5  ;;  %v356_v26 = vadd.f32 %v355_v14, %v354_v6  ;;  %v363_v27 = vadd.f32 %v362_v15, %v361_v7  ;;  %v7103_v39 = vld [vmem:[%s9585_s6 + $0x58] sm:$0xff]  ;;  %v7118_v6 = vld [vmem:[%s9585_s6 + $0x68] sm:$0xff] }
  0x16   :  { %4802 = vperm.xlu1 %6857, %v7053_v51   ;;  %v6174_v30 = vunpack.c.l.bf16 %v6173_v16  ;;  %v6175_v31 = vunpack.c.h.bf16 %v6173_v16  ;;  %v6178_v32 = vunpack.c.l.bf16 %v6587_v17  ;;  %v6179_v33 = vunpack.c.h.bf16 %v6587_v17 }
  0x17   :  { %4740 = vperm.xlu0 %6852, %v7073_v18   ;;  %v7092_v34 = vmul.f32 0.125, %v342_v24  ;;  %v7094_v35 = vmul.f32 0.125, %v349_v25  ;;  %v7096_v36 = vmul.f32 0.125, %v356_v26  ;;  %v7098_v38 = vmul.f32 0.125, %v363_v27 }
  0x18   :  { %v6182_v40 = vunpack.c.l.bf16 %v6588_v28  ;;  %v6183_v41 = vunpack.c.h.bf16 %v6588_v28  ;;  %v6186_v43 = vunpack.c.l.bf16 %v6589_v29  ;;  %v6187_v44 = vunpack.c.h.bf16 %v6589_v29 }
  0x19   :  { %v1588_v45 = vsel %vm307_vm0, %v6174_v30, 0.0  ;;  %v1595_v46 = vsel %vm307_vm0, %v6175_v31, 0.0  ;;  %v1602_v47 = vsel %vm307_vm0, %v6178_v32, 0.0  ;;  %v1609_v48 = vsel %vm307_vm0, %v6179_v33, 0.0 }
  0x1a   :  { %4806 = vperm.xlu1 %6857, %v7034_v23   ;;  %v1589_v49 = vrot.slane %v1588_v45, 4  ;;  %v1596_v50 = vrot.slane %v1595_v46, 4  ;;  %v1603_v52 = vrot.slane %v1602_v47, 4  ;;  %v1610_v53 = vrot.slane %v1609_v48, 4 }
  0x1b   :  { %4750 = vperm.xlu0 %6852, %v7103_v39   ;;  %v1616_v54 = vsel %vm307_vm0, %v6182_v40, 0.0  ;;  %v1623_v55 = vsel %vm307_vm0, %v6183_v41, 0.0  ;;  %v1630_v56 = vsel %vm307_vm0, %v6186_v43, 0.0  ;;  %v1637_v57 = vsel %vm307_vm0, %v6187_v44, 0.0 }
  0x1c   :  { %v1590_v58 = vadd.f32 %v1589_v49, %v1588_v45  ;;  %v1597_v59 = vadd.f32 %v1596_v50, %v1595_v46  ;;  %v1604_v61 = vadd.f32 %v1603_v52, %v1602_v47  ;;  %v1611_v62 = vadd.f32 %v1610_v53, %v1609_v48 }
  0x1d   :  { %v1617_v63 = vrot.slane %v1616_v54, 4  ;;  %v1624_v1 = vrot.slane %v1623_v55, 4  ;;  %v1631_v4 = vrot.slane %v1630_v56, 4  ;;  %v1638_v5 = vrot.slane %v1637_v57, 4 }
  0x1e   :  { %v1591_v7 = vrot.slane %v1590_v58, 2  ;;  %v1598_v8 = vrot.slane %v1597_v59, 2  ;;  %v1605_v9 = vrot.slane %v1604_v61, 2  ;;  %v1612_v10 = vrot.slane %v1611_v62, 2  ;;  %6858 = vset.pattern.permute.xlu1 %v6910_v37 }
  0x1f   :  { %v1618_v11 = vadd.f32 %v1617_v63, %v1616_v54  ;;  %v1625_v12 = vadd.f32 %v1624_v1, %v1623_v55  ;;  %v1632_v13 = vadd.f32 %v1631_v4, %v1630_v56  ;;  %v1639_v14 = vadd.f32 %v1638_v5, %v1637_v57  ;;  %4902 = vperm.xlu1 %6858, %v7053_v51  }
  0x20   :  { %vm2879_vm1 = vcmask 1041409   ;;  %v1592_v15 = vadd.f32 %v1591_v7, %v1590_v58  ;;  %v1599_v16 = vadd.f32 %v1598_v8, %v1597_v59  ;;  %v1606_v17 = vadd.f32 %v1605_v9, %v1604_v61  ;;  %4760 = vperm.xlu0 %6852, %v7118_v6   ;;  %v6527_v61 = vld [vmem:[%s9579_s0 + $0x20] sm:$0xff]   ;;  %v7137_v7 = vld [vmem:[%s9585_s6 + $0x78] sm:$0xff] }
  0x21   :  { %v1613_v24 = vadd.f32 %v1612_v10, %v1611_v62  ;;  %v1619_v25 = vrot.slane %v1618_v11, 2  ;;  %v1626_v26 = vrot.slane %v1625_v12, 2  ;;  %v1633_v27 = vrot.slane %v1632_v13, 2  ;;  %v6528_v62 = vld [vmem:[%s9579_s0 + $0x28] sm:$0xff]  }
  0x22   :  { %v1640_v28 = vrot.slane %v1639_v14, 2  ;;  %vm2881_vm2 = vcmask 1042434   ;;  %v1593_v29 = vrot.slane %v1592_v15, 1  ;;  %v1600_v30 = vrot.slane %v1599_v16, 1 }
  0x23   :  { %v1607_v31 = vrot.slane %v1606_v17, 1  ;;  %v1614_v32 = vrot.slane %v1613_v24, 1  ;;  %vm2883_vm3 = vcmask 1043459   ;;  %v1620_v33 = vadd.f32 %v1619_v25, %v1618_v11  ;;  %6859 = vset.pattern.permute.xlu1 %v6909_v3 }
  0x24   :  { %v1627_v40 = vadd.f32 %v1626_v26, %v1625_v12  ;;  %v1634_v41 = vadd.f32 %v1633_v27, %v1632_v13  ;;  %v1641_v51 = vadd.f32 %v1640_v28, %v1639_v14  ;;  %vm2885_vm4 = vcmask 1044484   ;;  %v6529_v12 = vld [vmem:[%s9579_s0 + $0x30] sm:$0xff]   ;;  %4770 = vperm.xlu0 %6852, %v7137_v7   ;;  %v6530_v13 = vld [vmem:[%s9579_s0 + $0x38] sm:$0xff]  }
  0x25   :  { %v1594_v43 = vadd.f32 %v1593_v29, %v1592_v15  ;;  %v1601_v44 = vadd.f32 %v1600_v30, %v1599_v16  ;;  %v1608_v45 = vadd.f32 %v1607_v31, %v1606_v17  ;;  %v1615_v46 = vadd.f32 %v1614_v32, %v1613_v24 }
  0x26   :  { %vm2887_vm5 = vcmask 1045509   ;;  %v1621_v47 = vrot.slane %v1620_v33, 1  ;;  %v1628_v48 = vrot.slane %v1627_v40, 1  ;;  %v1635_v49 = vrot.slane %v1634_v41, 1 }
  0x27   :  { %v1642_v50 = vrot.slane %v1641_v51, 1  ;;  %vm2889_vm6 = vcmask 1046534   ;;  %v2484_v52 = vmul.f32 0.125, %v1594_v43  ;;  %v2485_v53 = vmul.f32 0.125, %v1601_v44 }
  0x28   :  { %v2486_v54 = vmul.f32 0.125, %v1608_v45  ;;  %v2487_v55 = vmul.f32 0.125, %v1615_v46  ;;  %vm2891_vm7 = vcmask 1047559   ;;  %v1622_v56 = vadd.f32 %v1621_v47, %v1620_v33  ;;  %6876 = vset.pattern.permute.xlu0 %v6910_v37 }
  0x29   :  { %v1629_v57 = vadd.f32 %v1628_v48, %v1627_v40  ;;  %v1636_v58 = vadd.f32 %v1635_v49, %v1634_v41  ;;  %v1643_v59 = vadd.f32 %v1642_v50, %v1641_v51  ;;  %v2612_v63 = vadd.f32 %v2484_v52, %v7075_v19  ;;  %4898 = vperm.xlu0 %6876, %v6995_v0  }
  0x2a   :  { %v2613_v1 = vadd.f32 %v2485_v53, %v7077_v20  ;;  %v2614_v4 = vadd.f32 %v2486_v54, %v7079_v21  ;;  %v2615_v5 = vadd.f32 %v2487_v55, %v7081_v22  ;;  %v2488_v8 = vmul.f32 0.125, %v1622_v56 }
  0x2b   :  { %v2489_v9 = vmul.f32 0.125, %v1629_v57  ;;  %v2490_v10 = vmul.f32 0.125, %v1636_v58  ;;  %v2491_v11 = vmul.f32 0.125, %v1643_v59  ;;  %v5934_v20 = vunpack.c.l.bf16 %v6527_v61 }
  0x2c   :  { %v2880_v19 = vsel %vm2879_vm1, %v2613_v1, %v2612_v63  ;;  %v5935_v21 = vunpack.c.h.bf16 %v6527_v61  ;;  %v5938_v22 = vunpack.c.l.bf16 %v6528_v62  ;;  %v2616_v14 = vadd.f32 %v2488_v8, %v7092_v34 }
  0x2d   :  { %v2617_v15 = vadd.f32 %v2489_v9, %v7094_v35  ;;  %v2618_v16 = vadd.f32 %v2490_v10, %v7096_v36  ;;  %v2619_v17 = vadd.f32 %v2491_v11, %v7098_v38  ;;  %v2882_v24 = vsel %vm2881_vm2, %v2614_v4, %v2880_v19  ;;  %4906 = vperm.xlu0 %6876, %v7034_v23  }
  0x2e   :  { %v5939_v25 = vunpack.c.h.bf16 %v6528_v62  ;;  %v5942_v26 = vunpack.c.l.bf16 %v6529_v12  ;;  %v5943_v27 = vunpack.c.h.bf16 %v6529_v12  ;;  %v2884_v28 = vsel %vm2883_vm3, %v2615_v5, %v2882_v24 }
  0x2f   :  { %v5946_v29 = vunpack.c.l.bf16 %v6530_v13  ;;  %v5947_v30 = vunpack.c.h.bf16 %v6530_v13  ;;  %v364_v31 = vsel %vm307_vm0, %v5934_v20, 0.0  ;;  %v2886_v34 = vsel %vm2885_vm4, %v2616_v14, %v2884_v28 }
  0x30   :  { %v365_v35 = vrot.slane %v364_v31, 4  ;;  %v371_v36 = vsel %vm307_vm0, %v5935_v21, 0.0  ;;  %v378_v38 = vsel %vm307_vm0, %v5938_v22, 0.0  ;;  %v2888_v32 = vsel %vm2887_vm5, %v2617_v15, %v2886_v34 }
  0x31   :  { %v372_v33 = vrot.slane %v371_v36, 4  ;;  %v379_v40 = vrot.slane %v378_v38, 4  ;;  %v385_v41 = vsel %vm307_vm0, %v5939_v25, 0.0  ;;  %v2890_v51 = vsel %vm2889_vm6, %v2618_v16, %v2888_v32  ;;  %4914 = vperm.xlu0 %6876, %v7048_v42   ;;  %v6590_v25 = vld [vmem:[%s9580_s1 + $0x20] sm:$0xff]  }
  0x32   :  { %v366_v43 = vadd.f32 %v365_v35, %v364_v31  ;;  %v386_v44 = vrot.slane %v385_v41, 4  ;;  %v392_v45 = vsel %vm307_vm0, %v5942_v26, 0.0  ;;  %v2892_v46 = vsel %vm2891_vm7, %v2619_v17, %v2890_v51  ;;  %v6593_v51 = vld [vmem:[%s9580_s1 + $0x38] sm:$0xff]  }
  0x33   :  { %v373_v47 = vadd.f32 %v372_v33, %v371_v36  ;;  %v380_v48 = vadd.f32 %v379_v40, %v378_v38  ;;  %v393_v49 = vrot.slane %v392_v45, 4  ;;  %6743 = vmatprep.mubr.msk.f32.mxu0 %vm307_vm0, %v2892_v46  ;;  %v399_v52 = vsel %vm307_vm0, %v5943_v27, 0.0  ;;  %v6592_v38 = vld [vmem:[%s9580_s1 + $0x30] sm:$0xff]  }
  0x34   :  { %v367_v0 = vrot.slane %v366_v43, 2  ;;  %v387_v50 = vadd.f32 %v386_v44, %v385_v41  ;;  %v406_v53 = vsel %vm307_vm0, %v5946_v29, 0.0  ;;  %v400_v57 = vrot.slane %v399_v52, 4 }
  0x35   :  { %v374_v54 = vrot.slane %v373_v47, 2  ;;  %v381_v55 = vrot.slane %v380_v48, 2  ;;  %v394_v56 = vadd.f32 %v393_v49, %v392_v45  ;;  %v407_v61 = vrot.slane %v406_v53, 4  ;;  %4922 = vperm.xlu0 %6876, %v7060_v60  }
  0x36   :  { %v368_v58 = vadd.f32 %v367_v0, %v366_v43  ;;  %v388_v59 = vrot.slane %v387_v50, 2  ;;  %v413_v62 = vsel %vm307_vm0, %v5947_v30, 0.0  ;;  %v401_v5 = vadd.f32 %v400_v57, %v399_v52  ;;  %v6591_v30 = vld [vmem:[%s9580_s1 + $0x28] sm:$0xff]  }
  0x37   :  { %v375_v63 = vadd.f32 %v374_v54, %v373_v47  ;;  %v382_v1 = vadd.f32 %v381_v55, %v380_v48  ;;  %v395_v4 = vrot.slane %v394_v56, 2  ;;  %v408_v10 = vadd.f32 %v407_v61, %v406_v53 }
  0x38   :  { %v369_v8 = vrot.slane %v368_v58, 1  ;;  %v389_v9 = vadd.f32 %v388_v59, %v387_v50  ;;  %v414_v11 = vrot.slane %v413_v62, 4  ;;  %v402_v20 = vrot.slane %v401_v5, 2 }
  0x39   :  { %v376_v23 = vrot.slane %v375_v63, 1  ;;  %v383_v12 = vrot.slane %v382_v1, 1  ;;  %v396_v19 = vadd.f32 %v395_v4, %v394_v56  ;;  %v409_v13 = vrot.slane %v408_v10, 2  ;;  %4930 = vperm.xlu0 %6876, %v7073_v18  }
  0x3a   :  { %v370_v21 = vadd.f32 %v369_v8, %v368_v58  ;;  %v390_v22 = vrot.slane %v389_v9, 1  ;;  %v415_v14 = vadd.f32 %v414_v11, %v413_v62  ;;  %v403_v24 = vadd.f32 %v402_v20, %v401_v5 }
  0x3b   :  { %v377_v15 = vadd.f32 %v376_v23, %v375_v63  ;;  %v384_v16 = vadd.f32 %v383_v12, %v382_v1  ;;  %v397_v17 = vrot.slane %v396_v19, 1  ;;  %v410_v27 = vadd.f32 %v409_v13, %v408_v10 }
  0x3c   :  { %v391_v26 = vadd.f32 %v390_v22, %v389_v9  ;;  %v416_v28 = vrot.slane %v415_v14, 2  ;;  %v7173_v29 = vmul.f32 0.125, %v370_v21  ;;  %v404_v34 = vrot.slane %v403_v24, 1 }
  0x3d   :  { %v398_v31 = vadd.f32 %v397_v17, %v396_v19  ;;  %v7179_v35 = vmul.f32 0.125, %v377_v15  ;;  %v7181_v36 = vmul.f32 0.125, %v384_v16  ;;  %v411_v32 = vrot.slane %v410_v27, 1  ;;  %4938 = vperm.xlu0 %6876, %v7103_v39  }
  0x3e   :  { %v417_v33 = vadd.f32 %v416_v28, %v415_v14  ;;  %v7186_v40 = vmul.f32 0.125, %v391_v26  ;;  %v6190_v41 = vunpack.c.l.bf16 %v6590_v25  ;;  %v405_v60 = vadd.f32 %v404_v34, %v403_v24 }
  0x3f   :  { %v7191_v43 = vmul.f32 0.125, %v398_v31  ;;  %v6191_v44 = vunpack.c.h.bf16 %v6590_v25  ;;  %v6194_v45 = vunpack.c.l.bf16 %v6591_v30  ;;  %v412_v46 = vadd.f32 %v411_v32, %v410_v27 }
  0x40   :  { %v418_v47 = vrot.slane %v417_v33, 1  ;;  %v6195_v48 = vunpack.c.h.bf16 %v6591_v30  ;;  %v6198_v49 = vunpack.c.l.bf16 %v6592_v38  ;;  %v7194_v0 = vmul.f32 0.125, %v405_v60 }
  0x41   :  { %v6199_v50 = vunpack.c.h.bf16 %v6592_v38  ;;  %v6202_v52 = vunpack.c.l.bf16 %v6593_v51  ;;  %v6203_v53 = vunpack.c.h.bf16 %v6593_v51  ;;  %v7196_v55 = vmul.f32 0.125, %v412_v46  ;;  %4946 = vperm.xlu0 %6876, %v7118_v6  }
  0x42   :  { %v419_v54 = vadd.f32 %v418_v47, %v417_v33  ;;  %v1644_v56 = vsel %vm307_vm0, %v6190_v41, 0.0  ;;  %v1651_v57 = vsel %vm307_vm0, %v6191_v44, 0.0  ;;  %v1658_v61 = vsel %vm307_vm0, %v6194_v45, 0.0 }
  0x43   :  { %v1645_v58 = vrot.slane %v1644_v56, 4  ;;  %v1652_v59 = vrot.slane %v1651_v57, 4  ;;  %v1665_v62 = vsel %vm307_vm0, %v6195_v48, 0.0  ;;  %v1659_v18 = vrot.slane %v1658_v61, 4 }
  0x44   :  { %v7202_v63 = vmul.f32 0.125, %v419_v54  ;;  %v1666_v1 = vrot.slane %v1665_v62, 4  ;;  %v1672_v4 = vsel %vm307_vm0, %v6198_v49, 0.0  ;;  %v1679_v10 = vsel %vm307_vm0, %v6199_v50, 0.0 }
  0x45   :  { %v1646_v5 = vadd.f32 %v1645_v58, %v1644_v56  ;;  %v1653_v8 = vadd.f32 %v1652_v59, %v1651_v57  ;;  %v1673_v9 = vrot.slane %v1672_v4, 4  ;;  %v1660_v11 = vadd.f32 %v1659_v18, %v1658_v61  ;;  %4954 = vperm.xlu0 %6876, %v7137_v7   ;;  %v6531_v7 = vld [vmem:[%s9579_s0 + $0x40] sm:$0xff]  }
  0x46   :  { %v1667_v23 = vadd.f32 %v1666_v1, %v1665_v62  ;;  %v1680_v12 = vrot.slane %v1679_v10, 4  ;;  %v1686_v19 = vsel %vm307_vm0, %v6202_v52, 0.0  ;;  %v1693_v17 = vsel %vm307_vm0, %v6203_v53, 0.0 }
  0x47   :  { %v1647_v20 = vrot.slane %v1646_v5, 2  ;;  %v1654_v21 = vrot.slane %v1653_v8, 2  ;;  %v1674_v22 = vadd.f32 %v1673_v9, %v1672_v4  ;;  %v1687_v13 = vrot.slane %v1686_v19, 4 }
  0x48   :  { %v1661_v14 = vrot.slane %v1660_v11, 2  ;;  %v1668_v15 = vrot.slane %v1667_v23, 2  ;;  %v1681_v16 = vadd.f32 %v1680_v12, %v1679_v10  ;;  %v1694_v31 = vrot.slane %v1693_v17, 4 }
  0x49   :  { %v1648_v39 = vadd.f32 %v1647_v20, %v1646_v5  ;;  %v1655_v24 = vadd.f32 %v1654_v21, %v1653_v8  ;;  %v1675_v25 = vrot.slane %v1674_v22, 2  ;;  %v1688_v26 = vadd.f32 %v1687_v13, %v1686_v19 }
  0x4a   :  { %v1662_v27 = vadd.f32 %v1661_v14, %v1660_v11  ;;  %v1669_v28 = vadd.f32 %v1668_v15, %v1667_v23  ;;  %v1682_v30 = vrot.slane %v1681_v16, 2  ;;  %v1695_v44 = vadd.f32 %v1694_v31, %v1693_v17  ;;  %v6532_v23 = vld [vmem:[%s9579_s0 + $0x48] sm:$0xff]  }
  0x4b   :  { %v1649_v34 = vrot.slane %v1648_v39, 1  ;;  %v1656_v38 = vrot.slane %v1655_v24, 1  ;;  %v1676_v32 = vadd.f32 %v1675_v25, %v1674_v22  ;;  %v1689_v33 = vrot.slane %v1688_v26, 2 }
  0x4c   :  { %v1663_v41 = vrot.slane %v1662_v27, 1  ;;  %v1670_v51 = vrot.slane %v1669_v28, 1  ;;  %v1683_v60 = vadd.f32 %v1682_v30, %v1681_v16  ;;  %v1696_v52 = vrot.slane %v1695_v44, 2 }
  0x4d   :  { %v1650_v45 = vadd.f32 %v1649_v34, %v1648_v39  ;;  %v1657_v6 = vadd.f32 %v1656_v38, %v1655_v24  ;;  %v1677_v46 = vrot.slane %v1676_v32, 1  ;;  %v1690_v47 = vadd.f32 %v1689_v33, %v1688_v26 }
  0x4e   :  { %v1664_v48 = vadd.f32 %v1663_v41, %v1662_v27  ;;  %v1671_v49 = vadd.f32 %v1670_v51, %v1669_v28  ;;  %v1684_v50 = vrot.slane %v1683_v60, 1  ;;  %v1697_v59 = vadd.f32 %v1696_v52, %v1695_v44 }
  0x4f   :  { %v1678_v53 = vadd.f32 %v1677_v46, %v1676_v32  ;;  %v1691_v54 = vrot.slane %v1690_v47, 1  ;;  %v2492_v56 = vmul.f32 0.125, %v1650_v45  ;;  %v2493_v57 = vmul.f32 0.125, %v1657_v6 }
  0x50   :  { %v1685_v58 = vadd.f32 %v1684_v50, %v1683_v60  ;;  %v2494_v61 = vmul.f32 0.125, %v1664_v48  ;;  %v2495_v62 = vmul.f32 0.125, %v1671_v49  ;;  %v1698_v8 = vrot.slane %v1697_v59, 1 }
  0x51   :  { %v1692_v18 = vadd.f32 %v1691_v54, %v1690_v47  ;;  %v2496_v1 = vmul.f32 0.125, %v1678_v53  ;;  %v2620_v4 = vadd.f32 %v2492_v56, %v7173_v29  ;;  %v2621_v5 = vadd.f32 %v2493_v57, %v7179_v35  ;;  %v6533_v29 = vld [vmem:[%s9579_s0 + $0x50] sm:$0xff]   ;;  %v7229_v35 = vld [vmem:[%s9585_s6 + $0x20] sm:$0xff] }
  0x52   :  { %v2497_v9 = vmul.f32 0.125, %v1685_v58  ;;  %v2622_v10 = vadd.f32 %v2494_v61, %v7181_v36  ;;  %v2623_v11 = vadd.f32 %v2495_v62, %v7186_v40  ;;  %v5950_v21 = vunpack.c.l.bf16 %v6531_v7  ;;  %4715 = vperm.xlu1 %6859, %v7229_v35  }
  0x53   :  { %v2498_v12 = vmul.f32 0.125, %v1692_v18  ;;  %v2624_v19 = vadd.f32 %v2496_v1, %v7191_v43  ;;  %v2893_v20 = vsel %vm2879_vm1, %v2621_v5, %v2620_v4  ;;  %v1699_v36 = vadd.f32 %v1698_v8, %v1697_v59  ;;  %v6534_v43 = vld [vmem:[%s9579_s0 + $0x58] sm:$0xff]  }
  0x54   :  { %v2625_v40 = vadd.f32 %v2497_v9, %v7194_v0  ;;  %v2894_v22 = vsel %vm2881_vm2, %v2622_v10, %v2893_v20  ;;  %v5951_v13 = vunpack.c.h.bf16 %v6531_v7  ;;  %v5954_v16 = vunpack.c.l.bf16 %v6532_v23 }
  0x55   :  { %v2626_v14 = vadd.f32 %v2498_v12, %v7196_v55  ;;  %v2895_v15 = vsel %vm2883_vm3, %v2623_v11, %v2894_v22  ;;  %v5955_v17 = vunpack.c.h.bf16 %v6532_v23  ;;  %v2499_v39 = vmul.f32 0.125, %v1699_v36 }
  0x56   :  { %v2896_v24 = vsel %vm2885_vm4, %v2624_v19, %v2895_v15  ;;  %v5958_v25 = vunpack.c.l.bf16 %v6533_v29  ;;  %v5959_v0 = vunpack.c.h.bf16 %v6533_v29  ;;  %v5962_v27 = vunpack.c.l.bf16 %v6534_v43  ;;  %6860 = vset.pattern.permute.xlu1 %v6908_v2 }
  0x57   :  { %v2897_v26 = vsel %vm2887_vm5, %v2625_v40, %v2896_v24  ;;  %v5963_v28 = vunpack.c.h.bf16 %v6534_v43  ;;  %v420_v30 = vsel %vm307_vm0, %v5950_v21, 0.0  ;;  %v2627_v31 = vadd.f32 %v2499_v39, %v7202_v63  ;;  %4810 = vperm.xlu1 %6860, %v7229_v35  }
  0x58   :  { %v2898_v34 = vsel %vm2889_vm6, %v2626_v14, %v2897_v26  ;;  %v421_v55 = vrot.slane %v420_v30, 4  ;;  %v427_v38 = vsel %vm307_vm0, %v5951_v13, 0.0  ;;  %v434_v33 = vsel %vm307_vm0, %v5954_v16, 0.0  ;;  %v6594_v14 = vld [vmem:[%s9580_s1 + $0x40] sm:$0xff]  }
  0x59   :  { %v428_v32 = vrot.slane %v427_v38, 4  ;;  %v441_v41 = vsel %vm307_vm0, %v5955_v17, 0.0  ;;  %v448_v51 = vsel %vm307_vm0, %v5958_v25, 0.0  ;;  %v2899_v60 = vsel %vm2891_vm7, %v2627_v31, %v2898_v34 }
  0x5a   :  { %v422_v44 = vadd.f32 %v421_v55, %v420_v30  ;;  %v435_v63 = vrot.slane %v434_v33, 4  ;;  %v442_v45 = vrot.slane %v441_v41, 4  ;;  %6744 = vmatmul.mubr.msk.f32.vlgmr.msra.gmra.mxu0 %vm307_vm0, %v2899_v60  ;;  %v449_v46 = vrot.slane %v448_v51, 4  ;;  %v6597_v55 = vld [vmem:[%s9580_s1 + $0x58] sm:$0xff]  }
  0x5b   :  { %v429_v6 = vadd.f32 %v428_v32, %v427_v38  ;;  %v455_v47 = vsel %vm307_vm0, %v5959_v0, 0.0  ;;  %v462_v48 = vsel %vm307_vm0, %v5962_v27, 0.0  ;;  %v469_v58 = vsel %vm307_vm0, %v5963_v28, 0.0  ;;  %4814 = vperm.xlu1 %6860, %v7048_v42   ;;  %v6596_v27 = vld [vmem:[%s9580_s1 + $0x50] sm:$0xff]  }
  0x5c   :  { %v423_v49 = vrot.slane %v422_v44, 2  ;;  %v436_v50 = vadd.f32 %v435_v63, %v434_v33  ;;  %v443_v52 = vadd.f32 %v442_v45, %v441_v41  ;;  %v456_v53 = vrot.slane %v455_v47, 4 }
  0x5d   :  { %v430_v54 = vrot.slane %v429_v6, 2  ;;  %v450_v56 = vadd.f32 %v449_v46, %v448_v51  ;;  %v463_v57 = vrot.slane %v462_v48, 4  ;;  %v470_v5 = vrot.slane %v469_v58, 4 }
  0x5e   :  { %v424_v59 = vadd.f32 %v423_v49, %v422_v44  ;;  %v437_v61 = vrot.slane %v436_v50, 2  ;;  %v444_v62 = vrot.slane %v443_v52, 2  ;;  %v457_v7 = vadd.f32 %v456_v53, %v455_v47 }
  0x5f   :  { %v431_v18 = vadd.f32 %v430_v54, %v429_v6  ;;  %v451_v1 = vrot.slane %v450_v56, 2  ;;  %v464_v4 = vadd.f32 %v463_v57, %v462_v48  ;;  %v471_v20 = vadd.f32 %v470_v5, %v469_v58  ;;  %6861 = vset.pattern.permute.xlu1 %v6910_v37 }
  0x60   :  { %v425_v8 = vrot.slane %v424_v59, 1  ;;  %v438_v9 = vadd.f32 %v437_v61, %v436_v50  ;;  %v445_v10 = vadd.f32 %v444_v62, %v443_v52  ;;  %v458_v11 = vrot.slane %v457_v7, 2  ;;  %4910 = vperm.xlu1 %6861, %v7229_v35   ;;  %v6595_v35 = vld [vmem:[%s9580_s1 + $0x48] sm:$0xff]  }
  0x61   :  { %v432_v23 = vrot.slane %v431_v18, 1  ;;  %v452_v12 = vadd.f32 %v451_v1, %v450_v56  ;;  %v465_v19 = vrot.slane %v464_v4, 2  ;;  %v472_v43 = vrot.slane %v471_v20, 2 }
  0x62   :  { %v426_v21 = vadd.f32 %v425_v8, %v424_v59  ;;  %v439_v42 = vrot.slane %v438_v9, 1  ;;  %v446_v29 = vrot.slane %v445_v10, 1  ;;  %v459_v36 = vadd.f32 %v458_v11, %v457_v7 }
  0x63   :  { %v433_v40 = vadd.f32 %v432_v23, %v431_v18  ;;  %v453_v22 = vrot.slane %v452_v12, 1  ;;  %v466_v13 = vadd.f32 %v465_v19, %v464_v4  ;;  %v473_v0 = vadd.f32 %v472_v43, %v471_v20 }
  0x64   :  { %v440_v15 = vadd.f32 %v439_v42, %v438_v9  ;;  %v447_v16 = vadd.f32 %v446_v29, %v445_v10  ;;  %v460_v17 = vrot.slane %v459_v36, 1  ;;  %v7261_v39 = vmul.f32 0.125, %v426_v21  ;;  %6862 = vset.pattern.permute.xlu1 %v6909_v3 }
  0x65   :  { %v454_v24 = vadd.f32 %v453_v22, %v452_v12  ;;  %v467_v25 = vrot.slane %v466_v13, 1  ;;  %v7263_v26 = vmul.f32 0.125, %v433_v40  ;;  %v6206_v34 = vunpack.c.l.bf16 %v6594_v14 }
  0x66   :  { %v461_v28 = vadd.f32 %v460_v17, %v459_v36  ;;  %v7271_v30 = vmul.f32 0.125, %v440_v15  ;;  %v7273_v31 = vmul.f32 0.125, %v447_v16  ;;  %v474_v32 = vrot.slane %v473_v0, 1 }
  0x67   :  { %v468_v38 = vadd.f32 %v467_v25, %v466_v13  ;;  %v7279_v33 = vmul.f32 0.125, %v454_v24  ;;  %v6207_v41 = vunpack.c.h.bf16 %v6594_v14  ;;  %v6210_v60 = vunpack.c.l.bf16 %v6595_v35 }
  0x68   :  { %v7281_v51 = vmul.f32 0.125, %v461_v28  ;;  %v6211_v44 = vunpack.c.h.bf16 %v6595_v35  ;;  %v6214_v63 = vunpack.c.l.bf16 %v6596_v27  ;;  %v475_v45 = vadd.f32 %v474_v32, %v473_v0 }
  0x69   :  { %v7283_v6 = vmul.f32 0.125, %v468_v38  ;;  %v6215_v46 = vunpack.c.h.bf16 %v6596_v27  ;;  %v6218_v47 = vunpack.c.l.bf16 %v6597_v55  ;;  %v6219_v48 = vunpack.c.h.bf16 %v6597_v55 }
  0x6a   :  { %v1700_v49 = vsel %vm307_vm0, %v6206_v34, 0.0  ;;  %v1707_v50 = vsel %vm307_vm0, %v6207_v41, 0.0  ;;  %v1714_v52 = vsel %vm307_vm0, %v6210_v60, 0.0  ;;  %v7288_v53 = vmul.f32 0.125, %v475_v45 }
  0x6b   :  { %v1701_v54 = vrot.slane %v1700_v49, 4  ;;  %v1708_v56 = vrot.slane %v1707_v50, 4  ;;  %v1715_v57 = vrot.slane %v1714_v52, 4  ;;  %v1721_v58 = vsel %vm307_vm0, %v6211_v44, 0.0 }
  0x6c   :  { %v1728_v59 = vsel %vm307_vm0, %v6214_v63, 0.0  ;;  %v1735_v61 = vsel %vm307_vm0, %v6215_v46, 0.0  ;;  %v1742_v62 = vsel %vm307_vm0, %v6218_v47, 0.0  ;;  %v1722_v4 = vrot.slane %v1721_v58, 4 }
  0x6d   :  { %v1702_v7 = vadd.f32 %v1701_v54, %v1700_v49  ;;  %v1709_v18 = vadd.f32 %v1708_v56, %v1707_v50  ;;  %v1716_v1 = vadd.f32 %v1715_v57, %v1714_v52  ;;  %v1729_v5 = vrot.slane %v1728_v59, 4  ;;  %v6535_v57 = vld [vmem:[%s9579_s0 + $0x60] sm:$0xff]  }
  0x6e   :  { %v1736_v8 = vrot.slane %v1735_v61, 4  ;;  %v1743_v9 = vrot.slane %v1742_v62, 4  ;;  %v1749_v10 = vsel %vm307_vm0, %v6219_v48, 0.0  ;;  %v1723_v19 = vadd.f32 %v1722_v4, %v1721_v58 }
  0x6f   :  { %v1703_v11 = vrot.slane %v1702_v7, 2  ;;  %v1710_v23 = vrot.slane %v1709_v18, 2  ;;  %v1717_v12 = vrot.slane %v1716_v1, 2  ;;  %v1730_v20 = vadd.f32 %v1729_v5, %v1728_v59  ;;  %v6536_v5 = vld [vmem:[%s9579_s0 + $0x68] sm:$0xff]  }
  0x70   :  { %v1737_v21 = vadd.f32 %v1736_v8, %v1735_v61  ;;  %v1744_v42 = vadd.f32 %v1743_v9, %v1742_v62  ;;  %v1750_v29 = vrot.slane %v1749_v10, 4  ;;  %v1724_v13 = vrot.slane %v1723_v19, 2  ;;  %v6537_v8 = vld [vmem:[%s9579_s0 + $0x70] sm:$0xff]  }
  0x71   :  { %v1704_v36 = vadd.f32 %v1703_v11, %v1702_v7  ;;  %v1711_v40 = vadd.f32 %v1710_v23, %v1709_v18  ;;  %v1718_v22 = vadd.f32 %v1717_v12, %v1716_v1  ;;  %v1731_v43 = vrot.slane %v1730_v20, 2 }
  0x72   :  { %v1738_v14 = vrot.slane %v1737_v21, 2  ;;  %v1745_v15 = vrot.slane %v1744_v42, 2  ;;  %v1751_v16 = vadd.f32 %v1750_v29, %v1749_v10  ;;  %v1725_v0 = vadd.f32 %v1724_v13, %v1723_v19 }
  0x73   :  { %v1705_v17 = vrot.slane %v1704_v36, 1  ;;  %v1712_v24 = vrot.slane %v1711_v40, 1  ;;  %v1719_v25 = vrot.slane %v1718_v22, 1  ;;  %v1732_v35 = vadd.f32 %v1731_v43, %v1730_v20 }
  0x74   :  { %v1739_v27 = vadd.f32 %v1738_v14, %v1737_v21  ;;  %v1746_v28 = vadd.f32 %v1745_v15, %v1744_v42  ;;  %v1752_v34 = vrot.slane %v1751_v16, 2  ;;  %v1726_v41 = vrot.slane %v1725_v0, 1 }
  0x75   :  { %v1706_v55 = vadd.f32 %v1705_v17, %v1704_v36  ;;  %v1713_v38 = vadd.f32 %v1712_v24, %v1711_v40  ;;  %v1720_v32 = vadd.f32 %v1719_v25, %v1718_v22  ;;  %v1733_v60 = vrot.slane %v1732_v35, 1 }
  0x76   :  { %v1740_v44 = vrot.slane %v1739_v27, 1  ;;  %v1747_v63 = vrot.slane %v1746_v28, 1  ;;  %v1753_v45 = vadd.f32 %v1752_v34, %v1751_v16  ;;  %v1727_v46 = vadd.f32 %v1726_v41, %v1725_v0 }
  0x77   :  { %v2500_v47 = vmul.f32 0.125, %v1706_v55  ;;  %v2501_v48 = vmul.f32 0.125, %v1713_v38  ;;  %v2502_v49 = vmul.f32 0.125, %v1720_v32  ;;  %v1734_v50 = vadd.f32 %v1733_v60, %v1732_v35 }
  0x78   :  { %v1741_v52 = vadd.f32 %v1740_v44, %v1739_v27  ;;  %v1748_v54 = vadd.f32 %v1747_v63, %v1746_v28  ;;  %v1754_v56 = vrot.slane %v1753_v45, 1  ;;  %v2503_v58 = vmul.f32 0.125, %v1727_v46 }
  0x79   :  { %v2628_v59 = vadd.f32 %v2500_v47, %v7261_v39  ;;  %v2629_v61 = vadd.f32 %v2501_v48, %v7263_v26  ;;  %v2630_v62 = vadd.f32 %v2502_v49, %v7271_v30  ;;  %v2504_v18 = vmul.f32 0.125, %v1734_v50  ;;  %v6538_v30 = vld [vmem:[%s9579_s0 + $0x78] sm:$0xff]  }
  0x7a   :  { %v1755_v7 = vadd.f32 %v1754_v56, %v1753_v45  ;;  %v2505_v1 = vmul.f32 0.125, %v1741_v52  ;;  %v2506_v4 = vmul.f32 0.125, %v1748_v54  ;;  %v2631_v9 = vadd.f32 %v2503_v58, %v7273_v31 }
  0x7b   :  { %v2900_v39 = vsel %vm2879_vm1, %v2629_v61, %v2628_v59  ;;  %v5966_v10 = vunpack.c.l.bf16 %v6535_v57  ;;  %v5967_v26 = vunpack.c.h.bf16 %v6535_v57  ;;  %v2632_v23 = vadd.f32 %v2504_v18, %v7279_v33 }
  0x7c   :  { %v2507_v11 = vmul.f32 0.125, %v1755_v7  ;;  %v2633_v12 = vadd.f32 %v2505_v1, %v7281_v51  ;;  %v2634_v19 = vadd.f32 %v2506_v4, %v7283_v6  ;;  %v2901_v20 = vsel %vm2881_vm2, %v2630_v62, %v2900_v39 }
  0x7d   :  { %v5970_v21 = vunpack.c.l.bf16 %v6536_v5  ;;  %v5971_v42 = vunpack.c.h.bf16 %v6536_v5  ;;  %v5974_v31 = vunpack.c.l.bf16 %v6537_v8  ;;  %v2902_v36 = vsel %vm2883_vm3, %v2631_v9, %v2901_v20 }
  0x7e   :  { %v2635_v29 = vadd.f32 %v2507_v11, %v7288_v53  ;;  %v5975_v40 = vunpack.c.h.bf16 %v6537_v8  ;;  %v5978_v22 = vunpack.c.l.bf16 %v6538_v30  ;;  %v2903_v13 = vsel %vm2885_vm4, %v2632_v23, %v2902_v36 }
  0x7f   :  { %v5979_v43 = vunpack.c.h.bf16 %v6538_v30  ;;  %v476_v33 = vsel %vm307_vm0, %v5966_v10, 0.0  ;;  %v483_v51 = vsel %vm307_vm0, %v5967_v26, 0.0  ;;  %v2904_v6 = vsel %vm2887_vm5, %v2633_v12, %v2903_v13 }
  0x80   :  { %v477_v14 = vrot.slane %v476_v33, 4  ;;  %v484_v15 = vrot.slane %v483_v51, 4  ;;  %v490_v16 = vsel %vm307_vm0, %v5970_v21, 0.0  ;;  %v2905_v17 = vsel %vm2889_vm6, %v2634_v19, %v2904_v6  ;;  %v6598_v19 = vld [vmem:[%s9580_s1 + $0x60] sm:$0xff]  }
  0x81   :  { %v491_v53 = vrot.slane %v490_v16, 4  ;;  %v497_v24 = vsel %vm307_vm0, %v5971_v42, 0.0  ;;  %v504_v25 = vsel %vm307_vm0, %v5974_v31, 0.0  ;;  %v2906_v0 = vsel %vm2891_vm7, %v2635_v29, %v2905_v17  ;;  %v6599_v29 = vld [vmem:[%s9580_s1 + $0x68] sm:$0xff]  }
  0x82   :  { %v478_v35 = vadd.f32 %v477_v14, %v476_v33  ;;  %v485_v27 = vadd.f32 %v484_v15, %v483_v51  ;;  %v498_v28 = vrot.slane %v497_v24, 4  ;;  %6746 = vmatprep.mubr.msk.f32.mxu0 %vm307_vm0, %v2906_v0  ;;  %v505_v55 = vrot.slane %v504_v25, 4  ;;  %v6601_v15 = vld [vmem:[%s9580_s1 + $0x78] sm:$0xff]  }
  0x83   :  { %v492_v34 = vadd.f32 %v491_v53, %v490_v16  ;;  %v511_v38 = vsel %vm307_vm0, %v5975_v40, 0.0  ;;  %v518_v32 = vsel %vm307_vm0, %v5978_v22, 0.0  ;;  %v525_v48 = vsel %vm307_vm0, %v5979_v43, 0.0  ;;  %v6600_v43 = vld [vmem:[%s9580_s1 + $0x70] sm:$0xff]  }
  0x84   :  { %v479_v41 = vrot.slane %v478_v35, 2  ;;  %v486_v60 = vrot.slane %v485_v27, 2  ;;  %v499_v44 = vadd.f32 %v498_v28, %v497_v24  ;;  %v512_v63 = vrot.slane %v511_v38, 4 }
  0x85   :  { %v493_v45 = vrot.slane %v492_v34, 2  ;;  %v506_v46 = vadd.f32 %v505_v55, %v504_v25  ;;  %v519_v47 = vrot.slane %v518_v32, 4  ;;  %v526_v59 = vrot.slane %v525_v48, 4 }
  0x86   :  { %v480_v49 = vadd.f32 %v479_v41, %v478_v35  ;;  %v487_v50 = vadd.f32 %v486_v60, %v485_v27  ;;  %v500_v52 = vrot.slane %v499_v44, 2  ;;  %v513_v54 = vadd.f32 %v512_v63, %v511_v38 }
  0x87   :  { %v494_v56 = vadd.f32 %v493_v45, %v492_v34  ;;  %v507_v57 = vrot.slane %v506_v46, 2  ;;  %v520_v58 = vadd.f32 %v519_v47, %v518_v32  ;;  %v527_v8 = vadd.f32 %v526_v59, %v525_v48 }
  0x88   :  { %v481_v61 = vrot.slane %v480_v49, 1  ;;  %v488_v62 = vrot.slane %v487_v50, 1  ;;  %v501_v7 = vadd.f32 %v500_v52, %v499_v44  ;;  %v514_v18 = vrot.slane %v513_v54, 2 }
  0x89   :  { %v495_v1 = vrot.slane %v494_v56, 1  ;;  %v508_v4 = vadd.f32 %v507_v57, %v506_v46  ;;  %v521_v5 = vrot.slane %v520_v58, 2  ;;  %v528_v12 = vrot.slane %v527_v8, 2 }
  0x8a   :  { %v482_v9 = vadd.f32 %v481_v61, %v480_v49  ;;  %v489_v39 = vadd.f32 %v488_v62, %v487_v50  ;;  %v502_v10 = vrot.slane %v501_v7, 1  ;;  %v515_v26 = vadd.f32 %v514_v18, %v513_v54 }
  0x8b   :  { %v496_v30 = vadd.f32 %v495_v1, %v494_v56  ;;  %v509_v11 = vrot.slane %v508_v4, 1  ;;  %v522_v23 = vadd.f32 %v521_v5, %v520_v58  ;;  %v529_v22 = vadd.f32 %v528_v12, %v527_v8 }
  0x8c   :  { %v503_v20 = vadd.f32 %v502_v10, %v501_v7  ;;  %v516_v21 = vrot.slane %v515_v26, 1  ;;  %v7334_v42 = vmul.f32 0.125, %v482_v9  ;;  %v7336_v31 = vmul.f32 0.125, %v489_v39 }
  0x8d   :  { %v510_v36 = vadd.f32 %v509_v11, %v508_v4  ;;  %v523_v40 = vrot.slane %v522_v23, 1  ;;  %v7341_v13 = vmul.f32 0.125, %v496_v30  ;;  %v6222_v6 = vunpack.c.l.bf16 %v6598_v19 }
  0x8e   :  { %v517_v33 = vadd.f32 %v516_v21, %v515_v26  ;;  %v7346_v51 = vmul.f32 0.125, %v503_v20  ;;  %v6223_v14 = vunpack.c.h.bf16 %v6598_v19  ;;  %v530_v17 = vrot.slane %v529_v22, 1 }
  0x8f   :  { %v524_v16 = vadd.f32 %v523_v40, %v522_v23  ;;  %v7351_v53 = vmul.f32 0.125, %v510_v36  ;;  %v6226_v24 = vunpack.c.l.bf16 %v6599_v29  ;;  %v6227_v0 = vunpack.c.h.bf16 %v6599_v29 }
  0x90   :  { %v7353_v25 = vmul.f32 0.125, %v517_v33  ;;  %v6230_v35 = vunpack.c.l.bf16 %v6600_v43  ;;  %v6231_v27 = vunpack.c.h.bf16 %v6600_v43  ;;  %v531_v28 = vadd.f32 %v530_v17, %v529_v22 }
  0x91   :  { %v7355_v34 = vmul.f32 0.125, %v524_v16  ;;  %v6234_v55 = vunpack.c.l.bf16 %v6601_v15  ;;  %v6235_v38 = vunpack.c.h.bf16 %v6601_v15  ;;  %v1756_v32 = vsel %vm307_vm0, %v6222_v6, 0.0 }
  0x92   :  { %v1763_v41 = vsel %vm307_vm0, %v6223_v14, 0.0  ;;  %v1770_v60 = vsel %vm307_vm0, %v6226_v24, 0.0  ;;  %v1777_v44 = vsel %vm307_vm0, %v6227_v0, 0.0  ;;  %v7361_v63 = vmul.f32 0.125, %v531_v28 }
  0x93   :  { %v1757_v45 = vrot.slane %v1756_v32, 4  ;;  %v1764_v46 = vrot.slane %v1763_v41, 4  ;;  %v1771_v47 = vrot.slane %v1770_v60, 4  ;;  %v1778_v48 = vrot.slane %v1777_v44, 4 }
  0x94   :  { %v1784_v49 = vsel %vm307_vm0, %v6230_v35, 0.0  ;;  %v1791_v50 = vsel %vm307_vm0, %v6231_v27, 0.0  ;;  %v1798_v52 = vsel %vm307_vm0, %v6234_v55, 0.0  ;;  %v1805_v7 = vsel %vm307_vm0, %v6235_v38, 0.0 }
  0x95   :  { %v1758_v54 = vadd.f32 %v1757_v45, %v1756_v32  ;;  %v1765_v56 = vadd.f32 %v1764_v46, %v1763_v41  ;;  %v1772_v57 = vadd.f32 %v1771_v47, %v1770_v60  ;;  %v1785_v58 = vrot.slane %v1784_v49, 4  ;;  %v6539_v47 = vld [vmem:[%s9579_s0 + $0x80] sm:$0xff]  }
  0x96   :  { %v1779_v59 = vadd.f32 %v1778_v48, %v1777_v44  ;;  %v1792_v61 = vrot.slane %v1791_v50, 4  ;;  %v1799_v62 = vrot.slane %v1798_v52, 4  ;;  %v1806_v10 = vrot.slane %v1805_v7, 4 }
  0x97   :  { %v1759_v18 = vrot.slane %v1758_v54, 2  ;;  %v1766_v1 = vrot.slane %v1765_v56, 2  ;;  %v1773_v4 = vrot.slane %v1772_v57, 2  ;;  %v1786_v5 = vadd.f32 %v1785_v58, %v1784_v49 }
  0x98   :  { %v1780_v8 = vrot.slane %v1779_v59, 2  ;;  %v1793_v9 = vadd.f32 %v1792_v61, %v1791_v50  ;;  %v1800_v39 = vadd.f32 %v1799_v62, %v1798_v52  ;;  %v1807_v21 = vadd.f32 %v1806_v10, %v1805_v7  ;;  %v6541_v61 = vld [vmem:[%s9579_s0 + $0x90] sm:$0xff]  }
  0x99   :  { %v1760_v26 = vadd.f32 %v1759_v18, %v1758_v54  ;;  %v1767_v30 = vadd.f32 %v1766_v1, %v1765_v56  ;;  %v1774_v11 = vadd.f32 %v1773_v4, %v1772_v57  ;;  %v1787_v23 = vrot.slane %v1786_v5, 2 }
  0x9a   :  { %v1781_v12 = vadd.f32 %v1780_v8, %v1779_v59  ;;  %v1794_v19 = vrot.slane %v1793_v9, 2  ;;  %v1801_v20 = vrot.slane %v1800_v39, 2  ;;  %v1808_v14 = vrot.slane %v1807_v21, 2  ;;  %v6540_v59 = vld [vmem:[%s9579_s0 + $0x88] sm:$0xff]  }
  0x9b   :  { %v1761_v29 = vrot.slane %v1760_v26, 1  ;;  %v1768_v36 = vrot.slane %v1767_v30, 1  ;;  %v1775_v40 = vrot.slane %v1774_v11, 1  ;;  %v1788_v22 = vadd.f32 %v1787_v23, %v1786_v5 }
  0x9c   :  { %v1782_v43 = vrot.slane %v1781_v12, 1  ;;  %v1795_v33 = vadd.f32 %v1794_v19, %v1793_v9  ;;  %v1802_v6 = vadd.f32 %v1801_v20, %v1800_v39  ;;  %v1809_v28 = vadd.f32 %v1808_v14, %v1807_v21 }
  0x9d   :  { %v1762_v15 = vadd.f32 %v1761_v29, %v1760_v26  ;;  %v1769_v16 = vadd.f32 %v1768_v36, %v1767_v30  ;;  %v1776_v17 = vadd.f32 %v1775_v40, %v1774_v11  ;;  %v1789_v24 = vrot.slane %v1788_v22, 1 }
  0x9e   :  { %v1783_v0 = vadd.f32 %v1782_v43, %v1781_v12  ;;  %v1796_v35 = vrot.slane %v1795_v33, 1  ;;  %v1803_v27 = vrot.slane %v1802_v6, 1  ;;  %v1810_v45 = vrot.slane %v1809_v28, 1 }
  0x9f   :  { %v1790_v55 = vadd.f32 %v1789_v24, %v1788_v22  ;;  %v2508_v38 = vmul.f32 0.125, %v1762_v15  ;;  %v2509_v32 = vmul.f32 0.125, %v1769_v16  ;;  %v2510_v41 = vmul.f32 0.125, %v1776_v17 }
  0xa0   :  { %v1797_v60 = vadd.f32 %v1796_v35, %v1795_v33  ;;  %v1804_v44 = vadd.f32 %v1803_v27, %v1802_v6  ;;  %v2511_v46 = vmul.f32 0.125, %v1783_v0  ;;  %v1811_v54 = vadd.f32 %v1810_v45, %v1809_v28 }
  0xa1   :  { %v2512_v48 = vmul.f32 0.125, %v1790_v55  ;;  %v2636_v49 = vadd.f32 %v2508_v38, %v7334_v42  ;;  %v2637_v50 = vadd.f32 %v2509_v32, %v7336_v31  ;;  %v2638_v52 = vadd.f32 %v2510_v41, %v7341_v13  ;;  %v6542_v13 = vld [vmem:[%s9579_s0 + $0x98] sm:$0xff]  }
  0xa2   :  { %v2513_v56 = vmul.f32 0.125, %v1797_v60  ;;  %v2514_v57 = vmul.f32 0.125, %v1804_v44  ;;  %v2639_v58 = vadd.f32 %v2511_v46, %v7346_v51  ;;  %v5982_v31 = vunpack.c.l.bf16 %v6539_v47 }
  0xa3   :  { %v2640_v62 = vadd.f32 %v2512_v48, %v7351_v53  ;;  %v2907_v42 = vsel %vm2879_vm1, %v2637_v50, %v2636_v49  ;;  %v5983_v7 = vunpack.c.h.bf16 %v6539_v47  ;;  %v2515_v18 = vmul.f32 0.125, %v1811_v54 }
  0xa4   :  { %v2641_v51 = vadd.f32 %v2513_v56, %v7353_v25  ;;  %v2642_v1 = vadd.f32 %v2514_v57, %v7355_v34  ;;  %v2908_v4 = vsel %vm2881_vm2, %v2638_v52, %v2907_v42  ;;  %v5986_v8 = vunpack.c.l.bf16 %v6540_v59 }
  0xa5   :  { %v2909_v5 = vsel %vm2883_vm3, %v2639_v58, %v2908_v4  ;;  %v5987_v9 = vunpack.c.h.bf16 %v6540_v59  ;;  %v5990_v53 = vunpack.c.l.bf16 %v6541_v61  ;;  %v2643_v39 = vadd.f32 %v2515_v18, %v7361_v63  ;;  %v6602_v4 = vld [vmem:[%s9580_s1 + $0x80] sm:$0xff]  }
  0xa6   :  { %v2910_v10 = vsel %vm2885_vm4, %v2640_v62, %v2909_v5  ;;  %v5991_v26 = vunpack.c.h.bf16 %v6541_v61  ;;  %v5994_v30 = vunpack.c.l.bf16 %v6542_v13  ;;  %v5995_v23 = vunpack.c.h.bf16 %v6542_v13 }
  0xa7   :  { %v2911_v11 = vsel %vm2887_vm5, %v2641_v51, %v2910_v10  ;;  %v532_v25 = vsel %vm307_vm0, %v5982_v31, 0.0  ;;  %v539_v34 = vsel %vm307_vm0, %v5983_v7, 0.0  ;;  %v546_v21 = vsel %vm307_vm0, %v5986_v8, 0.0 }
  0xa8   :  { %v2912_v12 = vsel %vm2889_vm6, %v2642_v1, %v2911_v11  ;;  %v533_v19 = vrot.slane %v532_v25, 4  ;;  %v540_v20 = vrot.slane %v539_v34, 4  ;;  %v547_v63 = vrot.slane %v546_v21, 4 }
  0xa9   :  { %v2913_v29 = vsel %vm2891_vm7, %v2643_v39, %v2912_v12  ;;  %v553_v36 = vsel %vm307_vm0, %v5987_v9, 0.0  ;;  %v560_v40 = vsel %vm307_vm0, %v5990_v53, 0.0  ;;  %v567_v15 = vsel %vm307_vm0, %v5991_v26, 0.0  ;;  %v6603_v39 = vld [vmem:[%s9580_s1 + $0x88] sm:$0xff]  }
  0xaa   :  { %6747 = vmatmul.mubr.msk.f32.gmra.mxu0 %vm307_vm0, %v2913_v29  ;;  %v534_v22 = vadd.f32 %v533_v19, %v532_v25  ;;  %v541_v43 = vadd.f32 %v540_v20, %v539_v34  ;;  %v554_v33 = vrot.slane %v553_v36, 4  ;;  %v561_v6 = vrot.slane %v560_v40, 4  ;;  %v6605_v25 = vld [vmem:[%s9580_s1 + $0x98] sm:$0xff]  }
  0xab   :  { %v548_v14 = vadd.f32 %v547_v63, %v546_v21  ;;  %v574_v16 = vsel %vm307_vm0, %v5994_v30, 0.0  ;;  %v581_v17 = vsel %vm307_vm0, %v5995_v23, 0.0  ;;  %v568_v55 = vrot.slane %v567_v15, 4  ;;  %v6604_v23 = vld [vmem:[%s9580_s1 + $0x90] sm:$0xff]  }
  0xac   :  { %v535_v24 = vrot.slane %v534_v22, 2  ;;  %v542_v0 = vrot.slane %v541_v43, 2  ;;  %v555_v35 = vadd.f32 %v554_v33, %v553_v36  ;;  %v562_v27 = vadd.f32 %v561_v6, %v560_v40 }
  0xad   :  { %v549_v28 = vrot.slane %v548_v14, 2  ;;  %v575_v38 = vrot.slane %v574_v16, 4  ;;  %v582_v32 = vrot.slane %v581_v17, 4  ;;  %v569_v47 = vadd.f32 %v568_v55, %v567_v15 }
  0xae   :  { %v536_v41 = vadd.f32 %v535_v24, %v534_v22  ;;  %v543_v60 = vadd.f32 %v542_v0, %v541_v43  ;;  %v556_v44 = vrot.slane %v555_v35, 2  ;;  %v563_v45 = vrot.slane %v562_v27, 2 }
  0xaf   :  { %v550_v46 = vadd.f32 %v549_v28, %v548_v14  ;;  %v576_v48 = vadd.f32 %v575_v38, %v574_v16  ;;  %v583_v49 = vadd.f32 %v582_v32, %v581_v17  ;;  %v570_v58 = vrot.slane %v569_v47, 2 }
  0xb0   :  { %v537_v50 = vrot.slane %v536_v41, 1  ;;  %v544_v52 = vrot.slane %v543_v60, 1  ;;  %v557_v54 = vadd.f32 %v556_v44, %v555_v35  ;;  %v564_v56 = vadd.f32 %v563_v45, %v562_v27 }
  0xb1   :  { %v551_v57 = vrot.slane %v550_v46, 1  ;;  %v577_v59 = vrot.slane %v576_v48, 2  ;;  %v584_v61 = vrot.slane %v583_v49, 2  ;;  %v571_v18 = vadd.f32 %v570_v58, %v569_v47 }
  0xb2   :  { %v538_v62 = vadd.f32 %v537_v50, %v536_v41  ;;  %v545_v42 = vadd.f32 %v544_v52, %v543_v60  ;;  %v558_v31 = vrot.slane %v557_v54, 1  ;;  %v565_v7 = vrot.slane %v564_v56, 1 }
  0xb3   :  { %v552_v13 = vadd.f32 %v551_v57, %v550_v46  ;;  %v578_v51 = vadd.f32 %v577_v59, %v576_v48  ;;  %v585_v1 = vadd.f32 %v584_v61, %v583_v49  ;;  %v572_v10 = vrot.slane %v571_v18, 1 }
  0xb4   :  { %v559_v5 = vadd.f32 %v558_v31, %v557_v54  ;;  %v566_v8 = vadd.f32 %v565_v7, %v564_v56  ;;  %v7406_v9 = vmul.f32 0.125, %v538_v62  ;;  %v7408_v53 = vmul.f32 0.125, %v545_v42 }
  0xb5   :  { %v579_v26 = vrot.slane %v578_v51, 1  ;;  %v586_v30 = vrot.slane %v585_v1, 1  ;;  %v7413_v11 = vmul.f32 0.125, %v552_v13  ;;  %v6238_v19 = vunpack.c.l.bf16 %v6602_v4 }
  0xb6   :  { %v7421_v34 = vmul.f32 0.125, %v559_v5  ;;  %v7423_v12 = vmul.f32 0.125, %v566_v8  ;;  %v6239_v20 = vunpack.c.h.bf16 %v6602_v4  ;;  %v573_v21 = vadd.f32 %v572_v10, %v571_v18 }
  0xb7   :  { %v580_v29 = vadd.f32 %v579_v26, %v578_v51  ;;  %v587_v63 = vadd.f32 %v586_v30, %v585_v1  ;;  %v6242_v36 = vunpack.c.l.bf16 %v6603_v39  ;;  %v6243_v40 = vunpack.c.h.bf16 %v6603_v39 }
  0xb8   :  { %v6246_v22 = vunpack.c.l.bf16 %v6604_v23  ;;  %v6247_v43 = vunpack.c.h.bf16 %v6604_v23  ;;  %v6250_v33 = vunpack.c.l.bf16 %v6605_v25  ;;  %v7425_v6 = vmul.f32 0.125, %v573_v21 }
  0xb9   :  { %v7427_v14 = vmul.f32 0.125, %v580_v29  ;;  %v7429_v15 = vmul.f32 0.125, %v587_v63  ;;  %v6251_v16 = vunpack.c.h.bf16 %v6605_v25  ;;  %v1812_v17 = vsel %vm307_vm0, %v6238_v19, 0.0 }
  0xba   :  { %v1819_v24 = vsel %vm307_vm0, %v6239_v20, 0.0  ;;  %v1826_v0 = vsel %vm307_vm0, %v6242_v36, 0.0  ;;  %v1833_v35 = vsel %vm307_vm0, %v6243_v40, 0.0  ;;  %v1813_v27 = vrot.slane %v1812_v17, 4 }
  0xbb   :  { %v1820_v28 = vrot.slane %v1819_v24, 4  ;;  %v1827_v55 = vrot.slane %v1826_v0, 4  ;;  %v1834_v38 = vrot.slane %v1833_v35, 4  ;;  %v1840_v32 = vsel %vm307_vm0, %v6246_v22, 0.0 }
  0xbc   :  { %v1847_v41 = vsel %vm307_vm0, %v6247_v43, 0.0  ;;  %v1854_v60 = vsel %vm307_vm0, %v6250_v33, 0.0  ;;  %v1861_v44 = vsel %vm307_vm0, %v6251_v16, 0.0  ;;  %v1814_v45 = vadd.f32 %v1813_v27, %v1812_v17 }
  0xbd   :  { %v1821_v46 = vadd.f32 %v1820_v28, %v1819_v24  ;;  %v1828_v47 = vadd.f32 %v1827_v55, %v1826_v0  ;;  %v1835_v48 = vadd.f32 %v1834_v38, %v1833_v35  ;;  %v1841_v49 = vrot.slane %v1840_v32, 4  ;;  %v6543_v38 = vld [vmem:[%s9579_s0 + $0xa0] sm:$0xff]  }
  0xbe   :  { %v1848_v50 = vrot.slane %v1847_v41, 4  ;;  %v1855_v52 = vrot.slane %v1854_v60, 4  ;;  %v1862_v54 = vrot.slane %v1861_v44, 4  ;;  %v1815_v56 = vrot.slane %v1814_v45, 2 }
  0xbf   :  { %v1822_v57 = vrot.slane %v1821_v46, 2  ;;  %v1829_v58 = vrot.slane %v1828_v47, 2  ;;  %v1836_v59 = vrot.slane %v1835_v48, 2  ;;  %v1842_v61 = vadd.f32 %v1841_v49, %v1840_v32  ;;  %v6544_v32 = vld [vmem:[%s9579_s0 + $0xa8] sm:$0xff]  }
  0xc0   :  { %v1849_v62 = vadd.f32 %v1848_v50, %v1847_v41  ;;  %v1856_v42 = vadd.f32 %v1855_v52, %v1854_v60  ;;  %v1863_v31 = vadd.f32 %v1862_v54, %v1861_v44  ;;  %v1816_v7 = vadd.f32 %v1815_v56, %v1814_v45  ;;  %v6545_v50 = vld [vmem:[%s9579_s0 + $0xb0] sm:$0xff]  }
  0xc1   :  { %v1823_v13 = vadd.f32 %v1822_v57, %v1821_v46  ;;  %v1830_v18 = vadd.f32 %v1829_v58, %v1828_v47  ;;  %v1837_v51 = vadd.f32 %v1836_v59, %v1835_v48  ;;  %v1843_v1 = vrot.slane %v1842_v61, 2 }
  0xc2   :  { %v1850_v4 = vrot.slane %v1849_v62, 2  ;;  %v1857_v5 = vrot.slane %v1856_v42, 2  ;;  %v1864_v8 = vrot.slane %v1863_v31, 2  ;;  %v1817_v39 = vrot.slane %v1816_v7, 1 }
  0xc3   :  { %v1824_v10 = vrot.slane %v1823_v13, 1  ;;  %v1831_v26 = vrot.slane %v1830_v18, 1  ;;  %v1838_v30 = vrot.slane %v1837_v51, 1  ;;  %v1844_v23 = vadd.f32 %v1843_v1, %v1842_v61 }
  0xc4   :  { %v1851_v25 = vadd.f32 %v1850_v4, %v1849_v62  ;;  %v1858_v19 = vadd.f32 %v1857_v5, %v1856_v42  ;;  %v1865_v20 = vadd.f32 %v1864_v8, %v1863_v31  ;;  %v1818_v21 = vadd.f32 %v1817_v39, %v1816_v7 }
  0xc5   :  { %v1825_v29 = vadd.f32 %v1824_v10, %v1823_v13  ;;  %v1832_v63 = vadd.f32 %v1831_v26, %v1830_v18  ;;  %v1839_v36 = vadd.f32 %v1838_v30, %v1837_v51  ;;  %v1845_v40 = vrot.slane %v1844_v23, 1 }
  0xc6   :  { %v1852_v22 = vrot.slane %v1851_v25, 1  ;;  %v1859_v43 = vrot.slane %v1858_v19, 1  ;;  %v1866_v33 = vrot.slane %v1865_v20, 1  ;;  %v2516_v16 = vmul.f32 0.125, %v1818_v21 }
  0xc7   :  { %v2517_v17 = vmul.f32 0.125, %v1825_v29  ;;  %v2518_v24 = vmul.f32 0.125, %v1832_v63  ;;  %v2519_v0 = vmul.f32 0.125, %v1839_v36  ;;  %v1846_v35 = vadd.f32 %v1845_v40, %v1844_v23 }
  0xc8   :  { %v1853_v27 = vadd.f32 %v1852_v22, %v1851_v25  ;;  %v1860_v28 = vadd.f32 %v1859_v43, %v1858_v19  ;;  %v1867_v55 = vadd.f32 %v1866_v33, %v1865_v20  ;;  %v2644_v41 = vadd.f32 %v2516_v16, %v7406_v9  ;;  %v6546_v9 = vld [vmem:[%s9579_s0 + $0xb8] sm:$0xff]  }
  0xc9   :  { %v2645_v60 = vadd.f32 %v2517_v17, %v7408_v53  ;;  %v2646_v44 = vadd.f32 %v2518_v24, %v7413_v11  ;;  %v2647_v45 = vadd.f32 %v2519_v0, %v7421_v34  ;;  %v2520_v46 = vmul.f32 0.125, %v1846_v35 }
  0xca   :  { %v2521_v47 = vmul.f32 0.125, %v1853_v27  ;;  %v2522_v48 = vmul.f32 0.125, %v1860_v28  ;;  %v2523_v49 = vmul.f32 0.125, %v1867_v55  ;;  %v5998_v54 = vunpack.c.l.bf16 %v6543_v38 }
  0xcb   :  { %v2914_v52 = vsel %vm2879_vm1, %v2645_v60, %v2644_v41  ;;  %v5999_v56 = vunpack.c.h.bf16 %v6543_v38  ;;  %v6002_v57 = vunpack.c.l.bf16 %v6544_v32  ;;  %v2648_v53 = vadd.f32 %v2520_v46, %v7423_v12 }
  0xcc   :  { %v2649_v11 = vadd.f32 %v2521_v47, %v7425_v6  ;;  %v2650_v34 = vadd.f32 %v2522_v48, %v7427_v14  ;;  %v2651_v58 = vadd.f32 %v2523_v49, %v7429_v15  ;;  %v2915_v59 = vsel %vm2881_vm2, %v2646_v44, %v2914_v52 }
  0xcd   :  { %v6003_v61 = vunpack.c.h.bf16 %v6544_v32  ;;  %v6006_v62 = vunpack.c.l.bf16 %v6545_v50  ;;  %v6007_v42 = vunpack.c.h.bf16 %v6545_v50  ;;  %v2916_v31 = vsel %vm2883_vm3, %v2647_v45, %v2915_v59  ;;  %v6607_v59 = vld [vmem:[%s9580_s1 + $0xa8] sm:$0xff]  }
  0xce   :  { %v6010_v7 = vunpack.c.l.bf16 %v6546_v9  ;;  %v6011_v13 = vunpack.c.h.bf16 %v6546_v9  ;;  %v588_v18 = vsel %vm307_vm0, %v5998_v54, 0.0  ;;  %v2917_v51 = vsel %vm2885_vm4, %v2648_v53, %v2916_v31  ;;  %v6606_v9 = vld [vmem:[%s9580_s1 + $0xa0] sm:$0xff]  }
  0xcf   :  { %v589_v12 = vrot.slane %v588_v18, 4  ;;  %v595_v6 = vsel %vm307_vm0, %v5999_v56, 0.0  ;;  %v602_v14 = vsel %vm307_vm0, %v6002_v57, 0.0  ;;  %v2918_v15 = vsel %vm2887_vm5, %v2649_v11, %v2917_v51 }
  0xd0   :  { %v596_v1 = vrot.slane %v595_v6, 4  ;;  %v603_v4 = vrot.slane %v602_v14, 4  ;;  %v609_v5 = vsel %vm307_vm0, %v6003_v61, 0.0  ;;  %v2919_v8 = vsel %vm2889_vm6, %v2650_v34, %v2918_v15 }
  0xd1   :  { %v590_v39 = vadd.f32 %v589_v12, %v588_v18  ;;  %v610_v10 = vrot.slane %v609_v5, 4  ;;  %v616_v26 = vsel %vm307_vm0, %v6006_v62, 0.0  ;;  %v2920_v30 = vsel %vm2891_vm7, %v2651_v58, %v2919_v8 }
  0xd2   :  { %v597_v23 = vadd.f32 %v596_v1, %v595_v6  ;;  %v604_v25 = vadd.f32 %v603_v4, %v602_v14  ;;  %v617_v19 = vrot.slane %v616_v26, 4  ;;  %6749 = vmatprep.mubr.msk.f32.mxu0 %vm307_vm0, %v2920_v30  ;;  %v623_v29 = vsel %vm307_vm0, %v6007_v42, 0.0  ;;  %v6609_v6 = vld [vmem:[%s9580_s1 + $0xb8] sm:$0xff]  }
  0xd3   :  { %v591_v20 = vrot.slane %v590_v39, 2  ;;  %v611_v21 = vadd.f32 %v610_v10, %v609_v5  ;;  %v630_v63 = vsel %vm307_vm0, %v6010_v7, 0.0  ;;  %v624_v43 = vrot.slane %v623_v29, 4  ;;  %v6608_v7 = vld [vmem:[%s9580_s1 + $0xb0] sm:$0xff]  }
  0xd4   :  { %v598_v36 = vrot.slane %v597_v23, 2  ;;  %v605_v40 = vrot.slane %v604_v25, 2  ;;  %v618_v22 = vadd.f32 %v617_v19, %v616_v26  ;;  %v631_v17 = vrot.slane %v630_v63, 4 }
  0xd5   :  { %v592_v33 = vadd.f32 %v591_v20, %v590_v39  ;;  %v612_v16 = vrot.slane %v611_v21, 2  ;;  %v637_v24 = vsel %vm307_vm0, %v6011_v13, 0.0  ;;  %v625_v28 = vadd.f32 %v624_v43, %v623_v29 }
  0xd6   :  { %v599_v0 = vadd.f32 %v598_v36, %v597_v23  ;;  %v606_v35 = vadd.f32 %v605_v40, %v604_v25  ;;  %v619_v27 = vrot.slane %v618_v22, 2  ;;  %v632_v32 = vadd.f32 %v631_v17, %v630_v63 }
  0xd7   :  { %v593_v55 = vrot.slane %v592_v33, 1  ;;  %v613_v38 = vadd.f32 %v612_v16, %v611_v21  ;;  %v638_v41 = vrot.slane %v637_v24, 4  ;;  %v626_v46 = vrot.slane %v625_v28, 2 }
  0xd8   :  { %v600_v60 = vrot.slane %v599_v0, 1  ;;  %v607_v44 = vrot.slane %v606_v35, 1  ;;  %v620_v45 = vadd.f32 %v619_v27, %v618_v22  ;;  %v633_v49 = vrot.slane %v632_v32, 2 }
  0xd9   :  { %v594_v47 = vadd.f32 %v593_v55, %v592_v33  ;;  %v614_v48 = vrot.slane %v613_v38, 1  ;;  %v639_v50 = vadd.f32 %v638_v41, %v637_v24  ;;  %v627_v57 = vadd.f32 %v626_v46, %v625_v28 }
  0xda   :  { %v601_v52 = vadd.f32 %v600_v60, %v599_v0  ;;  %v608_v54 = vadd.f32 %v607_v44, %v606_v35  ;;  %v621_v56 = vrot.slane %v620_v45, 1  ;;  %v634_v11 = vadd.f32 %v633_v49, %v632_v32 }
  0xdb   :  { %v615_v53 = vadd.f32 %v614_v48, %v613_v38  ;;  %v640_v34 = vrot.slane %v639_v50, 2  ;;  %v7478_v58 = vmul.f32 0.125, %v594_v47  ;;  %v628_v62 = vrot.slane %v627_v57, 1 }
  0xdc   :  { %v622_v61 = vadd.f32 %v621_v56, %v620_v45  ;;  %v7483_v42 = vmul.f32 0.125, %v601_v52  ;;  %v7485_v31 = vmul.f32 0.125, %v608_v54  ;;  %v635_v13 = vrot.slane %v634_v11, 1 }
  0xdd   :  { %v641_v18 = vadd.f32 %v640_v34, %v639_v50  ;;  %v7490_v51 = vmul.f32 0.125, %v615_v53  ;;  %v6254_v12 = vunpack.c.l.bf16 %v6606_v9  ;;  %v629_v14 = vadd.f32 %v628_v62, %v627_v57 }
  0xde   :  { %v7495_v15 = vmul.f32 0.125, %v622_v61  ;;  %v6255_v1 = vunpack.c.h.bf16 %v6606_v9  ;;  %v6258_v4 = vunpack.c.l.bf16 %v6607_v59  ;;  %v636_v5 = vadd.f32 %v635_v13, %v634_v11 }
  0xdf   :  { %v642_v8 = vrot.slane %v641_v18, 1  ;;  %v6259_v39 = vunpack.c.h.bf16 %v6607_v59  ;;  %v6262_v10 = vunpack.c.l.bf16 %v6608_v7  ;;  %v7497_v26 = vmul.f32 0.125, %v629_v14 }
  0xe0   :  { %v6263_v30 = vunpack.c.h.bf16 %v6608_v7  ;;  %v6266_v23 = vunpack.c.l.bf16 %v6609_v6  ;;  %v6267_v25 = vunpack.c.h.bf16 %v6609_v6  ;;  %v7499_v20 = vmul.f32 0.125, %v636_v5 }
  0xe1   :  { %v643_v19 = vadd.f32 %v642_v8, %v641_v18  ;;  %v1868_v21 = vsel %vm307_vm0, %v6254_v12, 0.0  ;;  %v1875_v29 = vsel %vm307_vm0, %v6255_v1, 0.0  ;;  %v1882_v40 = vsel %vm307_vm0, %v6258_v4, 0.0 }
  0xe2   :  { %v1869_v63 = vrot.slane %v1868_v21, 4  ;;  %v1876_v36 = vrot.slane %v1875_v29, 4  ;;  %v1889_v22 = vsel %vm307_vm0, %v6259_v39, 0.0  ;;  %v1883_v33 = vrot.slane %v1882_v40, 4 }
  0xe3   :  { %v7505_v43 = vmul.f32 0.125, %v643_v19  ;;  %v1890_v16 = vrot.slane %v1889_v22, 4  ;;  %v1896_v17 = vsel %vm307_vm0, %v6262_v10, 0.0  ;;  %v1903_v27 = vsel %vm307_vm0, %v6263_v30, 0.0 }
  0xe4   :  { %v1870_v24 = vadd.f32 %v1869_v63, %v1868_v21  ;;  %v1877_v0 = vadd.f32 %v1876_v36, %v1875_v29  ;;  %v1897_v35 = vrot.slane %v1896_v17, 4  ;;  %v1884_v28 = vadd.f32 %v1883_v33, %v1882_v40  ;;  %v6547_v40 = vld [vmem:[%s9579_s0 + $0xc0] sm:$0xff]  }
  0xe5   :  { %v1891_v55 = vadd.f32 %v1890_v16, %v1889_v22  ;;  %v1904_v38 = vrot.slane %v1903_v27, 4  ;;  %v1910_v32 = vsel %vm307_vm0, %v6266_v23, 0.0  ;;  %v1917_v49 = vsel %vm307_vm0, %v6267_v25, 0.0 }
  0xe6   :  { %v1871_v41 = vrot.slane %v1870_v24, 2  ;;  %v1878_v60 = vrot.slane %v1877_v0, 2  ;;  %v1898_v44 = vadd.f32 %v1897_v35, %v1896_v17  ;;  %v1911_v45 = vrot.slane %v1910_v32, 4 }
  0xe7   :  { %v1885_v46 = vrot.slane %v1884_v28, 2  ;;  %v1892_v47 = vrot.slane %v1891_v55, 2  ;;  %v1905_v48 = vadd.f32 %v1904_v38, %v1903_v27  ;;  %v1918_v11 = vrot.slane %v1917_v49, 4 }
  0xe8   :  { %v1872_v50 = vadd.f32 %v1871_v41, %v1870_v24  ;;  %v1879_v52 = vadd.f32 %v1878_v60, %v1877_v0  ;;  %v1899_v54 = vrot.slane %v1898_v44, 2  ;;  %v1912_v56 = vadd.f32 %v1911_v45, %v1910_v32 }
  0xe9   :  { %v1886_v57 = vadd.f32 %v1885_v46, %v1884_v28  ;;  %v1893_v9 = vadd.f32 %v1892_v47, %v1891_v55  ;;  %v1906_v53 = vrot.slane %v1905_v48, 2  ;;  %v1919_v12 = vadd.f32 %v1918_v11, %v1917_v49  ;;  %v6548_v28 = vld [vmem:[%s9579_s0 + $0xc8] sm:$0xff]  }
  0xea   :  { %v1873_v34 = vrot.slane %v1872_v50, 1  ;;  %v1880_v59 = vrot.slane %v1879_v52, 1  ;;  %v1900_v61 = vadd.f32 %v1899_v54, %v1898_v44  ;;  %v1913_v62 = vrot.slane %v1912_v56, 2  ;;  %v6550_v44 = vld [vmem:[%s9579_s0 + $0xd8] sm:$0xff]  }
  0xeb   :  { %v1887_v7 = vrot.slane %v1886_v57, 1  ;;  %v1894_v13 = vrot.slane %v1893_v9, 1  ;;  %v1907_v18 = vadd.f32 %v1906_v53, %v1905_v48  ;;  %v1920_v10 = vrot.slane %v1919_v12, 2 }
  0xec   :  { %v1874_v6 = vadd.f32 %v1873_v34, %v1872_v50  ;;  %v1881_v14 = vadd.f32 %v1880_v59, %v1879_v52  ;;  %v1901_v1 = vrot.slane %v1900_v61, 1  ;;  %v1914_v4 = vadd.f32 %v1913_v62, %v1912_v56 }
  0xed   :  { %v1888_v5 = vadd.f32 %v1887_v7, %v1886_v57  ;;  %v1895_v8 = vadd.f32 %v1894_v13, %v1893_v9  ;;  %v1908_v39 = vrot.slane %v1907_v18, 1  ;;  %v1921_v29 = vadd.f32 %v1920_v10, %v1919_v12 }
  0xee   :  { %v1902_v30 = vadd.f32 %v1901_v1, %v1900_v61  ;;  %v1915_v23 = vrot.slane %v1914_v4, 1  ;;  %v2524_v25 = vmul.f32 0.125, %v1874_v6  ;;  %v2525_v19 = vmul.f32 0.125, %v1881_v14 }
  0xef   :  { %v1909_v21 = vadd.f32 %v1908_v39, %v1907_v18  ;;  %v2526_v63 = vmul.f32 0.125, %v1888_v5  ;;  %v2527_v36 = vmul.f32 0.125, %v1895_v8  ;;  %v1922_v24 = vrot.slane %v1921_v29, 1 }
  0xf0   :  { %v1916_v22 = vadd.f32 %v1915_v23, %v1914_v4  ;;  %v2528_v33 = vmul.f32 0.125, %v1902_v30  ;;  %v2652_v16 = vadd.f32 %v2524_v25, %v7478_v58  ;;  %v2653_v17 = vadd.f32 %v2525_v19, %v7483_v42  ;;  %v6549_v58 = vld [vmem:[%s9579_s0 + $0xd0] sm:$0xff]  }
  0xf1   :  { %v2529_v0 = vmul.f32 0.125, %v1909_v21  ;;  %v2654_v35 = vadd.f32 %v2526_v63, %v7485_v31  ;;  %v2655_v27 = vadd.f32 %v2527_v36, %v7490_v51  ;;  %v6014_v41 = vunpack.c.l.bf16 %v6547_v40 }
  0xf2   :  { %v2530_v55 = vmul.f32 0.125, %v1916_v22  ;;  %v2656_v38 = vadd.f32 %v2528_v33, %v7495_v15  ;;  %v2921_v32 = vsel %vm2879_vm1, %v2653_v17, %v2652_v16  ;;  %v1923_v42 = vadd.f32 %v1922_v24, %v1921_v29 }
  0xf3   :  { %v2657_v60 = vadd.f32 %v2529_v0, %v7497_v26  ;;  %v2922_v31 = vsel %vm2881_vm2, %v2654_v35, %v2921_v32  ;;  %v6015_v51 = vunpack.c.h.bf16 %v6547_v40  ;;  %v6018_v46 = vunpack.c.l.bf16 %v6548_v28 }
  0xf4   :  { %v2658_v45 = vadd.f32 %v2530_v55, %v7499_v20  ;;  %v2923_v15 = vsel %vm2883_vm3, %v2655_v27, %v2922_v31  ;;  %v6019_v47 = vunpack.c.h.bf16 %v6548_v28  ;;  %v2531_v48 = vmul.f32 0.125, %v1923_v42 }
  0xf5   :  { %v2924_v49 = vsel %vm2885_vm4, %v2656_v38, %v2923_v15  ;;  %v6022_v50 = vunpack.c.l.bf16 %v6549_v58  ;;  %v6023_v52 = vunpack.c.h.bf16 %v6549_v58  ;;  %v6026_v54 = vunpack.c.l.bf16 %v6550_v44 }
  0xf6   :  { %v2925_v26 = vsel %vm2887_vm5, %v2657_v60, %v2924_v49  ;;  %v6027_v56 = vunpack.c.h.bf16 %v6550_v44  ;;  %v644_v57 = vsel %vm307_vm0, %v6014_v41, 0.0  ;;  %v2659_v9 = vadd.f32 %v2531_v48, %v7505_v43  ;;  %v6610_v44 = vld [vmem:[%s9580_s1 + $0xc0] sm:$0xff]  }
  0xf7   :  { %v2926_v53 = vsel %vm2889_vm6, %v2658_v45, %v2925_v26  ;;  %v645_v20 = vrot.slane %v644_v57, 4  ;;  %v651_v11 = vsel %vm307_vm0, %v6015_v51, 0.0  ;;  %v658_v59 = vsel %vm307_vm0, %v6018_v46, 0.0  ;;  %v6611_v26 = vld [vmem:[%s9580_s1 + $0xc8] sm:$0xff]  }
  0xf8   :  { %v652_v34 = vrot.slane %v651_v11, 4  ;;  %v665_v61 = vsel %vm307_vm0, %v6019_v47, 0.0  ;;  %v672_v62 = vsel %vm307_vm0, %v6022_v50, 0.0  ;;  %v2927_v7 = vsel %vm2891_vm7, %v2659_v9, %v2926_v53 }
  0xf9   :  { %v646_v13 = vadd.f32 %v645_v20, %v644_v57  ;;  %v659_v18 = vrot.slane %v658_v59, 4  ;;  %v666_v12 = vrot.slane %v665_v61, 4  ;;  %6750 = vmatmul.mubr.msk.f32.gmra.mxu0 %vm307_vm0, %v2927_v7  ;;  %v673_v6 = vrot.slane %v672_v62, 4  ;;  %v6613_v20 = vld [vmem:[%s9580_s1 + $0xd8] sm:$0xff]  }
  0xfa   :  { %v653_v43 = vadd.f32 %v652_v34, %v651_v11  ;;  %v679_v14 = vsel %vm307_vm0, %v6023_v52, 0.0  ;;  %v686_v1 = vsel %vm307_vm0, %v6026_v54, 0.0  ;;  %v693_v25 = vsel %vm307_vm0, %v6027_v56, 0.0  ;;  %v6612_v54 = vld [vmem:[%s9580_s1 + $0xd0] sm:$0xff]  }
  0xfb   :  { %v647_v4 = vrot.slane %v646_v13, 2  ;;  %v660_v5 = vadd.f32 %v659_v18, %v658_v59  ;;  %v667_v8 = vadd.f32 %v666_v12, %v665_v61  ;;  %v680_v39 = vrot.slane %v679_v14, 4 }
  0xfc   :  { %v654_v10 = vrot.slane %v653_v43, 2  ;;  %v674_v30 = vadd.f32 %v673_v6, %v672_v62  ;;  %v687_v23 = vrot.slane %v686_v1, 4  ;;  %v694_v33 = vrot.slane %v693_v25, 4 }
  0xfd   :  { %v648_v19 = vadd.f32 %v647_v4, %v646_v13  ;;  %v661_v21 = vrot.slane %v660_v5, 2  ;;  %v668_v29 = vrot.slane %v667_v8, 2  ;;  %v681_v63 = vadd.f32 %v680_v39, %v679_v14 }
  0xfe   :  { %v655_v36 = vadd.f32 %v654_v10, %v653_v43  ;;  %v675_v40 = vrot.slane %v674_v30, 2  ;;  %v688_v22 = vadd.f32 %v687_v23, %v686_v1  ;;  %v695_v55 = vadd.f32 %v694_v33, %v693_v25 }
  0xff   :  { %v649_v16 = vrot.slane %v648_v19, 1  ;;  %v662_v17 = vadd.f32 %v661_v21, %v660_v5  ;;  %v669_v24 = vadd.f32 %v668_v29, %v667_v8  ;;  %v682_v0 = vrot.slane %v681_v63, 2 }
 0x100   :  { %v656_v35 = vrot.slane %v655_v36, 1  ;;  %v676_v27 = vadd.f32 %v675_v40, %v674_v30  ;;  %v689_v28 = vrot.slane %v688_v22, 2  ;;  %v696_v51 = vrot.slane %v695_v55, 2 }
 0x101   :  { %v650_v38 = vadd.f32 %v649_v16, %v648_v19  ;;  %v663_v32 = vrot.slane %v662_v17, 1  ;;  %v670_v41 = vrot.slane %v669_v24, 1  ;;  %v683_v58 = vadd.f32 %v682_v0, %v681_v63 }
 0x102   :  { %v657_v42 = vadd.f32 %v656_v35, %v655_v36  ;;  %v677_v60 = vrot.slane %v676_v27, 1  ;;  %v690_v31 = vadd.f32 %v689_v28, %v688_v22  ;;  %v697_v50 = vadd.f32 %v696_v51, %v695_v55 }
 0x103   :  { %v664_v45 = vadd.f32 %v663_v32, %v662_v17  ;;  %v671_v15 = vadd.f32 %v670_v41, %v669_v24  ;;  %v684_v46 = vrot.slane %v683_v58, 1  ;;  %v7550_v47 = vmul.f32 0.125, %v650_v38 }
 0x104   :  { %v678_v48 = vadd.f32 %v677_v60, %v676_v27  ;;  %v691_v49 = vrot.slane %v690_v31, 1  ;;  %v7552_v52 = vmul.f32 0.125, %v657_v42  ;;  %v6270_v53 = vunpack.c.l.bf16 %v6610_v44 }
 0x105   :  { %v685_v56 = vadd.f32 %v684_v46, %v683_v58  ;;  %v7560_v57 = vmul.f32 0.125, %v664_v45  ;;  %v7562_v9 = vmul.f32 0.125, %v671_v15  ;;  %v698_v34 = vrot.slane %v697_v50, 1 }
 0x106   :  { %v692_v11 = vadd.f32 %v691_v49, %v690_v31  ;;  %v7567_v59 = vmul.f32 0.125, %v678_v48  ;;  %v6271_v61 = vunpack.c.h.bf16 %v6610_v44  ;;  %v6274_v7 = vunpack.c.l.bf16 %v6611_v26 }
 0x107   :  { %v7569_v62 = vmul.f32 0.125, %v685_v56  ;;  %v6275_v13 = vunpack.c.h.bf16 %v6611_v26  ;;  %v6278_v18 = vunpack.c.l.bf16 %v6612_v54  ;;  %v699_v12 = vadd.f32 %v698_v34, %v697_v50 }
 0x108   :  { %v7571_v43 = vmul.f32 0.125, %v692_v11  ;;  %v6279_v6 = vunpack.c.h.bf16 %v6612_v54  ;;  %v6282_v14 = vunpack.c.l.bf16 %v6613_v20  ;;  %v6283_v1 = vunpack.c.h.bf16 %v6613_v20 }
 0x109   :  { %v1924_v4 = vsel %vm307_vm0, %v6270_v53, 0.0  ;;  %v1931_v5 = vsel %vm307_vm0, %v6271_v61, 0.0  ;;  %v1938_v8 = vsel %vm307_vm0, %v6274_v7, 0.0  ;;  %v7576_v39 = vmul.f32 0.125, %v699_v12 }
 0x10a   :  { %v1925_v10 = vrot.slane %v1924_v4, 4  ;;  %v1932_v30 = vrot.slane %v1931_v5, 4  ;;  %v1939_v23 = vrot.slane %v1938_v8, 4  ;;  %v1945_v25 = vsel %vm307_vm0, %v6275_v13, 0.0 }
 0x10b   :  { %v1952_v19 = vsel %vm307_vm0, %v6278_v18, 0.0  ;;  %v1959_v21 = vsel %vm307_vm0, %v6279_v6, 0.0  ;;  %v1966_v29 = vsel %vm307_vm0, %v6282_v14, 0.0  ;;  %v1946_v22 = vrot.slane %v1945_v25, 4 }
 0x10c   :  { %v1926_v63 = vadd.f32 %v1925_v10, %v1924_v4  ;;  %v1933_v36 = vadd.f32 %v1932_v30, %v1931_v5  ;;  %v1940_v40 = vadd.f32 %v1939_v23, %v1938_v8  ;;  %v1953_v33 = vrot.slane %v1952_v19, 4  ;;  %v6551_v23 = vld [vmem:[%s9579_s0 + $0xe0] sm:$0xff]  }
 0x10d   :  { %v1960_v16 = vrot.slane %v1959_v21, 4  ;;  %v1967_v17 = vrot.slane %v1966_v29, 4  ;;  %v1973_v24 = vsel %vm307_vm0, %v6283_v1, 0.0  ;;  %v1947_v28 = vadd.f32 %v1946_v22, %v1945_v25 }
 0x10e   :  { %v1927_v0 = vrot.slane %v1926_v63, 2  ;;  %v1934_v35 = vrot.slane %v1933_v36, 2  ;;  %v1941_v27 = vrot.slane %v1940_v40, 2  ;;  %v1954_v55 = vadd.f32 %v1953_v33, %v1952_v19  ;;  %v6552_v33 = vld [vmem:[%s9579_s0 + $0xe8] sm:$0xff]  }
 0x10f   :  { %v1961_v38 = vadd.f32 %v1960_v16, %v1959_v21  ;;  %v1968_v32 = vadd.f32 %v1967_v17, %v1966_v29  ;;  %v1974_v41 = vrot.slane %v1973_v24, 4  ;;  %v1948_v31 = vrot.slane %v1947_v28, 2  ;;  %v6553_v16 = vld [vmem:[%s9579_s0 + $0xf0] sm:$0xff]  }
 0x110   :  { %v1928_v58 = vadd.f32 %v1927_v0, %v1926_v63  ;;  %v1935_v42 = vadd.f32 %v1934_v35, %v1933_v36  ;;  %v1942_v60 = vadd.f32 %v1941_v27, %v1940_v40  ;;  %v1955_v51 = vrot.slane %v1954_v55, 2 }
 0x111   :  { %v1962_v44 = vrot.slane %v1961_v38, 2  ;;  %v1969_v45 = vrot.slane %v1968_v32, 2  ;;  %v1975_v15 = vadd.f32 %v1974_v41, %v1973_v24  ;;  %v1949_v50 = vadd.f32 %v1948_v31, %v1947_v28 }
 0x112   :  { %v1929_v46 = vrot.slane %v1928_v58, 1  ;;  %v1936_v48 = vrot.slane %v1935_v42, 1  ;;  %v1943_v49 = vrot.slane %v1942_v60, 1  ;;  %v1956_v26 = vadd.f32 %v1955_v51, %v1954_v55 }
 0x113   :  { %v1963_v54 = vadd.f32 %v1962_v44, %v1961_v38  ;;  %v1970_v56 = vadd.f32 %v1969_v45, %v1968_v32  ;;  %v1976_v53 = vrot.slane %v1975_v15, 2  ;;  %v1950_v61 = vrot.slane %v1949_v50, 1 }
 0x114   :  { %v1930_v20 = vadd.f32 %v1929_v46, %v1928_v58  ;;  %v1937_v11 = vadd.f32 %v1936_v48, %v1935_v42  ;;  %v1944_v34 = vadd.f32 %v1943_v49, %v1942_v60  ;;  %v1957_v7 = vrot.slane %v1956_v26, 1 }
 0x115   :  { %v1964_v13 = vrot.slane %v1963_v54, 1  ;;  %v1971_v18 = vrot.slane %v1970_v56, 1  ;;  %v1977_v12 = vadd.f32 %v1976_v53, %v1975_v15  ;;  %v1951_v6 = vadd.f32 %v1950_v61, %v1949_v50 }
 0x116   :  { %v2532_v14 = vmul.f32 0.125, %v1930_v20  ;;  %v2533_v1 = vmul.f32 0.125, %v1937_v11  ;;  %v2534_v4 = vmul.f32 0.125, %v1944_v34  ;;  %v1958_v5 = vadd.f32 %v1957_v7, %v1956_v26 }
 0x117   :  { %v1965_v8 = vadd.f32 %v1964_v13, %v1963_v54  ;;  %v1972_v10 = vadd.f32 %v1971_v18, %v1970_v56  ;;  %v1978_v30 = vrot.slane %v1977_v12, 1  ;;  %v2535_v25 = vmul.f32 0.125, %v1951_v6 }
 0x118   :  { %v2660_v19 = vadd.f32 %v2532_v14, %v7550_v47  ;;  %v2661_v21 = vadd.f32 %v2533_v1, %v7552_v52  ;;  %v2662_v29 = vadd.f32 %v2534_v4, %v7560_v57  ;;  %v2536_v36 = vmul.f32 0.125, %v1958_v5  ;;  %v6554_v57 = vld [vmem:[%s9579_s0 + $0xf8] sm:$0xff]  }
 0x119   :  { %v1979_v63 = vadd.f32 %v1978_v30, %v1977_v12  ;;  %v2537_v40 = vmul.f32 0.125, %v1965_v8  ;;  %v2538_v22 = vmul.f32 0.125, %v1972_v10  ;;  %v2663_v17 = vadd.f32 %v2535_v25, %v7562_v9 }
 0x11a   :  { %v2928_v47 = vsel %vm2879_vm1, %v2661_v21, %v2660_v19  ;;  %v6030_v24 = vunpack.c.l.bf16 %v6551_v23  ;;  %v6031_v52 = vunpack.c.h.bf16 %v6551_v23  ;;  %v2664_v35 = vadd.f32 %v2536_v36, %v7567_v59 }
 0x11b   :  { %v2539_v0 = vmul.f32 0.125, %v1979_v63  ;;  %v2665_v27 = vadd.f32 %v2537_v40, %v7569_v62  ;;  %v2666_v28 = vadd.f32 %v2538_v22, %v7571_v43  ;;  %v2929_v55 = vsel %vm2881_vm2, %v2662_v29, %v2928_v47 }
 0x11c   :  { %v6034_v38 = vunpack.c.l.bf16 %v6552_v33  ;;  %v6035_v32 = vunpack.c.h.bf16 %v6552_v33  ;;  %v6038_v9 = vunpack.c.l.bf16 %v6553_v16  ;;  %v2930_v58 = vsel %vm2883_vm3, %v2663_v17, %v2929_v55 }
 0x11d   :  { %v2667_v41 = vadd.f32 %v2539_v0, %v7576_v39  ;;  %v6039_v42 = vunpack.c.h.bf16 %v6553_v16  ;;  %v6042_v60 = vunpack.c.l.bf16 %v6554_v57  ;;  %v2931_v31 = vsel %vm2885_vm4, %v2664_v35, %v2930_v58 }
 0x11e   :  { %v6043_v51 = vunpack.c.h.bf16 %v6554_v57  ;;  %v700_v59 = vsel %vm307_vm0, %v6030_v24, 0.0  ;;  %v707_v62 = vsel %vm307_vm0, %v6031_v52, 0.0  ;;  %v2932_v43 = vsel %vm2887_vm5, %v2665_v27, %v2931_v31 }
 0x11f   :  { %v701_v44 = vrot.slane %v700_v59, 4  ;;  %v708_v45 = vrot.slane %v707_v62, 4  ;;  %v714_v15 = vsel %vm307_vm0, %v6034_v38, 0.0  ;;  %v2933_v46 = vsel %vm2889_vm6, %v2666_v28, %v2932_v43  ;;  %v6614_v28 = vld [vmem:[%s9580_s1 + $0xe0] sm:$0xff]  }
 0x120   :  { %v715_v39 = vrot.slane %v714_v15, 4  ;;  %v721_v48 = vsel %vm307_vm0, %v6035_v32, 0.0  ;;  %v728_v49 = vsel %vm307_vm0, %v6038_v9, 0.0  ;;  %v2934_v50 = vsel %vm2891_vm7, %v2667_v41, %v2933_v46  ;;  %v6615_v41 = vld [vmem:[%s9580_s1 + $0xe8] sm:$0xff]  }
 0x121   :  { %v702_v26 = vadd.f32 %v701_v44, %v700_v59  ;;  %v709_v54 = vadd.f32 %v708_v45, %v707_v62  ;;  %v722_v56 = vrot.slane %v721_v48, 4  ;;  %6752 = vmatprep.mubr.msk.f32.mxu0 %vm307_vm0, %v2934_v50  ;;  %v729_v20 = vrot.slane %v728_v49, 4  ;;  %v6617_v45 = vld [vmem:[%s9580_s1 + $0xf8] sm:$0xff]  }
 0x122   :  { %v716_v53 = vadd.f32 %v715_v39, %v714_v15  ;;  %v735_v11 = vsel %vm307_vm0, %v6039_v42, 0.0  ;;  %v742_v34 = vsel %vm307_vm0, %v6042_v60, 0.0  ;;  %v749_v1 = vsel %vm307_vm0, %v6043_v51, 0.0  ;;  %v6616_v51 = vld [vmem:[%s9580_s1 + $0xf0] sm:$0xff]  }
 0x123   :  { %v703_v61 = vrot.slane %v702_v26, 2  ;;  %v710_v7 = vrot.slane %v709_v54, 2  ;;  %v723_v13 = vadd.f32 %v722_v56, %v721_v48  ;;  %v736_v18 = vrot.slane %v735_v11, 4 }
 0x124   :  { %v717_v12 = vrot.slane %v716_v53, 2  ;;  %v730_v6 = vadd.f32 %v729_v20, %v728_v49  ;;  %v743_v14 = vrot.slane %v742_v34, 4  ;;  %v750_v19 = vrot.slane %v749_v1, 4 }
 0x125   :  { %v704_v4 = vadd.f32 %v703_v61, %v702_v26  ;;  %v711_v5 = vadd.f32 %v710_v7, %v709_v54  ;;  %v724_v8 = vrot.slane %v723_v13, 2  ;;  %v737_v10 = vadd.f32 %v736_v18, %v735_v11 }
 0x126   :  { %v718_v30 = vadd.f32 %v717_v12, %v716_v53  ;;  %v731_v23 = vrot.slane %v730_v6, 2  ;;  %v744_v25 = vadd.f32 %v743_v14, %v742_v34  ;;  %v751_v16 = vadd.f32 %v750_v19, %v749_v1 }
 0x127   :  { %v705_v21 = vrot.slane %v704_v4, 1  ;;  %v712_v29 = vrot.slane %v711_v5, 1  ;;  %v725_v63 = vadd.f32 %v724_v8, %v723_v13  ;;  %v738_v36 = vrot.slane %v737_v10, 2 }
 0x128   :  { %v719_v40 = vrot.slane %v718_v30, 1  ;;  %v732_v22 = vadd.f32 %v731_v23, %v730_v6  ;;  %v745_v33 = vrot.slane %v744_v25, 2  ;;  %v752_v27 = vrot.slane %v751_v16, 2 }
 0x129   :  { %v706_v17 = vadd.f32 %v705_v21, %v704_v4  ;;  %v713_v47 = vadd.f32 %v712_v29, %v711_v5  ;;  %v726_v24 = vrot.slane %v725_v63, 1  ;;  %v739_v52 = vadd.f32 %v738_v36, %v737_v10 }
 0x12a   :  { %v720_v57 = vadd.f32 %v719_v40, %v718_v30  ;;  %v733_v0 = vrot.slane %v732_v22, 1  ;;  %v746_v35 = vadd.f32 %v745_v33, %v744_v25  ;;  %v753_v60 = vadd.f32 %v752_v27, %v751_v16 }
 0x12b   :  { %v727_v55 = vadd.f32 %v726_v24, %v725_v63  ;;  %v740_v38 = vrot.slane %v739_v52, 1  ;;  %v7622_v32 = vmul.f32 0.125, %v706_v17  ;;  %v7624_v9 = vmul.f32 0.125, %v713_v47 }
 0x12c   :  { %v734_v58 = vadd.f32 %v733_v0, %v732_v22  ;;  %v747_v42 = vrot.slane %v746_v35, 1  ;;  %v7629_v31 = vmul.f32 0.125, %v720_v57  ;;  %v6286_v43 = vunpack.c.l.bf16 %v6614_v28 }
 0x12d   :  { %v741_v59 = vadd.f32 %v740_v38, %v739_v52  ;;  %v7634_v62 = vmul.f32 0.125, %v727_v55  ;;  %v6287_v44 = vunpack.c.h.bf16 %v6614_v28  ;;  %v754_v46 = vrot.slane %v753_v60, 1 }
 0x12e   :  { %v748_v15 = vadd.f32 %v747_v42, %v746_v35  ;;  %v7639_v39 = vmul.f32 0.125, %v734_v58  ;;  %v6290_v48 = vunpack.c.l.bf16 %v6615_v41  ;;  %v6291_v50 = vunpack.c.h.bf16 %v6615_v41 }
 0x12f   :  { %v7641_v49 = vmul.f32 0.125, %v741_v59  ;;  %v6294_v26 = vunpack.c.l.bf16 %v6616_v51  ;;  %v6295_v54 = vunpack.c.h.bf16 %v6616_v51  ;;  %v755_v56 = vadd.f32 %v754_v46, %v753_v60 }
 0x130   :  { %v7643_v53 = vmul.f32 0.125, %v748_v15  ;;  %v6298_v20 = vunpack.c.l.bf16 %v6617_v45  ;;  %v6299_v11 = vunpack.c.h.bf16 %v6617_v45  ;;  %v1980_v34 = vsel %vm307_vm0, %v6286_v43, 0.0 }
 0x131   :  { %v1987_v61 = vsel %vm307_vm0, %v6287_v44, 0.0  ;;  %v1994_v7 = vsel %vm307_vm0, %v6290_v48, 0.0  ;;  %v2001_v13 = vsel %vm307_vm0, %v6291_v50, 0.0  ;;  %v7649_v18 = vmul.f32 0.125, %v755_v56 }
 0x132   :  { %v1981_v12 = vrot.slane %v1980_v34, 4  ;;  %v1988_v6 = vrot.slane %v1987_v61, 4  ;;  %v1995_v14 = vrot.slane %v1994_v7, 4  ;;  %v2002_v1 = vrot.slane %v2001_v13, 4 }
 0x133   :  { %v2008_v4 = vsel %vm307_vm0, %v6294_v26, 0.0  ;;  %v2015_v5 = vsel %vm307_vm0, %v6295_v54, 0.0  ;;  %v2022_v8 = vsel %vm307_vm0, %v6298_v20, 0.0  ;;  %v2029_v63 = vsel %vm307_vm0, %v6299_v11, 0.0 }
 0x134   :  { %v1982_v10 = vadd.f32 %v1981_v12, %v1980_v34  ;;  %v1989_v30 = vadd.f32 %v1988_v6, %v1987_v61  ;;  %v1996_v23 = vadd.f32 %v1995_v14, %v1994_v7  ;;  %v2009_v25 = vrot.slane %v2008_v4, 4  ;;  %v6555_v14 = vld [vmem:[%s9579_s0 + $0x100] sm:$0xff]  }
 0x135   :  { %v2003_v19 = vadd.f32 %v2002_v1, %v2001_v13  ;;  %v2016_v21 = vrot.slane %v2015_v5, 4  ;;  %v2023_v29 = vrot.slane %v2022_v8, 4  ;;  %v2030_v24 = vrot.slane %v2029_v63, 4 }
 0x136   :  { %v1983_v36 = vrot.slane %v1982_v10, 2  ;;  %v1990_v40 = vrot.slane %v1989_v30, 2  ;;  %v1997_v22 = vrot.slane %v1996_v23, 2  ;;  %v2010_v33 = vadd.f32 %v2009_v25, %v2008_v4 }
 0x137   :  { %v2004_v16 = vrot.slane %v2003_v19, 2  ;;  %v2017_v17 = vadd.f32 %v2016_v21, %v2015_v5  ;;  %v2024_v47 = vadd.f32 %v2023_v29, %v2022_v8  ;;  %v2031_v38 = vadd.f32 %v2030_v24, %v2029_v63  ;;  %v6557_v21 = vld [vmem:[%s9579_s0 + $0x110] sm:$0xff]  }
 0x138   :  { %v1984_v52 = vadd.f32 %v1983_v36, %v1982_v10  ;;  %v1991_v57 = vadd.f32 %v1990_v40, %v1989_v30  ;;  %v1998_v0 = vadd.f32 %v1997_v22, %v1996_v23  ;;  %v2011_v35 = vrot.slane %v2010_v33, 2 }
 0x139   :  { %v2005_v27 = vadd.f32 %v2004_v16, %v2003_v19  ;;  %v2018_v28 = vrot.slane %v2017_v17, 2  ;;  %v2025_v55 = vrot.slane %v2024_v47, 2  ;;  %v2032_v44 = vrot.slane %v2031_v38, 2  ;;  %v6556_v19 = vld [vmem:[%s9579_s0 + $0x108] sm:$0xff]  }
 0x13a   :  { %v1985_v41 = vrot.slane %v1984_v52, 1  ;;  %v1992_v58 = vrot.slane %v1991_v57, 1  ;;  %v1999_v42 = vrot.slane %v1998_v0, 1  ;;  %v2012_v60 = vadd.f32 %v2011_v35, %v2010_v33 }
 0x13b   :  { %v2006_v51 = vrot.slane %v2005_v27, 1  ;;  %v2019_v59 = vadd.f32 %v2018_v28, %v2017_v17  ;;  %v2026_v43 = vadd.f32 %v2025_v55, %v2024_v47  ;;  %v2033_v56 = vadd.f32 %v2032_v44, %v2031_v38 }
 0x13c   :  { %v1986_v45 = vadd.f32 %v1985_v41, %v1984_v52  ;;  %v1993_v15 = vadd.f32 %v1992_v58, %v1991_v57  ;;  %v2000_v46 = vadd.f32 %v1999_v42, %v1998_v0  ;;  %v2013_v48 = vrot.slane %v2012_v60, 1 }
 0x13d   :  { %v2007_v50 = vadd.f32 %v2006_v51, %v2005_v27  ;;  %v2020_v26 = vrot.slane %v2019_v59, 1  ;;  %v2027_v54 = vrot.slane %v2026_v43, 1  ;;  %v2034_v12 = vrot.slane %v2033_v56, 1 }
 0x13e   :  { %v2014_v20 = vadd.f32 %v2013_v48, %v2012_v60  ;;  %v2540_v11 = vmul.f32 0.125, %v1986_v45  ;;  %v2541_v34 = vmul.f32 0.125, %v1993_v15  ;;  %v2542_v61 = vmul.f32 0.125, %v2000_v46 }
 0x13f   :  { %v2021_v7 = vadd.f32 %v2020_v26, %v2019_v59  ;;  %v2028_v13 = vadd.f32 %v2027_v54, %v2026_v43  ;;  %v2543_v6 = vmul.f32 0.125, %v2007_v50  ;;  %v2035_v10 = vadd.f32 %v2034_v12, %v2033_v56 }
 0x140   :  { %v2544_v1 = vmul.f32 0.125, %v2014_v20  ;;  %v2668_v4 = vadd.f32 %v2540_v11, %v7622_v32  ;;  %v2669_v5 = vadd.f32 %v2541_v34, %v7624_v9  ;;  %v2670_v8 = vadd.f32 %v2542_v61, %v7629_v31  ;;  %v6558_v31 = vld [vmem:[%s9579_s0 + $0x118] sm:$0xff]  }
 0x141   :  { %v2545_v30 = vmul.f32 0.125, %v2021_v7  ;;  %v2546_v23 = vmul.f32 0.125, %v2028_v13  ;;  %v2671_v25 = vadd.f32 %v2543_v6, %v7634_v62  ;;  %v6046_v9 = vunpack.c.l.bf16 %v6555_v14 }
 0x142   :  { %v2672_v29 = vadd.f32 %v2544_v1, %v7639_v39  ;;  %v2935_v32 = vsel %vm2879_vm1, %v2669_v5, %v2668_v4  ;;  %v6047_v63 = vunpack.c.h.bf16 %v6555_v14  ;;  %v2547_v36 = vmul.f32 0.125, %v2035_v10 }
 0x143   :  { %v2673_v62 = vadd.f32 %v2545_v30, %v7641_v49  ;;  %v2674_v40 = vadd.f32 %v2546_v23, %v7643_v53  ;;  %v2936_v22 = vsel %vm2881_vm2, %v2670_v8, %v2935_v32  ;;  %v6050_v16 = vunpack.c.l.bf16 %v6556_v19 }
 0x144   :  { %v2937_v33 = vsel %vm2883_vm3, %v2671_v25, %v2936_v22  ;;  %v6051_v17 = vunpack.c.h.bf16 %v6556_v19  ;;  %v6054_v39 = vunpack.c.l.bf16 %v6557_v21  ;;  %v2675_v47 = vadd.f32 %v2547_v36, %v7649_v18  ;;  %v6618_v22 = vld [vmem:[%s9580_s1 + $0x100] sm:$0xff]  }
 0x145   :  { %v2938_v24 = vsel %vm2885_vm4, %v2672_v29, %v2937_v33  ;;  %v6055_v52 = vunpack.c.h.bf16 %v6557_v21  ;;  %v6058_v57 = vunpack.c.l.bf16 %v6558_v31  ;;  %v6059_v35 = vunpack.c.h.bf16 %v6558_v31 }
 0x146   :  { %v2939_v0 = vsel %vm2887_vm5, %v2673_v62, %v2938_v24  ;;  %v756_v49 = vsel %vm307_vm0, %v6046_v9, 0.0  ;;  %v763_v53 = vsel %vm307_vm0, %v6047_v63, 0.0  ;;  %v770_v38 = vsel %vm307_vm0, %v6050_v16, 0.0 }
 0x147   :  { %v2940_v27 = vsel %vm2889_vm6, %v2674_v40, %v2939_v0  ;;  %v757_v28 = vrot.slane %v756_v49, 4  ;;  %v764_v55 = vrot.slane %v763_v53, 4  ;;  %v771_v18 = vrot.slane %v770_v38, 4 }
 0x148   :  { %v2941_v41 = vsel %vm2891_vm7, %v2675_v47, %v2940_v27  ;;  %v777_v58 = vsel %vm307_vm0, %v6051_v17, 0.0  ;;  %v784_v42 = vsel %vm307_vm0, %v6054_v39, 0.0  ;;  %v791_v45 = vsel %vm307_vm0, %v6055_v52, 0.0  ;;  %v6619_v47 = vld [vmem:[%s9580_s1 + $0x108] sm:$0xff]  }
 0x149   :  { %6753 = vmatmul.mubr.msk.f32.gmra.mxu0 %vm307_vm0, %v2941_v41  ;;  %v758_v60 = vadd.f32 %v757_v28, %v756_v49  ;;  %v765_v51 = vadd.f32 %v764_v55, %v763_v53  ;;  %v778_v59 = vrot.slane %v777_v58, 4  ;;  %v785_v43 = vrot.slane %v784_v42, 4  ;;  %v6621_v49 = vld [vmem:[%s9580_s1 + $0x118] sm:$0xff]  }
 0x14a   :  { %v772_v44 = vadd.f32 %v771_v18, %v770_v38  ;;  %v798_v15 = vsel %vm307_vm0, %v6058_v57, 0.0  ;;  %v805_v46 = vsel %vm307_vm0, %v6059_v35, 0.0  ;;  %v792_v20 = vrot.slane %v791_v45, 4  ;;  %v6620_v35 = vld [vmem:[%s9580_s1 + $0x110] sm:$0xff]  }
 0x14b   :  { %v759_v48 = vrot.slane %v758_v60, 2  ;;  %v766_v50 = vrot.slane %v765_v51, 2  ;;  %v779_v26 = vadd.f32 %v778_v59, %v777_v58  ;;  %v786_v54 = vadd.f32 %v785_v43, %v784_v42 }
 0x14c   :  { %v773_v56 = vrot.slane %v772_v44, 2  ;;  %v799_v11 = vrot.slane %v798_v15, 4  ;;  %v806_v34 = vrot.slane %v805_v46, 4  ;;  %v793_v14 = vadd.f32 %v792_v20, %v791_v45 }
 0x14d   :  { %v760_v61 = vadd.f32 %v759_v48, %v758_v60  ;;  %v767_v7 = vadd.f32 %v766_v50, %v765_v51  ;;  %v780_v13 = vrot.slane %v779_v26, 2  ;;  %v787_v12 = vrot.slane %v786_v54, 2 }
 0x14e   :  { %v774_v6 = vadd.f32 %v773_v56, %v772_v44  ;;  %v800_v1 = vadd.f32 %v799_v11, %v798_v15  ;;  %v807_v4 = vadd.f32 %v806_v34, %v805_v46  ;;  %v794_v25 = vrot.slane %v793_v14, 2 }
 0x14f   :  { %v761_v5 = vrot.slane %v760_v61, 1  ;;  %v768_v8 = vrot.slane %v767_v7, 1  ;;  %v781_v10 = vadd.f32 %v780_v13, %v779_v26  ;;  %v788_v30 = vadd.f32 %v787_v12, %v786_v54 }
 0x150   :  { %v775_v23 = vrot.slane %v774_v6, 1  ;;  %v801_v19 = vrot.slane %v800_v1, 2  ;;  %v808_v21 = vrot.slane %v807_v4, 2  ;;  %v795_v36 = vadd.f32 %v794_v25, %v793_v14 }
 0x151   :  { %v762_v29 = vadd.f32 %v761_v5, %v760_v61  ;;  %v769_v32 = vadd.f32 %v768_v8, %v767_v7  ;;  %v782_v9 = vrot.slane %v781_v10, 1  ;;  %v789_v63 = vrot.slane %v788_v30, 1 }
 0x152   :  { %v776_v31 = vadd.f32 %v775_v23, %v774_v6  ;;  %v802_v62 = vadd.f32 %v801_v19, %v800_v1  ;;  %v809_v40 = vadd.f32 %v808_v21, %v807_v4  ;;  %v796_v24 = vrot.slane %v795_v36, 1 }
 0x153   :  { %v783_v33 = vadd.f32 %v782_v9, %v781_v10  ;;  %v790_v16 = vadd.f32 %v789_v63, %v788_v30  ;;  %v7694_v17 = vmul.f32 0.125, %v762_v29  ;;  %v7696_v39 = vmul.f32 0.125, %v769_v32 }
 0x154   :  { %v803_v52 = vrot.slane %v802_v62, 1  ;;  %v810_v57 = vrot.slane %v809_v40, 1  ;;  %v7701_v0 = vmul.f32 0.125, %v776_v31  ;;  %v6302_v28 = vunpack.c.l.bf16 %v6618_v22 }
 0x155   :  { %v7709_v53 = vmul.f32 0.125, %v783_v33  ;;  %v7711_v27 = vmul.f32 0.125, %v790_v16  ;;  %v6303_v55 = vunpack.c.h.bf16 %v6618_v22  ;;  %v797_v38 = vadd.f32 %v796_v24, %v795_v36 }
 0x156   :  { %v804_v41 = vadd.f32 %v803_v52, %v802_v62  ;;  %v811_v18 = vadd.f32 %v810_v57, %v809_v40  ;;  %v6306_v58 = vunpack.c.l.bf16 %v6619_v47  ;;  %v6307_v42 = vunpack.c.h.bf16 %v6619_v47 }
 0x157   :  { %v6310_v60 = vunpack.c.l.bf16 %v6620_v35  ;;  %v6311_v51 = vunpack.c.h.bf16 %v6620_v35  ;;  %v6314_v59 = vunpack.c.l.bf16 %v6621_v49  ;;  %v7713_v43 = vmul.f32 0.125, %v797_v38 }
 0x158   :  { %v7715_v44 = vmul.f32 0.125, %v804_v41  ;;  %v7717_v45 = vmul.f32 0.125, %v811_v18  ;;  %v6315_v15 = vunpack.c.h.bf16 %v6621_v49  ;;  %v2036_v46 = vsel %vm307_vm0, %v6302_v28, 0.0 }
 0x159   :  { %v2043_v48 = vsel %vm307_vm0, %v6303_v55, 0.0  ;;  %v2050_v50 = vsel %vm307_vm0, %v6306_v58, 0.0  ;;  %v2057_v26 = vsel %vm307_vm0, %v6307_v42, 0.0  ;;  %v2037_v54 = vrot.slane %v2036_v46, 4 }
 0x15a   :  { %v2044_v56 = vrot.slane %v2043_v48, 4  ;;  %v2051_v20 = vrot.slane %v2050_v50, 4  ;;  %v2058_v11 = vrot.slane %v2057_v26, 4  ;;  %v2064_v34 = vsel %vm307_vm0, %v6310_v60, 0.0 }
 0x15b   :  { %v2071_v61 = vsel %vm307_vm0, %v6311_v51, 0.0  ;;  %v2078_v7 = vsel %vm307_vm0, %v6314_v59, 0.0  ;;  %v2085_v13 = vsel %vm307_vm0, %v6315_v15, 0.0  ;;  %v2038_v12 = vadd.f32 %v2037_v54, %v2036_v46 }
 0x15c   :  { %v2045_v6 = vadd.f32 %v2044_v56, %v2043_v48  ;;  %v2052_v14 = vadd.f32 %v2051_v20, %v2050_v50  ;;  %v2059_v1 = vadd.f32 %v2058_v11, %v2057_v26  ;;  %v2065_v4 = vrot.slane %v2064_v34, 4  ;;  %v6559_v11 = vld [vmem:[%s9579_s0 + $0x120] sm:$0xff]  }
 0x15d   :  { %v2072_v5 = vrot.slane %v2071_v61, 4  ;;  %v2079_v8 = vrot.slane %v2078_v7, 4  ;;  %v2086_v10 = vrot.slane %v2085_v13, 4  ;;  %v2039_v30 = vrot.slane %v2038_v12, 2 }
 0x15e   :  { %v2046_v23 = vrot.slane %v2045_v6, 2  ;;  %v2053_v25 = vrot.slane %v2052_v14, 2  ;;  %v2060_v19 = vrot.slane %v2059_v1, 2  ;;  %v2066_v21 = vadd.f32 %v2065_v4, %v2064_v34  ;;  %v6560_v34 = vld [vmem:[%s9579_s0 + $0x128] sm:$0xff]  }
 0x15f   :  { %v2073_v29 = vadd.f32 %v2072_v5, %v2071_v61  ;;  %v2080_v32 = vadd.f32 %v2079_v8, %v2078_v7  ;;  %v2087_v9 = vadd.f32 %v2086_v10, %v2085_v13  ;;  %v2040_v63 = vadd.f32 %v2039_v30, %v2038_v12  ;;  %v6561_v8 = vld [vmem:[%s9579_s0 + $0x130] sm:$0xff]   ;;  %v6562_v10 = vld [vmem:[%s9579_s0 + $0x138] sm:$0xff]  }
 0x160   :  { %v2047_v31 = vadd.f32 %v2046_v23, %v2045_v6  ;;  %v2054_v36 = vadd.f32 %v2053_v25, %v2052_v14  ;;  %v2061_v62 = vadd.f32 %v2060_v19, %v2059_v1  ;;  %v2067_v40 = vrot.slane %v2066_v21, 2  ;;  %v7740_v6 = vld [vmem:[%s9585_s6 + $0x30] sm:$0xff] }
 0x161   :  { %v2074_v22 = vrot.slane %v2073_v29, 2  ;;  %v2081_v33 = vrot.slane %v2080_v32, 2  ;;  %v2088_v16 = vrot.slane %v2087_v9, 2  ;;  %v2041_v47 = vrot.slane %v2040_v63, 1  ;;  %4725 = vperm.xlu1 %6862, %v7740_v6  }
 0x162   :  { %v2048_v24 = vrot.slane %v2047_v31, 1  ;;  %v2055_v52 = vrot.slane %v2054_v36, 1  ;;  %v2062_v57 = vrot.slane %v2061_v62, 1  ;;  %v2068_v35 = vadd.f32 %v2067_v40, %v2066_v21 }
 0x163   :  { %v2075_v49 = vadd.f32 %v2074_v22, %v2073_v29  ;;  %v2082_v28 = vadd.f32 %v2081_v33, %v2080_v32  ;;  %v2089_v55 = vadd.f32 %v2088_v16, %v2087_v9  ;;  %v2042_v38 = vadd.f32 %v2041_v47, %v2040_v63 }
 0x164   :  { %v2049_v41 = vadd.f32 %v2048_v24, %v2047_v31  ;;  %v2056_v18 = vadd.f32 %v2055_v52, %v2054_v36  ;;  %v2063_v58 = vadd.f32 %v2062_v57, %v2061_v62  ;;  %v2069_v42 = vrot.slane %v2068_v35, 1 }
 0x165   :  { %v2076_v60 = vrot.slane %v2075_v49, 1  ;;  %v2083_v51 = vrot.slane %v2082_v28, 1  ;;  %v2090_v59 = vrot.slane %v2089_v55, 1  ;;  %v2548_v15 = vmul.f32 0.125, %v2042_v38  ;;  %6863 = vset.pattern.permute.xlu1 %v6908_v2 }
 0x166   :  { %v2549_v46 = vmul.f32 0.125, %v2049_v41  ;;  %v2550_v48 = vmul.f32 0.125, %v2056_v18  ;;  %v2551_v50 = vmul.f32 0.125, %v2063_v58  ;;  %v2070_v26 = vadd.f32 %v2069_v42, %v2068_v35  ;;  %4818 = vperm.xlu1 %6863, %v7740_v6   ;;  %v6878_v42 = vld [vmem:[%s9585_s6 + $0x38] sm:$0xff] }
 0x167   :  { %v2077_v54 = vadd.f32 %v2076_v60, %v2075_v49  ;;  %v2084_v56 = vadd.f32 %v2083_v51, %v2082_v28  ;;  %v2091_v20 = vadd.f32 %v2090_v59, %v2089_v55  ;;  %v2676_v61 = vadd.f32 %v2548_v15, %v7694_v17 }
 0x168   :  { %v2677_v7 = vadd.f32 %v2549_v46, %v7696_v39  ;;  %v2678_v13 = vadd.f32 %v2550_v48, %v7701_v0  ;;  %v2679_v12 = vadd.f32 %v2551_v50, %v7709_v53  ;;  %v2552_v14 = vmul.f32 0.125, %v2070_v26 }
 0x169   :  { %v2553_v1 = vmul.f32 0.125, %v2077_v54  ;;  %v2554_v4 = vmul.f32 0.125, %v2084_v56  ;;  %v2555_v5 = vmul.f32 0.125, %v2091_v20  ;;  %v6062_v39 = vunpack.c.l.bf16 %v6559_v11 }
 0x16a   :  { %v2942_v17 = vsel %vm2879_vm1, %v2677_v7, %v2676_v61  ;;  %v6063_v0 = vunpack.c.h.bf16 %v6559_v11  ;;  %v6066_v53 = vunpack.c.l.bf16 %v6560_v34  ;;  %v2680_v30 = vadd.f32 %v2552_v14, %v7711_v27  ;;  %4822 = vperm.xlu1 %6863, %v6878_v42  }
 0x16b   :  { %v2681_v23 = vadd.f32 %v2553_v1, %v7713_v43  ;;  %v2682_v25 = vadd.f32 %v2554_v4, %v7715_v44  ;;  %v2683_v19 = vadd.f32 %v2555_v5, %v7717_v45  ;;  %v2943_v21 = vsel %vm2881_vm2, %v2678_v13, %v2942_v17 }
 0x16c   :  { %v6067_v29 = vunpack.c.h.bf16 %v6560_v34  ;;  %v6070_v32 = vunpack.c.l.bf16 %v6561_v8  ;;  %v6071_v9 = vunpack.c.h.bf16 %v6561_v8  ;;  %v2944_v63 = vsel %vm2883_vm3, %v2679_v12, %v2943_v21 }
 0x16d   :  { %v6074_v31 = vunpack.c.l.bf16 %v6562_v10  ;;  %v6075_v36 = vunpack.c.h.bf16 %v6562_v10  ;;  %v812_v62 = vsel %vm307_vm0, %v6062_v39, 0.0  ;;  %v2945_v27 = vsel %vm2885_vm4, %v2680_v30, %v2944_v63 }
 0x16e   :  { %v813_v43 = vrot.slane %v812_v62, 4  ;;  %v819_v44 = vsel %vm307_vm0, %v6063_v0, 0.0  ;;  %v826_v45 = vsel %vm307_vm0, %v6066_v53, 0.0  ;;  %v2946_v40 = vsel %vm2887_vm5, %v2681_v23, %v2945_v27  ;;  %6864 = vset.pattern.permute.xlu1 %v6910_v37  ;;  %v6622_v23 = vld [vmem:[%s9580_s1 + $0x120] sm:$0xff]  }
 0x16f   :  { %v820_v22 = vrot.slane %v819_v44, 4  ;;  %v827_v33 = vrot.slane %v826_v45, 4  ;;  %v833_v16 = vsel %vm307_vm0, %v6067_v29, 0.0  ;;  %v2947_v47 = vsel %vm2889_vm6, %v2682_v25, %v2946_v40  ;;  %4918 = vperm.xlu1 %6864, %v7740_v6   ;;  %v6623_v6 = vld [vmem:[%s9580_s1 + $0x128] sm:$0xff]  }
 0x170   :  { %v814_v24 = vadd.f32 %v813_v43, %v812_v62  ;;  %v834_v52 = vrot.slane %v833_v16, 4  ;;  %v840_v57 = vsel %vm307_vm0, %v6070_v32, 0.0  ;;  %v2948_v35 = vsel %vm2891_vm7, %v2683_v19, %v2947_v47 }
 0x171   :  { %v821_v49 = vadd.f32 %v820_v22, %v819_v44  ;;  %v828_v28 = vadd.f32 %v827_v33, %v826_v45  ;;  %v841_v55 = vrot.slane %v840_v57, 4  ;;  %6755 = vmatprep.mubr.msk.f32.mxu1 %vm307_vm0, %v2948_v35  ;;  %v847_v18 = vsel %vm307_vm0, %v6071_v9, 0.0  ;;  %v6625_v45 = vld [vmem:[%s9580_s1 + $0x138] sm:$0xff]  }
 0x172   :  { %v815_v38 = vrot.slane %v814_v24, 2  ;;  %v835_v41 = vadd.f32 %v834_v52, %v833_v16  ;;  %v854_v58 = vsel %vm307_vm0, %v6074_v31, 0.0  ;;  %v848_v15 = vrot.slane %v847_v18, 4 }
 0x173   :  { %v822_v60 = vrot.slane %v821_v49, 2  ;;  %v829_v51 = vrot.slane %v828_v28, 2  ;;  %v842_v59 = vadd.f32 %v841_v55, %v840_v57  ;;  %v855_v50 = vrot.slane %v854_v58, 4  ;;  %6865 = vset.pattern.permute.xlu1 %v6909_v3 }
 0x174   :  { %v816_v46 = vadd.f32 %v815_v38, %v814_v24  ;;  %v836_v48 = vrot.slane %v835_v41, 2  ;;  %v861_v26 = vsel %vm307_vm0, %v6075_v36, 0.0  ;;  %v849_v11 = vadd.f32 %v848_v15, %v847_v18  ;;  %v6624_v36 = vld [vmem:[%s9580_s1 + $0x130] sm:$0xff]  }
 0x175   :  { %v823_v54 = vadd.f32 %v822_v60, %v821_v49  ;;  %v830_v56 = vadd.f32 %v829_v51, %v828_v28  ;;  %v843_v20 = vrot.slane %v842_v59, 2  ;;  %v856_v7 = vadd.f32 %v855_v50, %v854_v58 }
 0x176   :  { %v817_v34 = vrot.slane %v816_v46, 1  ;;  %v837_v61 = vadd.f32 %v836_v48, %v835_v41  ;;  %v862_v13 = vrot.slane %v861_v26, 4  ;;  %v850_v4 = vrot.slane %v849_v11, 2 }
 0x177   :  { %v824_v12 = vrot.slane %v823_v54, 1  ;;  %v831_v14 = vrot.slane %v830_v56, 1  ;;  %v844_v1 = vadd.f32 %v843_v20, %v842_v59  ;;  %v857_v17 = vrot.slane %v856_v7, 2 }
 0x178   :  { %v818_v5 = vadd.f32 %v817_v34, %v816_v46  ;;  %v838_v8 = vrot.slane %v837_v61, 1  ;;  %v863_v39 = vadd.f32 %v862_v13, %v861_v26  ;;  %v851_v30 = vadd.f32 %v850_v4, %v849_v11 }
 0x179   :  { %v825_v0 = vadd.f32 %v824_v12, %v823_v54  ;;  %v832_v53 = vadd.f32 %v831_v14, %v830_v56  ;;  %v845_v10 = vrot.slane %v844_v1, 1  ;;  %v858_v19 = vadd.f32 %v857_v17, %v856_v7 }
 0x17a   :  { %v839_v25 = vadd.f32 %v838_v8, %v837_v61  ;;  %v864_v21 = vrot.slane %v863_v39, 2  ;;  %v7779_v29 = vmul.f32 0.125, %v818_v5  ;;  %v852_v9 = vrot.slane %v851_v30, 1 }
 0x17b   :  { %v846_v32 = vadd.f32 %v845_v10, %v844_v1  ;;  %v7784_v63 = vmul.f32 0.125, %v825_v0  ;;  %v7786_v31 = vmul.f32 0.125, %v832_v53  ;;  %v859_v62 = vrot.slane %v858_v19, 1 }
 0x17c   :  { %v865_v27 = vadd.f32 %v864_v21, %v863_v39  ;;  %v7792_v43 = vmul.f32 0.125, %v839_v25  ;;  %v6318_v44 = vunpack.c.l.bf16 %v6622_v23  ;;  %v853_v40 = vadd.f32 %v852_v9, %v851_v30 }
 0x17d   :  { %v7797_v22 = vmul.f32 0.125, %v846_v32  ;;  %v6319_v33 = vunpack.c.h.bf16 %v6622_v23  ;;  %v6322_v16 = vunpack.c.l.bf16 %v6623_v6  ;;  %v860_v47 = vadd.f32 %v859_v62, %v858_v19 }
 0x17e   :  { %v866_v24 = vrot.slane %v865_v27, 1  ;;  %v6323_v52 = vunpack.c.h.bf16 %v6623_v6  ;;  %v6326_v57 = vunpack.c.l.bf16 %v6624_v36  ;;  %v7799_v35 = vmul.f32 0.125, %v853_v40 }
 0x17f   :  { %v6327_v49 = vunpack.c.h.bf16 %v6624_v36  ;;  %v6330_v28 = vunpack.c.l.bf16 %v6625_v45  ;;  %v6331_v55 = vunpack.c.h.bf16 %v6625_v45  ;;  %v7801_v41 = vmul.f32 0.125, %v860_v47 }
 0x180   :  { %v867_v38 = vadd.f32 %v866_v24, %v865_v27  ;;  %v2092_v18 = vsel %vm307_vm0, %v6318_v44, 0.0  ;;  %v2099_v58 = vsel %vm307_vm0, %v6319_v33, 0.0  ;;  %v2106_v51 = vsel %vm307_vm0, %v6322_v16, 0.0 }
 0x181   :  { %v2093_v42 = vrot.slane %v2092_v18, 4  ;;  %v2100_v60 = vrot.slane %v2099_v58, 4  ;;  %v2113_v59 = vsel %vm307_vm0, %v6323_v52, 0.0  ;;  %v2107_v46 = vrot.slane %v2106_v51, 4 }
 0x182   :  { %v7807_v15 = vmul.f32 0.125, %v867_v38  ;;  %v2114_v48 = vrot.slane %v2113_v59, 4  ;;  %v2120_v50 = vsel %vm307_vm0, %v6326_v57, 0.0  ;;  %v2127_v20 = vsel %vm307_vm0, %v6327_v49, 0.0 }
 0x183   :  { %v2094_v26 = vadd.f32 %v2093_v42, %v2092_v18  ;;  %v2101_v54 = vadd.f32 %v2100_v60, %v2099_v58  ;;  %v2121_v56 = vrot.slane %v2120_v50, 4  ;;  %v2108_v11 = vadd.f32 %v2107_v46, %v2106_v51  ;;  %v6563_v51 = vld [vmem:[%s9579_s0 + $0x140] sm:$0xff]  }
 0x184   :  { %v2115_v34 = vadd.f32 %v2114_v48, %v2113_v59  ;;  %v2128_v61 = vrot.slane %v2127_v20, 4  ;;  %v2134_v7 = vsel %vm307_vm0, %v6330_v28, 0.0  ;;  %v2141_v17 = vsel %vm307_vm0, %v6331_v55, 0.0 }
 0x185   :  { %v2095_v13 = vrot.slane %v2094_v26, 2  ;;  %v2102_v12 = vrot.slane %v2101_v54, 2  ;;  %v2122_v14 = vadd.f32 %v2121_v56, %v2120_v50  ;;  %v2135_v1 = vrot.slane %v2134_v7, 4 }
 0x186   :  { %v2109_v4 = vrot.slane %v2108_v11, 2  ;;  %v2116_v5 = vrot.slane %v2115_v34, 2  ;;  %v2129_v8 = vadd.f32 %v2128_v61, %v2127_v20  ;;  %v2142_v19 = vrot.slane %v2141_v17, 4 }
 0x187   :  { %v2096_v39 = vadd.f32 %v2095_v13, %v2094_v26  ;;  %v2103_v0 = vadd.f32 %v2102_v12, %v2101_v54  ;;  %v2123_v53 = vrot.slane %v2122_v14, 2  ;;  %v2136_v10 = vadd.f32 %v2135_v1, %v2134_v7 }
 0x188   :  { %v2110_v30 = vadd.f32 %v2109_v4, %v2108_v11  ;;  %v2117_v23 = vadd.f32 %v2116_v5, %v2115_v34  ;;  %v2130_v25 = vrot.slane %v2129_v8, 2  ;;  %v2143_v44 = vadd.f32 %v2142_v19, %v2141_v17  ;;  %v6564_v11 = vld [vmem:[%s9579_s0 + $0x148] sm:$0xff]  }
 0x189   :  { %v2097_v21 = vrot.slane %v2096_v39, 1  ;;  %v2104_v6 = vrot.slane %v2103_v0, 1  ;;  %v2124_v32 = vadd.f32 %v2123_v53, %v2122_v14  ;;  %v2137_v9 = vrot.slane %v2136_v10, 2  ;;  %v6566_v14 = vld [vmem:[%s9579_s0 + $0x158] sm:$0xff]  }
 0x18a   :  { %v2111_v36 = vrot.slane %v2110_v30, 1  ;;  %v2118_v62 = vrot.slane %v2117_v23, 1  ;;  %v2131_v27 = vadd.f32 %v2130_v25, %v2129_v8  ;;  %v2144_v57 = vrot.slane %v2143_v44, 2 }
 0x18b   :  { %v2098_v45 = vadd.f32 %v2097_v21, %v2096_v39  ;;  %v2105_v40 = vadd.f32 %v2104_v6, %v2103_v0  ;;  %v2125_v33 = vrot.slane %v2124_v32, 1  ;;  %v2138_v16 = vadd.f32 %v2137_v9, %v2136_v10 }
 0x18c   :  { %v2112_v47 = vadd.f32 %v2111_v36, %v2110_v30  ;;  %v2119_v24 = vadd.f32 %v2118_v62, %v2117_v23  ;;  %v2132_v52 = vrot.slane %v2131_v27, 1  ;;  %v2145_v58 = vadd.f32 %v2144_v57, %v2143_v44 }
 0x18d   :  { %v2126_v49 = vadd.f32 %v2125_v33, %v2124_v32  ;;  %v2139_v28 = vrot.slane %v2138_v16, 1  ;;  %v2556_v55 = vmul.f32 0.125, %v2098_v45  ;;  %v2557_v38 = vmul.f32 0.125, %v2105_v40 }
 0x18e   :  { %v2133_v18 = vadd.f32 %v2132_v52, %v2131_v27  ;;  %v2558_v42 = vmul.f32 0.125, %v2112_v47  ;;  %v2559_v60 = vmul.f32 0.125, %v2119_v24  ;;  %v2146_v26 = vrot.slane %v2145_v58, 1 }
 0x18f   :  { %v2140_v59 = vadd.f32 %v2139_v28, %v2138_v16  ;;  %v2560_v46 = vmul.f32 0.125, %v2126_v49  ;;  %v2684_v48 = vadd.f32 %v2556_v55, %v7779_v29  ;;  %v2685_v50 = vadd.f32 %v2557_v38, %v7784_v63  ;;  %v6565_v29 = vld [vmem:[%s9579_s0 + $0x150] sm:$0xff]  }
 0x190   :  { %v2561_v54 = vmul.f32 0.125, %v2133_v18  ;;  %v2686_v56 = vadd.f32 %v2558_v42, %v7786_v31  ;;  %v2687_v20 = vadd.f32 %v2559_v60, %v7792_v43  ;;  %v6078_v13 = vunpack.c.l.bf16 %v6563_v51 }
 0x191   :  { %v2562_v34 = vmul.f32 0.125, %v2140_v59  ;;  %v2688_v61 = vadd.f32 %v2560_v46, %v7797_v22  ;;  %v2949_v7 = vsel %vm2879_vm1, %v2685_v50, %v2684_v48  ;;  %v2147_v63 = vadd.f32 %v2146_v26, %v2145_v58 }
 0x192   :  { %v2689_v12 = vadd.f32 %v2561_v54, %v7799_v35  ;;  %v2950_v31 = vsel %vm2881_vm2, %v2686_v56, %v2949_v7  ;;  %v6079_v43 = vunpack.c.h.bf16 %v6563_v51  ;;  %v6082_v4 = vunpack.c.l.bf16 %v6564_v11 }
 0x193   :  { %v2690_v1 = vadd.f32 %v2562_v34, %v7801_v41  ;;  %v2951_v22 = vsel %vm2883_vm3, %v2687_v20, %v2950_v31  ;;  %v6083_v5 = vunpack.c.h.bf16 %v6564_v11  ;;  %v2563_v8 = vmul.f32 0.125, %v2147_v63 }
 0x194   :  { %v2952_v17 = vsel %vm2885_vm4, %v2688_v61, %v2951_v22  ;;  %v6086_v39 = vunpack.c.l.bf16 %v6565_v29  ;;  %v6087_v0 = vunpack.c.h.bf16 %v6565_v29  ;;  %v6090_v53 = vunpack.c.l.bf16 %v6566_v14 }
 0x195   :  { %v2953_v35 = vsel %vm2887_vm5, %v2689_v12, %v2952_v17  ;;  %v6091_v10 = vunpack.c.h.bf16 %v6566_v14  ;;  %v868_v30 = vsel %vm307_vm0, %v6078_v13, 0.0  ;;  %v2691_v23 = vadd.f32 %v2563_v8, %v7807_v15  ;;  %v6626_v14 = vld [vmem:[%s9580_s1 + $0x140] sm:$0xff]  }
 0x196   :  { %v2954_v25 = vsel %vm2889_vm6, %v2690_v1, %v2953_v35  ;;  %v869_v41 = vrot.slane %v868_v30, 4  ;;  %v875_v19 = vsel %vm307_vm0, %v6079_v43, 0.0  ;;  %v882_v6 = vsel %vm307_vm0, %v6082_v4, 0.0  ;;  %v6627_v35 = vld [vmem:[%s9580_s1 + $0x148] sm:$0xff]  }
 0x197   :  { %v876_v21 = vrot.slane %v875_v19, 4  ;;  %v889_v32 = vsel %vm307_vm0, %v6083_v5, 0.0  ;;  %v896_v9 = vsel %vm307_vm0, %v6086_v39, 0.0  ;;  %v2955_v36 = vsel %vm2891_vm7, %v2691_v23, %v2954_v25 }
 0x198   :  { %v870_v62 = vadd.f32 %v869_v41, %v868_v30  ;;  %v883_v27 = vrot.slane %v882_v6, 4  ;;  %v890_v44 = vrot.slane %v889_v32, 4  ;;  %6756 = vmatmul.mubr.msk.f32.vlgmr.msra.gmra.mxu1 %vm307_vm0, %v2955_v36  ;;  %v897_v45 = vrot.slane %v896_v9, 4  ;;  %v6629_v41 = vld [vmem:[%s9580_s1 + $0x158] sm:$0xff]  }
 0x199   :  { %v877_v15 = vadd.f32 %v876_v21, %v875_v19  ;;  %v903_v40 = vsel %vm307_vm0, %v6087_v0, 0.0  ;;  %v910_v33 = vsel %vm307_vm0, %v6090_v53, 0.0  ;;  %v917_v55 = vsel %vm307_vm0, %v6091_v10, 0.0  ;;  %v6628_v53 = vld [vmem:[%s9580_s1 + $0x150] sm:$0xff]  }
 0x19a   :  { %v871_v16 = vrot.slane %v870_v62, 2  ;;  %v884_v47 = vadd.f32 %v883_v27, %v882_v6  ;;  %v891_v24 = vadd.f32 %v890_v44, %v889_v32  ;;  %v904_v52 = vrot.slane %v903_v40, 4 }
 0x19b   :  { %v878_v57 = vrot.slane %v877_v15, 2  ;;  %v898_v49 = vadd.f32 %v897_v45, %v896_v9  ;;  %v911_v28 = vrot.slane %v910_v33, 4  ;;  %v918_v46 = vrot.slane %v917_v55, 4 }
 0x19c   :  { %v872_v38 = vadd.f32 %v871_v16, %v870_v62  ;;  %v885_v18 = vrot.slane %v884_v47, 2  ;;  %v892_v58 = vrot.slane %v891_v24, 2  ;;  %v905_v42 = vadd.f32 %v904_v52, %v903_v40 }
 0x19d   :  { %v879_v60 = vadd.f32 %v878_v57, %v877_v15  ;;  %v899_v51 = vrot.slane %v898_v49, 2  ;;  %v912_v59 = vadd.f32 %v911_v28, %v910_v33  ;;  %v919_v34 = vadd.f32 %v918_v46, %v917_v55 }
 0x19e   :  { %v873_v48 = vrot.slane %v872_v38, 1  ;;  %v886_v50 = vadd.f32 %v885_v18, %v884_v47  ;;  %v893_v26 = vadd.f32 %v892_v58, %v891_v24  ;;  %v906_v54 = vrot.slane %v905_v42, 2 }
 0x19f   :  { %v880_v56 = vrot.slane %v879_v60, 1  ;;  %v900_v20 = vadd.f32 %v899_v51, %v898_v49  ;;  %v913_v11 = vrot.slane %v912_v59, 2  ;;  %v920_v43 = vrot.slane %v919_v34, 2 }
 0x1a0   :  { %v874_v61 = vadd.f32 %v873_v48, %v872_v38  ;;  %v887_v7 = vrot.slane %v886_v50, 1  ;;  %v894_v13 = vrot.slane %v893_v26, 1  ;;  %v907_v29 = vadd.f32 %v906_v54, %v905_v42 }
 0x1a1   :  { %v881_v63 = vadd.f32 %v880_v56, %v879_v60  ;;  %v901_v12 = vrot.slane %v900_v20, 1  ;;  %v914_v31 = vadd.f32 %v913_v11, %v912_v59  ;;  %v921_v39 = vadd.f32 %v920_v43, %v919_v34 }
 0x1a2   :  { %v888_v1 = vadd.f32 %v887_v7, %v886_v50  ;;  %v895_v22 = vadd.f32 %v894_v13, %v893_v26  ;;  %v908_v4 = vrot.slane %v907_v29, 1  ;;  %v7852_v5 = vmul.f32 0.125, %v874_v61 }
 0x1a3   :  { %v902_v8 = vadd.f32 %v901_v12, %v900_v20  ;;  %v915_v17 = vrot.slane %v914_v31, 1  ;;  %v7854_v0 = vmul.f32 0.125, %v881_v63  ;;  %v6334_v25 = vunpack.c.l.bf16 %v6626_v14 }
 0x1a4   :  { %v909_v10 = vadd.f32 %v908_v4, %v907_v29  ;;  %v7862_v30 = vmul.f32 0.125, %v888_v1  ;;  %v7864_v23 = vmul.f32 0.125, %v895_v22  ;;  %v922_v21 = vrot.slane %v921_v39, 1 }
 0x1a5   :  { %v916_v19 = vadd.f32 %v915_v17, %v914_v31  ;;  %v7869_v6 = vmul.f32 0.125, %v902_v8  ;;  %v6335_v32 = vunpack.c.h.bf16 %v6626_v14  ;;  %v6338_v36 = vunpack.c.l.bf16 %v6627_v35 }
 0x1a6   :  { %v7871_v9 = vmul.f32 0.125, %v909_v10  ;;  %v6339_v62 = vunpack.c.h.bf16 %v6627_v35  ;;  %v6342_v27 = vunpack.c.l.bf16 %v6628_v53  ;;  %v923_v44 = vadd.f32 %v922_v21, %v921_v39 }
 0x1a7   :  { %v7873_v15 = vmul.f32 0.125, %v916_v19  ;;  %v6343_v45 = vunpack.c.h.bf16 %v6628_v53  ;;  %v6346_v40 = vunpack.c.l.bf16 %v6629_v41  ;;  %v6347_v33 = vunpack.c.h.bf16 %v6629_v41 }
 0x1a8   :  { %v2148_v16 = vsel %vm307_vm0, %v6334_v25, 0.0  ;;  %v2155_v47 = vsel %vm307_vm0, %v6335_v32, 0.0  ;;  %v2162_v24 = vsel %vm307_vm0, %v6338_v36, 0.0  ;;  %v7878_v52 = vmul.f32 0.125, %v923_v44 }
 0x1a9   :  { %v2149_v57 = vrot.slane %v2148_v16, 4  ;;  %v2156_v49 = vrot.slane %v2155_v47, 4  ;;  %v2163_v28 = vrot.slane %v2162_v24, 4  ;;  %v2169_v55 = vsel %vm307_vm0, %v6339_v62, 0.0 }
 0x1aa   :  { %v2176_v38 = vsel %vm307_vm0, %v6342_v27, 0.0  ;;  %v2183_v18 = vsel %vm307_vm0, %v6343_v45, 0.0  ;;  %v2190_v58 = vsel %vm307_vm0, %v6346_v40, 0.0  ;;  %v2170_v59 = vrot.slane %v2169_v55, 4 }
 0x1ab   :  { %v2150_v42 = vadd.f32 %v2149_v57, %v2148_v16  ;;  %v2157_v60 = vadd.f32 %v2156_v49, %v2155_v47  ;;  %v2164_v51 = vadd.f32 %v2163_v28, %v2162_v24  ;;  %v2177_v46 = vrot.slane %v2176_v38, 4  ;;  %v6567_v28 = vld [vmem:[%s9579_s0 + $0x160] sm:$0xff]  }
 0x1ac   :  { %v2184_v48 = vrot.slane %v2183_v18, 4  ;;  %v2191_v50 = vrot.slane %v2190_v58, 4  ;;  %v2197_v26 = vsel %vm307_vm0, %v6347_v33, 0.0  ;;  %v2171_v11 = vadd.f32 %v2170_v59, %v2169_v55 }
 0x1ad   :  { %v2151_v54 = vrot.slane %v2150_v42, 2  ;;  %v2158_v56 = vrot.slane %v2157_v60, 2  ;;  %v2165_v20 = vrot.slane %v2164_v51, 2  ;;  %v2178_v34 = vadd.f32 %v2177_v46, %v2176_v38  ;;  %v6568_v46 = vld [vmem:[%s9579_s0 + $0x168] sm:$0xff]  }
 0x1ae   :  { %v2185_v61 = vadd.f32 %v2184_v48, %v2183_v18  ;;  %v2192_v7 = vadd.f32 %v2191_v50, %v2190_v58  ;;  %v2198_v13 = vrot.slane %v2197_v26, 4  ;;  %v2172_v31 = vrot.slane %v2171_v11, 2  ;;  %v6569_v48 = vld [vmem:[%s9579_s0 + $0x170] sm:$0xff]  }
 0x1af   :  { %v2152_v29 = vadd.f32 %v2151_v54, %v2150_v42  ;;  %v2159_v63 = vadd.f32 %v2158_v56, %v2157_v60  ;;  %v2166_v12 = vadd.f32 %v2165_v20, %v2164_v51  ;;  %v2179_v43 = vrot.slane %v2178_v34, 2  ;;  %v6570_v54 = vld [vmem:[%s9579_s0 + $0x178] sm:$0xff]  }
 0x1b0   :  { %v2186_v14 = vrot.slane %v2185_v61, 2  ;;  %v2193_v1 = vrot.slane %v2192_v7, 2  ;;  %v2199_v22 = vadd.f32 %v2198_v13, %v2197_v26  ;;  %v2173_v39 = vadd.f32 %v2172_v31, %v2171_v11 }
 0x1b1   :  { %v2153_v4 = vrot.slane %v2152_v29, 1  ;;  %v2160_v8 = vrot.slane %v2159_v63, 1  ;;  %v2167_v17 = vrot.slane %v2166_v12, 1  ;;  %v2180_v35 = vadd.f32 %v2179_v43, %v2178_v34 }
 0x1b2   :  { %v2187_v53 = vadd.f32 %v2186_v14, %v2185_v61  ;;  %v2194_v10 = vadd.f32 %v2193_v1, %v2192_v7  ;;  %v2200_v25 = vrot.slane %v2199_v22, 2  ;;  %v2174_v32 = vrot.slane %v2173_v39, 1 }
 0x1b3   :  { %v2154_v41 = vadd.f32 %v2153_v4, %v2152_v29  ;;  %v2161_v19 = vadd.f32 %v2160_v8, %v2159_v63  ;;  %v2168_v21 = vadd.f32 %v2167_v17, %v2166_v12  ;;  %v2181_v36 = vrot.slane %v2180_v35, 1 }
 0x1b4   :  { %v2188_v62 = vrot.slane %v2187_v53, 1  ;;  %v2195_v27 = vrot.slane %v2194_v10, 1  ;;  %v2201_v44 = vadd.f32 %v2200_v25, %v2199_v22  ;;  %v2175_v45 = vadd.f32 %v2174_v32, %v2173_v39 }
 0x1b5   :  { %v2564_v40 = vmul.f32 0.125, %v2154_v41  ;;  %v2565_v33 = vmul.f32 0.125, %v2161_v19  ;;  %v2566_v16 = vmul.f32 0.125, %v2168_v21  ;;  %v2182_v47 = vadd.f32 %v2181_v36, %v2180_v35 }
 0x1b6   :  { %v2189_v24 = vadd.f32 %v2188_v62, %v2187_v53  ;;  %v2196_v57 = vadd.f32 %v2195_v27, %v2194_v10  ;;  %v2202_v49 = vrot.slane %v2201_v44, 1  ;;  %v2567_v55 = vmul.f32 0.125, %v2175_v45  ;;  %v6879_v45 = vld [vmem:[%s9585_s6 + $0x48] sm:$0xff] }
 0x1b7   :  { %v2692_v38 = vadd.f32 %v2564_v40, %v7852_v5  ;;  %v2693_v18 = vadd.f32 %v2565_v33, %v7854_v0  ;;  %v2694_v58 = vadd.f32 %v2566_v16, %v7862_v30  ;;  %v2568_v60 = vmul.f32 0.125, %v2182_v47  ;;  %v7900_v5 = vld [vmem:[%s9585_s6 + $0x40] sm:$0xff] }
 0x1b8   :  { %v2203_v42 = vadd.f32 %v2202_v49, %v2201_v44  ;;  %v2569_v51 = vmul.f32 0.125, %v2189_v24  ;;  %v2570_v59 = vmul.f32 0.125, %v2196_v57  ;;  %v2695_v0 = vadd.f32 %v2567_v55, %v7864_v23  ;;  %4735 = vperm.xlu1 %6865, %v7900_v5  }
 0x1b9   :  { %v2956_v30 = vsel %vm2879_vm1, %v2693_v18, %v2692_v38  ;;  %v6094_v50 = vunpack.c.l.bf16 %v6567_v28  ;;  %v6095_v26 = vunpack.c.h.bf16 %v6567_v28  ;;  %v2696_v20 = vadd.f32 %v2568_v60, %v7869_v6 }
 0x1ba   :  { %v2571_v56 = vmul.f32 0.125, %v2203_v42  ;;  %v2697_v11 = vadd.f32 %v2569_v51, %v7871_v9  ;;  %v2698_v34 = vadd.f32 %v2570_v59, %v7873_v15  ;;  %v2957_v61 = vsel %vm2881_vm2, %v2694_v58, %v2956_v30 }
 0x1bb   :  { %v6098_v23 = vunpack.c.l.bf16 %v6568_v46  ;;  %v6099_v7 = vunpack.c.h.bf16 %v6568_v46  ;;  %v6102_v13 = vunpack.c.l.bf16 %v6569_v48  ;;  %v2958_v63 = vsel %vm2883_vm3, %v2695_v0, %v2957_v61 }
 0x1bc   :  { %v2699_v29 = vadd.f32 %v2571_v56, %v7878_v52  ;;  %v6103_v12 = vunpack.c.h.bf16 %v6569_v48  ;;  %v6106_v31 = vunpack.c.l.bf16 %v6570_v54  ;;  %v2959_v43 = vsel %vm2885_vm4, %v2696_v20, %v2958_v63  ;;  %6866 = vset.pattern.permute.xlu1 %v6908_v2 }
 0x1bd   :  { %v6107_v14 = vunpack.c.h.bf16 %v6570_v54  ;;  %v924_v6 = vsel %vm307_vm0, %v6094_v50, 0.0  ;;  %v931_v9 = vsel %vm307_vm0, %v6095_v26, 0.0  ;;  %v2960_v15 = vsel %vm2887_vm5, %v2697_v11, %v2959_v43  ;;  %4826 = vperm.xlu1 %6866, %v7900_v5  }
 0x1be   :  { %v925_v1 = vrot.slane %v924_v6, 4  ;;  %v932_v22 = vrot.slane %v931_v9, 4  ;;  %v938_v4 = vsel %vm307_vm0, %v6098_v23, 0.0  ;;  %v2961_v52 = vsel %vm2889_vm6, %v2698_v34, %v2960_v15  ;;  %v6630_v23 = vld [vmem:[%s9580_s1 + $0x160] sm:$0xff]  }
 0x1bf   :  { %v939_v8 = vrot.slane %v938_v4, 4  ;;  %v945_v17 = vsel %vm307_vm0, %v6099_v7, 0.0  ;;  %v952_v39 = vsel %vm307_vm0, %v6102_v13, 0.0  ;;  %v2962_v35 = vsel %vm2891_vm7, %v2699_v29, %v2961_v52 }
 0x1c0   :  { %v926_v53 = vadd.f32 %v925_v1, %v924_v6  ;;  %v933_v10 = vadd.f32 %v932_v22, %v931_v9  ;;  %v946_v25 = vrot.slane %v945_v17, 4  ;;  %6758 = vmatprep.mubr.msk.f32.mxu1 %vm307_vm0, %v2962_v35  ;;  %v953_v19 = vrot.slane %v952_v39, 4  ;;  %v6632_v6 = vld [vmem:[%s9580_s1 + $0x170] sm:$0xff]  }
 0x1c1   :  { %v940_v41 = vadd.f32 %v939_v8, %v938_v4  ;;  %v959_v21 = vsel %vm307_vm0, %v6103_v12, 0.0  ;;  %v966_v32 = vsel %vm307_vm0, %v6106_v31, 0.0  ;;  %4830 = vperm.xlu1 %6866, %v6879_v45   ;;  %v973_v47 = vsel %vm307_vm0, %v6107_v14, 0.0  ;;  %v6633_v4 = vld [vmem:[%s9580_s1 + $0x178] sm:$0xff]  }
 0x1c2   :  { %v927_v36 = vrot.slane %v926_v53, 2  ;;  %v934_v62 = vrot.slane %v933_v10, 2  ;;  %v947_v27 = vadd.f32 %v946_v25, %v945_v17  ;;  %v960_v44 = vrot.slane %v959_v21, 4 }
 0x1c3   :  { %v941_v40 = vrot.slane %v940_v41, 2  ;;  %v954_v33 = vadd.f32 %v953_v19, %v952_v39  ;;  %v967_v16 = vrot.slane %v966_v32, 4  ;;  %v974_v58 = vrot.slane %v973_v47, 4 }
 0x1c4   :  { %v928_v24 = vadd.f32 %v927_v36, %v926_v53  ;;  %v935_v57 = vadd.f32 %v934_v62, %v933_v10  ;;  %v948_v49 = vrot.slane %v947_v27, 2  ;;  %v961_v28 = vadd.f32 %v960_v44, %v959_v21 }
 0x1c5   :  { %v942_v55 = vadd.f32 %v941_v40, %v940_v41  ;;  %v955_v38 = vrot.slane %v954_v33, 2  ;;  %v968_v18 = vadd.f32 %v967_v16, %v966_v32  ;;  %6867 = vset.pattern.permute.xlu1 %v6910_v37  ;;  %v975_v30 = vadd.f32 %v974_v58, %v973_v47 }
 0x1c6   :  { %v929_v42 = vrot.slane %v928_v24, 1  ;;  %v936_v60 = vrot.slane %v935_v57, 1  ;;  %v949_v51 = vadd.f32 %v948_v49, %v947_v27  ;;  %v962_v59 = vrot.slane %v961_v28, 2  ;;  %4926 = vperm.xlu1 %6867, %v7900_v5   ;;  %v6631_v5 = vld [vmem:[%s9580_s1 + $0x168] sm:$0xff]  }
 0x1c7   :  { %v943_v46 = vrot.slane %v942_v55, 1  ;;  %v956_v48 = vadd.f32 %v955_v38, %v954_v33  ;;  %v969_v0 = vrot.slane %v968_v18, 2  ;;  %v976_v61 = vrot.slane %v975_v30, 2 }
 0x1c8   :  { %v930_v50 = vadd.f32 %v929_v42, %v928_v24  ;;  %v937_v26 = vadd.f32 %v936_v60, %v935_v57  ;;  %v950_v54 = vrot.slane %v949_v51, 1  ;;  %v963_v56 = vadd.f32 %v962_v59, %v961_v28 }
 0x1c9   :  { %v944_v20 = vadd.f32 %v943_v46, %v942_v55  ;;  %v957_v11 = vrot.slane %v956_v48, 1  ;;  %v970_v34 = vadd.f32 %v969_v0, %v968_v18  ;;  %v977_v43 = vadd.f32 %v976_v61, %v975_v30 }
 0x1ca   :  { %v951_v7 = vadd.f32 %v950_v54, %v949_v51  ;;  %v964_v13 = vrot.slane %v963_v56, 1  ;;  %v7937_v29 = vmul.f32 0.125, %v930_v50  ;;  %v7939_v63 = vmul.f32 0.125, %v937_v26  ;;  %6868 = vset.pattern.permute.xlu1 %v6909_v3 }
 0x1cb   :  { %v958_v12 = vadd.f32 %v957_v11, %v956_v48  ;;  %v971_v31 = vrot.slane %v970_v34, 1  ;;  %v7944_v14 = vmul.f32 0.125, %v944_v20  ;;  %v6350_v1 = vunpack.c.l.bf16 %v6630_v23 }
 0x1cc   :  { %v965_v9 = vadd.f32 %v964_v13, %v963_v56  ;;  %v7950_v15 = vmul.f32 0.125, %v951_v7  ;;  %v6351_v22 = vunpack.c.h.bf16 %v6630_v23  ;;  %v978_v8 = vrot.slane %v977_v43, 1 }
 0x1cd   :  { %v972_v52 = vadd.f32 %v971_v31, %v970_v34  ;;  %v7955_v17 = vmul.f32 0.125, %v958_v12  ;;  %v6354_v39 = vunpack.c.l.bf16 %v6631_v5  ;;  %v6355_v53 = vunpack.c.h.bf16 %v6631_v5 }
 0x1ce   :  { %v7957_v35 = vmul.f32 0.125, %v965_v9  ;;  %v6358_v10 = vunpack.c.l.bf16 %v6632_v6  ;;  %v6359_v25 = vunpack.c.h.bf16 %v6632_v6  ;;  %v979_v41 = vadd.f32 %v978_v8, %v977_v43 }
 0x1cf   :  { %v7959_v19 = vmul.f32 0.125, %v972_v52  ;;  %v6362_v21 = vunpack.c.l.bf16 %v6633_v4  ;;  %v6363_v32 = vunpack.c.h.bf16 %v6633_v4  ;;  %v2204_v36 = vsel %vm307_vm0, %v6350_v1, 0.0 }
 0x1d0   :  { %v2211_v62 = vsel %vm307_vm0, %v6351_v22, 0.0  ;;  %v2218_v27 = vsel %vm307_vm0, %v6354_v39, 0.0  ;;  %v2225_v44 = vsel %vm307_vm0, %v6355_v53, 0.0  ;;  %v7965_v45 = vmul.f32 0.125, %v979_v41 }
 0x1d1   :  { %v2205_v40 = vrot.slane %v2204_v36, 4  ;;  %v2212_v33 = vrot.slane %v2211_v62, 4  ;;  %v2219_v16 = vrot.slane %v2218_v27, 4  ;;  %v2226_v47 = vrot.slane %v2225_v44, 4 }
 0x1d2   :  { %v2232_v24 = vsel %vm307_vm0, %v6358_v10, 0.0  ;;  %v2239_v57 = vsel %vm307_vm0, %v6359_v25, 0.0  ;;  %v2246_v49 = vsel %vm307_vm0, %v6362_v21, 0.0  ;;  %v2253_v51 = vsel %vm307_vm0, %v6363_v32, 0.0 }
 0x1d3   :  { %v2206_v28 = vadd.f32 %v2205_v40, %v2204_v36  ;;  %v2213_v55 = vadd.f32 %v2212_v33, %v2211_v62  ;;  %v2220_v38 = vadd.f32 %v2219_v16, %v2218_v27  ;;  %v2233_v18 = vrot.slane %v2232_v24, 4  ;;  %v6571_v16 = vld [vmem:[%s9579_s0 + $0x180] sm:$0xff]  }
 0x1d4   :  { %v2227_v58 = vadd.f32 %v2226_v47, %v2225_v44  ;;  %v2240_v42 = vrot.slane %v2239_v57, 4  ;;  %v2247_v60 = vrot.slane %v2246_v49, 4  ;;  %v2254_v54 = vrot.slane %v2253_v51, 4 }
 0x1d5   :  { %v2207_v59 = vrot.slane %v2206_v28, 2  ;;  %v2214_v46 = vrot.slane %v2213_v55, 2  ;;  %v2221_v48 = vrot.slane %v2220_v38, 2  ;;  %v2234_v0 = vadd.f32 %v2233_v18, %v2232_v24 }
 0x1d6   :  { %v2228_v30 = vrot.slane %v2227_v58, 2  ;;  %v2241_v50 = vadd.f32 %v2240_v42, %v2239_v57  ;;  %v2248_v26 = vadd.f32 %v2247_v60, %v2246_v49  ;;  %v2255_v13 = vadd.f32 %v2254_v54, %v2253_v51  ;;  %v6573_v42 = vld [vmem:[%s9579_s0 + $0x190] sm:$0xff]  }
 0x1d7   :  { %v2208_v56 = vadd.f32 %v2207_v59, %v2206_v28  ;;  %v2215_v20 = vadd.f32 %v2214_v46, %v2213_v55  ;;  %v2222_v11 = vadd.f32 %v2221_v48, %v2220_v38  ;;  %v2235_v34 = vrot.slane %v2234_v0, 2 }
 0x1d8   :  { %v2229_v61 = vadd.f32 %v2228_v30, %v2227_v58  ;;  %v2242_v23 = vrot.slane %v2241_v50, 2  ;;  %v2249_v7 = vrot.slane %v2248_v26, 2  ;;  %v2256_v22 = vrot.slane %v2255_v13, 2  ;;  %v6572_v58 = vld [vmem:[%s9579_s0 + $0x188] sm:$0xff]  }
 0x1d9   :  { %v2209_v5 = vrot.slane %v2208_v56, 1  ;;  %v2216_v12 = vrot.slane %v2215_v20, 1  ;;  %v2223_v31 = vrot.slane %v2222_v11, 1  ;;  %v2236_v43 = vadd.f32 %v2235_v34, %v2234_v0 }
 0x1da   :  { %v2230_v6 = vrot.slane %v2229_v61, 1  ;;  %v2243_v9 = vadd.f32 %v2242_v23, %v2241_v50  ;;  %v2250_v1 = vadd.f32 %v2249_v7, %v2248_v26  ;;  %v2257_v41 = vadd.f32 %v2256_v22, %v2255_v13 }
 0x1db   :  { %v2210_v4 = vadd.f32 %v2209_v5, %v2208_v56  ;;  %v2217_v52 = vadd.f32 %v2216_v12, %v2215_v20  ;;  %v2224_v8 = vadd.f32 %v2223_v31, %v2222_v11  ;;  %v2237_v39 = vrot.slane %v2236_v43, 1 }
 0x1dc   :  { %v2231_v53 = vadd.f32 %v2230_v6, %v2229_v61  ;;  %v2244_v10 = vrot.slane %v2243_v9, 1  ;;  %v2251_v25 = vrot.slane %v2250_v1, 1  ;;  %v2258_v40 = vrot.slane %v2257_v41, 1 }
 0x1dd   :  { %v2238_v21 = vadd.f32 %v2237_v39, %v2236_v43  ;;  %v2572_v32 = vmul.f32 0.125, %v2210_v4  ;;  %v2573_v36 = vmul.f32 0.125, %v2217_v52  ;;  %v2574_v62 = vmul.f32 0.125, %v2224_v8 }
 0x1de   :  { %v2245_v27 = vadd.f32 %v2244_v10, %v2243_v9  ;;  %v2252_v44 = vadd.f32 %v2251_v25, %v2250_v1  ;;  %v2575_v33 = vmul.f32 0.125, %v2231_v53  ;;  %v2259_v28 = vadd.f32 %v2258_v40, %v2257_v41 }
 0x1df   :  { %v2576_v47 = vmul.f32 0.125, %v2238_v21  ;;  %v2700_v24 = vadd.f32 %v2572_v32, %v7937_v29  ;;  %v2701_v57 = vadd.f32 %v2573_v36, %v7939_v63  ;;  %v2702_v49 = vadd.f32 %v2574_v62, %v7944_v14  ;;  %v6574_v14 = vld [vmem:[%s9579_s0 + $0x198] sm:$0xff]  }
 0x1e0   :  { %v2577_v55 = vmul.f32 0.125, %v2245_v27  ;;  %v2578_v38 = vmul.f32 0.125, %v2252_v44  ;;  %v2703_v18 = vadd.f32 %v2575_v33, %v7950_v15  ;;  %v6110_v63 = vunpack.c.l.bf16 %v6571_v16 }
 0x1e1   :  { %v2704_v60 = vadd.f32 %v2576_v47, %v7955_v17  ;;  %v2963_v29 = vsel %vm2879_vm1, %v2701_v57, %v2700_v24  ;;  %v6111_v51 = vunpack.c.h.bf16 %v6571_v16  ;;  %v2579_v59 = vmul.f32 0.125, %v2259_v28 }
 0x1e2   :  { %v2705_v15 = vadd.f32 %v2577_v55, %v7957_v35  ;;  %v2706_v46 = vadd.f32 %v2578_v38, %v7959_v19  ;;  %v2964_v48 = vsel %vm2881_vm2, %v2702_v49, %v2963_v29  ;;  %v6114_v30 = vunpack.c.l.bf16 %v6572_v58 }
 0x1e3   :  { %v2965_v0 = vsel %vm2883_vm3, %v2703_v18, %v2964_v48  ;;  %v6115_v50 = vunpack.c.h.bf16 %v6572_v58  ;;  %v6118_v17 = vunpack.c.l.bf16 %v6573_v42  ;;  %v2707_v26 = vadd.f32 %v2579_v59, %v7965_v45  ;;  %v6634_v48 = vld [vmem:[%s9580_s1 + $0x180] sm:$0xff]  }
 0x1e4   :  { %v2966_v54 = vsel %vm2885_vm4, %v2704_v60, %v2965_v0  ;;  %v6119_v56 = vunpack.c.h.bf16 %v6573_v42  ;;  %v6122_v20 = vunpack.c.l.bf16 %v6574_v14  ;;  %v6123_v34 = vunpack.c.h.bf16 %v6574_v14 }
 0x1e5   :  { %v2967_v11 = vsel %vm2887_vm5, %v2705_v15, %v2966_v54  ;;  %v980_v35 = vsel %vm307_vm0, %v6110_v63, 0.0  ;;  %v987_v19 = vsel %vm307_vm0, %v6111_v51, 0.0  ;;  %v994_v13 = vsel %vm307_vm0, %v6114_v30, 0.0 }
 0x1e6   :  { %v2968_v61 = vsel %vm2889_vm6, %v2706_v46, %v2967_v11  ;;  %v981_v23 = vrot.slane %v980_v35, 4  ;;  %v988_v7 = vrot.slane %v987_v19, 4  ;;  %v995_v45 = vrot.slane %v994_v13, 4 }
 0x1e7   :  { %v2969_v5 = vsel %vm2891_vm7, %v2707_v26, %v2968_v61  ;;  %v1001_v12 = vsel %vm307_vm0, %v6115_v50, 0.0  ;;  %v1008_v31 = vsel %vm307_vm0, %v6118_v17, 0.0  ;;  %v1015_v4 = vsel %vm307_vm0, %v6119_v56, 0.0  ;;  %v6635_v26 = vld [vmem:[%s9580_s1 + $0x188] sm:$0xff]  }
 0x1e8   :  { %6759 = vmatmul.mubr.msk.f32.gmra.mxu1 %vm307_vm0, %v2969_v5  ;;  %v982_v43 = vadd.f32 %v981_v23, %v980_v35  ;;  %v989_v6 = vadd.f32 %v988_v7, %v987_v19  ;;  %v1002_v9 = vrot.slane %v1001_v12, 4  ;;  %v1009_v1 = vrot.slane %v1008_v31, 4  ;;  %v6637_v35 = vld [vmem:[%s9580_s1 + $0x198] sm:$0xff]  }
 0x1e9   :  { %v996_v22 = vadd.f32 %v995_v45, %v994_v13  ;;  %v1022_v52 = vsel %vm307_vm0, %v6122_v20, 0.0  ;;  %v1029_v8 = vsel %vm307_vm0, %v6123_v34, 0.0  ;;  %v1016_v21 = vrot.slane %v1015_v4, 4  ;;  %v6636_v34 = vld [vmem:[%s9580_s1 + $0x190] sm:$0xff]  }
 0x1ea   :  { %v983_v39 = vrot.slane %v982_v43, 2  ;;  %v990_v53 = vrot.slane %v989_v6, 2  ;;  %v1003_v10 = vadd.f32 %v1002_v9, %v1001_v12  ;;  %v1010_v25 = vadd.f32 %v1009_v1, %v1008_v31 }
 0x1eb   :  { %v997_v41 = vrot.slane %v996_v22, 2  ;;  %v1023_v32 = vrot.slane %v1022_v52, 4  ;;  %v1030_v36 = vrot.slane %v1029_v8, 4  ;;  %v1017_v16 = vadd.f32 %v1016_v21, %v1015_v4 }
 0x1ec   :  { %v984_v62 = vadd.f32 %v983_v39, %v982_v43  ;;  %v991_v27 = vadd.f32 %v990_v53, %v989_v6  ;;  %v1004_v44 = vrot.slane %v1003_v10, 2  ;;  %v1011_v40 = vrot.slane %v1010_v25, 2 }
 0x1ed   :  { %v998_v33 = vadd.f32 %v997_v41, %v996_v22  ;;  %v1024_v47 = vadd.f32 %v1023_v32, %v1022_v52  ;;  %v1031_v24 = vadd.f32 %v1030_v36, %v1029_v8  ;;  %v1018_v18 = vrot.slane %v1017_v16, 2 }
 0x1ee   :  { %v985_v57 = vrot.slane %v984_v62, 1  ;;  %v992_v49 = vrot.slane %v991_v27, 1  ;;  %v1005_v28 = vadd.f32 %v1004_v44, %v1003_v10  ;;  %v1012_v55 = vadd.f32 %v1011_v40, %v1010_v25 }
 0x1ef   :  { %v999_v38 = vrot.slane %v998_v33, 1  ;;  %v1025_v58 = vrot.slane %v1024_v47, 2  ;;  %v1032_v42 = vrot.slane %v1031_v24, 2  ;;  %v1019_v59 = vadd.f32 %v1018_v18, %v1017_v16 }
 0x1f0   :  { %v986_v60 = vadd.f32 %v985_v57, %v984_v62  ;;  %v993_v29 = vadd.f32 %v992_v49, %v991_v27  ;;  %v1006_v63 = vrot.slane %v1005_v28, 1  ;;  %v1013_v51 = vrot.slane %v1012_v55, 1 }
 0x1f1   :  { %v1000_v14 = vadd.f32 %v999_v38, %v998_v33  ;;  %v1026_v15 = vadd.f32 %v1025_v58, %v1024_v47  ;;  %v1033_v46 = vadd.f32 %v1032_v42, %v1031_v24  ;;  %v1020_v54 = vrot.slane %v1019_v59, 1 }
 0x1f2   :  { %v1007_v0 = vadd.f32 %v1006_v63, %v1005_v28  ;;  %v1014_v30 = vadd.f32 %v1013_v51, %v1012_v55  ;;  %v8010_v50 = vmul.f32 0.125, %v986_v60  ;;  %v8012_v17 = vmul.f32 0.125, %v993_v29 }
 0x1f3   :  { %v1027_v56 = vrot.slane %v1026_v15, 1  ;;  %v1034_v20 = vrot.slane %v1033_v46, 1  ;;  %v8017_v11 = vmul.f32 0.125, %v1000_v14  ;;  %v6366_v23 = vunpack.c.l.bf16 %v6634_v48 }
 0x1f4   :  { %v8025_v19 = vmul.f32 0.125, %v1007_v0  ;;  %v8027_v61 = vmul.f32 0.125, %v1014_v30  ;;  %v6367_v7 = vunpack.c.h.bf16 %v6634_v48  ;;  %v1021_v13 = vadd.f32 %v1020_v54, %v1019_v59 }
 0x1f5   :  { %v1028_v5 = vadd.f32 %v1027_v56, %v1026_v15  ;;  %v1035_v45 = vadd.f32 %v1034_v20, %v1033_v46  ;;  %v6370_v12 = vunpack.c.l.bf16 %v6635_v26  ;;  %v6371_v31 = vunpack.c.h.bf16 %v6635_v26 }
 0x1f6   :  { %v6374_v43 = vunpack.c.l.bf16 %v6636_v34  ;;  %v6375_v6 = vunpack.c.h.bf16 %v6636_v34  ;;  %v6378_v9 = vunpack.c.l.bf16 %v6637_v35  ;;  %v8029_v1 = vmul.f32 0.125, %v1021_v13 }
 0x1f7   :  { %v8031_v22 = vmul.f32 0.125, %v1028_v5  ;;  %v8033_v4 = vmul.f32 0.125, %v1035_v45  ;;  %v6379_v52 = vunpack.c.h.bf16 %v6637_v35  ;;  %v2260_v8 = vsel %vm307_vm0, %v6366_v23, 0.0 }
 0x1f8   :  { %v2267_v39 = vsel %vm307_vm0, %v6367_v7, 0.0  ;;  %v2274_v53 = vsel %vm307_vm0, %v6370_v12, 0.0  ;;  %v2281_v10 = vsel %vm307_vm0, %v6371_v31, 0.0  ;;  %v2261_v25 = vrot.slane %v2260_v8, 4 }
 0x1f9   :  { %v2268_v41 = vrot.slane %v2267_v39, 4  ;;  %v2275_v21 = vrot.slane %v2274_v53, 4  ;;  %v2282_v32 = vrot.slane %v2281_v10, 4  ;;  %v2288_v36 = vsel %vm307_vm0, %v6374_v43, 0.0 }
 0x1fa   :  { %v2295_v62 = vsel %vm307_vm0, %v6375_v6, 0.0  ;;  %v2302_v27 = vsel %vm307_vm0, %v6378_v9, 0.0  ;;  %v2309_v44 = vsel %vm307_vm0, %v6379_v52, 0.0  ;;  %v2262_v40 = vadd.f32 %v2261_v25, %v2260_v8 }
 0x1fb   :  { %v2269_v33 = vadd.f32 %v2268_v41, %v2267_v39  ;;  %v2276_v16 = vadd.f32 %v2275_v21, %v2274_v53  ;;  %v2283_v47 = vadd.f32 %v2282_v32, %v2281_v10  ;;  %v2289_v24 = vrot.slane %v2288_v36, 4  ;;  %v6575_v32 = vld [vmem:[%s9579_s0 + $0x1a0] sm:$0xff]  }
 0x1fc   :  { %v2296_v57 = vrot.slane %v2295_v62, 4  ;;  %v2303_v49 = vrot.slane %v2302_v27, 4  ;;  %v2310_v28 = vrot.slane %v2309_v44, 4  ;;  %v2263_v55 = vrot.slane %v2262_v40, 2 }
 0x1fd   :  { %v2270_v38 = vrot.slane %v2269_v33, 2  ;;  %v2277_v18 = vrot.slane %v2276_v16, 2  ;;  %v2284_v58 = vrot.slane %v2283_v47, 2  ;;  %v2290_v42 = vadd.f32 %v2289_v24, %v2288_v36  ;;  %v6576_v36 = vld [vmem:[%s9579_s0 + $0x1a8] sm:$0xff]  }
 0x1fe   :  { %v2297_v60 = vadd.f32 %v2296_v57, %v2295_v62  ;;  %v2304_v29 = vadd.f32 %v2303_v49, %v2302_v27  ;;  %v2311_v63 = vadd.f32 %v2310_v28, %v2309_v44  ;;  %v2264_v51 = vadd.f32 %v2263_v55, %v2262_v40  ;;  %v6577_v49 = vld [vmem:[%s9579_s0 + $0x1b0] sm:$0xff]   ;;  %v6578_v28 = vld [vmem:[%s9579_s0 + $0x1b8] sm:$0xff]  }
 0x1ff   :  { %v2271_v14 = vadd.f32 %v2270_v38, %v2269_v33  ;;  %v2278_v59 = vadd.f32 %v2277_v18, %v2276_v16  ;;  %v2285_v15 = vadd.f32 %v2284_v58, %v2283_v47  ;;  %v2291_v46 = vrot.slane %v2290_v42, 2  ;;  %v8056_v33 = vld [vmem:[%s9585_s6 + $0x50] sm:$0xff] }
 0x200   :  { %v2298_v48 = vrot.slane %v2297_v60, 2  ;;  %v2305_v0 = vrot.slane %v2304_v29, 2  ;;  %v2312_v30 = vrot.slane %v2311_v63, 2  ;;  %v2265_v26 = vrot.slane %v2264_v51, 1  ;;  %4745 = vperm.xlu1 %6868, %v8056_v33  }
 0x201   :  { %v2272_v54 = vrot.slane %v2271_v14, 1  ;;  %v2279_v56 = vrot.slane %v2278_v59, 1  ;;  %v2286_v20 = vrot.slane %v2285_v15, 1  ;;  %v2292_v34 = vadd.f32 %v2291_v46, %v2290_v42 }
 0x202   :  { %v2299_v35 = vadd.f32 %v2298_v48, %v2297_v60  ;;  %v2306_v23 = vadd.f32 %v2305_v0, %v2304_v29  ;;  %v2313_v7 = vadd.f32 %v2312_v30, %v2311_v63  ;;  %v2266_v13 = vadd.f32 %v2265_v26, %v2264_v51 }
 0x203   :  { %v2273_v5 = vadd.f32 %v2272_v54, %v2271_v14  ;;  %v2280_v45 = vadd.f32 %v2279_v56, %v2278_v59  ;;  %v2287_v12 = vadd.f32 %v2286_v20, %v2285_v15  ;;  %v2293_v31 = vrot.slane %v2292_v34, 1 }
 0x204   :  { %v2300_v43 = vrot.slane %v2299_v35, 1  ;;  %v2307_v6 = vrot.slane %v2306_v23, 1  ;;  %v2314_v9 = vrot.slane %v2313_v7, 1  ;;  %v2580_v52 = vmul.f32 0.125, %v2266_v13  ;;  %6869 = vset.pattern.permute.xlu1 %v6908_v2 }
 0x205   :  { %v2581_v8 = vmul.f32 0.125, %v2273_v5  ;;  %v2582_v39 = vmul.f32 0.125, %v2280_v45  ;;  %v2583_v53 = vmul.f32 0.125, %v2287_v12  ;;  %v2294_v10 = vadd.f32 %v2293_v31, %v2292_v34  ;;  %4834 = vperm.xlu1 %6869, %v8056_v33   ;;  %v6880_v31 = vld [vmem:[%s9585_s6 + $0x58] sm:$0xff] }
 0x206   :  { %v2301_v25 = vadd.f32 %v2300_v43, %v2299_v35  ;;  %v2308_v41 = vadd.f32 %v2307_v6, %v2306_v23  ;;  %v2315_v21 = vadd.f32 %v2314_v9, %v2313_v7  ;;  %v2708_v62 = vadd.f32 %v2580_v52, %v8010_v50  ;;  %v8089_v43 = vpop.permute.xlu1 %4700 }
 0x207   :  { %v2709_v27 = vadd.f32 %v2581_v8, %v8012_v17  ;;  %v2710_v44 = vadd.f32 %v2582_v39, %v8017_v11  ;;  %v2711_v40 = vadd.f32 %v2583_v53, %v8025_v19  ;;  %v2584_v16 = vmul.f32 0.125, %v2294_v10  ;;  %v5039_v39 = vld [vmem:[%s9588_s9 + $0x38] sm:$0xff]  ;;  %v5038_v53 = vld [vmem:[%s9588_s9 + $0x30] sm:$0xff] }
 0x208   :  { %v2585_v47 = vmul.f32 0.125, %v2301_v25  ;;  %v2586_v24 = vmul.f32 0.125, %v2308_v41  ;;  %v2587_v57 = vmul.f32 0.125, %v2315_v21  ;;  %v6126_v17 = vunpack.c.l.bf16 %v6575_v32  ;;  %6799 = vmatprep.subr.mxu0 %v5039_v39 }
 0x209   :  { %v2970_v50 = vsel %vm2879_vm1, %v2709_v27, %v2708_v62  ;;  %v6127_v11 = vunpack.c.h.bf16 %v6575_v32  ;;  %v6130_v19 = vunpack.c.l.bf16 %v6576_v36  ;;  %v2712_v55 = vadd.f32 %v2584_v16, %v8027_v61  ;;  %4838 = vperm.xlu1 %6869, %v6880_v31   ;;  %6800 = vmatpush3.msra.mxu0 %v5039_v39 }
 0x20a   :  { %v2713_v38 = vadd.f32 %v2585_v47, %v8029_v1  ;;  %v2714_v18 = vadd.f32 %v2586_v24, %v8031_v22  ;;  %v2715_v58 = vadd.f32 %v2587_v57, %v8033_v4  ;;  %v2971_v42 = vsel %vm2881_vm2, %v2710_v44, %v2970_v50  ;;  %v5037_v44 = vld [vmem:[%s9588_s9 + $0x28] sm:$0xff]  ;;  %6801 = vmatprep.subr.mxu0 %v5038_v53 }
 0x20b   :  { %v6131_v60 = vunpack.c.h.bf16 %v6576_v36  ;;  %v6134_v29 = vunpack.c.l.bf16 %v6577_v49  ;;  %v6135_v63 = vunpack.c.h.bf16 %v6577_v49  ;;  %v2972_v51 = vsel %vm2883_vm3, %v2711_v40, %v2971_v42  ;;  %6802 = vmatpush3.msra.mxu0 %v5038_v53 }
 0x20c   :  { %v6138_v14 = vunpack.c.l.bf16 %v6578_v28  ;;  %v6139_v59 = vunpack.c.h.bf16 %v6578_v28  ;;  %v1036_v15 = vsel %vm307_vm0, %v6126_v17, 0.0  ;;  %v2973_v61 = vsel %vm2885_vm4, %v2712_v55, %v2972_v51  ;;  %6803 = vmatprep.subr.mxu0 %v5037_v44  ;;  %v5035_v51 = vld [vmem:[%s9588_s9 + $0x18] sm:$0xff] }
 0x20d   :  { %v1037_v1 = vrot.slane %v1036_v15, 4  ;;  %v1043_v22 = vsel %vm307_vm0, %v6127_v11, 0.0  ;;  %v1050_v4 = vsel %vm307_vm0, %v6130_v19, 0.0  ;;  %v2974_v46 = vsel %vm2887_vm5, %v2713_v38, %v2973_v61  ;;  %6870 = vset.pattern.permute.xlu1 %v6910_v37  ;;  %v5036_v11 = vld [vmem:[%s9588_s9 + $0x20] sm:$0xff]  ;;  %6804 = vmatpush3.msra.mxu0 %v5037_v44 }
 0x20e   :  { %v1044_v48 = vrot.slane %v1043_v22, 4  ;;  %v1051_v0 = vrot.slane %v1050_v4, 4  ;;  %v1057_v30 = vsel %vm307_vm0, %v6131_v60, 0.0  ;;  %v2975_v26 = vsel %vm2889_vm6, %v2714_v18, %v2974_v46  ;;  %4934 = vperm.xlu1 %6870, %v8056_v33   ;;  %v8106_v18 = vpop.permute.xlu1 %4798  ;;  %v6638_v33 = vld [vmem:[%s9580_s1 + $0x1a0] sm:$0xff]   ;;  %6805 = vmatprep.subr.mxu0 %v5036_v11 }
 0x20f   :  { %v1038_v54 = vadd.f32 %v1037_v1, %v1036_v15  ;;  %v1058_v56 = vrot.slane %v1057_v30, 4  ;;  %v1064_v20 = vsel %vm307_vm0, %v6134_v29, 0.0  ;;  %v2976_v34 = vsel %vm2891_vm7, %v2715_v58, %v2975_v26  ;;  %v6639_v1 = vld [vmem:[%s9580_s1 + $0x1a8] sm:$0xff]   ;;  %6806 = vmatpush3.msra.mxu0 %v5036_v11  ;;  %v3194_v11 = vld [vmem:[%s9592_s13 + $0x18] sm:$0xff] }
 0x210   :  { %v1045_v35 = vadd.f32 %v1044_v48, %v1043_v22  ;;  %v1052_v23 = vadd.f32 %v1051_v0, %v1050_v4  ;;  %v1065_v7 = vrot.slane %v1064_v20, 4  ;;  %6761 = vmatprep.mubr.msk.f32.mxu1 %vm307_vm0, %v2976_v34  ;;  %v1071_v45 = vsel %vm307_vm0, %v6135_v63, 0.0  ;;  %v8114_v63 = vld [vmem:[%s9585_s6 + $0x60] sm:$0xff]  ;;  %v6640_v0 = vld [vmem:[%s9580_s1 + $0x1b0] sm:$0xff]   ;;  %v6641_v34 = vld [vmem:[%s9580_s1 + $0x1b8] sm:$0xff]   ;;  %6807 = vmatprep.subr.mxu0 %v5035_v51 }
 0x211   :  { %v1039_v13 = vrot.slane %v1038_v54, 2  ;;  %v1059_v5 = vadd.f32 %v1058_v56, %v1057_v30  ;;  %v1078_v12 = vsel %vm307_vm0, %v6138_v14, 0.0  ;;  %v1072_v8 = vrot.slane %v1071_v45, 4  ;;  %v5034_v30 = vld [vmem:[%s9588_s9 + $0x10] sm:$0xff]  ;;  %6808 = vmatpush3.msra.mxu0 %v5035_v51  ;;  %6767 = vmatprep.subr.mxu1 %v3194_v11  ;;  %v6881_v51 = vld [vmem:[%s9585_s6 + $0x68] sm:$0xff] }
 0x212   :  { %v1046_v6 = vrot.slane %v1045_v35, 2  ;;  %v1053_v9 = vrot.slane %v1052_v23, 2  ;;  %v1066_v52 = vadd.f32 %v1065_v7, %v1064_v20  ;;  %v1079_v41 = vrot.slane %v1078_v12, 4  ;;  %6871 = vset.pattern.permute.xlu1 %v6909_v3  ;;  %6809 = vmatprep.subr.mxu0 %v5034_v30 }
 0x213   :  { %v1040_v10 = vadd.f32 %v1039_v13, %v1038_v54  ;;  %v1060_v25 = vrot.slane %v1059_v5, 2  ;;  %v1085_v21 = vsel %vm307_vm0, %v6139_v59, 0.0  ;;  %v1073_v27 = vadd.f32 %v1072_v8, %v1071_v45  ;;  %4755 = vperm.xlu1 %6871, %v8114_v63   ;;  %6810 = vmatpush3.msra.mxu0 %v5034_v30 }
 0x214   :  { %v1047_v32 = vadd.f32 %v1046_v6, %v1045_v35  ;;  %v1054_v36 = vadd.f32 %v1053_v9, %v1052_v23  ;;  %v1067_v62 = vrot.slane %v1066_v52, 2  ;;  %v1080_v47 = vadd.f32 %v1079_v41, %v1078_v12  ;;  %v8146_v9 = vpop.permute.xlu1 %4894  ;;  %6768 = vmatpush3.msra.mxu1 %v3194_v11 }
 0x215   :  { %v1041_v40 = vrot.slane %v1040_v10, 1  ;;  %v1061_v16 = vadd.f32 %v1060_v25, %v1059_v5  ;;  %v1086_v24 = vrot.slane %v1085_v21, 4  ;;  %v1074_v17 = vrot.slane %v1073_v27, 2  ;;  %v5033_v5 = vld [vmem:[%s9588_s9 + $0x8] sm:$0xff] }
 0x216   :  { %v1048_v57 = vrot.slane %v1047_v32, 1  ;;  %v1055_v49 = vrot.slane %v1054_v36, 1  ;;  %v1068_v50 = vadd.f32 %v1067_v62, %v1066_v52  ;;  %v1081_v55 = vrot.slane %v1080_v47, 2  ;;  %6811 = vmatprep.subr.mxu0 %v5033_v5 }
 0x217   :  { %v1042_v19 = vadd.f32 %v1041_v40, %v1040_v10  ;;  %v1062_v28 = vrot.slane %v1061_v16, 1  ;;  %v1087_v38 = vadd.f32 %v1086_v24, %v1085_v21  ;;  %v1075_v29 = vadd.f32 %v1074_v17, %v1073_v27  ;;  %v5032_v10 = vld [vmem:[%s9588_s9] sm:$0xff]  ;;  %6872 = vset.pattern.permute.xlu1 %v6908_v2  ;;  %6812 = vmatpush3.msra.mxu0 %v5033_v5 }
 0x218   :  { %v1049_v58 = vadd.f32 %v1048_v57, %v1047_v32  ;;  %v1056_v42 = vadd.f32 %v1055_v49, %v1054_v36  ;;  %v1069_v60 = vrot.slane %v1068_v50, 1  ;;  %v1082_v59 = vadd.f32 %v1081_v55, %v1080_v47  ;;  %4842 = vperm.xlu1 %6872, %v8114_v63   ;;  %6813 = vmatprep.subr.mxu0 %v5032_v10 }
 0x219   :  { %v1063_v14 = vadd.f32 %v1062_v28, %v1061_v16  ;;  %v1088_v15 = vrot.slane %v1087_v38, 2  ;;  %v8119_v61 = vmul.f32 0.125, %v1042_v19  ;;  %v1076_v4 = vrot.slane %v1075_v29, 1  ;;  %6814 = vmatpush3.msra.mxu0 %v5032_v10 }
 0x21a   :  { %v1070_v22 = vadd.f32 %v1069_v60, %v1068_v50  ;;  %v8124_v46 = vmul.f32 0.125, %v1049_v58  ;;  %v8126_v48 = vmul.f32 0.125, %v1056_v42  ;;  %v1083_v26 = vrot.slane %v1082_v59, 1  ;;  %v8169_v58 = vpop.permute.xlu1 %4705 }
 0x21b   :  { %v1089_v54 = vadd.f32 %v1088_v15, %v1087_v38  ;;  %v8135_v56 = vmul.f32 0.125, %v1063_v14  ;;  %v6382_v20 = vunpack.c.l.bf16 %v6638_v33  ;;  %v1077_v35 = vadd.f32 %v1076_v4, %v1075_v29  ;;  %v3192_v4 = vld [vmem:[%s9592_s13 + $0x8] sm:$0xff] }
 0x21c   :  { %v8141_v23 = vmul.f32 0.125, %v1070_v22  ;;  %v6383_v7 = vunpack.c.h.bf16 %v6638_v33  ;;  %v6386_v13 = vunpack.c.l.bf16 %v6639_v1  ;;  %v1084_v45 = vadd.f32 %v1083_v26, %v1082_v59  ;;  %4846 = vperm.xlu1 %6872, %v6881_v51   ;;  %v3193_v22 = vld [vmem:[%s9592_s13 + $0x10] sm:$0xff] }
 0x21d   :  { %v1090_v12 = vrot.slane %v1089_v54, 1  ;;  %v6387_v31 = vunpack.c.h.bf16 %v6639_v1  ;;  %v6390_v6 = vunpack.c.l.bf16 %v6640_v0  ;;  %v8148_v52 = vmul.f32 0.125, %v1077_v35  ;;  %6769 = vmatprep.subr.mxu1 %v3193_v22 }
 0x21e   :  { %v6391_v8 = vunpack.c.h.bf16 %v6640_v0  ;;  %v6394_v39 = vunpack.c.l.bf16 %v6641_v34  ;;  %v6395_v53 = vunpack.c.h.bf16 %v6641_v34  ;;  %v8153_v41 = vmul.f32 0.125, %v1084_v45  ;;  %6770 = vmatpush3.msra.mxu1 %v3193_v22  ;;  %v8186_v10 = vpop.permute.xlu1 %4802  ;;  %v6581_v22 = vld [vmem:[%s9579_s0 + $0x1d0] sm:$0xff]  }
 0x21f   :  { %v1091_v25 = vadd.f32 %v1090_v12, %v1089_v54  ;;  %v2316_v21 = vsel %vm307_vm0, %v6382_v20, 0.0  ;;  %v2323_v32 = vsel %vm307_vm0, %v6383_v7, 0.0  ;;  %v2330_v27 = vsel %vm307_vm0, %v6386_v13, 0.0  ;;  %v3191_v13 = vld [vmem:[%s9592_s13] sm:$0xff]  ;;  %6771 = vmatprep.subr.mxu1 %v3192_v4 }
 0x220   :  { %v2317_v36 = vrot.slane %v2316_v21, 4  ;;  %v2324_v62 = vrot.slane %v2323_v32, 4  ;;  %v2337_v44 = vsel %vm307_vm0, %v6387_v31, 0.0  ;;  %v2331_v16 = vrot.slane %v2330_v27, 4  ;;  %6873 = vset.pattern.permute.xlu1 %v6910_v37  ;;  %6772 = vmatpush3.msra.mxu1 %v3192_v4 }
 0x221   :  { %v8161_v40 = vmul.f32 0.125, %v1091_v25  ;;  %v2338_v47 = vrot.slane %v2337_v44, 4  ;;  %v2344_v24 = vsel %vm307_vm0, %v6390_v6, 0.0  ;;  %v2351_v17 = vsel %vm307_vm0, %v6391_v8, 0.0  ;;  %4942 = vperm.xlu1 %6873, %v8114_v63   ;;  %6773 = vmatprep.subr.mxu1 %v3191_v13 }
 0x222   :  { %v2318_v57 = vadd.f32 %v2317_v36, %v2316_v21  ;;  %v2325_v49 = vadd.f32 %v2324_v62, %v2323_v32  ;;  %v2345_v50 = vrot.slane %v2344_v24, 4  ;;  %v2332_v19 = vadd.f32 %v2331_v16, %v2330_v27  ;;  %6774 = vmatpush3.msra.mxu1 %v3191_v13 }
 0x223   :  { %v2339_v28 = vadd.f32 %v2338_v47, %v2337_v44  ;;  %v2352_v55 = vrot.slane %v2351_v17, 4  ;;  %v2358_v38 = vsel %vm307_vm0, %v6394_v39, 0.0  ;;  %v2365_v1 = vsel %vm307_vm0, %v6395_v53, 0.0  ;;  %v8191_v47 = vld [vmem:[%s9585_s6 + $0x70] sm:$0xff] }
 0x224   :  { %v2319_v42 = vrot.slane %v2318_v57, 2  ;;  %v2326_v60 = vrot.slane %v2325_v49, 2  ;;  %v2346_v29 = vadd.f32 %v2345_v50, %v2344_v24  ;;  %v2359_v33 = vrot.slane %v2358_v38, 4 }
 0x225   :  { %v2333_v14 = vrot.slane %v2332_v19, 2  ;;  %v2340_v59 = vrot.slane %v2339_v28, 2  ;;  %v2353_v15 = vadd.f32 %v2352_v55, %v2351_v17  ;;  %v2366_v7 = vrot.slane %v2365_v1, 4  ;;  %6874 = vset.pattern.permute.xlu1 %v6909_v3 }
 0x226   :  { %v2320_v0 = vadd.f32 %v2319_v42, %v2318_v57  ;;  %v2327_v30 = vadd.f32 %v2326_v60, %v2325_v49  ;;  %v2347_v26 = vrot.slane %v2346_v29, 2  ;;  %v2360_v54 = vadd.f32 %v2359_v33, %v2358_v38  ;;  %4765 = vperm.xlu1 %6874, %v8191_v47  }
 0x227   :  { %v2334_v20 = vadd.f32 %v2333_v14, %v2332_v19  ;;  %v2341_v34 = vadd.f32 %v2340_v59, %v2339_v28  ;;  %v2354_v35 = vrot.slane %v2353_v15, 2  ;;  %v2367_v53 = vadd.f32 %v2366_v7, %v2365_v1  ;;  %v6579_v28 = vld [vmem:[%s9579_s0 + $0x1c0] sm:$0xff]   ;;  %v6580_v59 = vld [vmem:[%s9579_s0 + $0x1c8] sm:$0xff]  }
 0x228   :  { %v2321_v5 = vrot.slane %v2320_v0, 1  ;;  %v2328_v45 = vrot.slane %v2327_v30, 1  ;;  %v2348_v12 = vadd.f32 %v2347_v26, %v2346_v29  ;;  %v2361_v31 = vrot.slane %v2360_v54, 2 }
 0x229   :  { %v2335_v6 = vrot.slane %v2334_v20, 1  ;;  %v2342_v8 = vrot.slane %v2341_v34, 1  ;;  %v2355_v39 = vadd.f32 %v2354_v35, %v2353_v15  ;;  %v2368_v16 = vrot.slane %v2367_v53, 2  ;;  %v8205_v15 = vpop.permute.xlu1 %4806 }
 0x22a   :  { %v2322_v25 = vadd.f32 %v2321_v5, %v2320_v0  ;;  %v2329_v21 = vadd.f32 %v2328_v45, %v2327_v30  ;;  %v2349_v32 = vrot.slane %v2348_v12, 1  ;;  %v2362_v36 = vadd.f32 %v2361_v31, %v2360_v54  ;;  %v6582_v30 = vld [vmem:[%s9579_s0 + $0x1d8] sm:$0xff]   ;;  %6875 = vset.pattern.permute.xlu1 %v6908_v2 }
 0x22b   :  { %v2336_v62 = vadd.f32 %v2335_v6, %v2334_v20  ;;  %v2343_v27 = vadd.f32 %v2342_v8, %v2341_v34  ;;  %v2356_v44 = vrot.slane %v2355_v39, 1  ;;  %v2369_v17 = vadd.f32 %v2368_v16, %v2367_v53  ;;  %4850 = vperm.xlu1 %6875, %v8191_v47  }
 0x22c   :  { %v2350_v24 = vadd.f32 %v2349_v32, %v2348_v12  ;;  %v2363_v63 = vrot.slane %v2362_v36, 1  ;;  %v2588_v57 = vmul.f32 0.125, %v2322_v25  ;;  %v2589_v49 = vmul.f32 0.125, %v2329_v21 }
 0x22d   :  { %v2357_v50 = vadd.f32 %v2356_v44, %v2355_v39  ;;  %v2590_v11 = vmul.f32 0.125, %v2336_v62  ;;  %v2591_v19 = vmul.f32 0.125, %v2343_v27  ;;  %v2370_v29 = vrot.slane %v2369_v17, 1  ;;  %v8227_v8 = vpop.permute.xlu1 %4902 }
 0x22e   :  { %v2364_v55 = vadd.f32 %v2363_v63, %v2362_v36  ;;  %v2592_v38 = vmul.f32 0.125, %v2350_v24  ;;  %v2716_v42 = vadd.f32 %v2588_v57, %v8119_v61  ;;  %v2717_v60 = vadd.f32 %v2589_v49, %v8124_v46 }
 0x22f   :  { %v2593_v33 = vmul.f32 0.125, %v2357_v50  ;;  %v2718_v51 = vadd.f32 %v2590_v11, %v8126_v48  ;;  %v2719_v14 = vadd.f32 %v2591_v19, %v8135_v56  ;;  %v6142_v46 = vunpack.c.l.bf16 %v6579_v28 }
 0x230   :  { %v2594_v3 = vmul.f32 0.125, %v2364_v55  ;;  %v2720_v1 = vadd.f32 %v2592_v38, %v8141_v23  ;;  %v2977_v61 = vsel %vm2879_vm1, %v2717_v60, %v2716_v42  ;;  %v2371_v4 = vadd.f32 %v2370_v29, %v2369_v17 }
 0x231   :  { %v2721_v48 = vadd.f32 %v2593_v33, %v8148_v52  ;;  %v2978_v56 = vsel %vm2881_vm2, %v2718_v51, %v2977_v61  ;;  %v6143_v0 = vunpack.c.h.bf16 %v6579_v28  ;;  %v6146_v54 = vunpack.c.l.bf16 %v6580_v59  ;;  %v8241_v33 = vpop.permute.xlu1 %4715 }
 0x232   :  { %v2722_v26 = vadd.f32 %v2594_v3, %v8153_v41  ;;  %v2979_v23 = vsel %vm2883_vm3, %v2719_v14, %v2978_v56  ;;  %v6147_v20 = vunpack.c.h.bf16 %v6580_v59  ;;  %v2595_v34 = vmul.f32 0.125, %v2371_v4 }
 0x233   :  { %v2980_v35 = vsel %vm2885_vm4, %v2720_v1, %v2979_v23  ;;  %v6150_v7 = vunpack.c.l.bf16 %v6581_v22  ;;  %v6151_v52 = vunpack.c.h.bf16 %v6581_v22  ;;  %v6154_v5 = vunpack.c.l.bf16 %v6582_v30 }
 0x234   :  { %v2981_v13 = vsel %vm2887_vm5, %v2721_v48, %v2980_v35  ;;  %v6155_v45 = vunpack.c.h.bf16 %v6582_v30  ;;  %v1092_v12 = vsel %vm307_vm0, %v6142_v46, 0.0  ;;  %v2723_v41 = vadd.f32 %v2595_v34, %v8161_v40  ;;  %v6882_v40 = vld [vmem:[%s9585_s6 + $0x78] sm:$0xff] }
 0x235   :  { %v2982_v31 = vsel %vm2889_vm6, %v2722_v26, %v2981_v13  ;;  %v1093_v6 = vrot.slane %v1092_v12, 4  ;;  %v1099_v2 = vsel %vm307_vm0, %v6143_v0, 0.0  ;;  %v1106_v53 = vsel %vm307_vm0, %v6146_v54, 0.0  ;;  %4854 = vperm.xlu1 %6875, %v6882_v40  }
 0x236   :  { %v1100_v39 = vrot.slane %v1099_v2, 4  ;;  %v1113_v25 = vsel %vm307_vm0, %v6147_v20, 0.0  ;;  %v1120_v21 = vsel %vm307_vm0, %v6150_v7, 0.0  ;;  %v2983_v32 = vsel %vm2891_vm7, %v2723_v41, %v2982_v31 }
 0x237   :  { %v1094_v36 = vadd.f32 %v1093_v6, %v1092_v12  ;;  %v1107_v62 = vrot.slane %v1106_v53, 4  ;;  %v1114_v27 = vrot.slane %v1113_v25, 4  ;;  %6762 = vmatmul.mubr.msk.f32.gmra.mxu1 %vm307_vm0, %v2983_v32  ;;  %v1121_v16 = vrot.slane %v1120_v21, 4 }
 0x238   :  { %v1101_v44 = vadd.f32 %v1100_v39, %v1099_v2  ;;  %v1127_v24 = vsel %vm307_vm0, %v6151_v52, 0.0  ;;  %v1134_v63 = vsel %vm307_vm0, %v6154_v5, 0.0  ;;  %v1141_v55 = vsel %vm307_vm0, %v6155_v45, 0.0  ;;  %v8249_v45 = vpop.permute.xlu1 %4810  ;;  %v6643_v2 = vld [vmem:[%s9580_s1 + $0x1c8] sm:$0xff]   ;;  %v6644_v39 = vld [vmem:[%s9580_s1 + $0x1d0] sm:$0xff]  }
 0x239   :  { %v1095_v57 = vrot.slane %v1094_v36, 2  ;;  %v1108_v49 = vadd.f32 %v1107_v62, %v1106_v53  ;;  %v1115_v50 = vadd.f32 %v1114_v27, %v1113_v25  ;;  %v1128_v17 = vrot.slane %v1127_v24, 4  ;;  %6877 = vset.pattern.permute.xlu1 %v6910_v37 }
 0x23a   :  { %v1102_v11 = vrot.slane %v1101_v44, 2  ;;  %v1122_v19 = vadd.f32 %v1121_v16, %v1120_v21  ;;  %v1135_v28 = vrot.slane %v1134_v63, 4  ;;  %v1142_v3 = vrot.slane %v1141_v55, 4  ;;  %4950 = vperm.xlu1 %6877, %v8191_v47   ;;  %v6642_v47 = vld [vmem:[%s9580_s1 + $0x1c0] sm:$0xff]  }
 0x23b   :  { %v1096_v38 = vadd.f32 %v1095_v57, %v1094_v36  ;;  %v1109_v42 = vrot.slane %v1108_v49, 2  ;;  %v1116_v60 = vrot.slane %v1115_v50, 2  ;;  %v1129_v29 = vadd.f32 %v1128_v17, %v1127_v24  ;;  %v6645_v36 = vld [vmem:[%s9580_s1 + $0x1d8] sm:$0xff]  }
 0x23c   :  { %v1103_v51 = vadd.f32 %v1102_v11, %v1101_v44  ;;  %v1123_v14 = vrot.slane %v1122_v19, 2  ;;  %v1136_v59 = vadd.f32 %v1135_v28, %v1134_v63  ;;  %v1143_v0 = vadd.f32 %v1142_v3, %v1141_v55 }
 0x23d   :  { %v1097_v1 = vrot.slane %v1096_v38, 1  ;;  %v1110_v61 = vadd.f32 %v1109_v42, %v1108_v49  ;;  %v1117_v46 = vadd.f32 %v1116_v60, %v1115_v50  ;;  %v1130_v22 = vrot.slane %v1129_v29, 2  ;;  %v8275_v42 = vpop.permute.xlu1 %4814 }
 0x23e   :  { %v1104_v4 = vrot.slane %v1103_v51, 1  ;;  %v1124_v48 = vadd.f32 %v1123_v14, %v1122_v19  ;;  %v1137_v56 = vrot.slane %v1136_v59, 2  ;;  %v1144_v35 = vrot.slane %v1143_v0, 2 }
 0x23f   :  { %v1098_v30 = vadd.f32 %v1097_v1, %v1096_v38  ;;  %v1111_v26 = vrot.slane %v1110_v61, 1  ;;  %v1118_v23 = vrot.slane %v1117_v46, 1  ;;  %v1131_v37 = vadd.f32 %v1130_v22, %v1129_v29 }
 0x240   :  { %v1105_v54 = vadd.f32 %v1104_v4, %v1103_v51  ;;  %v1125_v20 = vrot.slane %v1124_v48, 1  ;;  %v1138_v34 = vadd.f32 %v1137_v56, %v1136_v59  ;;  %v1145_v31 = vadd.f32 %v1144_v35, %v1143_v0 }
 0x241   :  { %v1112_v7 = vadd.f32 %v1111_v26, %v1110_v61  ;;  %v1119_v52 = vadd.f32 %v1118_v23, %v1117_v46  ;;  %v1132_v13 = vrot.slane %v1131_v37, 1  ;;  %v8247_v5 = vmul.f32 0.125, %v1098_v30  ;;  %v8283_v46 = vpop.permute.xlu0 %4794 }
 0x242   :  { %v1126_v12 = vadd.f32 %v1125_v20, %v1124_v48  ;;  %v1139_v41 = vrot.slane %v1138_v34, 1  ;;  %v8251_v6 = vmul.f32 0.125, %v1105_v54  ;;  %v6398_v32 = vunpack.c.l.bf16 %v6642_v47 }
 0x243   :  { %v1133_v53 = vadd.f32 %v1132_v13, %v1131_v37  ;;  %v8259_v25 = vmul.f32 0.125, %v1112_v7  ;;  %v8261_v21 = vmul.f32 0.125, %v1119_v52  ;;  %v1146_v27 = vrot.slane %v1145_v31, 1  ;;  %v8286_v13 = vpop.permute.xlu1 %4910 }
 0x244   :  { %v1140_v62 = vadd.f32 %v1139_v41, %v1138_v34  ;;  %v8266_v40 = vmul.f32 0.125, %v1126_v12  ;;  %v6399_v44 = vunpack.c.h.bf16 %v6642_v47  ;;  %v6402_v24 = vunpack.c.l.bf16 %v6643_v2 }
 0x245   :  { %v8268_v16 = vmul.f32 0.125, %v1133_v53  ;;  %v6403_v63 = vunpack.c.h.bf16 %v6643_v2  ;;  %v6406_v57 = vunpack.c.l.bf16 %v6644_v39  ;;  %v1147_v49 = vadd.f32 %v1146_v27, %v1145_v31 }
 0x246   :  { %v8270_v50 = vmul.f32 0.125, %v1140_v62  ;;  %v6407_v17 = vunpack.c.h.bf16 %v6644_v39  ;;  %v6410_v11 = vunpack.c.l.bf16 %v6645_v36  ;;  %v6411_v19 = vunpack.c.h.bf16 %v6645_v36  ;;  %v8288_v62 = vpop.permute.xlu0 %4695 }
 0x247   :  { %v2372_v28 = vsel %vm307_vm0, %v6398_v32, 0.0  ;;  %v2379_v55 = vsel %vm307_vm0, %v6399_v44, 0.0  ;;  %v2386_v38 = vsel %vm307_vm0, %v6402_v24, 0.0  ;;  %v8277_v60 = vmul.f32 0.125, %v1147_v49 }
 0x248   :  { %v2373_v29 = vrot.slane %v2372_v28, 4  ;;  %v2380_v51 = vrot.slane %v2379_v55, 4  ;;  %v2387_v14 = vrot.slane %v2386_v38, 4  ;;  %v2393_v59 = vsel %vm307_vm0, %v6403_v63, 0.0 }
 0x249   :  { %v2400_v3 = vsel %vm307_vm0, %v6406_v57, 0.0  ;;  %v2407_v1 = vsel %vm307_vm0, %v6407_v17, 0.0  ;;  %v2414_v61 = vsel %vm307_vm0, %v6410_v11, 0.0  ;;  %v2394_v56 = vrot.slane %v2393_v59, 4 }
 0x24a   :  { %v2374_v22 = vadd.f32 %v2373_v29, %v2372_v28  ;;  %v2381_v4 = vadd.f32 %v2380_v51, %v2379_v55  ;;  %v2388_v48 = vadd.f32 %v2387_v14, %v2386_v38  ;;  %v2401_v0 = vrot.slane %v2400_v3, 4 }
 0x24b   :  { %v2408_v30 = vrot.slane %v2407_v1, 4  ;;  %v2415_v26 = vrot.slane %v2414_v61, 4  ;;  %v2421_v23 = vsel %vm307_vm0, %v6411_v19, 0.0  ;;  %v2395_v34 = vadd.f32 %v2394_v56, %v2393_v59 }
 0x24c   :  { %v2375_v37 = vrot.slane %v2374_v22, 2  ;;  %v2382_v54 = vrot.slane %v2381_v4, 2  ;;  %v2389_v20 = vrot.slane %v2388_v48, 2  ;;  %v2402_v35 = vadd.f32 %v2401_v0, %v2400_v3  ;;  %v8290_v3 = vpop.permute.xlu1 %4725 }
 0x24d   :  { %v2409_v47 = vadd.f32 %v2408_v30, %v2407_v1  ;;  %v2416_v7 = vadd.f32 %v2415_v26, %v2414_v61  ;;  %v2422_v52 = vrot.slane %v2421_v23, 4  ;;  %v2396_v2 = vrot.slane %v2395_v34, 2  ;;  %v6583_v26 = vld [vmem:[%s9579_s0 + $0x1e0] sm:$0xff]  }
 0x24e   :  { %v2376_v12 = vadd.f32 %v2375_v37, %v2374_v22  ;;  %v2383_v41 = vadd.f32 %v2382_v54, %v2381_v4  ;;  %v2390_v31 = vadd.f32 %v2389_v20, %v2388_v48  ;;  %v2403_v39 = vrot.slane %v2402_v35, 2 }
 0x24f   :  { %v2410_v53 = vrot.slane %v2409_v47, 2  ;;  %v2417_v32 = vrot.slane %v2416_v7, 2  ;;  %v2423_v36 = vadd.f32 %v2422_v52, %v2421_v23  ;;  %v2397_v63 = vadd.f32 %v2396_v2, %v2395_v34  ;;  %v8295_v23 = vpop.permute.xlu0 %4710 }
 0x250   :  { %v2377_v27 = vrot.slane %v2376_v12, 1  ;;  %v2384_v44 = vrot.slane %v2383_v41, 1  ;;  %v2391_v24 = vrot.slane %v2390_v31, 1  ;;  %v2404_v57 = vadd.f32 %v2403_v39, %v2402_v35 }
 0x251   :  { %v2411_v49 = vadd.f32 %v2410_v53, %v2409_v47  ;;  %v2418_v17 = vadd.f32 %v2417_v32, %v2416_v7  ;;  %v2424_v11 = vrot.slane %v2423_v36, 2  ;;  %v2398_v38 = vrot.slane %v2397_v63, 1 }
 0x252   :  { %v2378_v19 = vadd.f32 %v2377_v27, %v2376_v12  ;;  %v2385_v28 = vadd.f32 %v2384_v44, %v2383_v41  ;;  %v2392_v55 = vadd.f32 %v2391_v24, %v2390_v31  ;;  %v2405_v29 = vrot.slane %v2404_v57, 1  ;;  %v6584_v12 = vld [vmem:[%s9579_s0 + $0x1e8] sm:$0xff]   ;;  %v6585_v41 = vld [vmem:[%s9579_s0 + $0x1f0] sm:$0xff]   ;;  %v8314_v27 = vpop.permute.xlu1 %4818 }
 0x253   :  { %v2412_v51 = vrot.slane %v2411_v49, 1  ;;  %v2419_v14 = vrot.slane %v2418_v17, 1  ;;  %v2425_v59 = vadd.f32 %v2424_v11, %v2423_v36  ;;  %v2399_v1 = vadd.f32 %v2398_v38, %v2397_v63 }
 0x254   :  { %v2596_v61 = vmul.f32 0.125, %v2378_v19  ;;  %v2597_v22 = vmul.f32 0.125, %v2385_v28  ;;  %v2598_v4 = vmul.f32 0.125, %v2392_v55  ;;  %v2406_v48 = vadd.f32 %v2405_v29, %v2404_v57  ;;  %v8319_v19 = vpop.permute.xlu0 %4720 }
 0x255   :  { %v2413_v56 = vadd.f32 %v2412_v51, %v2411_v49  ;;  %v2420_v0 = vadd.f32 %v2419_v14, %v2418_v17  ;;  %v2426_v30 = vrot.slane %v2425_v59, 1  ;;  %v2599_v37 = vmul.f32 0.125, %v2399_v1 }
 0x256   :  { %v2724_v54 = vadd.f32 %v2596_v61, %v8247_v5  ;;  %v2725_v20 = vadd.f32 %v2597_v22, %v8251_v6  ;;  %v2726_v34 = vadd.f32 %v2598_v4, %v8259_v25  ;;  %v2600_v47 = vmul.f32 0.125, %v2406_v48  ;;  %v6586_v25 = vld [vmem:[%s9579_s0 + $0x1f8] sm:$0xff]  }
 0x257   :  { %v2427_v35 = vadd.f32 %v2426_v30, %v2425_v59  ;;  %v2601_v7 = vmul.f32 0.125, %v2413_v56  ;;  %v2602_v52 = vmul.f32 0.125, %v2420_v0  ;;  %v2727_v31 = vadd.f32 %v2599_v37, %v8261_v21  ;;  %v8330_v56 = vpop.permute.xlu1 %4822 }
 0x258   :  { %v2984_v5 = vsel %vm2879_vm1, %v2725_v20, %v2724_v54  ;;  %v6158_v2 = vunpack.c.l.bf16 %v6583_v26  ;;  %v6159_v6 = vunpack.c.h.bf16 %v6583_v26  ;;  %v2728_v53 = vadd.f32 %v2600_v47, %v8266_v40  ;;  %v8335_v47 = vpop.permute.xlu0 %4730 }
 0x259   :  { %v2603_v39 = vmul.f32 0.125, %v2427_v35  ;;  %v2729_v32 = vadd.f32 %v2601_v7, %v8268_v16  ;;  %v2730_v36 = vadd.f32 %v2602_v52, %v8270_v50  ;;  %v2985_v44 = vsel %vm2881_vm2, %v2726_v34, %v2984_v5 }
 0x25a   :  { %v6162_v21 = vunpack.c.l.bf16 %v6584_v12  ;;  %v6163_v24 = vunpack.c.h.bf16 %v6584_v12  ;;  %v6166_v63 = vunpack.c.l.bf16 %v6585_v41  ;;  %v2986_v49 = vsel %vm2883_vm3, %v2727_v31, %v2985_v44 }
 0x25b   :  { %v2731_v57 = vadd.f32 %v2603_v39, %v8277_v60  ;;  %v6167_v17 = vunpack.c.h.bf16 %v6585_v41  ;;  %v6170_v11 = vunpack.c.l.bf16 %v6586_v25  ;;  %v2987_v40 = vsel %vm2885_vm4, %v2728_v53, %v2986_v49 }
 0x25c   :  { %v6171_v16 = vunpack.c.h.bf16 %v6586_v25  ;;  %v1148_v50 = vsel %vm307_vm0, %v6158_v2, 0.0  ;;  %v1155_v28 = vsel %vm307_vm0, %v6159_v6, 0.0  ;;  %v2988_v55 = vsel %vm2887_vm5, %v2729_v32, %v2987_v40 }
 0x25d   :  { %v1149_v38 = vrot.slane %v1148_v50, 4  ;;  %v1156_v29 = vrot.slane %v1155_v28, 4  ;;  %v1162_v51 = vsel %vm307_vm0, %v6162_v21, 0.0  ;;  %v2989_v60 = vsel %vm2889_vm6, %v2730_v36, %v2988_v55  ;;  %v8340_v55 = vpop.permute.xlu0 %4740 }
 0x25e   :  { %v1163_v14 = vrot.slane %v1162_v51, 4  ;;  %v1169_v59 = vsel %vm307_vm0, %v6163_v24, 0.0  ;;  %v1176_v1 = vsel %vm307_vm0, %v6166_v63, 0.0  ;;  %v2990_v61 = vsel %vm2891_vm7, %v2731_v57, %v2989_v60  ;;  %v8338_v63 = vpop.permute.xlu1 %4918 }
 0x25f   :  { %v1150_v22 = vadd.f32 %v1149_v38, %v1148_v50  ;;  %v1157_v4 = vadd.f32 %v1156_v29, %v1155_v28  ;;  %v1170_v48 = vrot.slane %v1169_v59, 4  ;;  %6764 = vmatprep.mubr.msk.f32.mxu1 %vm307_vm0, %v2990_v61  ;;  %v1177_v30 = vrot.slane %v1176_v1, 4 }
 0x260   :  { %v1164_v0 = vadd.f32 %v1163_v14, %v1162_v51  ;;  %v1183_v26 = vsel %vm307_vm0, %v6167_v17, 0.0  ;;  %v1190_v37 = vsel %vm307_vm0, %v6170_v11, 0.0  ;;  %v1197_v41 = vsel %vm307_vm0, %v6171_v16, 0.0  ;;  %v6646_v14 = vld [vmem:[%s9580_s1 + $0x1e0] sm:$0xff]  }
 0x261   :  { %v1151_v54 = vrot.slane %v1150_v22, 2  ;;  %v1158_v20 = vrot.slane %v1157_v4, 2  ;;  %v1171_v34 = vadd.f32 %v1170_v48, %v1169_v59  ;;  %v1184_v35 = vrot.slane %v1183_v26, 4 }
 0x262   :  { %v1165_v7 = vrot.slane %v1164_v0, 2  ;;  %v1178_v52 = vadd.f32 %v1177_v30, %v1176_v1  ;;  %v1191_v12 = vrot.slane %v1190_v37, 4  ;;  %v1198_v32 = vrot.slane %v1197_v41, 4 }
 0x263   :  { %v1152_v31 = vadd.f32 %v1151_v54, %v1150_v22  ;;  %v1159_v5 = vadd.f32 %v1158_v20, %v1157_v4  ;;  %v1172_v2 = vrot.slane %v1171_v34, 2  ;;  %v1185_v6 = vadd.f32 %v1184_v35, %v1183_v26  ;;  %v6647_v4 = vld [vmem:[%s9580_s1 + $0x1e8] sm:$0xff]  }
 0x264   :  { %v1166_v25 = vadd.f32 %v1165_v7, %v1164_v0  ;;  %v1179_v39 = vrot.slane %v1178_v52, 2  ;;  %v1192_v53 = vadd.f32 %v1191_v12, %v1190_v37  ;;  %v1199_v11 = vadd.f32 %v1198_v32, %v1197_v41  ;;  %v6648_v37 = vld [vmem:[%s9580_s1 + $0x1f0] sm:$0xff]   ;;  %v6649_v7 = vld [vmem:[%s9580_s1 + $0x1f8] sm:$0xff]  }
 0x265   :  { %v1153_v36 = vrot.slane %v1152_v31, 1  ;;  %v1160_v44 = vrot.slane %v1159_v5, 1  ;;  %v1173_v21 = vadd.f32 %v1172_v2, %v1171_v34  ;;  %v1186_v24 = vrot.slane %v1185_v6, 2 }
 0x266   :  { %v1167_v57 = vrot.slane %v1166_v25, 1  ;;  %v1180_v49 = vadd.f32 %v1179_v39, %v1178_v52  ;;  %v1193_v17 = vrot.slane %v1192_v53, 2  ;;  %v1200_v60 = vrot.slane %v1199_v11, 2  ;;  %v8362_v52 = vpop.permute.xlu1 %4735 }
 0x267   :  { %v1154_v40 = vadd.f32 %v1153_v36, %v1152_v31  ;;  %v1161_v16 = vadd.f32 %v1160_v44, %v1159_v5  ;;  %v1174_v50 = vrot.slane %v1173_v21, 1  ;;  %v1187_v28 = vadd.f32 %v1186_v24, %v1185_v6  ;;  %9595 = vst [vmem:[#allocation5_spill] sm:$0xff] %v8362_v52 }
 0x268   :  { %v1168_v38 = vadd.f32 %v1167_v57, %v1166_v25  ;;  %v1181_v29 = vrot.slane %v1180_v49, 1  ;;  %v1194_v51 = vadd.f32 %v1193_v17, %v1192_v53  ;;  %v1201_v30 = vadd.f32 %v1200_v60, %v1199_v11  ;;  %v8368_v53 = vpop.permute.xlu0 %4750 }
 0x269   :  { %v1175_v59 = vadd.f32 %v1174_v50, %v1173_v21  ;;  %v1188_v1 = vrot.slane %v1187_v28, 1  ;;  %v8345_v61 = vmul.f32 0.125, %v1154_v40  ;;  %v8347_v22 = vmul.f32 0.125, %v1161_v16  ;;  %9596 = vst [vmem:[#allocation6_spill] sm:$0xff] %v8368_v53 }
 0x26a   :  { %v1182_v48 = vadd.f32 %v1181_v29, %v1180_v49  ;;  %v1195_v0 = vrot.slane %v1194_v51, 1  ;;  %v8352_v26 = vmul.f32 0.125, %v1168_v38  ;;  %v6414_v34 = vunpack.c.l.bf16 %v6646_v14  ;;  %v8381_v60 = vpop.permute.xlu1 %4826 }
 0x26b   :  { %v1189_v54 = vadd.f32 %v1188_v1, %v1187_v28  ;;  %v8357_v20 = vmul.f32 0.125, %v1175_v59  ;;  %v6415_v35 = vunpack.c.h.bf16 %v6646_v14  ;;  %v1202_v41 = vrot.slane %v1201_v30, 1  ;;  %9597 = vst [vmem:[#allocation7_spill] sm:$0xff] %v8381_v60 }
 0x26c   :  { %v1196_v12 = vadd.f32 %v1195_v0, %v1194_v51  ;;  %v8364_v31 = vmul.f32 0.125, %v1182_v48  ;;  %v6418_v5 = vunpack.c.l.bf16 %v6647_v4  ;;  %v6419_v6 = vunpack.c.h.bf16 %v6647_v4  ;;  %v8383_v48 = vpop.f32.mrf.mxu0 }
 0x26d   :  { %v8366_v2 = vmul.f32 0.125, %v1189_v54  ;;  %v6422_v25 = vunpack.c.l.bf16 %v6648_v37  ;;  %v6423_v39 = vunpack.c.h.bf16 %v6648_v37  ;;  %v1203_v32 = vadd.f32 %v1202_v41, %v1201_v30 }
 0x26e   :  { %v8370_v36 = vmul.f32 0.125, %v1196_v12  ;;  %v6426_v44 = vunpack.c.l.bf16 %v6649_v7  ;;  %v6427_v21 = vunpack.c.h.bf16 %v6649_v7  ;;  %v2428_v24 = vsel %vm307_vm0, %v6414_v34, 0.0  ;;  %v8386_v34 = vpop.permute.xlu0 %4760 }
 0x26f   :  { %v2435_v57 = vsel %vm307_vm0, %v6415_v35, 0.0  ;;  %v2442_v49 = vsel %vm307_vm0, %v6418_v5, 0.0  ;;  %v2449_v17 = vsel %vm307_vm0, %v6419_v6, 0.0  ;;  %v8376_v11 = vmul.f32 0.125, %v1203_v32  ;;  %9598 = vst [vmem:[#allocation8_spill] sm:$0xff] %v8386_v34 }
 0x270   :  { %v2429_v40 = vrot.slane %v2428_v24, 4  ;;  %v2436_v16 = vrot.slane %v2435_v57, 4  ;;  %v2443_v50 = vrot.slane %v2442_v49, 4  ;;  %v2450_v28 = vrot.slane %v2449_v17, 4 }
 0x271   :  { %v2456_v38 = vsel %vm307_vm0, %v6422_v25, 0.0  ;;  %v2463_v29 = vsel %vm307_vm0, %v6423_v39, 0.0  ;;  %v2470_v51 = vsel %vm307_vm0, %v6426_v44, 0.0  ;;  %v2477_v54 = vsel %vm307_vm0, %v6427_v21, 0.0  ;;  %v8388_v21 = vpop.permute.xlu1 %4830 }
 0x272   :  { %v2430_v14 = vadd.f32 %v2429_v40, %v2428_v24  ;;  %v2437_v59 = vadd.f32 %v2436_v16, %v2435_v57  ;;  %v2444_v1 = vadd.f32 %v2443_v50, %v2442_v49  ;;  %v2457_v4 = vrot.slane %v2456_v38, 4  ;;  %v3096_v49 = vpop.f32.mrf.mxu0  ;;  %9599 = vst [vmem:[#allocation9_spill] sm:$0xff] %v8388_v21 }
 0x273   :  { %v2451_v0 = vadd.f32 %v2450_v28, %v2449_v17  ;;  %v2464_v30 = vrot.slane %v2463_v29, 4  ;;  %v2471_v37 = vrot.slane %v2470_v51, 4  ;;  %v2478_v39 = vrot.slane %v2477_v54, 4 }
 0x274   :  { %v2431_v35 = vrot.slane %v2430_v14, 2  ;;  %v2438_v7 = vrot.slane %v2437_v59, 2  ;;  %v2445_v12 = vrot.slane %v2444_v1, 2  ;;  %v2458_v41 = vadd.f32 %v2457_v4, %v2456_v38 }
 0x275   :  { %v2452_v5 = vrot.slane %v2451_v0, 2  ;;  %v2465_v6 = vadd.f32 %v2464_v30, %v2463_v29  ;;  %v2472_v25 = vadd.f32 %v2471_v37, %v2470_v51  ;;  %v2479_v50 = vadd.f32 %v2478_v39, %v2477_v54  ;;  %v8390_v30 = vpop.permute.xlu0 %4770 }
 0x276   :  { %v2432_v32 = vadd.f32 %v2431_v35, %v2430_v14  ;;  %v2439_v44 = vadd.f32 %v2438_v7, %v2437_v59  ;;  %v2446_v24 = vadd.f32 %v2445_v12, %v2444_v1  ;;  %v2459_v57 = vrot.slane %v2458_v41, 2 }
 0x277   :  { %v2453_v17 = vadd.f32 %v2452_v5, %v2451_v0  ;;  %v2466_v40 = vrot.slane %v2465_v6, 2  ;;  %v2473_v16 = vrot.slane %v2472_v25, 2  ;;  %v2480_v51 = vrot.slane %v2479_v50, 2  ;;  %v6748_v0 = vpop.f32.mrf.mxu0 }
 0x278   :  { %v2433_v28 = vrot.slane %v2432_v32, 1  ;;  %v2440_v34 = vrot.slane %v2439_v44, 1  ;;  %v2447_v53 = vrot.slane %v2446_v24, 1  ;;  %v2460_v60 = vadd.f32 %v2459_v57, %v2458_v41 }
 0x279   :  { %v2454_v38 = vrot.slane %v2453_v17, 1  ;;  %v2467_v4 = vadd.f32 %v2466_v40, %v2465_v6  ;;  %v2474_v29 = vadd.f32 %v2473_v16, %v2472_v25  ;;  %v2481_v12 = vadd.f32 %v2480_v51, %v2479_v50  ;;  %v8392_v40 = vpop.permute.xlu1 %4926 }
 0x27a   :  { %v2434_v14 = vadd.f32 %v2433_v28, %v2432_v32  ;;  %v2441_v59 = vadd.f32 %v2440_v34, %v2439_v44  ;;  %v2448_v1 = vadd.f32 %v2447_v53, %v2446_v24  ;;  %v2461_v37 = vrot.slane %v2460_v60, 1  ;;  %v3106_v44 = vpop.f32.mrf.mxu0  ;;  %v8398_v28 = vpop.permute.xlu0 %4898 }
 0x27b   :  { %v2455_v35 = vadd.f32 %v2454_v38, %v2453_v17  ;;  %v2468_v7 = vrot.slane %v2467_v4, 1  ;;  %v2475_v54 = vrot.slane %v2474_v29, 1  ;;  %v2482_v6 = vrot.slane %v2481_v12, 1  ;;  %v8403_v38 = vld [vmem:[%s9591_s12] ss:$0 sm:$0xff] }
 0x27c   :  { %v2462_v5 = vadd.f32 %v2461_v37, %v2460_v60  ;;  %v2604_v39 = vmul.f32 0.125, %v2434_v14  ;;  %v2605_v21 = vmul.f32 0.125, %v2441_v59  ;;  %v2606_v52 = vmul.f32 0.125, %v2448_v1  ;;  %v6751_v59 = vpop.f32.mrf.mxu0 }
 0x27d   :  { %v2469_v41 = vadd.f32 %v2468_v7, %v2467_v4  ;;  %v2476_v57 = vadd.f32 %v2475_v54, %v2474_v29  ;;  %v2607_v25 = vmul.f32 0.125, %v2455_v35  ;;  %v2483_v24 = vadd.f32 %v2482_v6, %v2481_v12 }
 0x27e   :  { %v2608_v16 = vmul.f32 0.125, %v2462_v5  ;;  %v2732_v34 = vadd.f32 %v2604_v39, %v8345_v61  ;;  %v2733_v53 = vadd.f32 %v2605_v21, %v8347_v22  ;;  %v2734_v32 = vadd.f32 %v2606_v52, %v8352_v26  ;;  %v4907_v5 = vpop.permute.xlu0 %4906 }
 0x27f   :  { %v2609_v17 = vmul.f32 0.125, %v2469_v41  ;;  %v2610_v60 = vmul.f32 0.125, %v2476_v57  ;;  %v2735_v50 = vadd.f32 %v2607_v25, %v8357_v20  ;;  %v4773_v22 = vlaneseq  ;;  %v3116_v25 = vpop.f32.mrf.mxu0 }
 0x280   :  { %v2736_v4 = vadd.f32 %v2608_v16, %v8364_v31  ;;  %v2991_v61 = vsel %vm2879_vm1, %v2733_v53, %v2732_v34  ;;  %v2611_v21 = vmul.f32 0.125, %v2483_v24  ;;  %v3102_v14 = vadd.f32 %v8383_v48, %v8403_v38 }
 0x281   :  { %v2737_v26 = vadd.f32 %v2609_v17, %v8366_v2  ;;  %v2738_v52 = vadd.f32 %v2610_v60, %v8370_v36  ;;  %v2992_v29 = vsel %vm2881_vm2, %v2734_v32, %v2991_v61  ;;  %v8412_v51 = vshrl.u32 %v4773_v22, 7  ;;  %v4692_v2 = vld [vmem:[%s9586_s7] sm:$0x7]  ;;  %v8422_v36 = vpop.permute.xlu1 %4745 }
 0x282   :  { %v2993_v20 = vsel %vm2883_vm3, %v2735_v50, %v2992_v29  ;;  %v3097_v31 = vadd.f32 %v8403_v38, %v3096_v49  ;;  %v2739_v1 = vadd.f32 %v2611_v21, %v8376_v11  ;;  %v3112_v35 = vadd.f32 %v6748_v0, %v8403_v38  ;;  %v4915_v29 = vpop.permute.xlu0 %4914 }
 0x283   :  { %v2994_v37 = vsel %vm2885_vm4, %v2736_v4, %v2993_v20  ;;  %v3107_v7 = vadd.f32 %v8403_v38, %v3106_v44  ;;  %v4775_v48 = vsub.s32 0, %v8412_v51  ;;  %v4859_v49 = vsub.s32 1, %v8412_v51 }
 0x284   :  { %v2995_v54 = vsel %vm2887_vm5, %v2737_v26, %v2994_v37  ;;  %v4959_v11 = vsub.s32 2, %v8412_v51  ;;  %v3175_v39 = vmax.f32 %v3097_v31, 0.0  ;;  %vm5047_vm8 = vcmask 523264  }
 0x285   :  { %v2996_v12 = vsel %vm2889_vm6, %v2738_v52, %v2995_v54  ;;  %v8432_v57 = vrot.slane %v4692_v2, %v4775_v48  ;;  %v8434_v6 = vrot.slane %v4692_v2, %v4859_v49  ;;  %v3176_v16 = vmax.f32 %v3102_v14, 0.0  ;;  %v8445_v24 = vpop.permute.xlu1 %4834 }
 0x286   :  { %v2997_v41 = vsel %vm2891_vm7, %v2739_v1, %v2996_v12  ;;  %v8436_v0 = vrot.slane %v4692_v2, %v4959_v11  ;;  %v3178_v34 = vmax.f32 %v3112_v35, 0.0  ;;  %v3177_v17 = vmax.f32 %v3107_v7, 0.0  ;;  %v4923_v49 = vpop.permute.xlu0 %4922 }
 0x287   :  { %6765 = vmatmul.mubr.msk.f32.gmra.mxu1 %vm307_vm0, %v2997_v41  ;;  %v4861_v53 = vmul.f32 %v8434_v6, %v8283_v46  ;;  %v4862_v32 = vmul.f32 %v8434_v6, %v8106_v18  ;;  %v4777_v44 = vmul.f32 %v8432_v57, %v8288_v62  ;;  %v4780_v50 = vmul.f32 %v8432_v57, %v8295_v23  ;;  %v8467_v23 = vld [vmem:[%s9587_s8] ss:$0 sm:$0xff] }
 0x288   :  { %6775 = vmatprep.mubr.msk.f32.mxu1 %vm307_vm0, %v3175_v39  ;;  %v4961_v60 = vmul.f32 %v8436_v0, %v8146_v9  ;;  %v8453_v4 = vadd.f32 %v6751_v59, %v8403_v38  ;;  %v8456_v46 = vadd.f32 %v8403_v38, %v3116_v25  ;;  %v4778_v18 = vmul.f32 %v8432_v57, %v8089_v43  ;;  %v6754_v9 = vpop.f32.mrf.mxu0 }
 0x289   :  { %v4877_v62 = vadd.f32 %v4861_v53, %v4777_v44  ;;  %v4779_v61 = vmul.f32 %v8432_v57, %v8169_v58  ;;  %v4863_v21 = vmul.f32 %v8434_v6, %v8186_v10  ;;  %v4782_v26 = vmul.f32 %v8432_v57, %v8319_v19  ;;  %v4839_v59 = vpop.permute.xlu1 %4838 }
 0x28a   :  { %v4864_v52 = vmul.f32 %v8434_v6, %v8205_v15  ;;  %v4963_v43 = vmul.f32 %v8436_v0, %v8227_v8  ;;  %v8477_v58 = vadd.f32 %v6754_v9, %v8403_v38  ;;  %v4878_v10 = vadd.f32 %v4862_v32, %v4778_v18 }
 0x28b   :  { %6776 = vmatmul.mubr.msk.f32.vlgmr.msra.gmra.mxu1 %vm307_vm0, %v3176_v16  ;;  %v4977_v20 = vadd.f32 %v4961_v60, %v4877_v62  ;;  %v4784_v14 = vmul.f32 %v8432_v57, %v8335_v47  ;;  %v4879_v31 = vadd.f32 %v4863_v21, %v4779_v61  ;;  %v4781_v15 = vmul.f32 %v8432_v57, %v8241_v33  ;;  %v4931_v60 = vpop.permute.xlu0 %4930  ;;  %v9601_v21 = vld [vmem:[#allocation7_spill] sm:$0xff] }
 0x28c   :  { %6778 = vmatprep.mubr.msk.f32.mxu1 %vm307_vm0, %v3177_v17  ;;  %v4880_v19 = vadd.f32 %v4864_v52, %v4780_v50  ;;  %v4962_v8 = vmul.f32 %v8436_v0, %v8398_v28  ;;  %v4865_v1 = vmul.f32 %v8434_v6, %v8249_v45  ;;  %v4964_v35 = vmul.f32 %v8436_v0, %v4907_v5 }
 0x28d   :  { %v5000_v37 = vadd.f32 %v8467_v23, %v4977_v20  ;;  %v4979_v2 = vadd.f32 %v4963_v43, %v4879_v31  ;;  %v4866_v47 = vmul.f32 %v8434_v6, %v8275_v42  ;;  %v4966_v48 = vmul.f32 %v8436_v0, %v4915_v29  ;;  %v4935_v25 = vpop.permute.xlu1 %4934 }
 0x28e   :  { %v4978_v7 = vadd.f32 %v4962_v8, %v4878_v10  ;;  %v4881_v54 = vadd.f32 %v4865_v1, %v4781_v15  ;;  %v4965_v33 = vmul.f32 %v8436_v0, %v8286_v13  ;;  %v4980_v11 = vadd.f32 %v4964_v35, %v4880_v19 }
 0x28f   :  { %6779 = vmatmul.mubr.msk.f32.gmra.mxu1 %vm307_vm0, %v3178_v34  ;;  %v5016_v28 = vmax.f32 %v5000_v37, 0.0  ;;  %v5002_v45 = vadd.f32 %v8467_v23, %v4979_v2  ;;  %v4882_v12 = vadd.f32 %v4866_v47, %v4782_v26  ;;  %v4786_v5 = vmul.f32 %v8432_v57, %v8340_v55  ;;  %v9602_v26 = vld [vmem:[#allocation9_spill] sm:$0xff]  ;;  %v4939_v1 = vpop.permute.xlu0 %4938  ;;  %v6757_v37 = vpop.f32.mrf.mxu1 }
 0x290   :  { %v5001_v42 = vadd.f32 %v8467_v23, %v4978_v7  ;;  %v4981_v39 = vadd.f32 %v4965_v33, %v4881_v54  ;;  %v4867_v41 = vmul.f32 %v8434_v6, %v8314_v27  ;;  %v5003_v13 = vadd.f32 %v8467_v23, %v4980_v11 }
 0x291   :  { %6815 = vmatprep.mubr.msk.f32.mxu0 %vm5047_vm8, %v5016_v28  ;;  %v4982_v16 = vadd.f32 %v4966_v48, %v4882_v12  ;;  %v4783_v34 = vmul.f32 %v8432_v57, %v8290_v3  ;;  %v4868_v53 = vmul.f32 %v8434_v6, %v8330_v56  ;;  %v5018_v32 = vmax.f32 %v5002_v45, 0.0  ;;  %v9600_v3 = vld [vmem:[#allocation5_spill] sm:$0xff]  ;;  %v4756_v20 = vpop.permute.xlu1 %4755 }
 0x292   :  { %v5017_v55 = vmax.f32 %v5001_v42, 0.0  ;;  %v5004_v44 = vadd.f32 %v8467_v23, %v4981_v39  ;;  %v4968_v17 = vmul.f32 %v8436_v0, %v4923_v49  ;;  %v5019_v27 = vmax.f32 %v5003_v13, 0.0  ;;  %v3136_v42 = vpop.f32.mrf.mxu1 }
 0x293   :  { %v4883_v50 = vadd.f32 %v4867_v41, %v4783_v34  ;;  %v4884_v18 = vadd.f32 %v4868_v53, %v4784_v14  ;;  %v4967_v62 = vmul.f32 %v8436_v0, %v8338_v63  ;;  %v5005_v61 = vadd.f32 %v8467_v23, %v4982_v16  ;;  %v9603_v14 = vld [vmem:[#allocation6_spill] sm:$0xff] }
 0x294   :  { %6816 = vmatmul.mubr.msk.f32.vlgmr.msra.gmra.mxu0 %vm5047_vm8, %v5017_v55  ;;  %v4785_v56 = vmul.f32 %v8432_v57, %v9600_v3  ;;  %v4869_v9 = vmul.f32 %v8434_v6, %v9601_v21  ;;  %v4870_v52 = vmul.f32 %v8434_v6, %v9602_v26  ;;  %v5020_v43 = vmax.f32 %v5004_v44, 0.0 }
 0x295   :  { %6818 = vmatprep.mubr.msk.f32.mxu0 %vm5047_vm8, %v5018_v32  ;;  %v4984_v29 = vadd.f32 %v4968_v17, %v4884_v18  ;;  %v4983_v10 = vadd.f32 %v4967_v62, %v4883_v50  ;;  %v4970_v63 = vmul.f32 %v8436_v0, %v4931_v60  ;;  %v4788_v31 = vmul.f32 %v8432_v57, %v9603_v14  ;;  %v4843_v39 = vpop.permute.xlu1 %4842  ;;  %v4947_v18 = vpop.permute.xlu0 %4946 }
 0x296   :  { %v4885_v19 = vadd.f32 %v4869_v9, %v4785_v56  ;;  %v4886_v15 = vadd.f32 %v4870_v52, %v4786_v5  ;;  %v4969_v8 = vmul.f32 %v8436_v0, %v8392_v40  ;;  %v4787_v35 = vmul.f32 %v8432_v57, %v8422_v36  ;;  %v3126_v40 = vpop.f32.mrf.mxu0 }
 0x297   :  { %v5006_v2 = vadd.f32 %v8467_v23, %v4983_v10  ;;  %v4871_v47 = vmul.f32 %v8434_v6, %v8445_v24  ;;  %v4872_v7 = vmul.f32 %v8434_v6, %v4839_v59  ;;  %v5021_v54 = vmax.f32 %v5005_v61, 0.0 }
 0x298   :  { %6819 = vmatmul.mubr.msk.f32.gmra.mxu0 %vm5047_vm8, %v5019_v27  ;;  %v5007_v48 = vadd.f32 %v8467_v23, %v4984_v29  ;;  %v4986_v33 = vadd.f32 %v4970_v63, %v4886_v15  ;;  %v4985_v49 = vadd.f32 %v4969_v8, %v4885_v19  ;;  %v4972_v11 = vmul.f32 %v8436_v0, %v4939_v1 }
 0x299   :  { %6821 = vmatprep.mubr.msk.f32.mxu0 %vm5047_vm8, %v5020_v43  ;;  %v5022_v28 = vmax.f32 %v5006_v2, 0.0  ;;  %v4887_v45 = vadd.f32 %v4871_v47, %v4787_v35  ;;  %v3180_v36 = vmax.f32 %v8453_v4, 0.0  ;;  %v4888_v12 = vadd.f32 %v4872_v7, %v4788_v31  ;;  %v4847_v17 = vpop.permute.xlu1 %4846 }
 0x29a   :  { %v5008_v24 = vadd.f32 %v8467_v23, %v4985_v49  ;;  %v4971_v59 = vmul.f32 %v8436_v0, %v4935_v25  ;;  %v3179_v5 = vmax.f32 %v8456_v46, 0.0  ;;  %v3127_v41 = vadd.f32 %v8403_v38, %v3126_v40 }
 0x29b   :  { %v3182_v16 = vmax.f32 %v8477_v58, 0.0  ;;  %v3142_v53 = vadd.f32 %v6757_v37, %v8403_v38  ;;  %v3137_v46 = vadd.f32 %v8403_v38, %v3136_v42  ;;  %v5023_v25 = vmax.f32 %v5007_v48, 0.0  ;;  %v9604_v58 = vld [vmem:[#allocation8_spill] sm:$0xff] }
 0x29c   :  { %6822 = vmatmul.mubr.msk.f32.gmra.mxu0 %vm5047_vm8, %v5021_v54  ;;  %v4987_v13 = vadd.f32 %v4971_v59, %v4887_v45  ;;  %6781 = vmatprep.mubr.msk.f32.mxu1 %vm307_vm0, %v3179_v5  ;;  %v5024_v4 = vmax.f32 %v5008_v24, 0.0  ;;  %v3181_v34 = vmax.f32 %v3127_v41, 0.0  ;;  %v5009_v32 = vadd.f32 %v8467_v23, %v4986_v33 }
 0x29d   :  { %6824 = vmatprep.mubr.msk.f32.mxu0 %vm5047_vm8, %v5022_v28  ;;  %6782 = vmatmul.mubr.msk.f32.gmra.mxu1 %vm307_vm0, %v3180_v36  ;;  %v4988_v55 = vadd.f32 %v4972_v11, %v4888_v12  ;;  %v4790_v60 = vmul.f32 %v8432_v57, %v9604_v58  ;;  %v3183_v27 = vmax.f32 %v3137_v46, 0.0  ;;  %v4874_v50 = vmul.f32 %v8434_v6, %v4847_v17  ;;  %v4943_v29 = vpop.permute.xlu1 %4942  ;;  %v4955_v28 = vpop.permute.xlu0 %4954  ;;  %v3408_v46 = vld [vmem:[%s9581_s2 + $0x1a] sm:$0x3] }
 0x29e   :  { %v5010_v44 = vadd.f32 %v8467_v23, %v4987_v13  ;;  %6784 = vmatprep.mubr.msk.f32.mxu1 %vm307_vm0, %v3181_v34  ;;  %v4873_v62 = vmul.f32 %v8434_v6, %v4843_v39  ;;  %v3184_v3 = vmax.f32 %v3142_v53, 0.0  ;;  %v4974_v56 = vmul.f32 %v8436_v0, %v4947_v18 }
 0x29f   :  { %v4890_v21 = vadd.f32 %v4874_v50, %v4790_v60  ;;  %v5025_v9 = vmax.f32 %v5009_v32, 0.0  ;;  %v5011_v26 = vadd.f32 %v8467_v23, %v4988_v55  ;;  %v4789_v52 = vmul.f32 %v8432_v57, %v4756_v20  ;;  %v3410_v32 = vld [vmem:[%s9581_s2 + $0x1e] sm:$0x3] }
 0x2a0   :  { %6825 = vmatmul.mubr.msk.f32.gmra.mxu0 %vm5047_vm8, %v5023_v25  ;;  %v5026_v61 = vmax.f32 %v5010_v44, 0.0  ;;  %v4973_v63 = vmul.f32 %v8436_v0, %v4943_v29  ;;  %v4792_v11 = vmul.f32 %v8432_v57, %v8390_v30  ;;  %v4976_v24 = vmul.f32 %v8436_v0, %v4955_v28  ;;  %v3403_v30 = vld [vmem:[%s9581_s2 + $0x10] sm:$0x3]  ;;  %v3409_v25 = vld [vmem:[%s9581_s2 + $0x1c] sm:$0x3] }
 0x2a1   :  { %6827 = vmatprep.mubr.msk.f32.mxu0 %vm5047_vm8, %v5024_v4  ;;  %6785 = vmatmul.mubr.msk.f32.gmra.mxu1 %vm307_vm0, %v3182_v16  ;;  %v4990_v43 = vadd.f32 %v4974_v56, %v4890_v21  ;;  %v4889_v10 = vadd.f32 %v4873_v62, %v4789_v52  ;;  %v5027_v14 = vmax.f32 %v5011_v26, 0.0  ;;  %v4766_v1 = vpop.permute.xlu1 %4765  ;;  %vm3651_vm9 = vcmask 257024  }
 0x2a2   :  { %6787 = vmatprep.mubr.msk.f32.mxu1 %vm307_vm0, %v3183_v27  ;;  %v4791_v33 = vmul.f32 %v8432_v57, %v4766_v1  ;;  %v3404_v57 = vld [vmem:[%s9581_s2 + $0x12] sm:$0x3]  ;;  %v3531_v34 = vunpack.c.l.bf16 %v3403_v30  ;;  %v3536_v58 = vunpack.c.l.bf16 %v3408_v46  ;;  %v3537_v60 = vunpack.c.l.bf16 %v3409_v25 }
 0x2a3   :  { %v4989_v31 = vadd.f32 %v4973_v63, %v4889_v10  ;;  %v5013_v15 = vadd.f32 %v8467_v23, %v4990_v43  ;;  %v3532_v53 = vunpack.c.l.bf16 %v3404_v57  ;;  %v3538_v27 = vunpack.c.l.bf16 %v3410_v32  ;;  %v8626_v32 = vld [vmem:[%s9583_s4] sm:$0xff]  }
 0x2a4   :  { %6828 = vmatmul.mubr.msk.f32.gmra.mxu0 %vm5047_vm8, %v5025_v9  ;;  %v3708_v50 = vsel %vm3651_vm9, %v3531_v34, 0.0  ;;  %v3743_v29 = vsel %vm3651_vm9, %v3536_v58, 0.0  ;;  %v3750_v10 = vsel %vm3651_vm9, %v3537_v60, 0.0  ;;  %vm5748_vm10 = vcmask 130112  }
 0x2a5   :  { %6830 = vmatprep.mubr.msk.f32.mxu0 %vm5047_vm8, %v5026_v61  ;;  %6788 = vmatmul.mubr.msk.f32.gmra.mxu1 %vm307_vm0, %v3184_v3  ;;  %v5012_v8 = vadd.f32 %v8467_v23, %v4989_v31  ;;  %v5029_v7 = vmax.f32 %v5013_v15, 0.0  ;;  %v3709_v18 = vrot.slane %v3708_v50, 4  ;;  %v3715_v62 = vsel %vm3651_vm9, %v3532_v53, 0.0 }
 0x2a6   :  { %v4851_v48 = vpop.permute.xlu1 %4850  ;;  %v3716_v56 = vrot.slane %v3715_v62, 4  ;;  %v3757_v1 = vsel %vm3651_vm9, %v3538_v27, 0.0  ;;  %v3395_v27 = vld [vmem:[%s9581_s2] sm:$0x3]  ;;  %vm5755_vm11 = vcmask 195712   ;;  %vm5762_vm12 = vcmask 261312  }
 0x2a7   :  { %v5028_v35 = vmax.f32 %v5012_v8, 0.0  ;;  %v4875_v49 = vmul.f32 %v8434_v6, %v4851_v48  ;;  %v3710_v52 = vadd.f32 %v3709_v18, %v3708_v50  ;;  %v3751_v8 = vrot.slane %v3750_v10, 4 }
 0x2a8   :  { %v6760_v19 = vpop.f32.mrf.mxu1  ;;  %6831 = vmatmul.mubr.msk.f32.gmra.mxu0 %vm5047_vm8, %v5027_v14  ;;  %v3717_v63 = vadd.f32 %v3716_v56, %v3715_v62  ;;  %v3397_v56 = vld [vmem:[%s9581_s2 + $0x4] sm:$0x3]  ;;  %vm5769_vm13 = vcmask 326912   ;;  %vm5776_vm14 = vcmask 392512   ;;  %vm5783_vm15 = vcmask 458112  }
 0x2a9   :  { %v3152_v20 = vadd.f32 %v6760_v19, %v8403_v38  ;;  %6833 = vmatprep.mubr.msk.f32.mxu0 %vm5047_vm8, %v5028_v35  ;;  %v4891_v40 = vadd.f32 %v4875_v49, %v4791_v33  ;;  %v3744_v19 = vrot.slane %v3743_v29, 4  ;;  %v3711_v15 = vrot.slane %v3710_v52, 2 }
 0x2aa   :  { %v3146_v37 = vpop.f32.mrf.mxu1  ;;  %v3752_v48 = vadd.f32 %v3751_v8, %v3750_v10  ;;  %v3758_v33 = vrot.slane %v3757_v1, 4 }
 0x2ab   :  { %v3147_v2 = vadd.f32 %v8403_v38, %v3146_v37  ;;  %v3186_v47 = vmax.f32 %v3152_v20, 0.0  ;;  %v3718_v37 = vrot.slane %v3717_v63, 2 }
 0x2ac   :  { %6834 = vmatmul.mubr.msk.f32.gmra.mxu0 %vm5047_vm8, %v5029_v7  ;;  %v3712_v7 = vadd.f32 %v3711_v15, %v3710_v52  ;;  %v3523_v15 = vunpack.c.l.bf16 %v3395_v27 }
 0x2ad   :  { %v3185_v54 = vmax.f32 %v3147_v2, 0.0  ;;  %v3719_v49 = vadd.f32 %v3718_v37, %v3717_v63 }
 0x2af   :  { %6790 = vmatprep.mubr.msk.f32.mxu1 %vm307_vm0, %v3185_v54 }
 0x2b0   :  { %6791 = vmatmul.mubr.msk.f32.gmra.mxu1 %vm307_vm0, %v3186_v47  ;;  %v4855_v45 = vpop.permute.xlu1 %4854  ;;  %v3745_v47 = vadd.f32 %v3744_v19, %v3743_v29  ;;  %v3399_v29 = vld [vmem:[%s9581_s2 + $0x8] sm:$0x3]  ;;  %v3401_v19 = vld [vmem:[%s9581_s2 + $0xc] sm:$0x3] }
 0x2b1   :  { %v4876_v36 = vmul.f32 %v8434_v6, %v4855_v45  ;;  %v3405_v6 = vld [vmem:[%s9581_s2 + $0x14] sm:$0x3] }
 0x2b2   :  { %v3533_v55 = vunpack.c.l.bf16 %v3405_v6  ;;  %v3746_v45 = vrot.slane %v3745_v47, 2 }
 0x2b3   :  { %v4892_v12 = vadd.f32 %v4876_v36, %v4792_v11  ;;  %v3713_v11 = vrot.slane %v3712_v7, 1 }
 0x2b4   :  { %v3722_v61 = vsel %vm3651_vm9, %v3533_v55, 0.0  ;;  %v8631_v55 = vld [vmem:[%s9584_s5] sm:$0xff]  }
 0x2b5   :  { %v4992_v59 = vadd.f32 %v4976_v24, %v4892_v12  ;;  %v4951_v42 = vpop.permute.xlu1 %4950  ;;  %v3723_v21 = vrot.slane %v3722_v61, 4  ;;  %v3753_v24 = vrot.slane %v3752_v48, 2  ;;  %v3759_v12 = vadd.f32 %v3758_v33, %v3757_v1  ;;  %v3402_v1 = vld [vmem:[%s9581_s2 + $0xe] sm:$0x3] }
 0x2b6   :  { %v4975_v39 = vmul.f32 %v8436_v0, %v4951_v42  ;;  %v3406_v0 = vld [vmem:[%s9581_s2 + $0x16] sm:$0x3] }
 0x2b7   :  { %v5015_v5 = vadd.f32 %v8467_v23, %v4992_v59  ;;  %v3534_v44 = vunpack.c.l.bf16 %v3406_v0  ;;  %v3724_v14 = vadd.f32 %v3723_v21, %v3722_v61  ;;  %v3720_v59 = vrot.slane %v3719_v49, 1 }
 0x2b8   :  { %v4991_v41 = vadd.f32 %v4975_v39, %v4891_v40  ;;  %v3747_v39 = vadd.f32 %v3746_v45, %v3745_v47  ;;  %v3530_v45 = vunpack.c.l.bf16 %v3402_v1 }
 0x2b9   :  { %v5031_v16 = vmax.f32 %v5015_v5, 0.0  ;;  %v3729_v3 = vsel %vm3651_vm9, %v3534_v44, 0.0  ;;  %v3725_v2 = vrot.slane %v3724_v14, 2  ;;  %v3721_v30 = vadd.f32 %v3720_v59, %v3719_v49 }
 0x2ba   :  { %v5014_v13 = vadd.f32 %v8467_v23, %v4991_v41  ;;  %v3407_v23 = vld [vmem:[%s9581_s2 + $0x18] sm:$0x3]  ;;  %v3730_v9 = vrot.slane %v3729_v3, 4  ;;  %v3714_v41 = vadd.f32 %v3713_v11, %v3712_v7  ;;  %v3748_v0 = vrot.slane %v3747_v39, 1 }
 0x2bb   :  { %v3535_v17 = vunpack.c.l.bf16 %v3407_v23  ;;  %v3726_v40 = vadd.f32 %v3725_v2, %v3724_v14  ;;  %v8621_v23 = vld [vmem:[%s9582_s3] sm:$0xff]   ;;  %v3525_v2 = vunpack.c.l.bf16 %v3397_v56  ;;  %v3652_v11 = vsel %vm3651_vm9, %v3523_v15, 0.0 }
 0x2bc   :  { %v5030_v4 = vmax.f32 %v5014_v13, 0.0  ;;  %v3731_v31 = vadd.f32 %v3730_v9, %v3729_v3  ;;  %v4556_v25 = vmul.f32 0.25, %v3714_v41  ;;  %v3749_v44 = vadd.f32 %v3748_v0, %v3747_v39  ;;  %v3396_v3 = vld [vmem:[%s9581_s2 + $0x2] sm:$0x3] }
 0x2bd   :  { %v3736_v26 = vsel %vm3651_vm9, %v3535_v17, 0.0  ;;  %v3727_v5 = vrot.slane %v3726_v40, 1  ;;  %v4557_v17 = vmul.f32 0.25, %v3721_v30  ;;  %v6431_v61 = vunpack.c.h.bf16 %v8621_v23 }
 0x2be   :  { %6836 = vmatprep.mubr.msk.f32.mxu0 %vm5047_vm8, %v5030_v4  ;;  %v3737_v43 = vrot.slane %v3736_v26, 4  ;;  %v3732_v35 = vrot.slane %v3731_v31, 2  ;;  %v3760_v4 = vrot.slane %v3759_v12, 2  ;;  %v4561_v21 = vmul.f32 0.25, %v3749_v44 }
 0x2bf   :  { %6837 = vmatmul.mubr.msk.f32.gmra.mxu0 %vm5047_vm8, %v5031_v16  ;;  %v3754_v16 = vadd.f32 %v3753_v24, %v3752_v48  ;;  %v3728_v57 = vadd.f32 %v3727_v5, %v3726_v40  ;;  %v6463_v9 = vunpack.c.h.bf16 %v8626_v32  ;;  %v5504_v52 = vsel %vm2879_vm1, %v4557_v17, %v4556_v25 }
 0x2c0   :  { %v3738_v20 = vadd.f32 %v3737_v43, %v3736_v26  ;;  %v3733_v28 = vadd.f32 %v3732_v35, %v3731_v31  ;;  %v3761_v46 = vadd.f32 %v3760_v4, %v3759_v12  ;;  %v6495_v26 = vunpack.c.h.bf16 %v8631_v55  ;;  %v3398_v43 = vld [vmem:[%s9581_s2 + $0x6] sm:$0x3]  ;;  %v3400_v31 = vld [vmem:[%s9581_s2 + $0xa] sm:$0x3] }
 0x2c1   :  { %v3755_v53 = vrot.slane %v3754_v16, 1  ;;  %v4558_v58 = vmul.f32 0.25, %v3728_v57  ;;  %v3524_v37 = vunpack.c.l.bf16 %v3396_v3  ;;  %v3526_v7 = vunpack.c.l.bf16 %v3398_v43 }
 0x2c2   :  { %v3739_v54 = vrot.slane %v3738_v20, 2  ;;  %v3734_v42 = vrot.slane %v3733_v28, 1  ;;  %v3762_v18 = vrot.slane %v3761_v46, 1  ;;  %v3528_v49 = vunpack.c.l.bf16 %v3400_v31 }
 0x2c3   :  { %v3756_v50 = vadd.f32 %v3755_v53, %v3754_v16  ;;  %v5505_v14 = vsel %vm2881_vm2, %v4558_v58, %v5504_v52  ;;  %v3529_v40 = vunpack.c.l.bf16 %v3401_v19  ;;  %v3653_v12 = vrot.slane %v3652_v11, 4 }
 0x2c4   :  { %v3740_v36 = vadd.f32 %v3739_v54, %v3738_v20  ;;  %v3735_v6 = vadd.f32 %v3734_v42, %v3733_v28  ;;  %v3763_v10 = vadd.f32 %v3762_v18, %v3761_v46  ;;  %v5306_v20 = vadd.f32 %v6463_v9, %v6431_v61 }
 0x2c5   :  { %v4562_v63 = vmul.f32 0.25, %v3756_v50  ;;  %v3527_v54 = vunpack.c.l.bf16 %v3399_v29  ;;  %v3666_v5 = vsel %vm3651_vm9, %v3525_v2, 0.0  ;;  %v3673_v41 = vsel %vm3651_vm9, %v3526_v7, 0.0 }
 0x2c6   :  { %v3741_v13 = vrot.slane %v3740_v36, 1  ;;  %v4559_v60 = vmul.f32 0.25, %v3735_v6  ;;  %v4563_v35 = vmul.f32 0.25, %v3763_v10  ;;  %v5354_v48 = vadd.f32 %v6495_v26, %v5306_v20 }
 0x2c7   :  { %v3667_v39 = vrot.slane %v3666_v5, 4  ;;  %v3654_v16 = vadd.f32 %v3653_v12, %v3652_v11  ;;  %v3674_v30 = vrot.slane %v3673_v41, 4  ;;  %v3687_v0 = vsel %vm3651_vm9, %v3528_v49, 0.0  ;;  %v3419_v49 = vld [vmem:[%s9581_s2 + $0x30] sm:$0x3] }
 0x2c8   :  { %v3742_v34 = vadd.f32 %v3741_v13, %v3740_v36  ;;  %v5506_v8 = vsel %vm2883_vm3, %v4559_v60, %v5505_v14  ;;  %v3659_v36 = vsel %vm3651_vm9, %v3524_v37, 0.0  ;;  %v3680_v13 = vsel %vm3651_vm9, %v3527_v54, 0.0 }
 0x2c9   :  { %v3660_v59 = vrot.slane %v3659_v36, 4  ;;  %v3681_v57 = vrot.slane %v3680_v13, 4  ;;  %v3668_v6 = vadd.f32 %v3667_v39, %v3666_v5  ;;  %v3701_v53 = vsel %vm3651_vm9, %v3530_v45, 0.0 }
 0x2ca   :  { %v4560_v62 = vmul.f32 0.25, %v3742_v34  ;;  %v3694_v34 = vsel %vm3651_vm9, %v3529_v40, 0.0  ;;  %v3655_v46 = vrot.slane %v3654_v16, 2  ;;  %v3675_v44 = vadd.f32 %v3674_v30, %v3673_v41  ;;  %v3422_v30 = vld [vmem:[%s9581_s2 + $0x36] sm:$0x3] }
 0x2cb   :  { %v3661_v4 = vadd.f32 %v3660_v59, %v3659_v36  ;;  %v3682_v17 = vadd.f32 %v3681_v57, %v3680_v13  ;;  %v3669_v58 = vrot.slane %v3668_v6, 2  ;;  %v3688_v60 = vrot.slane %v3687_v0, 4  ;;  %v3420_v36 = vld [vmem:[%s9581_s2 + $0x32] sm:$0x3] }
 0x2cc   :  { %v5507_v47 = vsel %vm2885_vm4, %v4560_v62, %v5506_v8  ;;  %v3695_v27 = vrot.slane %v3694_v34, 4  ;;  %v3702_v50 = vrot.slane %v3701_v53, 4  ;;  %v3656_v18 = vadd.f32 %v3655_v46, %v3654_v16 }
 0x2cd   :  { %v5508_v33 = vsel %vm2887_vm5, %v4561_v21, %v5507_v47  ;;  %v3662_v25 = vrot.slane %v3661_v4, 2  ;;  %v3676_v61 = vrot.slane %v3675_v44, 2  ;;  %v3683_v3 = vrot.slane %v3682_v17, 2 }
 0x2ce   :  { %v5509_v28 = vsel %vm2889_vm6, %v4562_v63, %v5508_v33  ;;  %v3670_v56 = vadd.f32 %v3669_v58, %v3668_v6  ;;  %v3689_v21 = vadd.f32 %v3688_v60, %v3687_v0  ;;  %v3696_v9 = vadd.f32 %v3695_v27, %v3694_v34  ;;  %v3426_v58 = vld [vmem:[%s9581_s2 + $0x3e] sm:$0x3] }
 0x2cf   :  { %v5510_v24 = vsel %vm2891_vm7, %v4563_v35, %v5509_v28  ;;  %v3663_v62 = vadd.f32 %v3662_v25, %v3661_v4  ;;  %v3703_v26 = vadd.f32 %v3702_v50, %v3701_v53  ;;  %v3657_v52 = vrot.slane %v3656_v18, 1  ;;  %v3421_v4 = vld [vmem:[%s9581_s2 + $0x34] sm:$0x3] }
 0x2d0   :  { %v8670_v42 = vadd.f32 %v5510_v24, %v5354_v48  ;;  %v3677_v29 = vadd.f32 %v3676_v61, %v3675_v44  ;;  %v3684_v10 = vadd.f32 %v3683_v3, %v3682_v17  ;;  %v3671_v63 = vrot.slane %v3670_v56, 1 }
 0x2d1   :  { %v3664_v43 = vrot.slane %v3663_v62, 1  ;;  %v3690_v14 = vrot.slane %v3689_v21, 2  ;;  %v3697_v31 = vrot.slane %v3696_v9, 2  ;;  %v3704_v19 = vrot.slane %v3703_v26, 2 }
 0x2d2   :  { %v3658_v15 = vadd.f32 %v3657_v52, %v3656_v18  ;;  %v3678_v8 = vrot.slane %v3677_v29, 1  ;;  %v3685_v1 = vrot.slane %v3684_v10, 1  ;;  %v3672_v37 = vadd.f32 %v3671_v63, %v3670_v56 }
 0x2d3   :  { %v3665_v20 = vadd.f32 %v3664_v43, %v3663_v62  ;;  %v3691_v2 = vadd.f32 %v3690_v14, %v3689_v21  ;;  %v3698_v35 = vadd.f32 %v3697_v31, %v3696_v9  ;;  %v3705_v47 = vadd.f32 %v3704_v19, %v3703_v26 }
 0x2d4   :  { %v3679_v7 = vadd.f32 %v3678_v8, %v3677_v29  ;;  %v3686_v54 = vadd.f32 %v3685_v1, %v3684_v10  ;;  %v4548_v48 = vmul.f32 0.25, %v3658_v15  ;;  %v4550_v11 = vmul.f32 0.25, %v3672_v37 }
 0x2d5   :  { %v4549_v33 = vmul.f32 0.25, %v3665_v20  ;;  %v3692_v40 = vrot.slane %v3691_v2, 1  ;;  %v3699_v28 = vrot.slane %v3698_v35, 1  ;;  %v3706_v45 = vrot.slane %v3705_v47, 1 }
 0x2d6   :  { %v4551_v24 = vmul.f32 0.25, %v3679_v7  ;;  %v4552_v12 = vmul.f32 0.25, %v3686_v54  ;;  %v6430_v59 = vunpack.c.l.bf16 %v8621_v23  ;;  %v6462_v5 = vunpack.c.l.bf16 %v8626_v32  ;;  %v3423_v23 = vld [vmem:[%s9581_s2 + $0x38] sm:$0x3]  ;;  %v3424_v32 = vld [vmem:[%s9581_s2 + $0x3a] sm:$0x3] }
 0x2d7   :  { %v3693_v39 = vadd.f32 %v3692_v40, %v3691_v2  ;;  %v3700_v41 = vadd.f32 %v3699_v28, %v3698_v35  ;;  %v3707_v13 = vadd.f32 %v3706_v45, %v3705_v47  ;;  %v6494_v16 = vunpack.c.l.bf16 %v8631_v55  ;;  %v3425_v55 = vld [vmem:[%s9581_s2 + $0x3c] sm:$0x3] }
 0x2d8   :  { %v5305_v6 = vadd.f32 %v6462_v5, %v6430_v59  ;;  %v5497_v0 = vsel %vm2879_vm1, %v4549_v33, %v4548_v48  ;;  %v3547_v34 = vunpack.c.l.bf16 %v3419_v49  ;;  %v3548_v53 = vunpack.c.l.bf16 %v3420_v36 }
 0x2d9   :  { %v4553_v25 = vmul.f32 0.25, %v3693_v39  ;;  %v4554_v44 = vmul.f32 0.25, %v3700_v41  ;;  %v4555_v17 = vmul.f32 0.25, %v3707_v13  ;;  %v5498_v50 = vsel %vm2881_vm2, %v4550_v11, %v5497_v0 }
 0x2da   :  { %v5353_v27 = vadd.f32 %v6494_v16, %v5305_v6  ;;  %v3549_v18 = vunpack.c.l.bf16 %v3421_v4  ;;  %v3550_v62 = vunpack.c.l.bf16 %v3422_v30  ;;  %v5499_v56 = vsel %vm2883_vm3, %v4551_v24, %v5498_v50 }
 0x2db   :  { %v3551_v21 = vunpack.c.l.bf16 %v3423_v23  ;;  %v5500_v9 = vsel %vm2885_vm4, %v4552_v12, %v5499_v56  ;;  %v3552_v26 = vunpack.c.l.bf16 %v3424_v32  ;;  %v3553_v52 = vunpack.c.l.bf16 %v3425_v55 }
 0x2dc   :  { %v3554_v43 = vunpack.c.l.bf16 %v3426_v58  ;;  %v5501_v10 = vsel %vm2887_vm5, %v4553_v25, %v5500_v9  ;;  %v3820_v63 = vsel %vm3651_vm9, %v3547_v34, 0.0  ;;  %v3827_v14 = vsel %vm3651_vm9, %v3548_v53, 0.0 }
 0x2dd   :  { %v5502_v31 = vsel %vm2889_vm6, %v4554_v44, %v5501_v10  ;;  %v3821_v19 = vrot.slane %v3820_v63, 4  ;;  %v3828_v15 = vrot.slane %v3827_v14, 4  ;;  %v3841_v1 = vsel %vm3651_vm9, %v3550_v62, 0.0  ;;  %v8728_v62 = vld [vmem:[%s9582_s3 + $0x8] sm:$0xff]  }
 0x2de   :  { %v5503_v20 = vsel %vm2891_vm7, %v4555_v17, %v5502_v31  ;;  %v3848_v37 = vsel %vm3651_vm9, %v3551_v21, 0.0  ;;  %v3842_v7 = vrot.slane %v3841_v1, 4  ;;  %v3855_v33 = vsel %vm3651_vm9, %v3552_v26, 0.0  ;;  %v8738_v26 = vld [vmem:[%s9584_s5 + $0x8] sm:$0xff]  }
 0x2df   :  { %v8720_v2 = vadd.f32 %v5503_v20, %v5353_v27  ;;  %v3822_v35 = vadd.f32 %v3821_v19, %v3820_v63  ;;  %v3829_v47 = vadd.f32 %v3828_v15, %v3827_v14  ;;  %v3849_v48 = vrot.slane %v3848_v37, 4  ;;  %v3411_v63 = vld [vmem:[%s9581_s2 + $0x20] sm:$0x3] }
 0x2e0   :  { %v3862_v49 = vsel %vm3651_vm9, %v3553_v52, 0.0  ;;  %v3843_v45 = vadd.f32 %v3842_v7, %v3841_v1  ;;  %v3856_v11 = vrot.slane %v3855_v33, 4  ;;  %v3869_v59 = vsel %vm3651_vm9, %v3554_v43, 0.0 }
 0x2e1   :  { %v3823_v40 = vrot.slane %v3822_v35, 2  ;;  %v3830_v28 = vrot.slane %v3829_v47, 2  ;;  %v3850_v24 = vadd.f32 %v3849_v48, %v3848_v37  ;;  %v3863_v12 = vrot.slane %v3862_v49, 4 }
 0x2e2   :  { %v3844_v41 = vrot.slane %v3843_v45, 2  ;;  %v3857_v13 = vadd.f32 %v3856_v11, %v3855_v33  ;;  %v6435_v19 = vunpack.c.h.bf16 %v8728_v62  ;;  %v6499_v37 = vunpack.c.h.bf16 %v8738_v26  ;;  %v3415_v33 = vld [vmem:[%s9581_s2 + $0x28] sm:$0x3] }
 0x2e3   :  { %v3824_v5 = vadd.f32 %v3823_v40, %v3822_v35  ;;  %v3831_v39 = vadd.f32 %v3830_v28, %v3829_v47  ;;  %v3851_v4 = vrot.slane %v3850_v24, 2  ;;  %v3864_v30 = vadd.f32 %v3863_v12, %v3862_v49  ;;  %v3413_v35 = vld [vmem:[%s9581_s2 + $0x24] sm:$0x3]  ;;  %v3414_v47 = vld [vmem:[%s9581_s2 + $0x26] sm:$0x3] }
 0x2e4   :  { %v3845_v23 = vadd.f32 %v3844_v41, %v3843_v45  ;;  %v3858_v32 = vrot.slane %v3857_v13, 2  ;;  %v3416_v49 = vld [vmem:[%s9581_s2 + $0x2a] sm:$0x3]  ;;  %v3539_v40 = vunpack.c.l.bf16 %v3411_v63  ;;  %v3542_v41 = vunpack.c.l.bf16 %v3414_v47 }
 0x2e5   :  { %v3825_v6 = vrot.slane %v3824_v5, 1  ;;  %v3832_v0 = vrot.slane %v3831_v39, 1  ;;  %v3852_v34 = vadd.f32 %v3851_v4, %v3850_v24  ;;  %v3865_v53 = vrot.slane %v3864_v30, 2  ;;  %v3418_v24 = vld [vmem:[%s9581_s2 + $0x2e] sm:$0x3] }
 0x2e6   :  { %v3846_v17 = vrot.slane %v3845_v23, 1  ;;  %v3859_v58 = vadd.f32 %v3858_v32, %v3857_v13  ;;  %v3543_v4 = vunpack.c.l.bf16 %v3415_v33  ;;  %vm5846_vm8 = vcmask 1048512  }
 0x2e7   :  { %v3826_v25 = vadd.f32 %v3825_v6, %v3824_v5  ;;  %v3833_v44 = vadd.f32 %v3832_v0, %v3831_v39  ;;  %v3853_v27 = vrot.slane %v3852_v34, 1  ;;  %v3866_v50 = vadd.f32 %v3865_v53, %v3864_v30 }
 0x2e8   :  { %v3860_v56 = vrot.slane %v3859_v58, 1  ;;  %v3541_v39 = vunpack.c.l.bf16 %v3413_v35  ;;  %v3544_v30 = vunpack.c.l.bf16 %v3416_v49  ;;  %v3546_v0 = vunpack.c.l.bf16 %v3418_v24 }
 0x2e9   :  { %v4572_v21 = vmul.f32 0.25, %v3826_v25  ;;  %v4573_v9 = vmul.f32 0.25, %v3833_v44  ;;  %v3854_v52 = vadd.f32 %v3853_v27, %v3852_v34  ;;  %v3867_v43 = vrot.slane %v3866_v50, 1 }
 0x2ea   :  { %v3861_v14 = vadd.f32 %v3860_v56, %v3859_v58  ;;  %v3778_v53 = vsel %vm3651_vm9, %v3541_v39, 0.0 }
 0x2eb   :  { %v3868_v20 = vadd.f32 %v3867_v43, %v3866_v50  ;;  %v4576_v1 = vmul.f32 0.25, %v3854_v52  ;;  %v5518_v48 = vsel %vm2879_vm1, %v4573_v9, %v4572_v21  ;;  %v3779_v44 = vrot.slane %v3778_v53, 4 }
 0x2ec   :  { %v4577_v7 = vmul.f32 0.25, %v3861_v14  ;;  %v3792_v50 = vsel %vm3651_vm9, %v3543_v4, 0.0  ;;  %v3799_v21 = vsel %vm3651_vm9, %v3544_v30, 0.0 }
 0x2ed   :  { %v4578_v45 = vmul.f32 0.25, %v3868_v20  ;;  %v3793_v56 = vrot.slane %v3792_v50, 4  ;;  %v3800_v43 = vrot.slane %v3799_v21, 4  ;;  %v3813_v20 = vsel %vm3651_vm9, %v3546_v0, 0.0 }
 0x2ef   :  { %v3794_v14 = vadd.f32 %v3793_v56, %v3792_v50  ;;  %v3438_v50 = vld [vmem:[%s9581_s2 + $0x56] sm:$0x3]  ;;  %v3439_v56 = vld [vmem:[%s9581_s2 + $0x58] sm:$0x3] }
 0x2f7   :  { %v6763_v57 = vpop.f32.mrf.mxu1 }
 0x2f8   :  { %v3162_v46 = vadd.f32 %v6763_v57, %v8403_v38  ;;  %v3870_v57 = vrot.slane %v3869_v59, 4 }
 0x2f9   :  { %v3156_v60 = vpop.f32.mrf.mxu1 }
 0x2fa   :  { %v3188_v61 = vmax.f32 %v3162_v46, 0.0  ;;  %v3157_v3 = vadd.f32 %v8403_v38, %v3156_v60  ;;  %v3834_v38 = vsel %vm3651_vm9, %v3549_v18, 0.0  ;;  %v3871_v46 = vadd.f32 %v3870_v57, %v3869_v59 }
 0x2fb   :  { %v3835_v8 = vrot.slane %v3834_v38, 4 }
 0x2fc   :  { %v3187_v29 = vmax.f32 %v3157_v3, 0.0  ;;  %v3872_v18 = vrot.slane %v3871_v46, 2  ;;  %v3847_v3 = vadd.f32 %v3846_v17, %v3845_v23  ;;  %v3764_v23 = vsel %vm3651_vm9, %v3539_v40, 0.0 }
 0x2fd   :  { %v3836_v54 = vadd.f32 %v3835_v8, %v3834_v38  ;;  %v3412_v38 = vld [vmem:[%s9581_s2 + $0x22] sm:$0x3]  ;;  %v3785_v17 = vsel %vm3651_vm9, %v3542_v41, 0.0 }
 0x2fe   :  { %6793 = vmatprep.mubr.msk.f32.mxu1 %vm307_vm0, %v3187_v29  ;;  %v3873_v29 = vadd.f32 %v3872_v18, %v3871_v46  ;;  %v4575_v31 = vmul.f32 0.25, %v3847_v3  ;;  %v3540_v12 = vunpack.c.l.bf16 %v3412_v38  ;;  %v3786_v27 = vrot.slane %v3785_v17, 4 }
 0x2ff   :  { %6794 = vmatmul.mubr.msk.f32.gmra.mxu1 %vm307_vm0, %v3188_v61  ;;  %v3837_v36 = vrot.slane %v3836_v54, 2  ;;  %v8733_v61 = vld [vmem:[%s9583_s4 + $0x8] sm:$0xff]   ;;  %v3780_v3 = vadd.f32 %v3779_v44, %v3778_v53  ;;  %v3801_v38 = vadd.f32 %v3800_v43, %v3799_v21  ;;  %v6434_v53 = vunpack.c.l.bf16 %v8728_v62  ;;  %v3441_v43 = vld [vmem:[%s9581_s2 + $0x5c] sm:$0x3] }
 0x300   :  { %v6467_v15 = vunpack.c.h.bf16 %v8733_v61  ;;  %v3874_v8 = vrot.slane %v3873_v29, 1  ;;  %v3771_v34 = vsel %vm3651_vm9, %v3540_v12, 0.0  ;;  %v3787_v52 = vadd.f32 %v3786_v27, %v3785_v17  ;;  %v3437_v27 = vld [vmem:[%s9581_s2 + $0x54] sm:$0x3] }
 0x301   :  { %v3838_v16 = vadd.f32 %v3837_v36, %v3836_v54  ;;  %v3417_v36 = vld [vmem:[%s9581_s2 + $0x2c] sm:$0x3]  ;;  %v3772_v25 = vrot.slane %v3771_v34, 4  ;;  %v3781_v63 = vrot.slane %v3780_v3, 2  ;;  %v6466_v17 = vunpack.c.l.bf16 %v8733_v61  ;;  %v3440_v61 = vld [vmem:[%s9581_s2 + $0x5a] sm:$0x3] }
 0x302   :  { %v5308_v54 = vadd.f32 %v6467_v15, %v6435_v19  ;;  %v3875_v28 = vadd.f32 %v3874_v8, %v3873_v29  ;;  %v3545_v6 = vunpack.c.l.bf16 %v3417_v36  ;;  %v3788_v15 = vrot.slane %v3787_v52, 2 }
 0x303   :  { %v3839_v55 = vrot.slane %v3838_v16, 1  ;;  %v3773_v18 = vadd.f32 %v3772_v25, %v3771_v34 }
 0x304   :  { %v5356_v59 = vadd.f32 %v6499_v37, %v5308_v54  ;;  %v4579_v13 = vmul.f32 0.25, %v3875_v28  ;;  %v3806_v29 = vsel %vm3651_vm9, %v3545_v6, 0.0  ;;  %v3795_v37 = vrot.slane %v3794_v14, 2 }
 0x305   :  { %v3840_v60 = vadd.f32 %v3839_v55, %v3838_v16  ;;  %v3765_v55 = vrot.slane %v3764_v23, 4  ;;  %v3802_v54 = vrot.slane %v3801_v38, 2 }
 0x306   :  { %v3796_v40 = vadd.f32 %v3795_v37, %v3794_v14 }
 0x307   :  { %v4574_v10 = vmul.f32 0.25, %v3840_v60  ;;  %v3766_v60 = vadd.f32 %v3765_v55, %v3764_v23  ;;  %v3803_v36 = vadd.f32 %v3802_v54, %v3801_v38  ;;  %v3435_v23 = vld [vmem:[%s9581_s2 + $0x50] sm:$0x3] }
 0x309   :  { %v5519_v11 = vsel %vm2881_vm2, %v4574_v10, %v5518_v48  ;;  %v3767_v9 = vrot.slane %v3766_v60, 2  ;;  %v3774_v10 = vrot.slane %v3773_v18, 2  ;;  %v3814_v48 = vrot.slane %v3813_v20, 4 }
 0x30a   :  { %v5520_v5 = vsel %vm2883_vm3, %v4575_v31, %v5519_v11  ;;  %v3807_v31 = vrot.slane %v3806_v29, 4 }
 0x30b   :  { %v5521_v16 = vsel %vm2885_vm4, %v4576_v1, %v5520_v5  ;;  %v3768_v19 = vadd.f32 %v3767_v9, %v3766_v60  ;;  %v3775_v8 = vadd.f32 %v3774_v10, %v3773_v18  ;;  %v3782_v1 = vadd.f32 %v3781_v63, %v3780_v3 }
 0x30c   :  { %v5522_v57 = vsel %vm2887_vm5, %v4577_v7, %v5521_v16  ;;  %v3808_v35 = vadd.f32 %v3807_v31, %v3806_v29  ;;  %v3789_v7 = vadd.f32 %v3788_v15, %v3787_v52  ;;  %v3815_v24 = vadd.f32 %v3814_v48, %v3813_v20  ;;  %v3442_v29 = vld [vmem:[%s9581_s2 + $0x5e] sm:$0x3] }
 0x30d   :  { %v5523_v32 = vsel %vm2889_vm6, %v4578_v45, %v5522_v57  ;;  %v3769_v47 = vrot.slane %v3768_v19, 1  ;;  %v3776_v33 = vrot.slane %v3775_v8, 1  ;;  %v3783_v49 = vrot.slane %v3782_v1, 1 }
 0x30e   :  { %v5524_v46 = vsel %vm2891_vm7, %v4579_v13, %v5523_v32  ;;  %v3809_v28 = vrot.slane %v3808_v35, 2  ;;  %v3790_v11 = vrot.slane %v3789_v7, 1  ;;  %v3797_v5 = vrot.slane %v3796_v40, 1 }
 0x30f   :  { %v8778_v58 = vadd.f32 %v5524_v46, %v5356_v59  ;;  %v3770_v45 = vadd.f32 %v3769_v47, %v3768_v19  ;;  %v3777_v12 = vadd.f32 %v3776_v33, %v3775_v8  ;;  %v3784_v59 = vadd.f32 %v3783_v49, %v3782_v1  ;;  %v3436_v46 = vld [vmem:[%s9581_s2 + $0x52] sm:$0x3] }
 0x310   :  { %v3810_v39 = vadd.f32 %v3809_v28, %v3808_v35  ;;  %v3791_v41 = vadd.f32 %v3790_v11, %v3789_v7  ;;  %v3804_v13 = vrot.slane %v3803_v36, 1  ;;  %v3816_v16 = vrot.slane %v3815_v24, 2 }
 0x311   :  { %v4564_v4 = vmul.f32 0.25, %v3770_v45  ;;  %v3798_v30 = vadd.f32 %v3797_v5, %v3796_v40  ;;  %v4565_v6 = vmul.f32 0.25, %v3777_v12  ;;  %v4566_v0 = vmul.f32 0.25, %v3784_v59 }
 0x312   :  { %v3811_v57 = vrot.slane %v3810_v39, 1  ;;  %v3805_v32 = vadd.f32 %v3804_v13, %v3803_v36  ;;  %v3817_v55 = vadd.f32 %v3816_v16, %v3815_v24  ;;  %v4567_v34 = vmul.f32 0.25, %v3791_v41 }
 0x313   :  { %v4568_v44 = vmul.f32 0.25, %v3798_v30  ;;  %v6498_v60 = vunpack.c.l.bf16 %v8738_v26  ;;  %v5511_v3 = vsel %vm2879_vm1, %v4565_v6, %v4564_v4  ;;  %v3563_v26 = vunpack.c.l.bf16 %v3435_v23 }
 0x314   :  { %v3812_v25 = vadd.f32 %v3811_v57, %v3810_v39  ;;  %v3818_v18 = vrot.slane %v3817_v55, 1  ;;  %v4569_v62 = vmul.f32 0.25, %v3805_v32  ;;  %v5307_v9 = vadd.f32 %v6466_v17, %v6434_v53 }
 0x315   :  { %v5512_v52 = vsel %vm2881_vm2, %v4566_v0, %v5511_v3  ;;  %v3564_v10 = vunpack.c.l.bf16 %v3436_v46  ;;  %v3565_v31 = vunpack.c.l.bf16 %v3437_v27  ;;  %v3566_v19 = vunpack.c.l.bf16 %v3438_v50 }
 0x316   :  { %v4570_v21 = vmul.f32 0.25, %v3812_v25  ;;  %v3819_v63 = vadd.f32 %v3818_v18, %v3817_v55  ;;  %v5513_v14 = vsel %vm2883_vm3, %v4567_v34, %v5512_v52  ;;  %v5355_v15 = vadd.f32 %v6498_v60, %v5307_v9 }
 0x317   :  { %v5514_v38 = vsel %vm2885_vm4, %v4568_v44, %v5513_v14  ;;  %v3567_v20 = vunpack.c.l.bf16 %v3439_v56  ;;  %v3568_v8 = vunpack.c.l.bf16 %v3440_v61  ;;  %v3569_v35 = vunpack.c.l.bf16 %v3441_v43 }
 0x318   :  { %v4571_v1 = vmul.f32 0.25, %v3819_v63  ;;  %v5515_v37 = vsel %vm2887_vm5, %v4569_v62, %v5514_v38  ;;  %v3570_v47 = vunpack.c.l.bf16 %v3442_v29  ;;  %v3932_v54 = vsel %vm3651_vm9, %v3563_v26, 0.0  ;;  %v8831_v38 = vld [vmem:[%s9582_s3 + $0x10] sm:$0xff]  }
 0x319   :  { %v5516_v7 = vsel %vm2889_vm6, %v4570_v21, %v5515_v37  ;;  %v3939_v48 = vsel %vm3651_vm9, %v3564_v10, 0.0  ;;  %v3946_v33 = vsel %vm3651_vm9, %v3565_v31, 0.0  ;;  %v3933_v40 = vrot.slane %v3932_v54, 4 }
 0x31a   :  { %v5517_v49 = vsel %vm2891_vm7, %v4571_v1, %v5516_v7  ;;  %v3940_v28 = vrot.slane %v3939_v48, 4  ;;  %v3947_v45 = vrot.slane %v3946_v33, 4  ;;  %v3953_v36 = vsel %vm3651_vm9, %v3566_v19, 0.0 }
 0x31b   :  { %v8821_v11 = vadd.f32 %v5517_v49, %v5355_v15  ;;  %v3960_v24 = vsel %vm3651_vm9, %v3567_v20, 0.0  ;;  %v3967_v12 = vsel %vm3651_vm9, %v3568_v8, 0.0  ;;  %v3934_v59 = vadd.f32 %v3933_v40, %v3932_v54  ;;  %v8836_v20 = vld [vmem:[%s9583_s4 + $0x10] sm:$0xff]   ;;  %v3427_v49 = vld [vmem:[%s9581_s2 + $0x40] sm:$0x3] }
 0x31c   :  { %v3941_v5 = vadd.f32 %v3940_v28, %v3939_v48  ;;  %v3948_v39 = vadd.f32 %v3947_v45, %v3946_v33  ;;  %v3954_v41 = vrot.slane %v3953_v36, 4  ;;  %v3961_v13 = vrot.slane %v3960_v24, 4  ;;  %v8841_v8 = vld [vmem:[%s9584_s5 + $0x10] sm:$0xff]   ;;  %v3428_v40 = vld [vmem:[%s9581_s2 + $0x42] sm:$0x3] }
 0x31d   :  { %v3968_v16 = vrot.slane %v3967_v12, 4  ;;  %v3974_v4 = vsel %vm3651_vm9, %v3569_v35, 0.0  ;;  %v3981_v30 = vsel %vm3651_vm9, %v3570_v47, 0.0  ;;  %v3935_v57 = vrot.slane %v3934_v59, 2 }
 0x31e   :  { %v3942_v6 = vrot.slane %v3941_v5, 2  ;;  %v3949_v0 = vrot.slane %v3948_v39, 2  ;;  %v3955_v23 = vadd.f32 %v3954_v41, %v3953_v36  ;;  %v3962_v32 = vadd.f32 %v3961_v13, %v3960_v24  ;;  %v3430_v13 = vld [vmem:[%s9581_s2 + $0x46] sm:$0x3] }
 0x31f   :  { %v3969_v55 = vadd.f32 %v3968_v16, %v3967_v12  ;;  %v3975_v34 = vrot.slane %v3974_v4, 4  ;;  %v3982_v53 = vrot.slane %v3981_v30, 4  ;;  %v3936_v46 = vadd.f32 %v3935_v57, %v3934_v59  ;;  %v3429_v12 = vld [vmem:[%s9581_s2 + $0x44] sm:$0x3]  ;;  %v3431_v16 = vld [vmem:[%s9581_s2 + $0x48] sm:$0x3] }
 0x320   :  { %v3943_v25 = vadd.f32 %v3942_v6, %v3941_v5  ;;  %v3950_v44 = vadd.f32 %v3949_v0, %v3948_v39  ;;  %v3956_v17 = vrot.slane %v3955_v23, 2  ;;  %v3963_v60 = vrot.slane %v3962_v32, 2  ;;  %v3432_v57 = vld [vmem:[%s9581_s2 + $0x4a] sm:$0x3]  ;;  %v3433_v6 = vld [vmem:[%s9581_s2 + $0x4c] sm:$0x3] }
 0x321   :  { %v3970_v27 = vrot.slane %v3969_v55, 2  ;;  %v3976_v50 = vadd.f32 %v3975_v34, %v3974_v4  ;;  %v3983_v18 = vadd.f32 %v3982_v53, %v3981_v30  ;;  %v3937_v62 = vrot.slane %v3936_v46, 1  ;;  %v3434_v0 = vld [vmem:[%s9581_s2 + $0x4e] sm:$0x3] }
 0x322   :  { %v3944_v3 = vrot.slane %v3943_v25, 1  ;;  %v3951_v56 = vrot.slane %v3950_v44, 1  ;;  %v3957_v61 = vadd.f32 %v3956_v17, %v3955_v23  ;;  %v3964_v26 = vadd.f32 %v3963_v60, %v3962_v32 }
 0x323   :  { %v3971_v21 = vadd.f32 %v3970_v27, %v3969_v55  ;;  %v3977_v9 = vrot.slane %v3976_v50, 2  ;;  %v3984_v52 = vrot.slane %v3983_v18, 2  ;;  %v3938_v43 = vadd.f32 %v3937_v62, %v3936_v46 }
 0x324   :  { %v3945_v29 = vadd.f32 %v3944_v3, %v3943_v25  ;;  %v3952_v10 = vadd.f32 %v3951_v56, %v3950_v44  ;;  %v3958_v63 = vrot.slane %v3957_v61, 1  ;;  %v3965_v14 = vrot.slane %v3964_v26, 1 }
 0x325   :  { %v3972_v31 = vrot.slane %v3971_v21, 1  ;;  %v3978_v19 = vadd.f32 %v3977_v9, %v3976_v50  ;;  %v3985_v15 = vadd.f32 %v3984_v52, %v3983_v18  ;;  %v4588_v37 = vmul.f32 0.25, %v3938_v43 }
 0x326   :  { %v3959_v1 = vadd.f32 %v3958_v63, %v3957_v61  ;;  %v4589_v35 = vmul.f32 0.25, %v3945_v29  ;;  %v4590_v47 = vmul.f32 0.25, %v3952_v10  ;;  %v3966_v7 = vadd.f32 %v3965_v14, %v3964_v26 }
 0x327   :  { %v3973_v54 = vadd.f32 %v3972_v31, %v3971_v21  ;;  %v3979_v48 = vrot.slane %v3978_v19, 1  ;;  %v3986_v33 = vrot.slane %v3985_v15, 1  ;;  %v6439_v45 = vunpack.c.h.bf16 %v8831_v38 }
 0x328   :  { %v4591_v28 = vmul.f32 0.25, %v3959_v1  ;;  %v6471_v36 = vunpack.c.h.bf16 %v8836_v20  ;;  %v6503_v24 = vunpack.c.h.bf16 %v8841_v8  ;;  %v4592_v39 = vmul.f32 0.25, %v3966_v7 }
 0x329   :  { %v3980_v59 = vadd.f32 %v3979_v48, %v3978_v19  ;;  %v3987_v5 = vadd.f32 %v3986_v33, %v3985_v15  ;;  %v4593_v41 = vmul.f32 0.25, %v3973_v54  ;;  %v5532_v30 = vsel %vm2879_vm1, %v4589_v35, %v4588_v37 }
 0x32a   :  { %v5310_v4 = vadd.f32 %v6471_v36, %v6439_v45  ;;  %v3555_v23 = vunpack.c.l.bf16 %v3427_v49  ;;  %v3556_v32 = vunpack.c.l.bf16 %v3428_v40  ;;  %v5533_v53 = vsel %vm2881_vm2, %v4590_v47, %v5532_v30 }
 0x32b   :  { %v4594_v55 = vmul.f32 0.25, %v3980_v59  ;;  %v4595_v34 = vmul.f32 0.25, %v3987_v5  ;;  %v3557_v46 = vunpack.c.l.bf16 %v3429_v12  ;;  %v5534_v44 = vsel %vm2883_vm3, %v4591_v28, %v5533_v53  ;;  %v6883_v53 = vld [vmem:[%s9591_s12] ss:$0 sm:$0xff] }
 0x32c   :  { %v5358_v25 = vadd.f32 %v6503_v24, %v5310_v4  ;;  %v3558_v17 = vunpack.c.l.bf16 %v3430_v13  ;;  %v3559_v60 = vunpack.c.l.bf16 %v3431_v16  ;;  %v5535_v27 = vsel %vm2885_vm4, %v4592_v39, %v5534_v44 }
 0x32d   :  { %v3560_v50 = vunpack.c.l.bf16 %v3432_v57  ;;  %v3561_v18 = vunpack.c.l.bf16 %v3433_v6  ;;  %v3562_v62 = vunpack.c.l.bf16 %v3434_v0  ;;  %v5536_v3 = vsel %vm2887_vm5, %v4593_v41, %v5535_v27 }
 0x32e   :  { %v3876_v56 = vsel %vm3651_vm9, %v3555_v23, 0.0  ;;  %v3883_v61 = vsel %vm3651_vm9, %v3556_v32, 0.0  ;;  %v3890_v26 = vsel %vm3651_vm9, %v3557_v46, 0.0  ;;  %v5537_v21 = vsel %vm2889_vm6, %v4594_v55, %v5536_v3 }
 0x32f   :  { %v3877_v9 = vrot.slane %v3876_v56, 4  ;;  %v3884_v52 = vrot.slane %v3883_v61, 4  ;;  %v3891_v43 = vrot.slane %v3890_v26, 4  ;;  %v5538_v29 = vsel %vm2891_vm7, %v4595_v34, %v5537_v21 }
 0x330   :  { %v3897_v10 = vsel %vm3651_vm9, %v3558_v17, 0.0  ;;  %v3904_v63 = vsel %vm3651_vm9, %v3559_v60, 0.0  ;;  %v3911_v14 = vsel %vm3651_vm9, %v3560_v50, 0.0  ;;  %v8883_v31 = vadd.f32 %v5538_v29, %v5358_v25  ;;  %v3451_v29 = vld [vmem:[%s9581_s2 + $0x70] sm:$0x3] }
 0x331   :  { %v3878_v19 = vadd.f32 %v3877_v9, %v3876_v56  ;;  %v3885_v15 = vadd.f32 %v3884_v52, %v3883_v61  ;;  %v3892_v1 = vadd.f32 %v3891_v43, %v3890_v26  ;;  %v3898_v37 = vrot.slane %v3897_v10, 4 }
 0x332   :  { %v3905_v35 = vrot.slane %v3904_v63, 4  ;;  %v3912_v47 = vrot.slane %v3911_v14, 4  ;;  %v3918_v7 = vsel %vm3651_vm9, %v3561_v18, 0.0  ;;  %v3925_v36 = vsel %vm3651_vm9, %v3562_v62, 0.0 }
 0x333   :  { %v3879_v54 = vrot.slane %v3878_v19, 2  ;;  %v3886_v48 = vrot.slane %v3885_v15, 2  ;;  %v3893_v33 = vrot.slane %v3892_v1, 2  ;;  %v3919_v49 = vrot.slane %v3918_v7, 4 }
 0x334   :  { %v3899_v40 = vadd.f32 %v3898_v37, %v3897_v10  ;;  %v3906_v28 = vadd.f32 %v3905_v35, %v3904_v63  ;;  %v3913_v45 = vadd.f32 %v3912_v47, %v3911_v14  ;;  %v3926_v16 = vrot.slane %v3925_v36, 4  ;;  %v3452_v10 = vld [vmem:[%s9581_s2 + $0x72] sm:$0x3] }
 0x335   :  { %v3880_v24 = vadd.f32 %v3879_v54, %v3878_v19  ;;  %v3887_v12 = vadd.f32 %v3886_v48, %v3885_v15  ;;  %v3894_v59 = vadd.f32 %v3893_v33, %v3892_v1  ;;  %v3920_v5 = vadd.f32 %v3919_v49, %v3918_v7  ;;  %v3453_v1 = vld [vmem:[%s9581_s2 + $0x74] sm:$0x3]  ;;  %v3454_v54 = vld [vmem:[%s9581_s2 + $0x76] sm:$0x3] }
 0x336   :  { %v3900_v39 = vrot.slane %v3899_v40, 2  ;;  %v3907_v41 = vrot.slane %v3906_v28, 2  ;;  %v3914_v13 = vrot.slane %v3913_v45, 2  ;;  %v3927_v34 = vadd.f32 %v3926_v16, %v3925_v36 }
 0x337   :  { %v3881_v4 = vrot.slane %v3880_v24, 1  ;;  %v3888_v30 = vrot.slane %v3887_v12, 1  ;;  %v3895_v57 = vrot.slane %v3894_v59, 1  ;;  %v3921_v6 = vrot.slane %v3920_v5, 2 }
 0x338   :  { %v3901_v23 = vadd.f32 %v3900_v39, %v3899_v40  ;;  %v3908_v32 = vadd.f32 %v3907_v41, %v3906_v28  ;;  %v3915_v55 = vadd.f32 %v3914_v13, %v3913_v45  ;;  %v3928_v61 = vrot.slane %v3927_v34, 2  ;;  %v3455_v28 = vld [vmem:[%s9581_s2 + $0x78] sm:$0x3]  ;;  %v3456_v45 = vld [vmem:[%s9581_s2 + $0x7a] sm:$0x3] }
 0x339   :  { %v3882_v25 = vadd.f32 %v3881_v4, %v3880_v24  ;;  %v3889_v44 = vadd.f32 %v3888_v30, %v3887_v12  ;;  %v3896_v17 = vadd.f32 %v3895_v57, %v3894_v59  ;;  %v3922_v62 = vadd.f32 %v3921_v6, %v3920_v5  ;;  %v8923_v39 = vld [vmem:[%s9581_s2 + $0x7e] sm:$0x3] }
 0x33a   :  { %v3902_v27 = vrot.slane %v3901_v23, 1  ;;  %v3909_v50 = vrot.slane %v3908_v32, 1  ;;  %v3916_v18 = vrot.slane %v3915_v55, 1  ;;  %v3929_v14 = vadd.f32 %v3928_v61, %v3927_v34 }
 0x33b   :  { %v4580_v26 = vmul.f32 0.25, %v3882_v25  ;;  %v3923_v43 = vrot.slane %v3922_v62, 1  ;;  %v4581_v19 = vmul.f32 0.25, %v3889_v44  ;;  %v4582_v15 = vmul.f32 0.25, %v3896_v17 }
 0x33c   :  { %v3903_v21 = vadd.f32 %v3902_v27, %v3901_v23  ;;  %v3910_v9 = vadd.f32 %v3909_v50, %v3908_v32  ;;  %v3917_v52 = vadd.f32 %v3916_v18, %v3915_v55  ;;  %v3930_v48 = vrot.slane %v3929_v14, 1  ;;  %v8931_v32 = vld [vmem:[%s9589_s10] ss:$0 sm:$0xff] }
 0x33d   :  { %v3924_v37 = vadd.f32 %v3923_v43, %v3922_v62  ;;  %v6438_v33 = vunpack.c.l.bf16 %v8831_v38  ;;  %v6470_v49 = vunpack.c.l.bf16 %v8836_v20  ;;  %v6502_v40 = vunpack.c.l.bf16 %v8841_v8  ;;  %v8917_v38 = vld [vmem:[%s9581_s2 + $0x7c] sm:$0x3] }
 0x33e   :  { %v4583_v35 = vmul.f32 0.25, %v3903_v21  ;;  %v4584_v47 = vmul.f32 0.25, %v3910_v9  ;;  %v4585_v7 = vmul.f32 0.25, %v3917_v52  ;;  %v5525_v24 = vsel %vm2879_vm1, %v4581_v19, %v4580_v26 }
 0x33f   :  { %v4586_v36 = vmul.f32 0.25, %v3924_v37  ;;  %v3579_v20 = vunpack.c.l.bf16 %v3451_v29  ;;  %v3580_v8 = vunpack.c.l.bf16 %v3452_v10  ;;  %v3931_v12 = vadd.f32 %v3930_v48, %v3929_v14 }
 0x340   :  { %v5309_v59 = vadd.f32 %v6470_v49, %v6438_v33  ;;  %v5526_v5 = vsel %vm2881_vm2, %v4582_v15, %v5525_v24  ;;  %v3581_v41 = vunpack.c.l.bf16 %v3453_v1  ;;  %v3582_v16 = vunpack.c.l.bf16 %v3454_v54 }
 0x341   :  { %v5527_v13 = vsel %vm2883_vm3, %v4583_v35, %v5526_v5  ;;  %v3583_v4 = vunpack.c.l.bf16 %v3455_v28  ;;  %v3584_v30 = vunpack.c.l.bf16 %v3456_v45  ;;  %v4587_v57 = vmul.f32 0.25, %v3931_v12 }
 0x342   :  { %v5357_v6 = vadd.f32 %v6502_v40, %v5309_v59  ;;  %v3585_v23 = vunpack.c.l.bf16 %v8917_v38  ;;  %v3586_v34 = vunpack.c.l.bf16 %v8923_v39  ;;  %v4065_v62 = vsel %vm3651_vm9, %v3582_v16, 0.0 }
 0x343   :  { %v4066_v43 = vrot.slane %v4065_v62, 4  ;;  %v4079_v10 = vsel %vm3651_vm9, %v3584_v30, 0.0 }
 0x345   :  { %v4067_v35 = vadd.f32 %v4066_v43, %v4065_v62 }
 0x347   :  { %v6766_v0 = vpop.f32.mrf.mxu1 }
 0x348   :  { %v3172_v46 = vadd.f32 %v6883_v53, %v6766_v0  ;;  %v5528_v0 = vsel %vm2885_vm4, %v4584_v47, %v5527_v13 }
 0x349   :  { %v3166_v60 = vpop.f32.mrf.mxu1  ;;  %v5529_v55 = vsel %vm2887_vm5, %v4585_v7, %v5528_v0  ;;  %v4080_v7 = vrot.slane %v4079_v10, 4 }
 0x34a   :  { %v3190_v3 = vmax.f32 %v3172_v46, 0.0  ;;  %v3167_v56 = vadd.f32 %v6883_v53, %v3166_v60  ;;  %v4044_v53 = vsel %vm3651_vm9, %v3579_v20, 0.0  ;;  %v4051_v46 = vsel %vm3651_vm9, %v3580_v8, 0.0 }
 0x34b   :  { %v5530_v25 = vsel %vm2889_vm6, %v4586_v36, %v5529_v55  ;;  %v4045_v44 = vrot.slane %v4044_v53, 4  ;;  %v4052_v17 = vrot.slane %v4051_v46, 4  ;;  %v4058_v60 = vsel %vm3651_vm9, %v3581_v41, 0.0 }
 0x34c   :  { %v3189_v63 = vmax.f32 %v3167_v56, 0.0  ;;  %v5531_v50 = vsel %vm2891_vm7, %v4587_v57, %v5530_v25  ;;  %v4059_v18 = vrot.slane %v4058_v60, 4  ;;  %v4081_v36 = vadd.f32 %v4080_v7, %v4079_v10  ;;  %v3447_v7 = vld [vmem:[%s9581_s2 + $0x68] sm:$0x3] }
 0x34d   :  { %v5629_v61 = vadd.f32 %v5531_v50, %v5357_v6  ;;  %v4046_v26 = vadd.f32 %v4045_v44, %v4044_v53  ;;  %v4053_v21 = vadd.f32 %v4052_v17, %v4051_v46  ;;  %v4086_v46 = vsel %vm3651_vm9, %v3585_v23, 0.0  ;;  %v8969_v50 = vld [vmem:[%s9582_s3 + $0x18] sm:$0xff]  }
 0x34e   :  { %6796 = vmatprep.mubr.msk.f32.mxu1 %vm307_vm0, %v3189_v63  ;;  %v4060_v52 = vadd.f32 %v4059_v18, %v4058_v60  ;;  %v4082_v39 = vrot.slane %v4081_v36, 2  ;;  %v4093_v25 = vsel %vm3651_vm9, %v3586_v34, 0.0  ;;  %v4087_v60 = vrot.slane %v4086_v46, 4  ;;  %v8976_v23 = vld [vmem:[%s9583_s4 + $0x18] sm:$0xff]  }
 0x34f   :  { %6797 = vmatmul.mubr.msk.f32.gmra.mxu1 %vm307_vm0, %v3190_v3  ;;  %v4072_v3 = vsel %vm3651_vm9, %v3583_v4, 0.0  ;;  %v4047_v19 = vrot.slane %v4046_v26, 2  ;;  %v4054_v15 = vrot.slane %v4053_v21, 2  ;;  %v8981_v34 = vld [vmem:[%s9584_s5 + $0x18] sm:$0xff]  }
 0x350   :  { %v4073_v29 = vrot.slane %v4072_v3, 4  ;;  %v4061_v37 = vrot.slane %v4060_v52, 2  ;;  %v4083_v0 = vadd.f32 %v4082_v39, %v4081_v36 }
 0x351   :  { %v4048_v33 = vadd.f32 %v4047_v19, %v4046_v26  ;;  %v4055_v49 = vadd.f32 %v4054_v15, %v4053_v21  ;;  %v4088_v26 = vadd.f32 %v4087_v60, %v4086_v46  ;;  %v3445_v19 = vld [vmem:[%s9581_s2 + $0x64] sm:$0x3] }
 0x352   :  { %v4074_v47 = vadd.f32 %v4073_v29, %v4072_v3  ;;  %v4062_v28 = vadd.f32 %v4061_v37, %v4060_v52  ;;  %v4084_v17 = vrot.slane %v4083_v0, 1  ;;  %v3444_v52 = vld [vmem:[%s9581_s2 + $0x62] sm:$0x3]  ;;  %v6475_v37 = vunpack.c.h.bf16 %v8976_v23 }
 0x353   :  { %v4049_v20 = vrot.slane %v4048_v33, 1  ;;  %v4056_v8 = vrot.slane %v4055_v49, 1  ;;  %v4089_v15 = vrot.slane %v4088_v26, 2 }
 0x354   :  { %v6817_v27 = vpop.f32.mrf.mxu0  ;;  %v4075_v45 = vrot.slane %v4074_v47, 2  ;;  %v4063_v59 = vrot.slane %v4062_v28, 1 }
 0x355   :  { %v5168_v56 = vadd.f32 %v6817_v27, %v8931_v32  ;;  %v4050_v16 = vadd.f32 %v4049_v20, %v4048_v33  ;;  %v4057_v4 = vadd.f32 %v4056_v8, %v4055_v49  ;;  %v3448_v49 = vld [vmem:[%s9581_s2 + $0x6a] sm:$0x3]  ;;  %v3450_v20 = vld [vmem:[%s9581_s2 + $0x6e] sm:$0x3]  ;;  %v3573_v8 = vunpack.c.l.bf16 %v3445_v19 }
 0x356   :  { %v5162_v9 = vpop.f32.mrf.mxu0  ;;  %v4076_v5 = vadd.f32 %v4075_v45, %v4074_v47  ;;  %v4064_v57 = vadd.f32 %v4063_v59, %v4062_v28  ;;  %v3446_v47 = vld [vmem:[%s9581_s2 + $0x66] sm:$0x3]  ;;  %v3572_v28 = vunpack.c.l.bf16 %v3444_v52 }
 0x357   :  { %v8945_v63 = vadd.f32 %v8670_v42, %v5168_v56  ;;  %v5163_v14 = vadd.f32 %v8931_v32, %v5162_v9  ;;  %v4068_v42 = vrot.slane %v4067_v35, 2  ;;  %v4604_v62 = vmul.f32 0.25, %v4050_v16 }
 0x358   :  { %v6820_v1 = vpop.f32.mrf.mxu0  ;;  %v4077_v6 = vrot.slane %v4076_v5, 1  ;;  %v4605_v3 = vmul.f32 0.25, %v4057_v4  ;;  %v4085_v56 = vadd.f32 %v4084_v17, %v4083_v0  ;;  %v4606_v21 = vmul.f32 0.25, %v4064_v57 }
 0x359   :  { %v8949_v54 = vadd.f32 %v8720_v2, %v5163_v14  ;;  %v5178_v48 = vadd.f32 %v6820_v1, %v8931_v32  ;;  %v4069_v2 = vadd.f32 %v4068_v42, %v4067_v35  ;;  %v6443_v14 = vunpack.c.h.bf16 %v8969_v50 }
 0x35a   :  { %v5172_v40 = vpop.f32.mrf.mxu0  ;;  %v4078_v44 = vadd.f32 %v4077_v6, %v4076_v5  ;;  %v4609_v1 = vmul.f32 0.25, %v4085_v56  ;;  %v6507_v35 = vunpack.c.h.bf16 %v8981_v34  ;;  %v5546_v33 = vsel %vm2879_vm1, %v4605_v3, %v4604_v62 }
 0x35b   :  { %v8953_v24 = vadd.f32 %v8778_v58, %v5178_v48  ;;  %v5173_v38 = vadd.f32 %v8931_v32, %v5172_v40  ;;  %v4070_v58 = vrot.slane %v4069_v2, 1  ;;  %v4090_v42 = vadd.f32 %v4089_v15, %v4088_v26 }
 0x35c   :  { %v6823_v12 = vpop.f32.mrf.mxu0  ;;  %v4608_v29 = vmul.f32 0.25, %v4078_v44  ;;  %v5312_v45 = vadd.f32 %v6475_v37, %v6443_v14  ;;  %v5547_v36 = vsel %vm2881_vm2, %v4606_v21, %v5546_v33  ;;  %v3575_v5 = vunpack.c.l.bf16 %v3447_v7 }
 0x35d   :  { %v8957_v41 = vadd.f32 %v8821_v11, %v5173_v38  ;;  %v5188_v13 = vadd.f32 %v6823_v12, %v8931_v32  ;;  %v4071_v11 = vadd.f32 %v4070_v58, %v4069_v2  ;;  %v3449_v38 = vld [vmem:[%s9581_s2 + $0x6c] sm:$0x3]  ;;  %v3574_v2 = vunpack.c.l.bf16 %v3446_v47 }
 0x35e   :  { %v5182_v30 = vpop.f32.mrf.mxu0  ;;  %v4091_v39 = vrot.slane %v4090_v42, 1  ;;  %v3576_v4 = vunpack.c.l.bf16 %v3448_v49  ;;  %v3577_v58 = vunpack.c.l.bf16 %v3449_v38  ;;  %v3578_v6 = vunpack.c.l.bf16 %v3450_v20 }
 0x35f   :  { %v8961_v55 = vadd.f32 %v8883_v31, %v5188_v13  ;;  %v5183_v53 = vadd.f32 %v8931_v32, %v5182_v30  ;;  %v4094_v31 = vrot.slane %v4093_v25, 4  ;;  %v4607_v9 = vmul.f32 0.25, %v4071_v11 }
 0x360   :  { %v6826_v27 = vpop.f32.mrf.mxu0  ;;  %v5360_v13 = vadd.f32 %v6507_v35, %v5312_v45  ;;  %v4092_v0 = vadd.f32 %v4091_v39, %v4090_v42  ;;  %v3995_v46 = vsel %vm3651_vm9, %v3572_v28, 0.0  ;;  %v4016_v62 = vsel %vm3651_vm9, %v3575_v5, 0.0 }
 0x361   :  { %v8971_v18 = vadd.f32 %v5629_v61, %v5183_v53  ;;  %v3443_v61 = vld [vmem:[%s9581_s2 + $0x60] sm:$0x3]  ;;  %v4095_v43 = vadd.f32 %v4094_v31, %v4093_v25  ;;  %v8990_v10 = vadd.f32 %v6826_v27, %v8931_v32  ;;  %v5548_v59 = vsel %vm2883_vm3, %v4607_v9, %v5547_v36 }
 0x362   :  { %v3571_v40 = vunpack.c.l.bf16 %v3443_v61  ;;  %v5549_v16 = vsel %vm2885_vm4, %v4608_v29, %v5548_v59  ;;  %v4002_v25 = vsel %vm3651_vm9, %v3573_v8, 0.0  ;;  %v3996_v17 = vrot.slane %v3995_v46, 4 }
 0x363   :  { %v4096_v48 = vrot.slane %v4095_v43, 2  ;;  %v5550_v57 = vsel %vm2887_vm5, %v4609_v1, %v5549_v16  ;;  %v4003_v60 = vrot.slane %v4002_v25, 4  ;;  %v4610_v27 = vmul.f32 0.25, %v4092_v0 }
 0x364   :  { %v3988_v53 = vsel %vm3651_vm9, %v3571_v40, 0.0  ;;  %v4009_v31 = vsel %vm3651_vm9, %v3574_v2, 0.0  ;;  %v4023_v3 = vsel %vm3651_vm9, %v3576_v4, 0.0  ;;  %v3997_v21 = vadd.f32 %v3996_v17, %v3995_v46 }
 0x365   :  { %v4097_v12 = vadd.f32 %v4096_v48, %v4095_v43  ;;  %v3989_v44 = vrot.slane %v3988_v53, 4  ;;  %v4004_v9 = vadd.f32 %v4003_v60, %v4002_v25  ;;  %v5551_v61 = vsel %vm2889_vm6, %v4610_v27, %v5550_v57 }
 0x366   :  { %v4010_v52 = vrot.slane %v4009_v31, 4  ;;  %v4017_v43 = vrot.slane %v4016_v62, 4  ;;  %v4024_v29 = vrot.slane %v4023_v3, 4  ;;  %v3998_v15 = vrot.slane %v3997_v21, 2 }
 0x367   :  { %v4098_v30 = vrot.slane %v4097_v12, 1  ;;  %v3990_v26 = vadd.f32 %v3989_v44, %v3988_v53  ;;  %v4005_v1 = vrot.slane %v4004_v9, 2  ;;  %v4030_v40 = vsel %vm3651_vm9, %v3577_v58, 0.0  ;;  %v5192_v53 = vpop.f32.mrf.mxu0 }
 0x368   :  { %v4011_v35 = vadd.f32 %v4010_v52, %v4009_v31  ;;  %v4018_v47 = vadd.f32 %v4017_v43, %v4016_v62  ;;  %v4025_v7 = vadd.f32 %v4024_v29, %v4023_v3  ;;  %v3999_v33 = vadd.f32 %v3998_v15, %v3997_v21  ;;  %v3468_v21 = vld [vmem:[%s9581_s2 + $0x92] sm:$0x3]  ;;  %v3469_v29 = vld [vmem:[%s9581_s2 + $0x94] sm:$0x3]  ;;  %v3470_v15 = vld [vmem:[%s9581_s2 + $0x96] sm:$0x3] }
 0x369   :  { %v4099_v11 = vadd.f32 %v4098_v30, %v4097_v12  ;;  %v3991_v19 = vrot.slane %v3990_v26, 2  ;;  %v4006_v49 = vadd.f32 %v4005_v1, %v4004_v9  ;;  %v4031_v12 = vrot.slane %v4030_v40, 4  ;;  %v3471_v1 = vld [vmem:[%s9581_s2 + $0x98] sm:$0x3] }
 0x36a   :  { %v4012_v42 = vrot.slane %v4011_v35, 2  ;;  %v4019_v45 = vrot.slane %v4018_v47, 2  ;;  %v4026_v36 = vrot.slane %v4025_v7, 2  ;;  %v4000_v20 = vrot.slane %v3999_v33, 1 }
 0x36b   :  { %v4611_v56 = vmul.f32 0.25, %v4099_v11  ;;  %v3992_v48 = vadd.f32 %v3991_v19, %v3990_v26  ;;  %v4007_v8 = vrot.slane %v4006_v49, 1  ;;  %v4037_v39 = vsel %vm3651_vm9, %v3578_v6, 0.0  ;;  %v3467_v26 = vld [vmem:[%s9581_s2 + $0x90] sm:$0x3] }
 0x36c   :  { %v4013_v59 = vadd.f32 %v4012_v42, %v4011_v35  ;;  %v4020_v2 = vadd.f32 %v4019_v45, %v4018_v47  ;;  %v4027_v5 = vadd.f32 %v4026_v36, %v4025_v7  ;;  %v4001_v16 = vadd.f32 %v4000_v20, %v3999_v33  ;;  %v3472_v47 = vld [vmem:[%s9581_s2 + $0x9a] sm:$0x3]  ;;  %v3474_v42 = vld [vmem:[%s9581_s2 + $0x9e] sm:$0x3] }
 0x36d   :  { %v5552_v14 = vsel %vm2891_vm7, %v4611_v56, %v5551_v61  ;;  %v3993_v38 = vrot.slane %v3992_v48, 1  ;;  %v4008_v4 = vadd.f32 %v4007_v8, %v4006_v49  ;;  %v4032_v30 = vadd.f32 %v4031_v12, %v4030_v40 }
 0x36e   :  { %v5632_v37 = vadd.f32 %v5552_v14, %v5360_v13  ;;  %v4014_v57 = vrot.slane %v4013_v59, 1  ;;  %v4021_v58 = vrot.slane %v4020_v2, 1  ;;  %v4038_v0 = vrot.slane %v4037_v39, 4 }
 0x36f   :  { %v3994_v13 = vadd.f32 %v3993_v38, %v3992_v48  ;;  %v4033_v46 = vrot.slane %v4032_v30, 2  ;;  %v4597_v11 = vmul.f32 0.25, %v4001_v16  ;;  %v4598_v44 = vmul.f32 0.25, %v4008_v4 }
 0x370   :  { %v9028_v28 = vadd.f32 %v5632_v37, %v8990_v10  ;;  %v4028_v10 = vrot.slane %v4027_v5, 1  ;;  %v4015_v17 = vadd.f32 %v4014_v57, %v4013_v59  ;;  %v4022_v60 = vadd.f32 %v4021_v58, %v4020_v2 }
 0x371   :  { %v4596_v25 = vmul.f32 0.25, %v3994_v13  ;;  %v4039_v31 = vadd.f32 %v4038_v0, %v4037_v39  ;;  %v4034_v62 = vadd.f32 %v4033_v46, %v4032_v30  ;;  %v9032_v6 = vadd.f32 %v8931_v32, %v5192_v53 }
 0x372   :  { %v4029_v27 = vadd.f32 %v4028_v10, %v4027_v5  ;;  %v6442_v3 = vunpack.c.l.bf16 %v8969_v50  ;;  %v6474_v56 = vunpack.c.l.bf16 %v8976_v23  ;;  %v4599_v61 = vmul.f32 0.25, %v4015_v17 }
 0x373   :  { %v4040_v9 = vrot.slane %v4039_v31, 2  ;;  %v4600_v52 = vmul.f32 0.25, %v4022_v60  ;;  %v4035_v14 = vrot.slane %v4034_v62, 1  ;;  %v6506_v23 = vunpack.c.l.bf16 %v8981_v34  ;;  %v3473_v34 = vld [vmem:[%s9581_s2 + $0x9c] sm:$0x3] }
 0x374   :  { %v4601_v43 = vmul.f32 0.25, %v4029_v27  ;;  %v5311_v50 = vadd.f32 %v6474_v56, %v6442_v3  ;;  %v5539_v19 = vsel %vm2879_vm1, %v4597_v11, %v4596_v25  ;;  %v3595_v7 = vunpack.c.l.bf16 %v3467_v26 }
 0x375   :  { %v4041_v37 = vadd.f32 %v4040_v9, %v4039_v31  ;;  %v5540_v35 = vsel %vm2881_vm2, %v4598_v44, %v5539_v19  ;;  %v3596_v48 = vunpack.c.l.bf16 %v3468_v21  ;;  %v4036_v33 = vadd.f32 %v4035_v14, %v4034_v62 }
 0x376   :  { %v5359_v49 = vadd.f32 %v6506_v23, %v5311_v50  ;;  %v5541_v40 = vsel %vm2883_vm3, %v4599_v61, %v5540_v35  ;;  %v3597_v45 = vunpack.c.l.bf16 %v3469_v29  ;;  %v3598_v20 = vunpack.c.l.bf16 %v3470_v15 }
 0x377   :  { %v4042_v36 = vrot.slane %v4041_v37, 1  ;;  %v5542_v38 = vsel %vm2885_vm4, %v4600_v52, %v5541_v40  ;;  %v3599_v8 = vunpack.c.l.bf16 %v3471_v1  ;;  %v4602_v12 = vmul.f32 0.25, %v4036_v33 }
 0x378   :  { %v5543_v59 = vsel %vm2887_vm5, %v4601_v43, %v5542_v38  ;;  %v3600_v2 = vunpack.c.l.bf16 %v3472_v47  ;;  %v3601_v5 = vunpack.c.l.bf16 %v3473_v34  ;;  %v3602_v13 = vunpack.c.l.bf16 %v3474_v42 }
 0x379   :  { %v4043_v39 = vadd.f32 %v4042_v36, %v4041_v37  ;;  %v4156_v16 = vsel %vm3651_vm9, %v3595_v7, 0.0  ;;  %v4163_v4 = vsel %vm3651_vm9, %v3596_v48, 0.0  ;;  %v5544_v30 = vsel %vm2889_vm6, %v4602_v12, %v5543_v59 }
 0x37a   :  { %v4157_v57 = vrot.slane %v4156_v16, 4  ;;  %v4164_v58 = vrot.slane %v4163_v4, 4  ;;  %v4170_v10 = vsel %vm3651_vm9, %v3597_v45, 0.0  ;;  %v4177_v46 = vsel %vm3651_vm9, %v3598_v20, 0.0 }
 0x37b   :  { %v4603_v0 = vmul.f32 0.25, %v4043_v39  ;;  %v4171_v53 = vrot.slane %v4170_v10, 4  ;;  %v4184_v25 = vsel %vm3651_vm9, %v3599_v8, 0.0  ;;  %v4178_v17 = vrot.slane %v4177_v46, 4 }
 0x37c   :  { %v4158_v11 = vadd.f32 %v4157_v57, %v4156_v16  ;;  %v4165_v44 = vadd.f32 %v4164_v58, %v4163_v4  ;;  %v4185_v60 = vrot.slane %v4184_v25, 4  ;;  %v4191_v62 = vsel %vm3651_vm9, %v3600_v2, 0.0  ;;  %v6829_v2 = vpop.f32.mrf.mxu0 }
 0x37d   :  { %v5545_v27 = vsel %vm2891_vm7, %v4603_v0, %v5544_v30  ;;  %v4172_v31 = vadd.f32 %v4171_v53, %v4170_v10  ;;  %v4198_v3 = vsel %vm3651_vm9, %v3601_v5, 0.0  ;;  %v4179_v9 = vadd.f32 %v4178_v17, %v4177_v46  ;;  %v9082_v5 = vld [vmem:[%s9582_s3 + $0x20] sm:$0xff]  }
 0x37e   :  { %v5631_v56 = vadd.f32 %v5545_v27, %v5359_v49  ;;  %v4159_v26 = vrot.slane %v4158_v11, 2  ;;  %v4166_v21 = vrot.slane %v4165_v44, 2  ;;  %v4186_v52 = vadd.f32 %v4185_v60, %v4184_v25  ;;  %v9087_v30 = vld [vmem:[%s9583_s4 + $0x20] sm:$0xff]  }
 0x37f   :  { %v4173_v61 = vrot.slane %v4172_v31, 2  ;;  %v4192_v43 = vrot.slane %v4191_v62, 4  ;;  %v4199_v29 = vrot.slane %v4198_v3, 4  ;;  %v4180_v19 = vrot.slane %v4179_v9, 2  ;;  %v9092_v53 = vld [vmem:[%s9584_s5 + $0x20] sm:$0xff]  }
 0x380   :  { %v9076_v14 = vadd.f32 %v5631_v56, %v9032_v6  ;;  %v4160_v50 = vadd.f32 %v4159_v26, %v4158_v11  ;;  %v4167_v23 = vadd.f32 %v4166_v21, %v4165_v44  ;;  %v4187_v1 = vrot.slane %v4186_v52, 2  ;;  %v3459_v46 = vld [vmem:[%s9581_s2 + $0x80] sm:$0x3]  ;;  %v3461_v56 = vld [vmem:[%s9581_s2 + $0x84] sm:$0x3] }
 0x381   :  { %v4174_v15 = vadd.f32 %v4173_v61, %v4172_v31  ;;  %v4193_v37 = vadd.f32 %v4192_v43, %v4191_v62  ;;  %v4200_v35 = vadd.f32 %v4199_v29, %v4198_v3  ;;  %v4181_v7 = vadd.f32 %v4180_v19, %v4179_v9  ;;  %v3460_v3 = vld [vmem:[%s9581_s2 + $0x82] sm:$0x3]  ;;  %v3462_v61 = vld [vmem:[%s9581_s2 + $0x86] sm:$0x3] }
 0x382   :  { %v4161_v47 = vrot.slane %v4160_v50, 1  ;;  %v4168_v34 = vrot.slane %v4167_v23, 1  ;;  %v4205_v48 = vsel %vm3651_vm9, %v3602_v13, 0.0  ;;  %v4188_v49 = vadd.f32 %v4187_v1, %v4186_v52  ;;  %v3463_v52 = vld [vmem:[%s9581_s2 + $0x88] sm:$0x3] }
 0x383   :  { %v4175_v33 = vrot.slane %v4174_v15, 1  ;;  %v4194_v40 = vrot.slane %v4193_v37, 2  ;;  %v4201_v42 = vrot.slane %v4200_v35, 2  ;;  %v4182_v6 = vrot.slane %v4181_v7, 1  ;;  %v3465_v1 = vld [vmem:[%s9581_s2 + $0x8c] sm:$0x3] }
 0x384   :  { %v4162_v45 = vadd.f32 %v4161_v47, %v4160_v50  ;;  %v4169_v36 = vadd.f32 %v4168_v34, %v4167_v23  ;;  %v4206_v38 = vrot.slane %v4205_v48, 4  ;;  %v4189_v8 = vrot.slane %v4188_v49, 1  ;;  %v3466_v34 = vld [vmem:[%s9581_s2 + $0x8e] sm:$0x3] }
 0x385   :  { %v4176_v20 = vadd.f32 %v4175_v33, %v4174_v15  ;;  %v4195_v12 = vadd.f32 %v4194_v40, %v4193_v37  ;;  %v4202_v59 = vadd.f32 %v4201_v42, %v4200_v35  ;;  %v4183_v39 = vadd.f32 %v4182_v6, %v4181_v7  ;;  %v3464_v15 = vld [vmem:[%s9581_s2 + $0x8a] sm:$0x3]  ;;  %v9121_v37 = vpop.f32.mrf.mxu1 }
 0x386   :  { %v4207_v13 = vadd.f32 %v4206_v38, %v4205_v48  ;;  %v4620_v16 = vmul.f32 0.25, %v4162_v45  ;;  %v4621_v4 = vmul.f32 0.25, %v4169_v36  ;;  %v4190_v57 = vadd.f32 %v4189_v8, %v4188_v49 }
 0x387   :  { %v4196_v58 = vrot.slane %v4195_v12, 1  ;;  %v4203_v10 = vrot.slane %v4202_v59, 1  ;;  %v4622_v0 = vmul.f32 0.25, %v4176_v20  ;;  %v4623_v11 = vmul.f32 0.25, %v4183_v39 }
 0x388   :  { %v4208_v25 = vrot.slane %v4207_v13, 2  ;;  %v5208_v44 = vadd.f32 %v6829_v2, %v8931_v32  ;;  %v6447_v17 = vunpack.c.h.bf16 %v9082_v5  ;;  %v4624_v31 = vmul.f32 0.25, %v4190_v57  ;;  %v9132_v2 = vpop.f32.mrf.mxu1 }
 0x389   :  { %v4197_v60 = vadd.f32 %v4196_v58, %v4195_v12  ;;  %v4204_v27 = vadd.f32 %v4203_v10, %v4202_v59  ;;  %v6479_v62 = vunpack.c.h.bf16 %v9087_v30  ;;  %v6511_v21 = vunpack.c.h.bf16 %v9092_v53 }
 0x38a   :  { %v4209_v26 = vadd.f32 %v4208_v25, %v4207_v13  ;;  %v5560_v9 = vsel %vm2879_vm1, %v4621_v4, %v4620_v16  ;;  %v3587_v43 = vunpack.c.l.bf16 %v3459_v46  ;;  %v3588_v7 = vunpack.c.l.bf16 %v3460_v3  ;;  %v9139_v3 = vpop.f32.mrf.mxu1 }
 0x38b   :  { %v4625_v29 = vmul.f32 0.25, %v4197_v60  ;;  %v4626_v50 = vmul.f32 0.25, %v4204_v27  ;;  %v5314_v23 = vadd.f32 %v6479_v62, %v6447_v17  ;;  %v5561_v19 = vsel %vm2881_vm2, %v4622_v0, %v5560_v9 }
 0x38c   :  { %v4210_v35 = vrot.slane %v4209_v26, 1  ;;  %v5562_v47 = vsel %vm2883_vm3, %v4623_v11, %v5561_v19  ;;  %v3589_v48 = vunpack.c.l.bf16 %v3461_v56  ;;  %v3590_v40 = vunpack.c.l.bf16 %v3462_v61 }
 0x38d   :  { %v5362_v33 = vadd.f32 %v6511_v21, %v5314_v23  ;;  %v5563_v49 = vsel %vm2885_vm4, %v4624_v31, %v5562_v47  ;;  %v3591_v42 = vunpack.c.l.bf16 %v3463_v52  ;;  %v3592_v6 = vunpack.c.l.bf16 %v3464_v15 }
 0x38e   :  { %v4211_v45 = vadd.f32 %v4210_v35, %v4209_v26  ;;  %v5564_v36 = vsel %vm2887_vm5, %v4625_v29, %v5563_v49  ;;  %v3593_v38 = vunpack.c.l.bf16 %v3465_v1  ;;  %v3594_v8 = vunpack.c.l.bf16 %v3466_v34 }
 0x38f   :  { %v5565_v20 = vsel %vm2889_vm6, %v4626_v50, %v5564_v36  ;;  %v4100_v12 = vsel %vm3651_vm9, %v3587_v43, 0.0  ;;  %v4107_v59 = vsel %vm3651_vm9, %v3588_v7, 0.0  ;;  %v4114_v4 = vsel %vm3651_vm9, %v3589_v48, 0.0  ;;  %v3326_v7 = vpop.f32.mrf.mxu1 }
 0x390   :  { %v4627_v39 = vmul.f32 0.25, %v4211_v45  ;;  %v4101_v13 = vrot.slane %v4100_v12, 4  ;;  %v4108_v16 = vrot.slane %v4107_v59, 4  ;;  %v4115_v57 = vrot.slane %v4114_v4, 4 }
 0x391   :  { %v4121_v58 = vsel %vm3651_vm9, %v3590_v40, 0.0  ;;  %v4128_v10 = vsel %vm3651_vm9, %v3591_v42, 0.0  ;;  %v4135_v0 = vsel %vm3651_vm9, %v3592_v6, 0.0  ;;  %v4142_v9 = vsel %vm3651_vm9, %v3593_v38, 0.0 }
 0x392   :  { %v5566_v46 = vsel %vm2891_vm7, %v4627_v39, %v5565_v20  ;;  %v4102_v25 = vadd.f32 %v4101_v13, %v4100_v12  ;;  %v4109_v11 = vadd.f32 %v4108_v16, %v4107_v59  ;;  %v4122_v17 = vrot.slane %v4121_v58, 4 }
 0x393   :  { %v5634_v60 = vadd.f32 %v5566_v46, %v5362_v33  ;;  %v4116_v27 = vadd.f32 %v4115_v57, %v4114_v4  ;;  %v4129_v31 = vrot.slane %v4128_v10, 4  ;;  %v4136_v62 = vrot.slane %v4135_v0, 4  ;;  %v5202_v4 = vpop.f32.mrf.mxu0  ;;  %v6783_v57 = vpop.f32.mrf.mxu1 }
 0x394   :  { %v4103_v56 = vrot.slane %v4102_v25, 2  ;;  %v4110_v26 = vrot.slane %v4109_v11, 2  ;;  %v4123_v21 = vadd.f32 %v4122_v17, %v4121_v58  ;;  %v4143_v15 = vrot.slane %v4142_v9, 4 }
 0x395   :  { %v9142_v61 = vadd.f32 %v5634_v60, %v5208_v44  ;;  %v4117_v52 = vrot.slane %v4116_v27, 2  ;;  %v4130_v43 = vadd.f32 %v4129_v31, %v4128_v10  ;;  %v4137_v29 = vadd.f32 %v4136_v62, %v4135_v0  ;;  %v9148_v60 = vld [vmem:[%s9593_s14] ss:$0 sm:$0xff] }
 0x396   :  { %v4104_v50 = vadd.f32 %v4103_v56, %v4102_v25  ;;  %v4111_v23 = vadd.f32 %v4110_v26, %v4109_v11  ;;  %v4124_v19 = vrot.slane %v4123_v21, 2  ;;  %v4149_v34 = vsel %vm3651_vm9, %v3594_v8, 0.0 }
 0x397   :  { %v4118_v1 = vadd.f32 %v4117_v52, %v4116_v27  ;;  %v4131_v35 = vrot.slane %v4130_v43, 2  ;;  %v4138_v47 = vrot.slane %v4137_v29, 2  ;;  %v4144_v40 = vadd.f32 %v4143_v15, %v4142_v9 }
 0x398   :  { %v4105_v48 = vrot.slane %v4104_v50, 1  ;;  %v4112_v33 = vrot.slane %v4111_v23, 1  ;;  %v4125_v49 = vadd.f32 %v4124_v19, %v4123_v21  ;;  %v4150_v36 = vrot.slane %v4149_v34, 4 }
 0x399   :  { %v4119_v42 = vrot.slane %v4118_v1, 1  ;;  %v4132_v44 = vadd.f32 %v4131_v35, %v4130_v43  ;;  %v4139_v45 = vadd.f32 %v4138_v47, %v4137_v29  ;;  %v4145_v12 = vrot.slane %v4144_v40, 2  ;;  %v3336_v43 = vpop.f32.mrf.mxu1 }
 0x39a   :  { %v4106_v6 = vadd.f32 %v4105_v48, %v4104_v50  ;;  %v4113_v38 = vadd.f32 %v4112_v33, %v4111_v23  ;;  %v4126_v20 = vrot.slane %v4125_v49, 1  ;;  %v4151_v16 = vadd.f32 %v4150_v36, %v4149_v34  ;;  %v3486_v36 = vld [vmem:[%s9581_s2 + $0xb6] sm:$0x3] }
 0x39b   :  { %v4120_v59 = vadd.f32 %v4119_v42, %v4118_v1  ;;  %v4133_v39 = vrot.slane %v4132_v44, 1  ;;  %v4140_v13 = vrot.slane %v4139_v45, 1  ;;  %v4146_v58 = vadd.f32 %v4145_v12, %v4144_v40  ;;  %v6786_v40 = vpop.f32.mrf.mxu1  ;;  %v3484_v42 = vld [vmem:[%s9581_s2 + $0xb2] sm:$0x3] }
 0x39c   :  { %v4127_v8 = vadd.f32 %v4126_v20, %v4125_v49  ;;  %v4612_v10 = vmul.f32 0.25, %v4106_v6  ;;  %v4613_v0 = vmul.f32 0.25, %v4113_v38  ;;  %v4152_v11 = vrot.slane %v4151_v16, 2  ;;  %v3487_v6 = vld [vmem:[%s9581_s2 + $0xb8] sm:$0x3] }
 0x39d   :  { %v4134_v46 = vadd.f32 %v4133_v39, %v4132_v44  ;;  %v4141_v25 = vadd.f32 %v4140_v13, %v4139_v45  ;;  %v4614_v17 = vmul.f32 0.25, %v4120_v59  ;;  %v4147_v27 = vrot.slane %v4146_v58, 1  ;;  %v3489_v39 = vld [vmem:[%s9581_s2 + $0xbc] sm:$0x3] }
 0x39e   :  { %v4615_v31 = vmul.f32 0.25, %v4127_v8  ;;  %v5203_v62 = vadd.f32 %v8931_v32, %v5202_v4  ;;  %v6446_v56 = vunpack.c.l.bf16 %v9082_v5  ;;  %v4153_v26 = vadd.f32 %v4152_v11, %v4151_v16 }
 0x39f   :  { %v4616_v21 = vmul.f32 0.25, %v4134_v46  ;;  %v4617_v9 = vmul.f32 0.25, %v4141_v25  ;;  %v6478_v52 = vunpack.c.l.bf16 %v9087_v30  ;;  %v4148_v29 = vadd.f32 %v4147_v27, %v4146_v58 }
 0x3a0   :  { %v6510_v50 = vunpack.c.l.bf16 %v9092_v53  ;;  %v5553_v23 = vsel %vm2879_vm1, %v4613_v0, %v4612_v10  ;;  %v3322_v19 = vadd.f32 %v9121_v37, %v9148_v60  ;;  %v4154_v15 = vrot.slane %v4153_v26, 1 }
 0x3a1   :  { %v5313_v1 = vadd.f32 %v6478_v52, %v6446_v56  ;;  %v5554_v35 = vsel %vm2881_vm2, %v4614_v17, %v5553_v23  ;;  %v3317_v5 = vadd.f32 %v9148_v60, %v9132_v2  ;;  %v4618_v47 = vmul.f32 0.25, %v4148_v29  ;;  %v3483_v2 = vld [vmem:[%s9581_s2 + $0xb0] sm:$0x3] }
 0x3a2   :  { %v5555_v34 = vsel %vm2883_vm3, %v4615_v31, %v5554_v35  ;;  %v3332_v30 = vadd.f32 %v9139_v3, %v9148_v60  ;;  %v5658_v53 = vmul.f32 %v8945_v63, %v3322_v19  ;;  %v4155_v48 = vadd.f32 %v4154_v15, %v4153_v26  ;;  %v3485_v63 = vld [vmem:[%s9581_s2 + $0xb4] sm:$0x3] }
 0x3a3   :  { %v5361_v33 = vadd.f32 %v6510_v50, %v5313_v1  ;;  %v5556_v49 = vsel %vm2885_vm4, %v4616_v21, %v5555_v34  ;;  %v9166_v37 = vadd.f32 %v9148_v60, %v3326_v7  ;;  %v9180_v7 = vadd.f32 %v6783_v57, %v9148_v60 }
 0x3a4   :  { %v5557_v3 = vsel %vm2887_vm5, %v4617_v9, %v5556_v49  ;;  %v5676_v44 = vsel %vm307_vm0, %v5658_v53, 0.0  ;;  %v5657_v45 = vmul.f32 %v8949_v54, %v3317_v5  ;;  %v4619_v38 = vmul.f32 0.25, %v4155_v48  ;;  %v3488_v54 = vld [vmem:[%s9581_s2 + $0xba] sm:$0x3] }
 0x3a5   :  { %v5558_v20 = vsel %vm2889_vm6, %v4618_v47, %v5557_v3  ;;  %5677 = vadd.xlane.f32.xlu0 %v5676_v44  ;;  %v5660_v12 = vmul.f32 %v8953_v24, %v3332_v30  ;;  %v9192_v59 = vadd.f32 %v9148_v60, %v3336_v43  ;;  %v9202_v16 = vadd.f32 %v6786_v40, %v9148_v60  ;;  %v3490_v24 = vld [vmem:[%s9581_s2 + $0xbe] sm:$0x3] }
 0x3a6   :  { %v5673_v13 = vsel %vm307_vm0, %v5657_v45, 0.0  ;;  %v3611_v4 = vunpack.c.l.bf16 %v3483_v2  ;;  %v3612_v57 = vunpack.c.l.bf16 %v3484_v42  ;;  %v5559_v8 = vsel %vm2891_vm7, %v4619_v38, %v5558_v20 }
 0x3a7   :  { %5674 = vadd.xlane.f32.xlu1 %v5673_v13  ;;  %v5682_v58 = vsel %vm307_vm0, %v5660_v12, 0.0  ;;  %v3613_v10 = vunpack.c.l.bf16 %v3485_v63  ;;  %v3614_v0 = vunpack.c.l.bf16 %v3486_v36  ;;  %v5633_v46 = vadd.f32 %v5559_v8, %v5361_v33 }
 0x3a8   :  { %v3615_v25 = vunpack.c.l.bf16 %v3487_v6  ;;  %v3616_v11 = vunpack.c.l.bf16 %v3488_v54  ;;  %v3617_v17 = vunpack.c.l.bf16 %v3489_v39  ;;  %v3618_v27 = vunpack.c.l.bf16 %v3490_v24 }
 0x3a9   :  { %5683 = vadd.xlane.f32.xlu0 %v5682_v58  ;;  %v4268_v31 = vsel %vm3651_vm9, %v3611_v4, 0.0  ;;  %v4275_v56 = vsel %vm3651_vm9, %v3612_v57, 0.0  ;;  %v4282_v26 = vsel %vm3651_vm9, %v3613_v10, 0.0  ;;  %v9212_v21 = vadd.f32 %v5633_v46, %v5203_v62 }
 0x3aa   :  { %v4269_v9 = vrot.slane %v4268_v31, 4  ;;  %v4276_v52 = vrot.slane %v4275_v56, 4  ;;  %v4283_v43 = vrot.slane %v4282_v26, 4  ;;  %v4289_v29 = vsel %vm3651_vm9, %v3614_v0, 0.0 }
 0x3ab   :  { %v4296_v50 = vsel %vm3651_vm9, %v3615_v25, 0.0  ;;  %v4303_v23 = vsel %vm3651_vm9, %v3616_v11, 0.0  ;;  %v4310_v19 = vsel %vm3651_vm9, %v3617_v17, 0.0  ;;  %v4290_v5 = vrot.slane %v4289_v29, 4 }
 0x3ac   :  { %v4270_v15 = vadd.f32 %v4269_v9, %v4268_v31  ;;  %v4277_v1 = vadd.f32 %v4276_v52, %v4275_v56  ;;  %v4284_v35 = vadd.f32 %v4283_v43, %v4282_v26  ;;  %v4297_v47 = vrot.slane %v4296_v50, 4  ;;  %v6832_v56 = vpop.f32.mrf.mxu0  ;;  %v9222_v26 = vld [vmem:[%s9582_s3 + $0x28] sm:$0xff]  }
 0x3ad   :  { %v4304_v34 = vrot.slane %v4303_v23, 4  ;;  %v4311_v30 = vrot.slane %v4310_v19, 4  ;;  %v4317_v62 = vsel %vm3651_vm9, %v3618_v27, 0.0  ;;  %v4291_v49 = vadd.f32 %v4290_v5, %v4289_v29  ;;  %v9227_v9 = vld [vmem:[%s9583_s4 + $0x28] sm:$0xff]  }
 0x3ae   :  { %v4271_v53 = vrot.slane %v4270_v15, 2  ;;  %v4278_v48 = vrot.slane %v4277_v1, 2  ;;  %v4285_v33 = vrot.slane %v4284_v35, 2  ;;  %v4298_v40 = vadd.f32 %v4297_v47, %v4296_v50 }
 0x3af   :  { %v4305_v2 = vadd.f32 %v4304_v34, %v4303_v23  ;;  %v4312_v42 = vadd.f32 %v4311_v30, %v4310_v19  ;;  %v4318_v63 = vrot.slane %v4317_v62, 4  ;;  %v4292_v36 = vrot.slane %v4291_v49, 2 }
 0x3b0   :  { %v4272_v3 = vadd.f32 %v4271_v53, %v4270_v15  ;;  %v4279_v44 = vadd.f32 %v4278_v48, %v4277_v1  ;;  %v4286_v45 = vadd.f32 %v4285_v33, %v4284_v35  ;;  %v4299_v6 = vrot.slane %v4298_v40, 2  ;;  %v9232_v35 = vld [vmem:[%s9584_s5 + $0x28] sm:$0xff]   ;;  %v3476_v53 = vld [vmem:[%s9581_s2 + $0xa2] sm:$0x3] }
 0x3b1   :  { %v4306_v38 = vrot.slane %v4305_v2, 2  ;;  %v4313_v20 = vrot.slane %v4312_v42, 2  ;;  %v4319_v12 = vadd.f32 %v4318_v63, %v4317_v62  ;;  %v4293_v24 = vadd.f32 %v4292_v36, %v4291_v49  ;;  %v3475_v62 = vld [vmem:[%s9581_s2 + $0xa0] sm:$0x3]  ;;  %v3480_v36 = vld [vmem:[%s9581_s2 + $0xaa] sm:$0x3] }
 0x3b2   :  { %v4273_v54 = vrot.slane %v4272_v3, 1  ;;  %v4280_v39 = vrot.slane %v4279_v44, 1  ;;  %v4287_v13 = vrot.slane %v4286_v45, 1  ;;  %v4300_v4 = vadd.f32 %v4299_v6, %v4298_v40 }
 0x3b3   :  { %v4307_v57 = vadd.f32 %v4306_v38, %v4305_v2  ;;  %v4314_v8 = vadd.f32 %v4313_v20, %v4312_v42  ;;  %v4320_v58 = vrot.slane %v4319_v12, 2  ;;  %v4294_v25 = vrot.slane %v4293_v24, 1  ;;  %v3481_v20 = vld [vmem:[%s9581_s2 + $0xac] sm:$0x3] }
 0x3b4   :  { %v4274_v10 = vadd.f32 %v4273_v54, %v4272_v3  ;;  %v4281_v0 = vadd.f32 %v4280_v39, %v4279_v44  ;;  %v4288_v46 = vadd.f32 %v4287_v13, %v4286_v45  ;;  %v4301_v11 = vrot.slane %v4300_v4, 1  ;;  %v3478_v44 = vld [vmem:[%s9581_s2 + $0xa6] sm:$0x3]  ;;  %v3479_v45 = vld [vmem:[%s9581_s2 + $0xa8] sm:$0x3] }
 0x3b5   :  { %v4308_v17 = vrot.slane %v4307_v57, 1  ;;  %v4315_v27 = vrot.slane %v4314_v8, 1  ;;  %v4321_v31 = vadd.f32 %v4320_v58, %v4319_v12  ;;  %v4295_v52 = vadd.f32 %v4294_v25, %v4293_v24 }
 0x3b6   :  { %v4636_v43 = vmul.f32 0.25, %v4274_v10  ;;  %v4637_v29 = vmul.f32 0.25, %v4281_v0  ;;  %v4638_v50 = vmul.f32 0.25, %v4288_v46  ;;  %v4302_v23 = vadd.f32 %v4301_v11, %v4300_v4 }
 0x3b7   :  { %v4309_v19 = vadd.f32 %v4308_v17, %v4307_v57  ;;  %v4316_v15 = vadd.f32 %v4315_v27, %v4314_v8  ;;  %v4322_v1 = vrot.slane %v4321_v31, 1  ;;  %v4639_v5 = vmul.f32 0.25, %v4295_v52 }
 0x3b8   :  { %v5218_v47 = vadd.f32 %v6832_v56, %v8931_v32  ;;  %v6451_v34 = vunpack.c.h.bf16 %v9222_v26  ;;  %v6483_v30 = vunpack.c.h.bf16 %v9227_v9  ;;  %v4640_v33 = vmul.f32 0.25, %v4302_v23  ;;  %v3477_v32 = vld [vmem:[%s9581_s2 + $0xa4] sm:$0x3] }
 0x3b9   :  { %v4323_v48 = vadd.f32 %v4322_v1, %v4321_v31  ;;  %v4641_v49 = vmul.f32 0.25, %v4309_v19  ;;  %v4642_v40 = vmul.f32 0.25, %v4316_v15  ;;  %v6515_v42 = vunpack.c.h.bf16 %v9232_v35 }
 0x3ba   :  { %v5316_v2 = vadd.f32 %v6483_v30, %v6451_v34  ;;  %v5574_v63 = vsel %vm2879_vm1, %v4637_v29, %v4636_v43  ;;  %v5659_v3 = vmul.f32 %v8957_v41, %v9166_v37  ;;  %v3482_v41 = vld [vmem:[%s9581_s2 + $0xae] sm:$0x3]  ;;  %v3603_v37 = vunpack.c.l.bf16 %v3475_v62  ;;  %v9278_v62 = vpop.f32.mrf.mxu1 }
 0x3bb   :  { %v4643_v6 = vmul.f32 0.25, %v4323_v48  ;;  %v5575_v38 = vsel %vm2881_vm2, %v4638_v50, %v5574_v63  ;;  %v3604_v12 = vunpack.c.l.bf16 %v3476_v53  ;;  %v3605_v24 = vunpack.c.l.bf16 %v3477_v32 }
 0x3bc   :  { %v5364_v54 = vadd.f32 %v6515_v42, %v5316_v2  ;;  %v5576_v39 = vsel %vm2883_vm3, %v4639_v5, %v5575_v38  ;;  %v5679_v13 = vsel %vm307_vm0, %v5659_v3, 0.0  ;;  %v3606_v57 = vunpack.c.l.bf16 %v3478_v44 }
 0x3bd   :  { %v5577_v4 = vsel %vm2885_vm4, %v4640_v33, %v5576_v39  ;;  %5680 = vadd.xlane.f32.xlu1 %v5679_v13  ;;  %v3607_v8 = vunpack.c.l.bf16 %v3479_v45  ;;  %v3608_v58 = vunpack.c.l.bf16 %v3480_v36  ;;  %v3609_v0 = vunpack.c.l.bf16 %v3481_v20 }
 0x3be   :  { %v5578_v10 = vsel %vm2887_vm5, %v4641_v49, %v5577_v4  ;;  %v3610_v46 = vunpack.c.l.bf16 %v3482_v41  ;;  %v4212_v25 = vsel %vm3651_vm9, %v3603_v37, 0.0  ;;  %v4219_v27 = vsel %vm3651_vm9, %v3604_v12, 0.0  ;;  %v6789_v41 = vpop.f32.mrf.mxu1 }
 0x3bf   :  { %v5579_v11 = vsel %vm2889_vm6, %v4642_v40, %v5578_v10  ;;  %v4213_v17 = vrot.slane %v4212_v25, 4  ;;  %v4226_v31 = vsel %vm3651_vm9, %v3605_v24, 0.0  ;;  %v4220_v52 = vrot.slane %v4219_v27, 4 }
 0x3c0   :  { %v5580_v56 = vsel %vm2891_vm7, %v4643_v6, %v5579_v11  ;;  %v4227_v43 = vrot.slane %v4226_v31, 4  ;;  %v4233_v29 = vsel %vm3651_vm9, %v3606_v57, 0.0  ;;  %v4240_v15 = vsel %vm3651_vm9, %v3607_v8, 0.0 }
 0x3c1   :  { %v5636_v50 = vadd.f32 %v5580_v56, %v5364_v54  ;;  %v4214_v23 = vadd.f32 %v4213_v17, %v4212_v25  ;;  %v4234_v19 = vrot.slane %v4233_v29, 4  ;;  %v4221_v1 = vadd.f32 %v4220_v52, %v4219_v27  ;;  %v5212_v27 = vpop.f32.mrf.mxu0 }
 0x3c2   :  { %v4228_v5 = vadd.f32 %v4227_v43, %v4226_v31  ;;  %v4241_v34 = vrot.slane %v4240_v15, 4  ;;  %v4247_v30 = vsel %vm3651_vm9, %v3608_v58, 0.0  ;;  %v4254_v42 = vsel %vm3651_vm9, %v3609_v0, 0.0  ;;  %v3356_v31 = vpop.f32.mrf.mxu1 }
 0x3c3   :  { %v9280_v53 = vadd.f32 %v5636_v50, %v5218_v47  ;;  %v4215_v48 = vrot.slane %v4214_v23, 2  ;;  %v4235_v33 = vadd.f32 %v4234_v19, %v4233_v29  ;;  %v4248_v49 = vrot.slane %v4247_v30, 4 }
 0x3c4   :  { %v4222_v40 = vrot.slane %v4221_v1, 2  ;;  %v4229_v32 = vrot.slane %v4228_v5, 2  ;;  %v4242_v2 = vadd.f32 %v4241_v34, %v4240_v15  ;;  %v4255_v45 = vrot.slane %v4254_v42, 4  ;;  %v9287_v34 = vld [vmem:[%s9589_s10] ss:$0 sm:$0xff] }
 0x3c5   :  { %v4216_v63 = vadd.f32 %v4215_v48, %v4214_v23  ;;  %v4236_v3 = vrot.slane %v4235_v33, 2  ;;  %v4249_v44 = vadd.f32 %v4248_v49, %v4247_v30  ;;  %v4261_v20 = vsel %vm3651_vm9, %v3610_v46, 0.0 }
 0x3c6   :  { %v4223_v36 = vadd.f32 %v4222_v40, %v4221_v1  ;;  %v4230_v6 = vadd.f32 %v4229_v32, %v4228_v5  ;;  %v4243_v38 = vrot.slane %v4242_v2, 2  ;;  %v4256_v54 = vadd.f32 %v4255_v45, %v4254_v42  ;;  %v6792_v32 = vpop.f32.mrf.mxu1 }
 0x3c7   :  { %v4217_v47 = vrot.slane %v4216_v63, 1  ;;  %v4237_v37 = vadd.f32 %v4236_v3, %v4235_v33  ;;  %v4250_v12 = vrot.slane %v4249_v44, 2  ;;  %v4262_v4 = vrot.slane %v4261_v20, 4 }
 0x3c8   :  { %v4224_v39 = vrot.slane %v4223_v36, 1  ;;  %v4231_v13 = vrot.slane %v4230_v6, 1  ;;  %v4244_v24 = vadd.f32 %v4243_v38, %v4242_v2  ;;  %v4257_v10 = vrot.slane %v4256_v54, 2 }
 0x3c9   :  { %v4218_v57 = vadd.f32 %v4217_v47, %v4216_v63  ;;  %v4238_v8 = vrot.slane %v4237_v37, 1  ;;  %v4251_v58 = vadd.f32 %v4250_v12, %v4249_v44  ;;  %v4263_v17 = vadd.f32 %v4262_v4, %v4261_v20 }
 0x3ca   :  { %v4225_v0 = vadd.f32 %v4224_v39, %v4223_v36  ;;  %v4232_v25 = vadd.f32 %v4231_v13, %v4230_v6  ;;  %v4245_v11 = vrot.slane %v4244_v24, 1  ;;  %v4258_v52 = vadd.f32 %v4257_v10, %v4256_v54  ;;  %v3366_v54 = vpop.f32.mrf.mxu1  ;;  %v3503_v10 = vld [vmem:[%s9581_s2 + $0xd8] sm:$0x3] }
 0x3cb   :  { %v4239_v46 = vadd.f32 %v4238_v8, %v4237_v37  ;;  %v4252_v56 = vrot.slane %v4251_v58, 1  ;;  %v4628_v43 = vmul.f32 0.25, %v4218_v57  ;;  %v4264_v50 = vrot.slane %v4263_v17, 2 }
 0x3cc   :  { %v4246_v29 = vadd.f32 %v4245_v11, %v4244_v24  ;;  %v4629_v23 = vmul.f32 0.25, %v4225_v0  ;;  %v4630_v19 = vmul.f32 0.25, %v4232_v25  ;;  %v4259_v1 = vrot.slane %v4258_v52, 1 }
 0x3cd   :  { %v4253_v15 = vadd.f32 %v4252_v56, %v4251_v58  ;;  %v4631_v5 = vmul.f32 0.25, %v4239_v46  ;;  %v5213_v30 = vadd.f32 %v9287_v34, %v5212_v27  ;;  %v4265_v48 = vadd.f32 %v4264_v50, %v4263_v17  ;;  %v3505_v27 = vld [vmem:[%s9581_s2 + $0xdc] sm:$0x3]  ;;  %v3506_v56 = vld [vmem:[%s9581_s2 + $0xde] sm:$0x3] }
 0x3ce   :  { %v4632_v33 = vmul.f32 0.25, %v4246_v29  ;;  %v6450_v49 = vunpack.c.l.bf16 %v9222_v26  ;;  %v6482_v40 = vunpack.c.l.bf16 %v9227_v9  ;;  %v4260_v2 = vadd.f32 %v4259_v1, %v4258_v52 }
 0x3cf   :  { %v4633_v42 = vmul.f32 0.25, %v4253_v15  ;;  %v6514_v63 = vunpack.c.l.bf16 %v9232_v35  ;;  %v5567_v3 = vsel %vm2879_vm1, %v4629_v23, %v4628_v43  ;;  %v4266_v44 = vrot.slane %v4265_v48, 1 }
 0x3d0   :  { %v5315_v45 = vadd.f32 %v6482_v40, %v6450_v49  ;;  %v5568_v36 = vsel %vm2881_vm2, %v4630_v19, %v5567_v3  ;;  %v5662_v6 = vmul.f32 %v8961_v55, %v9180_v7  ;;  %v4634_v38 = vmul.f32 0.25, %v4260_v2 }
 0x3d1   :  { %v5569_v20 = vsel %vm2883_vm3, %v4631_v5, %v5568_v36  ;;  %v3347_v26 = vadd.f32 %v9148_v60, %v9278_v62  ;;  %v3362_v9 = vadd.f32 %v6789_v41, %v9148_v60  ;;  %v4267_v47 = vadd.f32 %v4266_v44, %v4265_v48  ;;  %v3499_v41 = vld [vmem:[%s9581_s2 + $0xd0] sm:$0x3] }
 0x3d2   :  { %v5363_v37 = vadd.f32 %v6514_v63, %v5315_v45  ;;  %v5570_v35 = vsel %vm2885_vm4, %v4632_v33, %v5569_v20  ;;  %v5688_v12 = vsel %vm307_vm0, %v5662_v6, 0.0  ;;  %v5661_v55 = vmul.f32 %v8971_v18, %v9192_v59  ;;  %v3500_v18 = vld [vmem:[%s9581_s2 + $0xd2] sm:$0x3] }
 0x3d3   :  { %v5571_v39 = vsel %vm2887_vm5, %v4633_v42, %v5570_v35  ;;  %5689 = vadd.xlane.f32.xlu0 %v5688_v12  ;;  %v5664_v7 = vmul.f32 %v9028_v28, %v9202_v16  ;;  %v3357_v62 = vadd.f32 %v9148_v60, %v3356_v31  ;;  %v4635_v13 = vmul.f32 0.25, %v4267_v47  ;;  %v3501_v28 = vld [vmem:[%s9581_s2 + $0xd4] sm:$0x3] }
 0x3d4   :  { %v5572_v24 = vsel %vm2889_vm6, %v4634_v38, %v5571_v39  ;;  %v3372_v4 = vadd.f32 %v6792_v32, %v9148_v60  ;;  %v5663_v57 = vmul.f32 %v9076_v14, %v3347_v26  ;;  %v5685_v59 = vsel %vm307_vm0, %v5661_v55, 0.0  ;;  %v3502_v14 = vld [vmem:[%s9581_s2 + $0xd6] sm:$0x3] }
 0x3d5   :  { %v5694_v16 = vsel %vm307_vm0, %v5664_v7, 0.0  ;;  %v5666_v8 = vmul.f32 %v9142_v61, %v3362_v9  ;;  %v3367_v58 = vadd.f32 %v9148_v60, %v3366_v54  ;;  %v5573_v0 = vsel %vm2891_vm7, %v4635_v13, %v5572_v24  ;;  %5686 = vadd.xlane.f32.xlu1 %v5685_v59  ;;  %v3504_v61 = vld [vmem:[%s9581_s2 + $0xda] sm:$0x3] }
 0x3d6   :  { %v5691_v25 = vsel %vm307_vm0, %v5663_v57, 0.0  ;;  %v5665_v11 = vmul.f32 %v9212_v21, %v3357_v62  ;;  %v5668_v17 = vmul.f32 %v9280_v53, %v3372_v4  ;;  %v5635_v31 = vadd.f32 %v5573_v0, %v5363_v37 }
 0x3d7   :  { %5695 = vadd.xlane.f32.xlu0 %v5694_v16  ;;  %v5700_v46 = vsel %vm307_vm0, %v5666_v8, 0.0  ;;  %v3627_v52 = vunpack.c.l.bf16 %v3499_v41  ;;  %v3628_v21 = vunpack.c.l.bf16 %v3500_v18  ;;  %v3629_v29 = vunpack.c.l.bf16 %v3501_v28 }
 0x3d8   :  { %v5697_v53 = vsel %vm307_vm0, %v5665_v11, 0.0  ;;  %v5706_v43 = vsel %vm307_vm0, %v5668_v17, 0.0  ;;  %v3630_v50 = vunpack.c.l.bf16 %v3502_v14  ;;  %v5651_v23 = vadd.f32 %v5635_v31, %v5213_v30 }
 0x3d9   :  { %v3631_v19 = vunpack.c.l.bf16 %v3503_v10  ;;  %v3632_v15 = vunpack.c.l.bf16 %v3504_v61  ;;  %v3633_v1 = vunpack.c.l.bf16 %v3505_v27  ;;  %5692 = vadd.xlane.f32.xlu1 %v5691_v25  ;;  %v3634_v5 = vunpack.c.l.bf16 %v3506_v56 }
 0x3da   :  { %v4380_v48 = vsel %vm3651_vm9, %v3627_v52, 0.0  ;;  %v4387_v33 = vsel %vm3651_vm9, %v3628_v21, 0.0  ;;  %v4394_v49 = vsel %vm3651_vm9, %v3629_v29, 0.0  ;;  %v5667_v40 = vmul.f32 %v5651_v23, %v3367_v58 }
 0x3db   :  { %5701 = vadd.xlane.f32.xlu0 %v5700_v46  ;;  %v4381_v32 = vrot.slane %v4380_v48, 4  ;;  %v4388_v2 = vrot.slane %v4387_v33, 4  ;;  %v4395_v42 = vrot.slane %v4394_v49, 4  ;;  %v4401_v63 = vsel %vm3651_vm9, %v3630_v50, 0.0 }
 0x3dc   :  { %v4408_v30 = vsel %vm3651_vm9, %v3631_v19, 0.0  ;;  %v4415_v3 = vsel %vm3651_vm9, %v3632_v15, 0.0  ;;  %v4422_v44 = vsel %vm3651_vm9, %v3633_v1, 0.0  ;;  %v5703_v45 = vsel %vm307_vm0, %v5667_v40, 0.0  ;;  %v6835_v15 = vpop.f32.mrf.mxu0 }
 0x3dd   :  { %v4382_v36 = vadd.f32 %v4381_v32, %v4380_v48  ;;  %v4389_v6 = vadd.f32 %v4388_v2, %v4387_v33  ;;  %v4396_v38 = vadd.f32 %v4395_v42, %v4394_v49  ;;  %5698 = vadd.xlane.f32.xlu1 %v5697_v53  ;;  %v4402_v20 = vrot.slane %v4401_v63, 4  ;;  %v9359_v53 = vld [vmem:[%s9582_s3 + $0x30] sm:$0xff]   ;;  %v3491_v42 = vld [vmem:[%s9581_s2 + $0xc0] sm:$0x3] }
 0x3de   :  { %v4409_v26 = vrot.slane %v4408_v30, 4  ;;  %v4416_v9 = vrot.slane %v4415_v3, 4  ;;  %v4423_v47 = vrot.slane %v4422_v44, 4  ;;  %v4429_v54 = vsel %vm3651_vm9, %v3634_v5, 0.0  ;;  %v9369_v49 = vld [vmem:[%s9584_s5 + $0x30] sm:$0xff]  }
 0x3df   :  { %5707 = vadd.xlane.f32.xlu0 %v5706_v43  ;;  %v4383_v37 = vrot.slane %v4382_v36, 2  ;;  %v4390_v35 = vrot.slane %v4389_v6, 2  ;;  %v4397_v12 = vrot.slane %v4396_v38, 2  ;;  %v4403_v39 = vadd.f32 %v4402_v20, %v4401_v63  ;;  %v9364_v43 = vld [vmem:[%s9583_s4 + $0x30] sm:$0xff]   ;;  %v3492_v63 = vld [vmem:[%s9581_s2 + $0xc2] sm:$0x3] }
 0x3e0   :  { %v4410_v55 = vadd.f32 %v4409_v26, %v4408_v30  ;;  %v4417_v7 = vadd.f32 %v4416_v9, %v4415_v3  ;;  %v4424_v62 = vadd.f32 %v4423_v47, %v4422_v44  ;;  %v4430_v4 = vrot.slane %v4429_v54, 4  ;;  %v3494_v47 = vld [vmem:[%s9581_s2 + $0xc6] sm:$0x3] }
 0x3e1   :  { %v4384_v41 = vadd.f32 %v4383_v37, %v4382_v36  ;;  %v4391_v13 = vadd.f32 %v4390_v35, %v4389_v6  ;;  %v4398_v24 = vadd.f32 %v4397_v12, %v4396_v38  ;;  %5704 = vadd.xlane.f32.xlu1 %v5703_v45  ;;  %v4404_v57 = vrot.slane %v4403_v39, 2  ;;  %v6795_v36 = vpop.f32.mrf.mxu1  ;;  %v3493_v6 = vld [vmem:[%s9581_s2 + $0xc4] sm:$0x3]  ;;  %v3495_v37 = vld [vmem:[%s9581_s2 + $0xc8] sm:$0x3] }
 0x3e2   :  { %v4411_v18 = vrot.slane %v4410_v55, 2  ;;  %v4418_v28 = vrot.slane %v4417_v7, 2  ;;  %v4425_v59 = vrot.slane %v4424_v62, 2  ;;  %v4431_v14 = vadd.f32 %v4430_v4, %v4429_v54  ;;  %v3496_v54 = vld [vmem:[%s9581_s2 + $0xca] sm:$0x3] }
 0x3e3   :  { %v4385_v16 = vrot.slane %v4384_v41, 1  ;;  %v4392_v8 = vrot.slane %v4391_v13, 1  ;;  %v4399_v58 = vrot.slane %v4398_v24, 1  ;;  %v4405_v10 = vadd.f32 %v4404_v57, %v4403_v39  ;;  %v3497_v39 = vld [vmem:[%s9581_s2 + $0xcc] sm:$0x3] }
 0x3e4   :  { %v4412_v0 = vadd.f32 %v4411_v18, %v4410_v55  ;;  %v4419_v25 = vadd.f32 %v4418_v28, %v4417_v7  ;;  %v4426_v11 = vadd.f32 %v4425_v59, %v4424_v62  ;;  %v4432_v31 = vrot.slane %v4431_v14, 2 }
 0x3e5   :  { %v4386_v17 = vadd.f32 %v4385_v16, %v4384_v41  ;;  %v4393_v61 = vadd.f32 %v4392_v8, %v4391_v13  ;;  %v4400_v27 = vadd.f32 %v4399_v58, %v4398_v24  ;;  %v4406_v46 = vrot.slane %v4405_v10, 1  ;;  %v3498_v16 = vld [vmem:[%s9581_s2 + $0xce] sm:$0x3] }
 0x3e6   :  { %v4413_v56 = vrot.slane %v4412_v0, 1  ;;  %v4420_v52 = vrot.slane %v4419_v25, 1  ;;  %v4427_v21 = vrot.slane %v4426_v11, 1  ;;  %v4433_v29 = vadd.f32 %v4432_v31, %v4431_v14 }
 0x3e7   :  { %v4652_v50 = vmul.f32 0.25, %v4386_v17  ;;  %v4653_v23 = vmul.f32 0.25, %v4393_v61  ;;  %v4654_v19 = vmul.f32 0.25, %v4400_v27  ;;  %v4407_v1 = vadd.f32 %v4406_v46, %v4405_v10 }
 0x3e8   :  { %v4414_v5 = vadd.f32 %v4413_v56, %v4412_v0  ;;  %v4421_v48 = vadd.f32 %v4420_v52, %v4419_v25  ;;  %v4428_v33 = vadd.f32 %v4427_v21, %v4426_v11  ;;  %v4434_v40 = vrot.slane %v4433_v29, 1 }
 0x3e9   :  { %v6455_v32 = vunpack.c.h.bf16 %v9359_v53  ;;  %v6487_v2 = vunpack.c.h.bf16 %v9364_v43  ;;  %v4655_v30 = vmul.f32 0.25, %v4407_v1  ;;  %v9380_v45 = vadd.f32 %v9287_v34, %v6835_v15 }
 0x3ea   :  { %v4656_v3 = vmul.f32 0.25, %v4414_v5  ;;  %v4657_v44 = vmul.f32 0.25, %v4421_v48  ;;  %v4435_v38 = vadd.f32 %v4434_v40, %v4433_v29  ;;  %v6519_v26 = vunpack.c.h.bf16 %v9369_v49 }
 0x3eb   :  { %v5318_v20 = vadd.f32 %v6487_v2, %v6455_v32  ;;  %v5588_v9 = vsel %vm2879_vm1, %v4653_v23, %v4652_v50  ;;  %v4658_v35 = vmul.f32 0.25, %v4428_v33  ;;  %v3619_v55 = vunpack.c.l.bf16 %v3491_v42 }
 0x3ec   :  { %v5589_v12 = vsel %vm2881_vm2, %v4654_v19, %v5588_v9  ;;  %v3620_v7 = vunpack.c.l.bf16 %v3492_v63  ;;  %v4659_v62 = vmul.f32 0.25, %v4435_v38  ;;  %v9402_v13 = vadd.f32 %v6795_v36, %v9148_v60 }
 0x3ed   :  { %v5590_v41 = vsel %vm2883_vm3, %v4655_v30, %v5589_v12  ;;  %v3621_v24 = vunpack.c.l.bf16 %v3493_v6  ;;  %v5366_v4 = vadd.f32 %v6519_v26, %v5318_v20  ;;  %v3622_v18 = vunpack.c.l.bf16 %v3494_v47 }
 0x3ee   :  { %v5591_v57 = vsel %vm2885_vm4, %v4656_v3, %v5590_v41  ;;  %v3623_v28 = vunpack.c.l.bf16 %v3495_v37  ;;  %v3624_v8 = vunpack.c.l.bf16 %v3496_v54  ;;  %v3625_v58 = vunpack.c.l.bf16 %v3497_v39 }
 0x3ef   :  { %v5592_v59 = vsel %vm2887_vm5, %v4657_v44, %v5591_v57  ;;  %v4324_v14 = vsel %vm3651_vm9, %v3619_v55, 0.0  ;;  %v4331_v25 = vsel %vm3651_vm9, %v3620_v7, 0.0  ;;  %v4338_v11 = vsel %vm3651_vm9, %v3621_v24, 0.0 }
 0x3f0   :  { %v5593_v10 = vsel %vm2889_vm6, %v4658_v35, %v5592_v59  ;;  %v4325_v0 = vrot.slane %v4324_v14, 4  ;;  %v4332_v61 = vrot.slane %v4331_v25, 4  ;;  %v4339_v27 = vrot.slane %v4338_v11, 4 }
 0x3f1   :  { %v5594_v17 = vsel %vm2891_vm7, %v4659_v62, %v5593_v10  ;;  %v4345_v31 = vsel %vm3651_vm9, %v3622_v18, 0.0  ;;  %v3626_v46 = vunpack.c.l.bf16 %v3498_v16  ;;  %v4352_v21 = vsel %vm3651_vm9, %v3623_v28, 0.0 }
 0x3f2   :  { %v4326_v56 = vadd.f32 %v4325_v0, %v4324_v14  ;;  %v4346_v52 = vrot.slane %v4345_v31, 4  ;;  %v4333_v29 = vadd.f32 %v4332_v61, %v4331_v25  ;;  %v4340_v50 = vadd.f32 %v4339_v27, %v4338_v11 }
 0x3f3   :  { %v4353_v23 = vrot.slane %v4352_v21, 4  ;;  %v4359_v19 = vsel %vm3651_vm9, %v3624_v8, 0.0  ;;  %v5638_v15 = vadd.f32 %v5594_v17, %v5366_v4  ;;  %v4366_v2 = vsel %vm3651_vm9, %v3625_v58, 0.0 }
 0x3f4   :  { %v4327_v1 = vrot.slane %v4326_v56, 2  ;;  %v4347_v5 = vadd.f32 %v4346_v52, %v4345_v31  ;;  %v4360_v48 = vrot.slane %v4359_v19, 4  ;;  %v4334_v33 = vrot.slane %v4333_v29, 2 }
 0x3f5   :  { %v4341_v40 = vrot.slane %v4340_v50, 2  ;;  %v4354_v32 = vadd.f32 %v4353_v23, %v4352_v21  ;;  %v4367_v3 = vrot.slane %v4366_v2, 4  ;;  %v4373_v38 = vsel %vm3651_vm9, %v3626_v46, 0.0 }
 0x3f6   :  { %v4328_v42 = vadd.f32 %v4327_v1, %v4326_v56  ;;  %v4348_v63 = vrot.slane %v4347_v5, 2  ;;  %v4361_v30 = vadd.f32 %v4360_v48, %v4359_v19  ;;  %v4335_v44 = vadd.f32 %v4334_v33, %v4333_v29  ;;  %v3515_v56 = vld [vmem:[%s9581_s2 + $0xf0] sm:$0x3]  ;;  %v3519_v33 = vld [vmem:[%s9581_s2 + $0xf8] sm:$0x3] }
 0x3f7   :  { %v4342_v36 = vadd.f32 %v4341_v40, %v4340_v50  ;;  %v4355_v6 = vrot.slane %v4354_v32, 2  ;;  %v4368_v47 = vadd.f32 %v4367_v3, %v4366_v2  ;;  %v4374_v54 = vrot.slane %v4373_v38, 4 }
 0x3f8   :  { %v4329_v20 = vrot.slane %v4328_v42, 1  ;;  %v4349_v26 = vadd.f32 %v4348_v63, %v4347_v5  ;;  %v4362_v9 = vrot.slane %v4361_v30, 2  ;;  %v4336_v37 = vrot.slane %v4335_v44, 1  ;;  %v3376_v63 = vpop.f32.mrf.mxu1 }
 0x3f9   :  { %v4343_v35 = vrot.slane %v4342_v36, 1  ;;  %v4356_v12 = vadd.f32 %v4355_v6, %v4354_v32  ;;  %v4369_v62 = vrot.slane %v4368_v47, 2  ;;  %v4375_v57 = vadd.f32 %v4374_v54, %v4373_v38 }
 0x3fa   :  { %v4330_v39 = vadd.f32 %v4329_v20, %v4328_v42  ;;  %v4350_v55 = vrot.slane %v4349_v26, 1  ;;  %v4363_v7 = vadd.f32 %v4362_v9, %v4361_v30  ;;  %v4337_v41 = vadd.f32 %v4336_v37, %v4335_v44  ;;  %v3520_v30 = vld [vmem:[%s9581_s2 + $0xfa] sm:$0x3]  ;;  %v3521_v9 = vld [vmem:[%s9581_s2 + $0xfc] sm:$0x3] }
 0x3fb   :  { %v4344_v24 = vadd.f32 %v4343_v35, %v4342_v36  ;;  %v4357_v4 = vrot.slane %v4356_v12, 1  ;;  %v4370_v59 = vadd.f32 %v4369_v62, %v4368_v47  ;;  %v4376_v58 = vrot.slane %v4375_v57, 2 }
 0x3fc   :  { %v4351_v18 = vadd.f32 %v4350_v55, %v4349_v26  ;;  %v4364_v28 = vrot.slane %v4363_v7, 1  ;;  %v4644_v16 = vmul.f32 0.25, %v4330_v39  ;;  %v4645_v14 = vmul.f32 0.25, %v4337_v41  ;;  %v3522_v55 = vld [vmem:[%s9581_s2 + $0xfe] sm:$0x3] }
 0x3fd   :  { %v4358_v8 = vadd.f32 %v4357_v4, %v4356_v12  ;;  %v4646_v10 = vmul.f32 0.25, %v4344_v24  ;;  %v5654_v0 = vadd.f32 %v5638_v15, %v9380_v45  ;;  %v4371_v11 = vrot.slane %v4370_v59, 1  ;;  %v3516_v45 = vld [vmem:[%s9581_s2 + $0xf2] sm:$0x3]  ;;  %v3518_v15 = vld [vmem:[%s9581_s2 + $0xf6] sm:$0x3] }
 0x3fe   :  { %v4365_v25 = vadd.f32 %v4364_v28, %v4363_v7  ;;  %v4647_v17 = vmul.f32 0.25, %v4351_v18  ;;  %v4377_v61 = vadd.f32 %v4376_v58, %v4375_v57  ;;  %v6454_v31 = vunpack.c.l.bf16 %v9359_v53 }
 0x3ff   :  { %v4648_v27 = vmul.f32 0.25, %v4358_v8  ;;  %v6486_v46 = vunpack.c.l.bf16 %v9364_v43  ;;  %v4372_v52 = vadd.f32 %v4371_v11, %v4370_v59  ;;  %v6518_v29 = vunpack.c.l.bf16 %v9369_v49  ;;  %v3517_v43 = vld [vmem:[%s9581_s2 + $0xf4] sm:$0x3]  ;;  %v5222_v49 = vpop.f32.mrf.mxu0 }
 0x400   :  { %v4649_v21 = vmul.f32 0.25, %v4365_v25  ;;  %v5581_v50 = vsel %vm2879_vm1, %v4645_v14, %v4644_v16  ;;  %v4378_v23 = vrot.slane %v4377_v61, 1  ;;  %v5670_v48 = vmul.f32 %v5654_v0, %v9402_v13 }
 0x401   :  { %v5317_v19 = vadd.f32 %v6486_v46, %v6454_v31  ;;  %v5582_v53 = vsel %vm2881_vm2, %v4646_v10, %v5581_v50  ;;  %v4650_v1 = vmul.f32 0.25, %v4372_v52  ;;  %v3643_v40 = vunpack.c.l.bf16 %v3515_v56 }
 0x402   :  { %v5583_v5 = vsel %vm2883_vm3, %v4647_v17, %v5582_v53  ;;  %v4379_v32 = vadd.f32 %v4378_v23, %v4377_v61  ;;  %v3644_v3 = vunpack.c.l.bf16 %v3516_v45  ;;  %v5712_v36 = vsel %vm307_vm0, %v5670_v48, 0.0 }
 0x403   :  { %v5365_v2 = vadd.f32 %v6518_v29, %v5317_v19  ;;  %v5584_v42 = vsel %vm2885_vm4, %v4648_v27, %v5583_v5  ;;  %v3645_v13 = vunpack.c.l.bf16 %v3517_v43  ;;  %v3646_v6 = vunpack.c.l.bf16 %v3518_v15  ;;  %5713 = vadd.xlane.f32.xlu0 %v5712_v36  ;;  %v6838_v36 = vpop.f32.mrf.mxu0 }
 0x404   :  { %v5585_v44 = vsel %vm2887_vm5, %v4649_v21, %v5584_v42  ;;  %v4651_v38 = vmul.f32 0.25, %v4379_v32  ;;  %v5223_v20 = vadd.f32 %v9287_v34, %v5222_v49  ;;  %v3647_v47 = vunpack.c.l.bf16 %v3519_v33 }
 0x405   :  { %v5586_v26 = vsel %vm2889_vm6, %v4650_v1, %v5585_v44  ;;  %v3377_v37 = vadd.f32 %v9148_v60, %v3376_v63  ;;  %v3648_v35 = vunpack.c.l.bf16 %v3520_v30  ;;  %v4492_v12 = vsel %vm3651_vm9, %v3643_v40, 0.0 }
 0x406   :  { %v4499_v54 = vsel %vm3651_vm9, %v3644_v3, 0.0  ;;  %v5587_v39 = vsel %vm2891_vm7, %v4651_v38, %v5586_v26  ;;  %v4493_v7 = vrot.slane %v4492_v12, 4  ;;  %v4506_v41 = vsel %vm3651_vm9, %v3645_v13, 0.0  ;;  %v9470_v13 = vld [vmem:[%s9582_s3 + $0x38] sm:$0xff]  }
 0x407   :  { %v4500_v62 = vrot.slane %v4499_v54, 4  ;;  %v5637_v24 = vadd.f32 %v5587_v39, %v5365_v2  ;;  %v3649_v4 = vunpack.c.l.bf16 %v3521_v9  ;;  %v4507_v57 = vrot.slane %v4506_v41, 4  ;;  %v9475_v9 = vld [vmem:[%s9583_s4 + $0x38] sm:$0xff]   ;;  %v3507_v39 = vld [vmem:[%s9581_s2 + $0xe0] sm:$0x3] }
 0x408   :  { %v4513_v60 = vsel %vm3651_vm9, %v3646_v6, 0.0  ;;  %v4494_v18 = vadd.f32 %v4493_v7, %v4492_v12  ;;  %v4520_v16 = vsel %vm3651_vm9, %v3647_v47, 0.0  ;;  %v3650_v58 = vunpack.c.l.bf16 %v3522_v55 }
 0x409   :  { %v4501_v28 = vadd.f32 %v4500_v62, %v4499_v54  ;;  %v4514_v59 = vrot.slane %v4513_v60, 4  ;;  %v5653_v8 = vadd.f32 %v5637_v24, %v5223_v20  ;;  %v4508_v14 = vadd.f32 %v4507_v57, %v4506_v41  ;;  %v9480_v54 = vld [vmem:[%s9584_s5 + $0x38] sm:$0xff]  }
 0x40a   :  { %v4521_v10 = vrot.slane %v4520_v16, 4  ;;  %v4495_v0 = vrot.slane %v4494_v18, 2  ;;  %v4527_v17 = vsel %vm3651_vm9, %v3648_v35, 0.0  ;;  %v4534_v29 = vsel %vm3651_vm9, %v3649_v4, 0.0 }
 0x40b   :  { %v4502_v25 = vrot.slane %v4501_v28, 2  ;;  %v4515_v11 = vadd.f32 %v4514_v59, %v4513_v60  ;;  %v5669_v61 = vmul.f32 %v5653_v8, %v3377_v37  ;;  %v4509_v27 = vrot.slane %v4508_v14, 2 }
 0x40c   :  { %v4522_v31 = vadd.f32 %v4521_v10, %v4520_v16  ;;  %v4528_v46 = vrot.slane %v4527_v17, 4  ;;  %v4496_v56 = vadd.f32 %v4495_v0, %v4494_v18  ;;  %v4535_v1 = vrot.slane %v4534_v29, 4  ;;  %v3508_v18 = vld [vmem:[%s9581_s2 + $0xe2] sm:$0x3] }
 0x40d   :  { %v4503_v52 = vadd.f32 %v4502_v25, %v4501_v28  ;;  %v4516_v21 = vrot.slane %v4515_v11, 2  ;;  %v5709_v50 = vsel %vm307_vm0, %v5669_v61, 0.0  ;;  %v4510_v45 = vadd.f32 %v4509_v27, %v4508_v14  ;;  %v3509_v28 = vld [vmem:[%s9581_s2 + $0xe4] sm:$0x3]  ;;  %v3512_v61 = vld [vmem:[%s9581_s2 + $0xea] sm:$0x3] }
 0x40e   :  { %v4523_v23 = vrot.slane %v4522_v31, 2  ;;  %v4529_v19 = vadd.f32 %v4528_v46, %v4527_v17  ;;  %5710 = vadd.xlane.f32.xlu1 %v5709_v50  ;;  %v4497_v53 = vrot.slane %v4496_v56, 1  ;;  %v4541_v33 = vsel %vm3651_vm9, %v3650_v58, 0.0  ;;  %v3510_v58 = vld [vmem:[%s9581_s2 + $0xe6] sm:$0x3] }
 0x40f   :  { %v4504_v43 = vrot.slane %v4503_v52, 1  ;;  %v4517_v15 = vadd.f32 %v4516_v21, %v4515_v11  ;;  %v4511_v49 = vrot.slane %v4510_v45, 1  ;;  %v4536_v42 = vadd.f32 %v4535_v1, %v4534_v29  ;;  %v3511_v17 = vld [vmem:[%s9581_s2 + $0xe8] sm:$0x3]  ;;  %v3513_v46 = vld [vmem:[%s9581_s2 + $0xec] sm:$0x3] }
 0x410   :  { %v4524_v5 = vadd.f32 %v4523_v23, %v4522_v31  ;;  %v4530_v48 = vrot.slane %v4529_v19, 2  ;;  %v4498_v40 = vadd.f32 %v4497_v53, %v4496_v56  ;;  %v4542_v44 = vrot.slane %v4541_v33, 4  ;;  %v3514_v56 = vld [vmem:[%s9581_s2 + $0xee] sm:$0x3] }
 0x411   :  { %v4505_v32 = vadd.f32 %v4504_v43, %v4503_v52  ;;  %v4518_v2 = vrot.slane %v4517_v15, 1  ;;  %v4512_v63 = vadd.f32 %v4511_v49, %v4510_v45  ;;  %v4537_v38 = vrot.slane %v4536_v42, 2 }
 0x412   :  { %v4525_v30 = vrot.slane %v4524_v5, 1  ;;  %v4531_v3 = vadd.f32 %v4530_v48, %v4529_v19  ;;  %v4668_v20 = vmul.f32 0.25, %v4498_v40  ;;  %v4543_v35 = vadd.f32 %v4542_v44, %v4541_v33 }
 0x413   :  { %v4519_v6 = vadd.f32 %v4518_v2, %v4517_v15  ;;  %v4669_v26 = vmul.f32 0.25, %v4505_v32  ;;  %v4670_v12 = vmul.f32 0.25, %v4512_v63  ;;  %v4538_v55 = vadd.f32 %v4537_v38, %v4536_v42 }
 0x414   :  { %v4526_v47 = vadd.f32 %v4525_v30, %v4524_v5  ;;  %v4532_v37 = vrot.slane %v4531_v3, 1  ;;  %v5238_v62 = vadd.f32 %v9287_v34, %v6838_v36  ;;  %v6459_v41 = vunpack.c.h.bf16 %v9470_v13 }
 0x415   :  { %v4671_v7 = vmul.f32 0.25, %v4519_v6  ;;  %v4544_v4 = vrot.slane %v4543_v35, 2  ;;  %v6491_v60 = vunpack.c.h.bf16 %v9475_v9  ;;  %v4539_v59 = vrot.slane %v4538_v55, 1 }
 0x416   :  { %v4533_v24 = vadd.f32 %v4532_v37, %v4531_v3  ;;  %v4672_v57 = vmul.f32 0.25, %v4526_v47  ;;  %v6523_v16 = vunpack.c.h.bf16 %v9480_v54  ;;  %v5602_v8 = vsel %vm2879_vm1, %v4669_v26, %v4668_v20 }
 0x417   :  { %v3635_v14 = vunpack.c.l.bf16 %v3507_v39  ;;  %v4545_v10 = vadd.f32 %v4544_v4, %v4543_v35  ;;  %v5320_v25 = vadd.f32 %v6491_v60, %v6459_v41  ;;  %v5603_v11 = vsel %vm2881_vm2, %v4670_v12, %v5602_v8 }
 0x418   :  { %v4673_v0 = vmul.f32 0.25, %v4533_v24  ;;  %v4540_v27 = vadd.f32 %v4539_v59, %v4538_v55  ;;  %v5604_v31 = vsel %vm2883_vm3, %v4671_v7, %v5603_v11  ;;  %v3636_v52 = vunpack.c.l.bf16 %v3508_v18 }
 0x419   :  { %v3637_v21 = vunpack.c.l.bf16 %v3509_v28  ;;  %v4546_v29 = vrot.slane %v4545_v10, 1  ;;  %v5368_v50 = vadd.f32 %v6523_v16, %v5320_v25  ;;  %v5605_v45 = vsel %vm2885_vm4, %v4672_v57, %v5604_v31 }
 0x41a   :  { %v3638_v23 = vunpack.c.l.bf16 %v3510_v58  ;;  %v4674_v19 = vmul.f32 0.25, %v4540_v27  ;;  %v5606_v53 = vsel %vm2887_vm5, %v4673_v0, %v5605_v45  ;;  %v3639_v43 = vunpack.c.l.bf16 %v3511_v17 }
 0x41b   :  { %v3640_v15 = vunpack.c.l.bf16 %v3512_v61  ;;  %v4547_v1 = vadd.f32 %v4546_v29, %v4545_v10  ;;  %v3641_v49 = vunpack.c.l.bf16 %v3513_v46  ;;  %v3642_v5 = vunpack.c.l.bf16 %v3514_v56 }
 0x41c   :  { %v4436_v48 = vsel %vm3651_vm9, %v3635_v14, 0.0  ;;  %v5607_v33 = vsel %vm2889_vm6, %v4674_v19, %v5606_v53  ;;  %v4443_v32 = vsel %vm3651_vm9, %v3636_v52, 0.0  ;;  %v4450_v2 = vsel %vm3651_vm9, %v3637_v21, 0.0 }
 0x41d   :  { %v4437_v40 = vrot.slane %v4436_v48, 4  ;;  %v4675_v42 = vmul.f32 0.25, %v4547_v1  ;;  %v4444_v63 = vrot.slane %v4443_v32, 4  ;;  %v4451_v30 = vrot.slane %v4450_v2, 4 }
 0x41e   :  { %v4457_v3 = vsel %vm3651_vm9, %v3638_v23, 0.0  ;;  %v4464_v6 = vsel %vm3651_vm9, %v3639_v43, 0.0  ;;  %v4471_v38 = vsel %vm3651_vm9, %v3640_v15, 0.0  ;;  %v4478_v4 = vsel %vm3651_vm9, %v3641_v49, 0.0  ;;  %v6798_v43 = vpop.f32.mrf.mxu1 }
 0x41f   :  { %v4438_v44 = vadd.f32 %v4437_v40, %v4436_v48  ;;  %v4458_v36 = vrot.slane %v4457_v3, 4  ;;  %v5608_v20 = vsel %vm2891_vm7, %v4675_v42, %v5607_v33  ;;  %v4445_v26 = vadd.f32 %v4444_v63, %v4443_v32  ;;  %v6885_v48 = vld [vmem:[%s9593_s14] ss:$0 sm:$0xff]  ;;  %s6911_s14 = smov [#allocation2]  }
 0x420   :  { %v4452_v47 = vadd.f32 %v4451_v30, %v4450_v2  ;;  %v4465_v37 = vrot.slane %v4464_v6, 4  ;;  %v5640_v35 = vadd.f32 %v5608_v20, %v5368_v50  ;;  %v4472_v55 = vrot.slane %v4471_v38, 4  ;;  %s5856_s8 = sshll.u32 %s6911_s14, 4  ;;  %s5857_s8 = int_to_ptr.vmem [resolvable:$true] %s5856_s8 }
 0x421   :  { %v4439_v12 = vrot.slane %v4438_v44, 2  ;;  %v4459_v39 = vadd.f32 %v4458_v36, %v4457_v3  ;;  %v4446_v7 = vrot.slane %v4445_v26, 2  ;;  %v4479_v58 = vrot.slane %v4478_v4, 4  ;;  %s6886_s10 = scalar_lea.vmem %s5857_s8, 16  ;;  %s6890_s24 = scalar_lea.vmem %s5857_s8, 32 }
 0x422   :  { %v4453_v41 = vrot.slane %v4452_v47, 2  ;;  %v4466_v24 = vadd.f32 %v4465_v37, %v4464_v6  ;;  %v5656_v57 = vadd.f32 %v5640_v35, %v5238_v62  ;;  %v4473_v28 = vadd.f32 %v4472_v55, %v4471_v38  ;;  %p6887_p0 = scmp.ne.s32.totalorder %s5857_s8, %s6886_s10  ;;  %p6891_p1 = scmp.lt.s32.totalorder %s5857_s8, %s5857_s8 }
 0x423   :  { %v4440_v60 = vadd.f32 %v4439_v12, %v4438_v44  ;;  %v4460_v18 = vrot.slane %v4459_v39, 2  ;;  %v4447_v59 = vadd.f32 %v4446_v7, %v4445_v26  ;;  %v4485_v25 = vsel %vm3651_vm9, %v3642_v5, 0.0  ;;  %v5232_v7 = vpop.f32.mrf.mxu0  ;;  %p6892_p2 = scmp.lt.s32.totalorder %s6890_s24, %s6886_s10 }
 0x424   :  { %v4454_v16 = vadd.f32 %v4453_v41, %v4452_v47  ;;  %v4467_v8 = vrot.slane %v4466_v24, 2  ;;  %v4474_v0 = vrot.slane %v4473_v28, 2  ;;  %v4480_v27 = vadd.f32 %v4479_v58, %v4478_v4 }
 0x425   :  { %v4441_v14 = vrot.slane %v4440_v60, 1  ;;  %v4461_v10 = vadd.f32 %v4460_v18, %v4459_v39  ;;  %v4448_v11 = vrot.slane %v4447_v59, 1  ;;  %v4486_v62 = vrot.slane %v4485_v25, 4  ;;  %p6893_p3 = por %p6892_p2, %p6891_p1 }
 0x426   :  { %v4455_v17 = vrot.slane %v4454_v16, 1  ;;  %v4468_v61 = vadd.f32 %v4467_v8, %v4466_v24  ;;  %v4475_v56 = vadd.f32 %v4474_v0, %v4473_v28  ;;  %v4481_v50 = vrot.slane %v4480_v27, 2 }
 0x427   :  { %v4442_v31 = vadd.f32 %v4441_v14, %v4440_v60  ;;  %v4462_v46 = vrot.slane %v4461_v10, 1  ;;  %v4449_v52 = vadd.f32 %v4448_v11, %v4447_v59  ;;  %v4487_v19 = vadd.f32 %v4486_v62, %v4485_v25  ;;  %p6894_p4 = pnand %p6893_p3, %p6887_p0 }
 0x428   :  { %v4456_v21 = vadd.f32 %v4455_v17, %v4454_v16  ;;  %v4469_v29 = vrot.slane %v4468_v61, 1  ;;  %v4476_v23 = vrot.slane %v4475_v56, 1  ;;  %v4482_v1 = vadd.f32 %v4481_v50, %v4480_v27 }
 0x429   :  { %v4463_v45 = vadd.f32 %v4462_v46, %v4461_v10  ;;  %v4660_v53 = vmul.f32 0.25, %v4442_v31  ;;  %v4661_v49 = vmul.f32 0.25, %v4449_v52  ;;  %v3392_v33 = vadd.f32 %v6885_v48, %v6798_v43 }
 0x42a   :  { %v4470_v15 = vadd.f32 %v4469_v29, %v4468_v61  ;;  %v4662_v5 = vmul.f32 0.25, %v4456_v21  ;;  %v4477_v40 = vadd.f32 %v4476_v23, %v4475_v56  ;;  %v4488_v32 = vrot.slane %v4487_v19, 2 }
 0x42b   :  { %v4663_v2 = vmul.f32 0.25, %v4463_v45  ;;  %v4483_v42 = vrot.slane %v4482_v1, 1  ;;  %v6458_v30 = vunpack.c.l.bf16 %v9470_v13  ;;  %v6490_v3 = vunpack.c.l.bf16 %v9475_v9 }
 0x42c   :  { %v4664_v63 = vmul.f32 0.25, %v4470_v15  ;;  %v4489_v44 = vadd.f32 %v4488_v32, %v4487_v19  ;;  %v4665_v36 = vmul.f32 0.25, %v4477_v40  ;;  %v6522_v6 = vunpack.c.l.bf16 %v9480_v54 }
 0x42d   :  { %v5595_v38 = vsel %vm2879_vm1, %v4661_v49, %v4660_v53  ;;  %v4484_v20 = vadd.f32 %v4483_v42, %v4482_v1  ;;  %v5319_v26 = vadd.f32 %v6490_v3, %v6458_v30  ;;  %v5672_v37 = vmul.f32 %v5656_v57, %v3392_v33  ;;  %v3386_v57 = vpop.f32.mrf.mxu1 }
 0x42e   :  { %v5596_v47 = vsel %vm2881_vm2, %v4662_v5, %v5595_v38  ;;  %v4490_v35 = vrot.slane %v4489_v44, 1  ;;  %v5233_v60 = vadd.f32 %v9287_v34, %v5232_v7  ;;  %v3387_v59 = vadd.f32 %v6885_v48, %v3386_v57  ;;  %v5678_v10 = vpop.xlane.xlu0 %5677 }
 0x42f   :  { %v5597_v12 = vsel %vm2883_vm3, %v4663_v2, %v5596_v47  ;;  %v4666_v39 = vmul.f32 0.25, %v4484_v20  ;;  %v5718_v13 = vsel %vm307_vm0, %v5672_v37, 0.0  ;;  %v5367_v54 = vadd.f32 %v6522_v6, %v5319_v26 }
 0x430   :  { %v5598_v55 = vsel %vm2885_vm4, %v4664_v63, %v5597_v12  ;;  %v4491_v9 = vadd.f32 %v4490_v35, %v4489_v44  ;;  %5719 = vadd.xlane.f32.xlu0 %v5718_v13  ;;  %v5675_v14 = vpop.xlane.xlu1 %5674  ;;  %v9542_v0 = vand.u32 127, %v4773_v22  ;;  %vm5797_vm1 = vcmask 589312  }
 0x431   :  { %v5599_v41 = vsel %vm2887_vm5, %v4665_v36, %v5598_v55  ;;  %vm5804_vm2 = vcmask 654912   ;;  %vm5811_vm3 = vcmask 720512   ;;  %vm5818_vm4 = vcmask 786112  }
 0x432   :  { %v5600_v24 = vsel %vm2889_vm6, %v4666_v39, %v5599_v41  ;;  %v4667_v4 = vmul.f32 0.25, %v4491_v9  ;;  %v5684_v11 = vpop.xlane.xlu0 %5683  ;;  %v5750_v17 = vadd.s32 4294967280, %v9542_v0  ;;  %v5743_v34 = vadd.s32 4294967288, %v9542_v0 }
 0x433   :  { %v5741_v61 = vsub.s32 %v9542_v0, %v8412_v51  ;;  %v5764_v46 = vadd.s32 4294967264, %v9542_v0  ;;  %v5757_v62 = vadd.s32 4294967272, %v9542_v0  ;;  %v5778_v50 = vadd.s32 4294967248, %v9542_v0 }
 0x434   :  { %v5601_v18 = vsel %vm2891_vm7, %v4667_v4, %v5600_v24  ;;  %v5753_v31 = vsub.s32 %v5750_v17, %v8412_v51  ;;  %v5746_v56 = vsub.s32 %v5743_v34, %v8412_v51  ;;  %v5771_v19 = vadd.s32 4294967256, %v9542_v0 }
 0x435   :  { %v5639_v28 = vadd.f32 %v5601_v18, %v5367_v54  ;;  %v5742_v52 = vrot.slane %v5675_v14, %v5741_v61  ;;  %v5767_v29 = vsub.s32 %v5764_v46, %v8412_v51  ;;  %v5760_v23 = vsub.s32 %v5757_v62, %v8412_v51 }
 0x436   :  { %v5747_v45 = vrot.slane %v5678_v10, %v5746_v56  ;;  %v5781_v5 = vsub.s32 %v5778_v50, %v8412_v51  ;;  %v5792_v48 = vadd.s32 4294967232, %v9542_v0  ;;  %v5774_v40 = vsub.s32 %v5771_v19, %v8412_v51 }
 0x437   :  { %v5655_v16 = vadd.f32 %v5639_v28, %v5233_v60  ;;  %v5761_v33 = vrot.slane %v5684_v11, %v5760_v23  ;;  %v5785_v32 = vadd.s32 4294967240, %v9542_v0  ;;  %v5806_v44 = vadd.s32 4294967216, %v9542_v0 }
 0x438   :  { %v5749_v43 = vsel %vm5748_vm10, %v5747_v45, %v5742_v52  ;;  %v5795_v3 = vsub.s32 %v5792_v48, %v8412_v51  ;;  %v5799_v38 = vadd.s32 4294967224, %v9542_v0  ;;  %v5820_v12 = vadd.s32 4294967200, %v9542_v0 }
 0x439   :  { %v5671_v8 = vmul.f32 %v5655_v16, %v3387_v59  ;;  %v5788_v6 = vsub.s32 %v5785_v32, %v8412_v51  ;;  %v5809_v35 = vsub.s32 %v5806_v44, %v8412_v51  ;;  %v5813_v13 = vadd.s32 4294967208, %v9542_v0 }
 0x43a   :  { %v5802_v55 = vsub.s32 %v5799_v38, %v8412_v51  ;;  %v5823_v4 = vsub.s32 %v5820_v12, %v8412_v51  ;;  %v5827_v18 = vadd.s32 4294967192, %v9542_v0  ;;  %v5834_v59 = vadd.s32 4294967184, %v9542_v0 }
 0x43b   :  { %v5715_v58 = vsel %vm307_vm0, %v5671_v8, 0.0  ;;  %vm5790_vm0 = vcmask 523712   ;;  %v5816_v57 = vsub.s32 %v5813_v13, %v8412_v51  ;;  %v5841_v8 = vadd.s32 4294967176, %v9542_v0 }
 0x43c   :  { %5716 = vadd.xlane.f32.xlu1 %v5715_v58  ;;  %v5830_v11 = vsub.s32 %v5827_v18, %v8412_v51  ;;  %vm5825_vm5 = vcmask 851712   ;;  %v5837_v17 = vsub.s32 %v5834_v59, %v8412_v51  ;;  %vm5832_vm6 = vcmask 917312  }
 0x43d   :  { %v5844_v61 = vsub.s32 %v5841_v8, %v8412_v51  ;;  %vm5839_vm7 = vcmask 982912  }
 0x446   :  { %v5681_v25 = vpop.xlane.xlu1 %5680 }
 0x447   :  { %v5754_v21 = vrot.slane %v5681_v25, %v5753_v31 }
 0x449   :  { %v5756_v15 = vsel %vm5755_vm11, %v5754_v21, %v5749_v43 }
 0x44a   :  { %v5763_v2 = vsel %vm5762_vm12, %v5761_v33, %v5756_v15 }
 0x45c   :  { %v5690_v22 = vpop.xlane.xlu0 %5689 }
 0x45d   :  { %v5775_v36 = vrot.slane %v5690_v22, %v5774_v40 }
 0x45e   :  { %v5687_v27 = vpop.xlane.xlu1 %5686 }
 0x45f   :  { %v5768_v1 = vrot.slane %v5687_v27, %v5767_v29 }
 0x460   :  { %v5696_v49 = vpop.xlane.xlu0 %5695 }
 0x461   :  { %v5770_v63 = vsel %vm5769_vm13, %v5768_v1, %v5763_v2  ;;  %v5789_v39 = vrot.slane %v5696_v49, %v5788_v6 }
 0x462   :  { %v5693_v53 = vpop.xlane.xlu1 %5692  ;;  %v5777_v26 = vsel %vm5776_vm14, %v5775_v36, %v5770_v63 }
 0x463   :  { %v5782_v30 = vrot.slane %v5693_v53, %v5781_v5 }
 0x464   :  { %v5702_v20 = vpop.xlane.xlu0 %5701 }
 0x465   :  { %v5784_v47 = vsel %vm5783_vm15, %v5782_v30, %v5777_v26  ;;  %v5803_v60 = vrot.slane %v5702_v20, %v5802_v55 }
 0x466   :  { %v5699_v42 = vpop.xlane.xlu1 %5698  ;;  %v5791_v7 = vsel %vm5790_vm0, %v5789_v39, %v5784_v47 }
 0x467   :  { %v5796_v37 = vrot.slane %v5699_v42, %v5795_v3 }
 0x468   :  { %v5708_v54 = vpop.xlane.xlu0 %5707 }
 0x469   :  { %v5798_v41 = vsel %vm5797_vm1, %v5796_v37, %v5791_v7  ;;  %v5817_v25 = vrot.slane %v5708_v54, %v5816_v57 }
 0x46a   :  { %v5705_v9 = vpop.xlane.xlu1 %5704  ;;  %v5805_v16 = vsel %vm5804_vm2, %v5803_v60, %v5798_v41 }
 0x46b   :  { %v5810_v24 = vrot.slane %v5705_v9, %v5809_v35 }
 0x46d   :  { %v5812_v58 = vsel %vm5811_vm3, %v5810_v24, %v5805_v16 }
 0x46e   :  { %v5819_v34 = vsel %vm5818_vm4, %v5817_v25, %v5812_v58 }
 0x48c   :  { %v5714_v14 = vpop.xlane.xlu0 %5713 }
 0x48d   :  { %v5831_v46 = vrot.slane %v5714_v14, %v5830_v11 }
 0x497   :  { %v5711_v28 = vpop.xlane.xlu1 %5710 }
 0x498   :  { %v5824_v10 = vrot.slane %v5711_v28, %v5823_v4 }
 0x49a   :  { %v5826_v27 = vsel %vm5825_vm5, %v5824_v10, %v5819_v34 }
 0x49b   :  { %v5833_v22 = vsel %vm5832_vm6, %v5831_v46, %v5826_v27 }
 0x4b9   :  { %v5720_v31 = vpop.xlane.xlu0 %5719 }
 0x4ba   :  { %v5845_v62 = vrot.slane %v5720_v31, %v5844_v61 }
 0x4c5   :  { %v5717_v56 = vpop.xlane.xlu1 %5716 }
 0x4c6   :  { %v5838_v0 = vrot.slane %v5717_v56, %v5837_v17 }
 0x4c8   :  { %v5840_v52 = vsel %vm5839_vm7, %v5838_v0, %v5833_v22 }
 0x4c9   :  { %v5847_v21 = vsel %vm5846_vm8, %v5845_v62, %v5840_v52 }
 0x4ca   :  { %5849 = vst [vmem:[#allocation2] sm:$0x1] %v5847_v21 }
 0x4cb   :  { %6897 = shalt.err (!%p6894_p4)
}
 0x4cc   :  { %5859 = dma.vmem_to_hbm [thread:$0]  %s5857_s8, 16, %s9594_s15, [#allocation3]  }
 0x4cd   :  { %6906 = dma.done.wait [#allocation3], 16  }
 0x4ce   :  { %6907 = vsyncadd [#allocation3], 4294967280 }
 0x4cf   :  { %5863 = vsyncpa [#allocation3], 1 }

</bundles_post_ra>
